<compile_context>
chip_gen: v7x
topology: tpu7x:2x2x1
jax: 0.10.0
libtpu: 0.0.40
codegen_flags: <defaults>
</compile_context>

<pallas_src>
import functools

import jax
import jax.numpy as jnp
from jax import lax
from jax.experimental import pallas as pl
from jax.experimental.pallas import tpu as pltpu


def _aspp_fused_kernel(x_ref, w_ref, b_ref, o_ref, *,
                       dilations, D, Wp, Cin, C4, th):
    """Fused 4-branch dilated conv3x3 + BN + ReLU for one (sample, row-block).

    x_ref: (1, L, Cin)          flattened spatially padded input (whole sample)
    w_ref: (B, 9*Cin, C4)       im2col conv weights per branch (BN scale folded)
    b_ref: (1, B*C4)            folded BN shift, branches concatenated
    o_ref: (1, th*Wp, B*C4)     "wide" output rows for this row block
    """
    r = pl.program_id(1)
    M = th * Wp                               # rows in this output tile
    base = r * M
    if M % 8 == 0:                            # static hint: sublane-aligned base
        base = pl.multiple_of(base, 8)

    parts = []
    for b, d in enumerate(dilations):
        taps = []
        for ky in range(3):
            for kx in range(3):
                # flat offset of tap (ky,kx) for dilation d inside the padded,
                # flattened image (center tap sits at offset D*Wp + D)
                off = (D + (ky - 1) * d) * Wp + (D + (kx - 1) * d)
                taps.append(x_ref[0, pl.ds(base + off, M), :])    # (M, Cin)
        # im2col: fold the 9 taps into the contraction dim -> one matmul/branch
        patches = jnp.concatenate(taps, axis=-1)                  # (M, 9*Cin)
        parts.append(jnp.dot(patches, w_ref[b],
                             preferred_element_type=jnp.float32))  # (M, C4)

    acc = jnp.concatenate(parts, axis=-1)     # (M, B*C4)  fused channel concat
    acc = acc + b_ref[0]                      # folded BatchNorm shift
    acc = jnp.maximum(acc, 0.0)               # ReLU
    o_ref[0] = acc.astype(o_ref.dtype)        # single lane-dense block store


def aspp_forward(x_nchw, params, dilations, eps=1e-5):
    """Full ASPP forward. x_nchw: (N, Cin, H, W) -> (N, outc, H, W)."""
    N, Cin, H, W = x_nchw.shape
    B = len(dilations)
    C4 = params[0]["w"].shape[-1]
    D = int(max(dilations))
    Wp = W + 2 * D

    # --- fold eval-mode BatchNorm into conv weights + per-channel shift ------
    w_list, b_list = [], []
    for p in params:
        scale = p["gamma"] / jnp.sqrt(p["var"] + eps)             # (C4,)
        shift = p["beta"] - p["mean"] * scale                     # (C4,)
        w_fold = p["w"] * scale[None, None, None, :]              # (3,3,Cin,C4)
        w_list.append(w_fold.reshape(9 * Cin, C4))                # im2col layout
        b_list.append(shift)
    w_im2col = jnp.stack(w_list, axis=0).astype(jnp.float32)      # (B,9*Cin,C4)
    shift_cat = jnp.concatenate(b_list).reshape(1, B * C4).astype(jnp.float32)

    # --- pad ONCE by max(dilation), flatten spatial dims (free in HBM) -------
    x_nhwc = jnp.transpose(x_nchw, (0, 2, 3, 1))                  # (N,H,W,Cin)
    # one extra zero row at the bottom keeps every tap's flat slice in range
    xpad = jnp.pad(x_nhwc, ((0, 0), (D, D + 1), (D, D), (0, 0)))
    L = (H + 2 * D + 1) * Wp
    x_flat = xpad.reshape(N, L, Cin)

    # --- spatial row tiling ---------------------------------------------------
    th = 8 if (H % 8 == 0) else H          # th*Wp (block sublane dim) % 8 == 0
    R = H // th
    M = th * Wp

    kernel = functools.partial(
        _aspp_fused_kernel,
        dilations=tuple(int(d) for d in dilations),
        D=D, Wp=Wp, Cin=Cin, C4=C4, th=th)

    out_wide = pl.pallas_call(
        kernel,
        out_shape=jax.ShapeDtypeStruct((N, H * Wp, B * C4), x_nchw.dtype),
        grid_spec=pltpu.PrefetchScalarGridSpec(
            num_scalar_prefetch=0,
            grid=(N, R),
            in_specs=[
                # whole padded sample; constant over r -> fetched once per n
                pl.BlockSpec((1, L, Cin), lambda n, r: (n, 0, 0)),
                # weights / bias: constant index maps -> resident in VMEM
                pl.BlockSpec((B, 9 * Cin, C4), lambda n, r: (0, 0, 0)),
                pl.BlockSpec((1, B * C4), lambda n, r: (0, 0)),
            ],
            out_specs=pl.BlockSpec((1, M, B * C4), lambda n, r: (n, r, 0)),
        ),
        compiler_params=pltpu.CompilerParams(
            dimension_semantics=("parallel", "parallel"),
            vmem_limit_bytes=48 * 1024 * 1024,
        ),
    )(x_flat, w_im2col, shift_cat)

    # (N, H*Wp, B*C4) -> (N, H, Wp, B*C4) -> drop padded columns -> NCHW.
    # The column slice fuses with the (unavoidable) NHWC->NCHW transpose.
    out = out_wide.reshape(N, H, Wp, B * C4)[:, :, :W, :]
    return jnp.transpose(out, (0, 3, 1, 2))


def aspp_reference(x_nchw, params, dilations, eps=1e-5):
    """Pure-JAX (lax.conv) reference for correctness checking."""
    outs = []
    for p, d in zip(params, dilations):
        w_oihw = jnp.transpose(p["w"], (3, 2, 0, 1))  # (C4, Cin, 3, 3)
        y = lax.conv_general_dilated(
            x_nchw, w_oihw,
            window_strides=(1, 1),
            padding=((d, d), (d, d)),
            rhs_dilation=(d, d),
            dimension_numbers=("NCHW", "OIHW", "NCHW"),
        )
        scale = p["gamma"] / jnp.sqrt(p["var"] + eps)
        shift = p["beta"] - p["mean"] * scale
        y = y * scale[None, :, None, None] + shift[None, :, None, None]
        outs.append(jnp.maximum(y, 0.0))
    return jnp.concatenate(outs, axis=1)


def make_params(key, inc, outc, n_branches=4):
    """Deterministic synthetic parameters (conv weight + BN stats per branch)."""
    c4 = outc // 4
    params = []
    keys = jax.random.split(key, n_branches)
    for k in keys:
        w = jax.random.normal(k, (3, 3, inc, c4), jnp.float32) * 0.1
        gamma = 1.0 + 0.1 * jnp.arange(c4, dtype=jnp.float32)
        beta = 0.01 * jnp.arange(c4, dtype=jnp.float32) - 0.02
        mean = 0.05 * jnp.arange(c4, dtype=jnp.float32)
        var = 1.0 + 0.02 * jnp.arange(c4, dtype=jnp.float32)
        params.append({"w": w, "gamma": gamma, "beta": beta,
                       "mean": mean, "var": var})
    return params


if __name__ == "__main__":
    N, inc, H, W = 2, 4, 16, 16
    outc = 16
    dilations = [1, 3, 5, 7]

    key = jax.random.PRNGKey(0)
    kx, kp = jax.random.split(key)
    x = jax.random.normal(kx, (N, inc, H, W), jnp.float32)
    params = make_params(kp, inc, outc)

    out = aspp_forward(x, params, dilations)
    out = jax.block_until_ready(out)

    ref = aspp_reference(x, params, dilations)
    assert out.shape == (N, outc, H, W), out.shape
    err = float(jnp.max(jnp.abs(out - ref)))
    assert jnp.allclose(out, ref, atol=1e-4, rtol=1e-4), err

    print("KERNEL_OK")
</pallas_src>

<mosaic_0001>
module attributes {stable_mosaic.version = 11 : i64} {
  func.func @_aspp_fused_kernel(%arg0: i32, %arg1: i32, %arg2: memref<1x930x4xf32, #tpu.memory_space<vmem>>, %arg3: memref<4x36x4xf32, #tpu.memory_space<vmem>>, %arg4: memref<1x16xf32, #tpu.memory_space<vmem>>, %arg5: memref<1x240x16xf32, #tpu.memory_space<vmem>>) attributes {dimension_semantics = [#tpu.dimension_semantics<parallel>, #tpu.dimension_semantics<parallel>], iteration_bounds = array<i64: 2, 2>, scalar_prefetch = 0 : i64, scratch_operands = 0 : i64, tpu.core_type = #tpu.core_type<tc>, window_params = [{transform_indices = @transform_0, window_bounds = array<i64: 1, 930, 4>}, {pipeline_mode = #tpu.pipeline_mode<synchronous>, transform_indices = @transform_1, window_bounds = array<i64: 4, 36, 4>}, {pipeline_mode = #tpu.pipeline_mode<synchronous>, transform_indices = @transform_2, window_bounds = array<i64: 1, 16>}, {transform_indices = @transform_3, window_bounds = array<i64: 1, 240, 16>}]} {
    %c240_i32 = arith.constant 240 : i32
    %0 = arith.muli %arg1, %c240_i32 : i32
    %1 = tpu.assume_multiple %0, 8 : i32
    %c186_i32 = arith.constant 186 : i32
    %2 = arith.addi %1, %c186_i32 : i32
    %c0 = arith.constant 0 : index
    %3 = arith.index_cast %2 : i32 to index
    %c0_0 = arith.constant 0 : index
    %4 = vector.load %arg2[%c0, %3, %c0_0] : memref<1x930x4xf32, #tpu.memory_space<vmem>>, vector<1x240x4xf32>
    %5 = vector.shape_cast %4 : vector<1x240x4xf32> to vector<240x4xf32>
    %c187_i32 = arith.constant 187 : i32
    %6 = arith.addi %1, %c187_i32 : i32
    %c0_1 = arith.constant 0 : index
    %7 = arith.index_cast %6 : i32 to index
    %c0_2 = arith.constant 0 : index
    %8 = vector.load %arg2[%c0_1, %7, %c0_2] : memref<1x930x4xf32, #tpu.memory_space<vmem>>, vector<1x240x4xf32>
    %9 = vector.shape_cast %8 : vector<1x240x4xf32> to vector<240x4xf32>
    %c188_i32 = arith.constant 188 : i32
    %10 = arith.addi %1, %c188_i32 : i32
    %c0_3 = arith.constant 0 : index
    %11 = arith.index_cast %10 : i32 to index
    %c0_4 = arith.constant 0 : index
    %12 = vector.load %arg2[%c0_3, %11, %c0_4] : memref<1x930x4xf32, #tpu.memory_space<vmem>>, vector<1x240x4xf32>
    %13 = vector.shape_cast %12 : vector<1x240x4xf32> to vector<240x4xf32>
    %c216_i32 = arith.constant 216 : i32
    %14 = arith.addi %1, %c216_i32 : i32
    %c0_5 = arith.constant 0 : index
    %15 = arith.index_cast %14 : i32 to index
    %c0_6 = arith.constant 0 : index
    %16 = vector.load %arg2[%c0_5, %15, %c0_6] : memref<1x930x4xf32, #tpu.memory_space<vmem>>, vector<1x240x4xf32>
    %17 = vector.shape_cast %16 : vector<1x240x4xf32> to vector<240x4xf32>
    %c217_i32 = arith.constant 217 : i32
    %18 = arith.addi %1, %c217_i32 : i32
    %c0_7 = arith.constant 0 : index
    %19 = arith.index_cast %18 : i32 to index
    %c0_8 = arith.constant 0 : index
    %20 = vector.load %arg2[%c0_7, %19, %c0_8] : memref<1x930x4xf32, #tpu.memory_space<vmem>>, vector<1x240x4xf32>
    %21 = vector.shape_cast %20 : vector<1x240x4xf32> to vector<240x4xf32>
    %c218_i32 = arith.constant 218 : i32
    %22 = arith.addi %1, %c218_i32 : i32
    %c0_9 = arith.constant 0 : index
    %23 = arith.index_cast %22 : i32 to index
    %c0_10 = arith.constant 0 : index
    %24 = vector.load %arg2[%c0_9, %23, %c0_10] : memref<1x930x4xf32, #tpu.memory_space<vmem>>, vector<1x240x4xf32>
    %25 = vector.shape_cast %24 : vector<1x240x4xf32> to vector<240x4xf32>
    %c246_i32 = arith.constant 246 : i32
    %26 = arith.addi %1, %c246_i32 : i32
    %c0_11 = arith.constant 0 : index
    %27 = arith.index_cast %26 : i32 to index
    %c0_12 = arith.constant 0 : index
    %28 = vector.load %arg2[%c0_11, %27, %c0_12] : memref<1x930x4xf32, #tpu.memory_space<vmem>>, vector<1x240x4xf32>
    %29 = vector.shape_cast %28 : vector<1x240x4xf32> to vector<240x4xf32>
    %c247_i32 = arith.constant 247 : i32
    %30 = arith.addi %1, %c247_i32 : i32
    %c0_13 = arith.constant 0 : index
    %31 = arith.index_cast %30 : i32 to index
    %c0_14 = arith.constant 0 : index
    %32 = vector.load %arg2[%c0_13, %31, %c0_14] : memref<1x930x4xf32, #tpu.memory_space<vmem>>, vector<1x240x4xf32>
    %33 = vector.shape_cast %32 : vector<1x240x4xf32> to vector<240x4xf32>
    %c248_i32 = arith.constant 248 : i32
    %34 = arith.addi %1, %c248_i32 : i32
    %c0_15 = arith.constant 0 : index
    %35 = arith.index_cast %34 : i32 to index
    %c0_16 = arith.constant 0 : index
    %36 = vector.load %arg2[%c0_15, %35, %c0_16] : memref<1x930x4xf32, #tpu.memory_space<vmem>>, vector<1x240x4xf32>
    %37 = vector.shape_cast %36 : vector<1x240x4xf32> to vector<240x4xf32>
    %38 = tpu.concatenate %5, %9, %13, %17, %21, %25, %29, %33, %37 in 1 : vector<240x4xf32>, vector<240x4xf32>, vector<240x4xf32>, vector<240x4xf32>, vector<240x4xf32>, vector<240x4xf32>, vector<240x4xf32>, vector<240x4xf32>, vector<240x4xf32> -> vector<240x36xf32>
    %c0_17 = arith.constant 0 : index
    %c0_18 = arith.constant 0 : index
    %c0_19 = arith.constant 0 : index
    %39 = vector.load %arg3[%c0_17, %c0_18, %c0_19] : memref<4x36x4xf32, #tpu.memory_space<vmem>>, vector<1x36x4xf32>
    %40 = vector.shape_cast %39 : vector<1x36x4xf32> to vector<36x4xf32>
    %cst = arith.constant dense<0.000000e+00> : vector<240x4xf32>
    %41 = tpu.matmul %38, %40, %cst {dimension_numbers = #tpu.dot_dimension_numbers<[1], [0], [0], [1], [0, 0, 1, 1], [], []>} : vector<240x36xf32>, vector<36x4xf32>, vector<240x4xf32> -> vector<240x4xf32>
    %c124_i32 = arith.constant 124 : i32
    %42 = arith.addi %1, %c124_i32 : i32
    %c0_20 = arith.constant 0 : index
    %43 = arith.index_cast %42 : i32 to index
    %c0_21 = arith.constant 0 : index
    %44 = vector.load %arg2[%c0_20, %43, %c0_21] : memref<1x930x4xf32, #tpu.memory_space<vmem>>, vector<1x240x4xf32>
    %45 = vector.shape_cast %44 : vector<1x240x4xf32> to vector<240x4xf32>
    %c127_i32 = arith.constant 127 : i32
    %46 = arith.addi %1, %c127_i32 : i32
    %c0_22 = arith.constant 0 : index
    %47 = arith.index_cast %46 : i32 to index
    %c0_23 = arith.constant 0 : index
    %48 = vector.load %arg2[%c0_22, %47, %c0_23] : memref<1x930x4xf32, #tpu.memory_space<vmem>>, vector<1x240x4xf32>
    %49 = vector.shape_cast %48 : vector<1x240x4xf32> to vector<240x4xf32>
    %c130_i32 = arith.constant 130 : i32
    %50 = arith.addi %1, %c130_i32 : i32
    %c0_24 = arith.constant 0 : index
    %51 = arith.index_cast %50 : i32 to index
    %c0_25 = arith.constant 0 : index
    %52 = vector.load %arg2[%c0_24, %51, %c0_25] : memref<1x930x4xf32, #tpu.memory_space<vmem>>, vector<1x240x4xf32>
    %53 = vector.shape_cast %52 : vector<1x240x4xf32> to vector<240x4xf32>
    %c214_i32 = arith.constant 214 : i32
    %54 = arith.addi %1, %c214_i32 : i32
    %c0_26 = arith.constant 0 : index
    %55 = arith.index_cast %54 : i32 to index
    %c0_27 = arith.constant 0 : index
    %56 = vector.load %arg2[%c0_26, %55, %c0_27] : memref<1x930x4xf32, #tpu.memory_space<vmem>>, vector<1x240x4xf32>
    %57 = vector.shape_cast %56 : vector<1x240x4xf32> to vector<240x4xf32>
    %c217_i32_28 = arith.constant 217 : i32
    %58 = arith.addi %1, %c217_i32_28 : i32
    %c0_29 = arith.constant 0 : index
    %59 = arith.index_cast %58 : i32 to index
    %c0_30 = arith.constant 0 : index
    %60 = vector.load %arg2[%c0_29, %59, %c0_30] : memref<1x930x4xf32, #tpu.memory_space<vmem>>, vector<1x240x4xf32>
    %61 = vector.shape_cast %60 : vector<1x240x4xf32> to vector<240x4xf32>
    %c220_i32 = arith.constant 220 : i32
    %62 = arith.addi %1, %c220_i32 : i32
    %c0_31 = arith.constant 0 : index
    %63 = arith.index_cast %62 : i32 to index
    %c0_32 = arith.constant 0 : index
    %64 = vector.load %arg2[%c0_31, %63, %c0_32] : memref<1x930x4xf32, #tpu.memory_space<vmem>>, vector<1x240x4xf32>
    %65 = vector.shape_cast %64 : vector<1x240x4xf32> to vector<240x4xf32>
    %c304_i32 = arith.constant 304 : i32
    %66 = arith.addi %1, %c304_i32 : i32
    %c0_33 = arith.constant 0 : index
    %67 = arith.index_cast %66 : i32 to index
    %c0_34 = arith.constant 0 : index
    %68 = vector.load %arg2[%c0_33, %67, %c0_34] : memref<1x930x4xf32, #tpu.memory_space<vmem>>, vector<1x240x4xf32>
    %69 = vector.shape_cast %68 : vector<1x240x4xf32> to vector<240x4xf32>
    %c307_i32 = arith.constant 307 : i32
    %70 = arith.addi %1, %c307_i32 : i32
    %c0_35 = arith.constant 0 : index
    %71 = arith.index_cast %70 : i32 to index
    %c0_36 = arith.constant 0 : index
    %72 = vector.load %arg2[%c0_35, %71, %c0_36] : memref<1x930x4xf32, #tpu.memory_space<vmem>>, vector<1x240x4xf32>
    %73 = vector.shape_cast %72 : vector<1x240x4xf32> to vector<240x4xf32>
    %c310_i32 = arith.constant 310 : i32
    %74 = arith.addi %1, %c310_i32 : i32
    %c0_37 = arith.constant 0 : index
    %75 = arith.index_cast %74 : i32 to index
    %c0_38 = arith.constant 0 : index
    %76 = vector.load %arg2[%c0_37, %75, %c0_38] : memref<1x930x4xf32, #tpu.memory_space<vmem>>, vector<1x240x4xf32>
    %77 = vector.shape_cast %76 : vector<1x240x4xf32> to vector<240x4xf32>
    %78 = tpu.concatenate %45, %49, %53, %57, %61, %65, %69, %73, %77 in 1 : vector<240x4xf32>, vector<240x4xf32>, vector<240x4xf32>, vector<240x4xf32>, vector<240x4xf32>, vector<240x4xf32>, vector<240x4xf32>, vector<240x4xf32>, vector<240x4xf32> -> vector<240x36xf32>
    %c1 = arith.constant 1 : index
    %c0_39 = arith.constant 0 : index
    %c0_40 = arith.constant 0 : index
    %79 = vector.load %arg3[%c1, %c0_39, %c0_40] : memref<4x36x4xf32, #tpu.memory_space<vmem>>, vector<1x36x4xf32>
    %80 = vector.shape_cast %79 : vector<1x36x4xf32> to vector<36x4xf32>
    %cst_41 = arith.constant dense<0.000000e+00> : vector<240x4xf32>
    %81 = tpu.matmul %78, %80, %cst_41 {dimension_numbers = #tpu.dot_dimension_numbers<[1], [0], [0], [1], [0, 0, 1, 1], [], []>} : vector<240x36xf32>, vector<36x4xf32>, vector<240x4xf32> -> vector<240x4xf32>
    %c62_i32 = arith.constant 62 : i32
    %82 = arith.addi %1, %c62_i32 : i32
    %c0_42 = arith.constant 0 : index
    %83 = arith.index_cast %82 : i32 to index
    %c0_43 = arith.constant 0 : index
    %84 = vector.load %arg2[%c0_42, %83, %c0_43] : memref<1x930x4xf32, #tpu.memory_space<vmem>>, vector<1x240x4xf32>
    %85 = vector.shape_cast %84 : vector<1x240x4xf32> to vector<240x4xf32>
    %c67_i32 = arith.constant 67 : i32
    %86 = arith.addi %1, %c67_i32 : i32
    %c0_44 = arith.constant 0 : index
    %87 = arith.index_cast %86 : i32 to index
    %c0_45 = arith.constant 0 : index
    %88 = vector.load %arg2[%c0_44, %87, %c0_45] : memref<1x930x4xf32, #tpu.memory_space<vmem>>, vector<1x240x4xf32>
    %89 = vector.shape_cast %88 : vector<1x240x4xf32> to vector<240x4xf32>
    %c72_i32 = arith.constant 72 : i32
    %90 = arith.addi %1, %c72_i32 : i32
    %c0_46 = arith.constant 0 : index
    %91 = arith.index_cast %90 : i32 to index
    %c0_47 = arith.constant 0 : index
    %92 = vector.load %arg2[%c0_46, %91, %c0_47] : memref<1x930x4xf32, #tpu.memory_space<vmem>>, vector<1x240x4xf32>
    %93 = vector.shape_cast %92 : vector<1x240x4xf32> to vector<240x4xf32>
    %c212_i32 = arith.constant 212 : i32
    %94 = arith.addi %1, %c212_i32 : i32
    %c0_48 = arith.constant 0 : index
    %95 = arith.index_cast %94 : i32 to index
    %c0_49 = arith.constant 0 : index
    %96 = vector.load %arg2[%c0_48, %95, %c0_49] : memref<1x930x4xf32, #tpu.memory_space<vmem>>, vector<1x240x4xf32>
    %97 = vector.shape_cast %96 : vector<1x240x4xf32> to vector<240x4xf32>
    %c217_i32_50 = arith.constant 217 : i32
    %98 = arith.addi %1, %c217_i32_50 : i32
    %c0_51 = arith.constant 0 : index
    %99 = arith.index_cast %98 : i32 to index
    %c0_52 = arith.constant 0 : index
    %100 = vector.load %arg2[%c0_51, %99, %c0_52] : memref<1x930x4xf32, #tpu.memory_space<vmem>>, vector<1x240x4xf32>
    %101 = vector.shape_cast %100 : vector<1x240x4xf32> to vector<240x4xf32>
    %c222_i32 = arith.constant 222 : i32
    %102 = arith.addi %1, %c222_i32 : i32
    %c0_53 = arith.constant 0 : index
    %103 = arith.index_cast %102 : i32 to index
    %c0_54 = arith.constant 0 : index
    %104 = vector.load %arg2[%c0_53, %103, %c0_54] : memref<1x930x4xf32, #tpu.memory_space<vmem>>, vector<1x240x4xf32>
    %105 = vector.shape_cast %104 : vector<1x240x4xf32> to vector<240x4xf32>
    %c362_i32 = arith.constant 362 : i32
    %106 = arith.addi %1, %c362_i32 : i32
    %c0_55 = arith.constant 0 : index
    %107 = arith.index_cast %106 : i32 to index
    %c0_56 = arith.constant 0 : index
    %108 = vector.load %arg2[%c0_55, %107, %c0_56] : memref<1x930x4xf32, #tpu.memory_space<vmem>>, vector<1x240x4xf32>
    %109 = vector.shape_cast %108 : vector<1x240x4xf32> to vector<240x4xf32>
    %c367_i32 = arith.constant 367 : i32
    %110 = arith.addi %1, %c367_i32 : i32
    %c0_57 = arith.constant 0 : index
    %111 = arith.index_cast %110 : i32 to index
    %c0_58 = arith.constant 0 : index
    %112 = vector.load %arg2[%c0_57, %111, %c0_58] : memref<1x930x4xf32, #tpu.memory_space<vmem>>, vector<1x240x4xf32>
    %113 = vector.shape_cast %112 : vector<1x240x4xf32> to vector<240x4xf32>
    %c372_i32 = arith.constant 372 : i32
    %114 = arith.addi %1, %c372_i32 : i32
    %c0_59 = arith.constant 0 : index
    %115 = arith.index_cast %114 : i32 to index
    %c0_60 = arith.constant 0 : index
    %116 = vector.load %arg2[%c0_59, %115, %c0_60] : memref<1x930x4xf32, #tpu.memory_space<vmem>>, vector<1x240x4xf32>
    %117 = vector.shape_cast %116 : vector<1x240x4xf32> to vector<240x4xf32>
    %118 = tpu.concatenate %85, %89, %93, %97, %101, %105, %109, %113, %117 in 1 : vector<240x4xf32>, vector<240x4xf32>, vector<240x4xf32>, vector<240x4xf32>, vector<240x4xf32>, vector<240x4xf32>, vector<240x4xf32>, vector<240x4xf32>, vector<240x4xf32> -> vector<240x36xf32>
    %c2 = arith.constant 2 : index
    %c0_61 = arith.constant 0 : index
    %c0_62 = arith.constant 0 : index
    %119 = vector.load %arg3[%c2, %c0_61, %c0_62] : memref<4x36x4xf32, #tpu.memory_space<vmem>>, vector<1x36x4xf32>
    %120 = vector.shape_cast %119 : vector<1x36x4xf32> to vector<36x4xf32>
    %cst_63 = arith.constant dense<0.000000e+00> : vector<240x4xf32>
    %121 = tpu.matmul %118, %120, %cst_63 {dimension_numbers = #tpu.dot_dimension_numbers<[1], [0], [0], [1], [0, 0, 1, 1], [], []>} : vector<240x36xf32>, vector<36x4xf32>, vector<240x4xf32> -> vector<240x4xf32>
    %c0_i32 = arith.constant 0 : i32
    %122 = arith.addi %1, %c0_i32 : i32
    %c0_64 = arith.constant 0 : index
    %123 = arith.index_cast %122 : i32 to index
    %c0_65 = arith.constant 0 : index
    %124 = vector.load %arg2[%c0_64, %123, %c0_65] : memref<1x930x4xf32, #tpu.memory_space<vmem>>, vector<1x240x4xf32>
    %125 = vector.shape_cast %124 : vector<1x240x4xf32> to vector<240x4xf32>
    %c7_i32 = arith.constant 7 : i32
    %126 = arith.addi %1, %c7_i32 : i32
    %c0_66 = arith.constant 0 : index
    %127 = arith.index_cast %126 : i32 to index
    %c0_67 = arith.constant 0 : index
    %128 = vector.load %arg2[%c0_66, %127, %c0_67] : memref<1x930x4xf32, #tpu.memory_space<vmem>>, vector<1x240x4xf32>
    %129 = vector.shape_cast %128 : vector<1x240x4xf32> to vector<240x4xf32>
    %c14_i32 = arith.constant 14 : i32
    %130 = arith.addi %1, %c14_i32 : i32
    %c0_68 = arith.constant 0 : index
    %131 = arith.index_cast %130 : i32 to index
    %c0_69 = arith.constant 0 : index
    %132 = vector.load %arg2[%c0_68, %131, %c0_69] : memref<1x930x4xf32, #tpu.memory_space<vmem>>, vector<1x240x4xf32>
    %133 = vector.shape_cast %132 : vector<1x240x4xf32> to vector<240x4xf32>
    %c210_i32 = arith.constant 210 : i32
    %134 = arith.addi %1, %c210_i32 : i32
    %c0_70 = arith.constant 0 : index
    %135 = arith.index_cast %134 : i32 to index
    %c0_71 = arith.constant 0 : index
    %136 = vector.load %arg2[%c0_70, %135, %c0_71] : memref<1x930x4xf32, #tpu.memory_space<vmem>>, vector<1x240x4xf32>
    %137 = vector.shape_cast %136 : vector<1x240x4xf32> to vector<240x4xf32>
    %c217_i32_72 = arith.constant 217 : i32
    %138 = arith.addi %1, %c217_i32_72 : i32
    %c0_73 = arith.constant 0 : index
    %139 = arith.index_cast %138 : i32 to index
    %c0_74 = arith.constant 0 : index
    %140 = vector.load %arg2[%c0_73, %139, %c0_74] : memref<1x930x4xf32, #tpu.memory_space<vmem>>, vector<1x240x4xf32>
    %141 = vector.shape_cast %140 : vector<1x240x4xf32> to vector<240x4xf32>
    %c224_i32 = arith.constant 224 : i32
    %142 = arith.addi %1, %c224_i32 : i32
    %c0_75 = arith.constant 0 : index
    %143 = arith.index_cast %142 : i32 to index
    %c0_76 = arith.constant 0 : index
    %144 = vector.load %arg2[%c0_75, %143, %c0_76] : memref<1x930x4xf32, #tpu.memory_space<vmem>>, vector<1x240x4xf32>
    %145 = vector.shape_cast %144 : vector<1x240x4xf32> to vector<240x4xf32>
    %c420_i32 = arith.constant 420 : i32
    %146 = arith.addi %1, %c420_i32 : i32
    %c0_77 = arith.constant 0 : index
    %147 = arith.index_cast %146 : i32 to index
    %c0_78 = arith.constant 0 : index
    %148 = vector.load %arg2[%c0_77, %147, %c0_78] : memref<1x930x4xf32, #tpu.memory_space<vmem>>, vector<1x240x4xf32>
    %149 = vector.shape_cast %148 : vector<1x240x4xf32> to vector<240x4xf32>
    %c427_i32 = arith.constant 427 : i32
    %150 = arith.addi %1, %c427_i32 : i32
    %c0_79 = arith.constant 0 : index
    %151 = arith.index_cast %150 : i32 to index
    %c0_80 = arith.constant 0 : index
    %152 = vector.load %arg2[%c0_79, %151, %c0_80] : memref<1x930x4xf32, #tpu.memory_space<vmem>>, vector<1x240x4xf32>
    %153 = vector.shape_cast %152 : vector<1x240x4xf32> to vector<240x4xf32>
    %c434_i32 = arith.constant 434 : i32
    %154 = arith.addi %1, %c434_i32 : i32
    %c0_81 = arith.constant 0 : index
    %155 = arith.index_cast %154 : i32 to index
    %c0_82 = arith.constant 0 : index
    %156 = vector.load %arg2[%c0_81, %155, %c0_82] : memref<1x930x4xf32, #tpu.memory_space<vmem>>, vector<1x240x4xf32>
    %157 = vector.shape_cast %156 : vector<1x240x4xf32> to vector<240x4xf32>
    %158 = tpu.concatenate %125, %129, %133, %137, %141, %145, %149, %153, %157 in 1 : vector<240x4xf32>, vector<240x4xf32>, vector<240x4xf32>, vector<240x4xf32>, vector<240x4xf32>, vector<240x4xf32>, vector<240x4xf32>, vector<240x4xf32>, vector<240x4xf32> -> vector<240x36xf32>
    %c3 = arith.constant 3 : index
    %c0_83 = arith.constant 0 : index
    %c0_84 = arith.constant 0 : index
    %159 = vector.load %arg3[%c3, %c0_83, %c0_84] : memref<4x36x4xf32, #tpu.memory_space<vmem>>, vector<1x36x4xf32>
    %160 = vector.shape_cast %159 : vector<1x36x4xf32> to vector<36x4xf32>
    %cst_85 = arith.constant dense<0.000000e+00> : vector<240x4xf32>
    %161 = tpu.matmul %158, %160, %cst_85 {dimension_numbers = #tpu.dot_dimension_numbers<[1], [0], [0], [1], [0, 0, 1, 1], [], []>} : vector<240x36xf32>, vector<36x4xf32>, vector<240x4xf32> -> vector<240x4xf32>
    %162 = tpu.concatenate %41, %81, %121, %161 in 1 : vector<240x4xf32>, vector<240x4xf32>, vector<240x4xf32>, vector<240x4xf32> -> vector<240x16xf32>
    %c0_86 = arith.constant 0 : index
    %c0_87 = arith.constant 0 : index
    %163 = vector.load %arg4[%c0_86, %c0_87] : memref<1x16xf32, #tpu.memory_space<vmem>>, vector<1x16xf32>
    %164 = vector.shape_cast %163 : vector<1x16xf32> to vector<16xf32>
    %165 = vector.shape_cast %164 : vector<16xf32> to vector<1x16xf32>
    %166 = vector.broadcast %165 : vector<1x16xf32> to vector<240x16xf32>
    %167 = arith.addf %162, %166 : vector<240x16xf32>
    %cst_88 = arith.constant 0.000000e+00 : f32
    %168 = vector.broadcast %cst_88 : f32 to vector<240x16xf32>
    %169 = arith.maximumf %167, %168 : vector<240x16xf32>
    %c0_89 = arith.constant 0 : index
    %c0_90 = arith.constant 0 : index
    %c0_91 = arith.constant 0 : index
    %170 = vector.load %arg5[%c0_89, %c0_90, %c0_91] : memref<1x240x16xf32, #tpu.memory_space<vmem>>, vector<1x240x16xf32>
    %171 = vector.shape_cast %170 : vector<1x240x16xf32> to vector<240x16xf32>
    %172 = vector.shape_cast %169 : vector<240x16xf32> to vector<1x240x16xf32>
    tpu.vector_store %arg5[%c0_89, %c0_90, %c0_91], %172 {strides = array<i32>} : memref<1x240x16xf32, #tpu.memory_space<vmem>>, vector<1x240x16xf32>,
    return
  }
  func.func @transform_0(%arg0: i32, %arg1: i32) -> (i32, i32, i32) {
    %c0_i32 = arith.constant 0 : i32
    %c0_i32_0 = arith.constant 0 : i32
    %c0_i32_1 = arith.constant 0 : i32
    return %arg0, %c0_i32, %c0_i32_0 : i32, i32, i32
  }
  func.func @transform_1(%arg0: i32, %arg1: i32) -> (i32, i32, i32) {
    %c0_i32 = arith.constant 0 : i32
    %c0_i32_0 = arith.constant 0 : i32
    %c0_i32_1 = arith.constant 0 : i32
    %c0_i32_2 = arith.constant 0 : i32
    return %c0_i32, %c0_i32_0, %c0_i32_1 : i32, i32, i32
  }
  func.func @transform_2(%arg0: i32, %arg1: i32) -> (i32, i32) {
    %c0_i32 = arith.constant 0 : i32
    %c0_i32_0 = arith.constant 0 : i32
    %c0_i32_1 = arith.constant 0 : i32
    return %c0_i32, %c0_i32_0 : i32, i32
  }
  func.func @transform_3(%arg0: i32, %arg1: i32) -> (i32, i32, i32) {
    %c0_i32 = arith.constant 0 : i32
    %c0_i32_0 = arith.constant 0 : i32
    return %arg0, %arg1, %c0_i32 : i32, i32, i32
  }
}

</mosaic_0001>

<bundles_post_ra>
// kernel: tpu_custom_call.1
= control target key start
LH: loop header
LB: loop body
LE: loop exit
PB: predicated region body
PF: predicated region fallthrough
CT: control target
= control target key end

     0   :  { %s9338_s12 = smov 0   ;;  %s9340_s13 = smov 0   ;;  %s15591_s0 = inlined_call_operand.vmem [shape: f32[2,930,4], index: 0, kind: input, shape index: {}]   ;;  %s15592_s1 = inlined_call_operand.vmem [shape: f32[4,36,4], index: 1, kind: input, shape index: {}]   ;;  %s15593_s2 = inlined_call_operand.vmem [shape: f32[1,16], index: 2, kind: input, shape index: {}]   ;;  %s15594_s3 = inlined_call_operand.vmem [shape: f32[2,480,16], index: 3, kind: output, shape index: {}]  }
   0x1   :  { %s9342_s14 = smov 0   ;;  %s9344_s15 = smov 0  }
   0x2   :  { %s9346_s16 = smov 0  }
   0x3 LB: > { %s22_s17 = sadd.s32 1, %s9300_s14  ;;  %s25_s18 = sadd.s32 1, %s9304_s15  ;;  %s9308_s16 = sphi %s9346_s16, %s13_s16   ;;  %s9304_s15 = sphi %s9344_s15, %s16891_s15   ;;  %s9300_s14 = sphi %s9342_s14, %s16890_s14   ;;  %s9296_s13 = sphi %s9340_s13, %s16889_s13   ;;  %s9292_s12 = sphi %s9338_s12, %s16888_s12  }
   0x4   : > { %p23_p0 = scmp.ge.s32.totalorder %s22_s17, 2  ;;  %p7688_p1 = scmp.ge.s32.totalorder %s9308_s16, 1 }
   0x5   : > { %p151_p2 = scmp.lt.s32.totalorder %s9308_s16, 5 }
   0x6   : > { %s16893_s17 = smov (%p23_p0, %s22_s17), 0  ;;  %s16895_s18 = smov (!%p23_p0, %s25_s18), %s9304_s15 }
   0x7   : > { %p152_p3 = pnand %p7688_p1, %p151_p2  ;;  %p27_p4 = scmp.ge.s32.totalorder %s16895_s18, 2 }
   0x9   : > { %s16897_s18 = smov (%p27_p4, %s16895_s18), 0  ;;  %155 = sbr.rel (%p152_p3) target bundleno = 2230 (0x8b6), region = 32 }
  0x10   : > { %p179_p5 = scmp.lt.s32.totalorder %s9296_s13, 1  ;;  %s194_s19 = smul.u32 240, %s9292_s12  ;;  %vm1787_vm0 = vcmask 1043456   ;;  %vm1443_vm1 = vcmask 31744   ;;  %vm1474_vm2 = vcmask 64512   ;;  %vm1505_vm3 = vcmask 97280  }
  0x11   : > { %s9310_s25 = smov 4   ;;  %s9311_s26 = smov 8   ;;  %vm1536_vm4 = vcmask 130048   ;;  %vm1567_vm5 = vcmask 162816   ;;  %vm1598_vm6 = vcmask 195584   ;;  %vm1629_vm7 = vcmask 228352  }
  0x12   : > { %s16899_s13 = smov (!%p179_p5, %s9296_s13), 1  ;;  %s9312_s27 = smov 12   ;;  %vm1660_vm8 = vcmask 261120   ;;  %vm1696_vm9 = vcmask 293888  }
  0x13   : > { %s9185_s20 = smul.u32 936, %s16899_s13  ;;  %s9313_s28 = smov 16  }
  0x14   : > { %s9314_s29 = smov 20   ;;  %s9315_s30 = smov 24  }
  0x15   : > { %s183_s23 = scalar_lea.vmem %s15591_s0, %s9185_s20  ;;  %s9316_s4 = smov 28  }
  0x16   : > { %s9377_s24 = scalar_lea.vmem %s183_s23, %s194_s19  ;;  %s9317_s22 = smov 32  }
  0x17   : > { %v7723_v0 = vld [vmem:[%s9377_s24 + $0xcb] sm:$0xff]  ;;  %v7721_v1 = vld [vmem:[%s9377_s24 + $0xbb] sm:$0xff]  ;;  %v7724_v2 = vld [vmem:[%s9377_s24 + $0xd3] sm:$0xff] }
  0x18   : > { %517 = vrot.lane.b32.xlu1 %v7723_v0, %s9310_s25  ;;  %513 = vrot.lane.b32.xlu0 %v7721_v1, %s9310_s25  ;;  %v7722_v3 = vld [vmem:[%s9377_s24 + $0xc3] sm:$0xff]  ;;  %v7725_v5 = vld [vmem:[%s9377_s24 + $0xdb] sm:$0xff] }
  0x19   : > { %v7726_v4 = vld [vmem:[%s9377_s24 + $0xe3] sm:$0xff]  ;;  %v7728_v6 = vld [vmem:[%s9377_s24 + $0xf3] sm:$0xff]  ;;  %v7727_v7 = vld [vmem:[%s9377_s24 + $0xeb] sm:$0xff] }
  0x1a   : > { %v7730_v8 = vld [vmem:[%s9377_s24 + $0x103] sm:$0xff]  ;;  %v7729_v9 = vld [vmem:[%s9377_s24 + $0xfb] sm:$0xff]  ;;  %v7732_v10 = vld [vmem:[%s9377_s24 + $0x113] sm:$0xff] }
  0x1b   : > { %v7731_v11 = vld [vmem:[%s9377_s24 + $0x10b] sm:$0xff]  ;;  %v7734_v12 = vld [vmem:[%s9377_s24 + $0x123] sm:$0xff]  ;;  %v7733_v13 = vld [vmem:[%s9377_s24 + $0x11b] sm:$0xff] }
  0x1c   : > { %519 = vrot.lane.b32.xlu1 %v7724_v2, %s9310_s25  ;;  %515 = vrot.lane.b32.xlu0 %v7722_v3, %s9310_s25  ;;  %v7736_v14 = vld [vmem:[%s9377_s24 + $0x133] sm:$0xff]  ;;  %v7735_v15 = vld [vmem:[%s9377_s24 + $0x12b] sm:$0xff] }
  0x1d   : > { %v7738_v16 = vld [vmem:[%s9377_s24 + $0x143] sm:$0xff]  ;;  %v7737_v17 = vld [vmem:[%s9377_s24 + $0x13b] sm:$0xff]  ;;  %v7740_v18 = vld [vmem:[%s9377_s24 + $0x153] sm:$0xff] }
  0x1e   : > { %v7739_v19 = vld [vmem:[%s9377_s24 + $0x14b] sm:$0xff]  ;;  %v7742_v20 = vld [vmem:[%s9377_s24 + $0x163] sm:$0xff]  ;;  %v7741_v21 = vld [vmem:[%s9377_s24 + $0x15b] sm:$0xff] }
  0x1f   : > { %v7744_v22 = vld [vmem:[%s9377_s24 + $0x173] sm:$0xff]  ;;  %v7743_v23 = vld [vmem:[%s9377_s24 + $0x16b] sm:$0xff]  ;;  %v7746_v24 = vld [vmem:[%s9377_s24 + $0x183] sm:$0xff] }
  0x20   : > { %523 = vrot.lane.b32.xlu1 %v7726_v4, %s9310_s25  ;;  %521 = vrot.lane.b32.xlu0 %v7725_v5, %s9310_s25  ;;  %v7745_v25 = vld [vmem:[%s9377_s24 + $0x17b] sm:$0xff]  ;;  %v7748_v26 = vld [vmem:[%s9377_s24 + $0x193] sm:$0xff] }
  0x21   : > { %v7747_v27 = vld [vmem:[%s9377_s24 + $0x18b] sm:$0xff]  ;;  %v7750_v28 = vld [vmem:[%s9377_s24 + $0x1a3] sm:$0xff]  ;;  %v7749_v29 = vld [vmem:[%s9377_s24 + $0x19b] sm:$0xff] }
  0x22   : > { %v7752_v30 = vld [vmem:[%s9377_s24 + $0xc4] sm:$0xff]  ;;  %v7751_v31 = vld [vmem:[%s9377_s24 + $0xbc] sm:$0xff]  ;;  %v7754_v32 = vld [vmem:[%s9377_s24 + $0xd4] sm:$0xff] }
  0x23   : > { %v7753_v33 = vld [vmem:[%s9377_s24 + $0xcc] sm:$0xff]  ;;  %v7756_v34 = vld [vmem:[%s9377_s24 + $0xe4] sm:$0xff]  ;;  %v7755_v35 = vld [vmem:[%s9377_s24 + $0xdc] sm:$0xff] }
  0x24   : > { %527 = vrot.lane.b32.xlu1 %v7728_v6, %s9310_s25  ;;  %525 = vrot.lane.b32.xlu0 %v7727_v7, %s9310_s25  ;;  %v7758_v36 = vld [vmem:[%s9377_s24 + $0xf4] sm:$0xff]  ;;  %v7757_v37 = vld [vmem:[%s9377_s24 + $0xec] sm:$0xff] }
  0x25   : > { %v7760_v38 = vld [vmem:[%s9377_s24 + $0x104] sm:$0xff]  ;;  %v7759_v39 = vld [vmem:[%s9377_s24 + $0xfc] sm:$0xff]  ;;  %v7762_v40 = vld [vmem:[%s9377_s24 + $0x114] sm:$0xff] }
  0x26   : > { %v7761_v41 = vld [vmem:[%s9377_s24 + $0x10c] sm:$0xff]  ;;  %v7764_v42 = vld [vmem:[%s9377_s24 + $0x124] sm:$0xff]  ;;  %v7763_v43 = vld [vmem:[%s9377_s24 + $0x11c] sm:$0xff] }
  0x27   : > { %v7766_v44 = vld [vmem:[%s9377_s24 + $0x134] sm:$0xff]  ;;  %v7765_v45 = vld [vmem:[%s9377_s24 + $0x12c] sm:$0xff]  ;;  %v7768_v46 = vld [vmem:[%s9377_s24 + $0x144] sm:$0xff] }
  0x28   : > { %531 = vrot.lane.b32.xlu1 %v7730_v8, %s9310_s25  ;;  %529 = vrot.lane.b32.xlu0 %v7729_v9, %s9310_s25  ;;  %v7767_v47 = vld [vmem:[%s9377_s24 + $0x13c] sm:$0xff]  ;;  %v7770_v48 = vld [vmem:[%s9377_s24 + $0x154] sm:$0xff] }
  0x29   : > { %v7769_v49 = vld [vmem:[%s9377_s24 + $0x14c] sm:$0xff]  ;;  %v7772_v50 = vld [vmem:[%s9377_s24 + $0x164] sm:$0xff]  ;;  %v7771_v51 = vld [vmem:[%s9377_s24 + $0x15c] sm:$0xff] }
  0x2a   : > { %v7774_v52 = vld [vmem:[%s9377_s24 + $0x174] sm:$0xff]  ;;  %v7773_v53 = vld [vmem:[%s9377_s24 + $0x16c] sm:$0xff]  ;;  %v7776_v54 = vld [vmem:[%s9377_s24 + $0x184] sm:$0xff] }
  0x2b   : > { %v7775_v55 = vld [vmem:[%s9377_s24 + $0x17c] sm:$0xff]  ;;  %v7778_v56 = vld [vmem:[%s9377_s24 + $0x194] sm:$0xff]  ;;  %v7777_v57 = vld [vmem:[%s9377_s24 + $0x18c] sm:$0xff] }
  0x2c   : > { %535 = vrot.lane.b32.xlu1 %v7732_v10, %s9310_s25  ;;  %533 = vrot.lane.b32.xlu0 %v7731_v11, %s9310_s25  ;;  %v7780_v58 = vld [vmem:[%s9377_s24 + $0x1a4] sm:$0xff]  ;;  %v7779_v59 = vld [vmem:[%s9377_s24 + $0x19c] sm:$0xff] }
  0x2d   : > { %v7782_v62 = vld [vmem:[%s9377_s24 + $0xe0] sm:$0xff]  ;;  %v7781_v63 = vld [vmem:[%s9377_s24 + $0xd8] sm:$0xff]  ;;  %v7784_v2 = vld [vmem:[%s9377_s24 + $0xf0] sm:$0xff] }
  0x2e   : > { %v7783_v3 = vld [vmem:[%s9377_s24 + $0xe8] sm:$0xff]  ;;  %v7786_v6 = vld [vmem:[%s9377_s24 + $0x100] sm:$0xff]  ;;  %v7785_v7 = vld [vmem:[%s9377_s24 + $0xf8] sm:$0xff] }
  0x2f   : > { %v7788_v10 = vld [vmem:[%s9377_s24 + $0x110] sm:$0xff]  ;;  %v7787_v11 = vld [vmem:[%s9377_s24 + $0x108] sm:$0xff] }
  0x30   : > { %539 = vrot.lane.b32.xlu1 %v7734_v12, %s9310_s25  ;;  %537 = vrot.lane.b32.xlu0 %v7733_v13, %s9310_s25 }
  0x34   : > { %543 = vrot.lane.b32.xlu1 %v7736_v14, %s9310_s25  ;;  %541 = vrot.lane.b32.xlu0 %v7735_v15, %s9310_s25  ;;  %v7790_v14 = vld [vmem:[%s9377_s24 + $0x120] sm:$0xff]  ;;  %v7789_v15 = vld [vmem:[%s9377_s24 + $0x118] sm:$0xff] }
  0x38   : > { %547 = vrot.lane.b32.xlu1 %v7738_v16, %s9310_s25  ;;  %545 = vrot.lane.b32.xlu0 %v7737_v17, %s9310_s25 }
  0x3c   : > { %551 = vrot.lane.b32.xlu1 %v7740_v18, %s9310_s25  ;;  %549 = vrot.lane.b32.xlu0 %v7739_v19, %s9310_s25  ;;  %v7792_v18 = vld [vmem:[%s9377_s24 + $0x130] sm:$0xff]  ;;  %v7791_v19 = vld [vmem:[%s9377_s24 + $0x128] sm:$0xff] }
  0x40   : > { %555 = vrot.lane.b32.xlu1 %v7742_v20, %s9310_s25  ;;  %553 = vrot.lane.b32.xlu0 %v7741_v21, %s9310_s25 }
  0x44   : > { %559 = vrot.lane.b32.xlu1 %v7744_v22, %s9310_s25  ;;  %557 = vrot.lane.b32.xlu0 %v7743_v23, %s9310_s25  ;;  %v7794_v22 = vld [vmem:[%s9377_s24 + $0x140] sm:$0xff]  ;;  %v7793_v23 = vld [vmem:[%s9377_s24 + $0x138] sm:$0xff] }
  0x48   : > { %563 = vrot.lane.b32.xlu1 %v7746_v24, %s9310_s25  ;;  %561 = vrot.lane.b32.xlu0 %v7745_v25, %s9310_s25 }
  0x4c   : > { %567 = vrot.lane.b32.xlu1 %v7748_v26, %s9310_s25  ;;  %565 = vrot.lane.b32.xlu0 %v7747_v27, %s9310_s25  ;;  %v7796_v26 = vld [vmem:[%s9377_s24 + $0x150] sm:$0xff]  ;;  %v7795_v27 = vld [vmem:[%s9377_s24 + $0x148] sm:$0xff] }
  0x50   : > { %571 = vrot.lane.b32.xlu1 %v7750_v28, %s9310_s25  ;;  %569 = vrot.lane.b32.xlu0 %v7749_v29, %s9310_s25 }
  0x54   : > { %635 = vrot.lane.b32.xlu1 %v7752_v30, %s9311_s26  ;;  %633 = vrot.lane.b32.xlu0 %v7751_v31, %s9311_s26  ;;  %v7798_v30 = vld [vmem:[%s9377_s24 + $0x160] sm:$0xff]  ;;  %v7797_v31 = vld [vmem:[%s9377_s24 + $0x158] sm:$0xff] }
  0x58   : > { %639 = vrot.lane.b32.xlu1 %v7754_v32, %s9311_s26  ;;  %637 = vrot.lane.b32.xlu0 %v7753_v33, %s9311_s26 }
  0x5c   : > { %643 = vrot.lane.b32.xlu1 %v7756_v34, %s9311_s26  ;;  %641 = vrot.lane.b32.xlu0 %v7755_v35, %s9311_s26  ;;  %v7800_v34 = vld [vmem:[%s9377_s24 + $0x170] sm:$0xff]  ;;  %v7799_v35 = vld [vmem:[%s9377_s24 + $0x168] sm:$0xff] }
  0x60   : > { %647 = vrot.lane.b32.xlu1 %v7758_v36, %s9311_s26  ;;  %645 = vrot.lane.b32.xlu0 %v7757_v37, %s9311_s26 }
  0x64   : > { %651 = vrot.lane.b32.xlu1 %v7760_v38, %s9311_s26  ;;  %649 = vrot.lane.b32.xlu0 %v7759_v39, %s9311_s26  ;;  %v7802_v38 = vld [vmem:[%s9377_s24 + $0x180] sm:$0xff]  ;;  %v7801_v39 = vld [vmem:[%s9377_s24 + $0x178] sm:$0xff] }
  0x68   : > { %655 = vrot.lane.b32.xlu1 %v7762_v40, %s9311_s26  ;;  %653 = vrot.lane.b32.xlu0 %v7761_v41, %s9311_s26 }
  0x6c   : > { %659 = vrot.lane.b32.xlu1 %v7764_v42, %s9311_s26  ;;  %657 = vrot.lane.b32.xlu0 %v7763_v43, %s9311_s26  ;;  %v7804_v42 = vld [vmem:[%s9377_s24 + $0x190] sm:$0xff]  ;;  %v7803_v43 = vld [vmem:[%s9377_s24 + $0x188] sm:$0xff] }
  0x70   : > { %663 = vrot.lane.b32.xlu1 %v7766_v44, %s9311_s26  ;;  %661 = vrot.lane.b32.xlu0 %v7765_v45, %s9311_s26 }
  0x74   : > { %667 = vrot.lane.b32.xlu1 %v7768_v46, %s9311_s26  ;;  %665 = vrot.lane.b32.xlu0 %v7767_v47, %s9311_s26  ;;  %v7806_v46 = vld [vmem:[%s9377_s24 + $0x1a0] sm:$0xff]  ;;  %v7805_v47 = vld [vmem:[%s9377_s24 + $0x198] sm:$0xff] }
  0x78   : > { %671 = vrot.lane.b32.xlu1 %v7770_v48, %s9311_s26  ;;  %669 = vrot.lane.b32.xlu0 %v7769_v49, %s9311_s26 }
  0x7c   : > { %675 = vrot.lane.b32.xlu1 %v7772_v50, %s9311_s26  ;;  %673 = vrot.lane.b32.xlu0 %v7771_v51, %s9311_s26  ;;  %v7808_v50 = vld [vmem:[%s9377_s24 + $0x1b0] sm:$0xff]  ;;  %v7807_v51 = vld [vmem:[%s9377_s24 + $0x1a8] sm:$0xff] }
  0x80   : > { %679 = vrot.lane.b32.xlu1 %v7774_v52, %s9311_s26  ;;  %677 = vrot.lane.b32.xlu0 %v7773_v53, %s9311_s26 }
  0x84   : > { %683 = vrot.lane.b32.xlu1 %v7776_v54, %s9311_s26  ;;  %681 = vrot.lane.b32.xlu0 %v7775_v55, %s9311_s26  ;;  %v7810_v54 = vld [vmem:[%s9377_s24 + $0x1c0] sm:$0xff]  ;;  %v7809_v55 = vld [vmem:[%s9377_s24 + $0x1b8] sm:$0xff] }
  0x88   : > { %687 = vrot.lane.b32.xlu1 %v7778_v56, %s9311_s26  ;;  %685 = vrot.lane.b32.xlu0 %v7777_v57, %s9311_s26 }
  0x8a   : > { %v9497_v60 = vpop.permute.xlu1 %517  ;;  %v9499_v61 = vpop.permute.xlu0 %513 }
  0x8c   : > { %691 = vrot.lane.b32.xlu1 %v7780_v58, %s9311_s26  ;;  %689 = vrot.lane.b32.xlu0 %v7779_v59, %s9311_s26  ;;  %v7812_v58 = vld [vmem:[%s9377_s24 + $0xe1] sm:$0xff]  ;;  %v7811_v59 = vld [vmem:[%s9377_s24 + $0xd9] sm:$0xff] }
  0x8e   : > { %v9505_v0 = vpop.permute.xlu1 %519  ;;  %v9507_v1 = vpop.permute.xlu0 %515 }
  0x90   : > { %755 = vrot.lane.b32.xlu1 %v7782_v62, %s9312_s27  ;;  %753 = vrot.lane.b32.xlu0 %v7781_v63, %s9312_s27 }
  0x92   : > { %v9513_v4 = vpop.permute.xlu1 %523  ;;  %v9515_v5 = vpop.permute.xlu0 %521 }
  0x94   : > { %759 = vrot.lane.b32.xlu1 %v7784_v2, %s9312_s27  ;;  %757 = vrot.lane.b32.xlu0 %v7783_v3, %s9312_s27  ;;  %v7814_v2 = vld [vmem:[%s9377_s24 + $0xf1] sm:$0xff]  ;;  %v7813_v3 = vld [vmem:[%s9377_s24 + $0xe9] sm:$0xff] }
  0x96   : > { %v9521_v8 = vpop.permute.xlu1 %527  ;;  %v9523_v9 = vpop.permute.xlu0 %525 }
  0x98   : > { %763 = vrot.lane.b32.xlu1 %v7786_v6, %s9312_s27  ;;  %761 = vrot.lane.b32.xlu0 %v7785_v7, %s9312_s27 }
  0x9a   : > { %v9529_v12 = vpop.permute.xlu1 %531  ;;  %v9531_v13 = vpop.permute.xlu0 %529 }
  0x9c   : > { %767 = vrot.lane.b32.xlu1 %v7788_v10, %s9312_s27  ;;  %765 = vrot.lane.b32.xlu0 %v7787_v11, %s9312_s27  ;;  %v7816_v10 = vld [vmem:[%s9377_s24 + $0x101] sm:$0xff]  ;;  %v7815_v11 = vld [vmem:[%s9377_s24 + $0xf9] sm:$0xff] }
  0x9e   : > { %v9537_v16 = vpop.permute.xlu1 %535  ;;  %v9539_v17 = vpop.permute.xlu0 %533 }
  0xa0   : > { %771 = vrot.lane.b32.xlu1 %v7790_v14, %s9312_s27  ;;  %769 = vrot.lane.b32.xlu0 %v7789_v15, %s9312_s27 }
  0xa2   : > { %v9545_v20 = vpop.permute.xlu1 %539  ;;  %v9547_v21 = vpop.permute.xlu0 %537 }
  0xa4   : > { %775 = vrot.lane.b32.xlu1 %v7792_v18, %s9312_s27  ;;  %773 = vrot.lane.b32.xlu0 %v7791_v19, %s9312_s27  ;;  %v7818_v18 = vld [vmem:[%s9377_s24 + $0x111] sm:$0xff]  ;;  %v7817_v19 = vld [vmem:[%s9377_s24 + $0x109] sm:$0xff] }
  0xa6   : > { %v9553_v24 = vpop.permute.xlu1 %543  ;;  %v9555_v25 = vpop.permute.xlu0 %541 }
  0xa8   : > { %779 = vrot.lane.b32.xlu1 %v7794_v22, %s9312_s27  ;;  %777 = vrot.lane.b32.xlu0 %v7793_v23, %s9312_s27 }
  0xaa   : > { %v9561_v28 = vpop.permute.xlu1 %547  ;;  %v9563_v29 = vpop.permute.xlu0 %545 }
  0xab   : > { %15628 = vst [vmem:[#allocation2_spill] sm:$0xff] %v9563_v29 }
  0xac   : > { %783 = vrot.lane.b32.xlu1 %v7796_v26, %s9312_s27  ;;  %781 = vrot.lane.b32.xlu0 %v7795_v27, %s9312_s27  ;;  %v7820_v26 = vld [vmem:[%s9377_s24 + $0x121] sm:$0xff]  ;;  %v7819_v27 = vld [vmem:[%s9377_s24 + $0x119] sm:$0xff] }
  0xae   : > { %v9569_v32 = vpop.permute.xlu1 %551  ;;  %v9571_v33 = vpop.permute.xlu0 %549 }
  0xaf   : > { %15629 = vst [vmem:[#allocation3_spill] sm:$0xff] %v9569_v32  ;;  %15630 = vst [vmem:[#allocation4_spill] sm:$0xff] %v9571_v33  ;;  %v7877_v33 = vld [vmem:[%s9377_s24 + $0x126] sm:$0xff] }
  0xb0   : > { %787 = vrot.lane.b32.xlu1 %v7798_v30, %s9312_s27  ;;  %785 = vrot.lane.b32.xlu0 %v7797_v31, %s9312_s27 }
  0xb2   : > { %v9577_v36 = vpop.permute.xlu1 %555  ;;  %v9579_v37 = vpop.permute.xlu0 %553 }
  0xb3   : > { %15631 = vst [vmem:[#allocation5_spill] sm:$0xff] %v9577_v36  ;;  %15632 = vst [vmem:[#allocation6_spill] sm:$0xff] %v9579_v37  ;;  %v9846_v37 = vld [vmem:[%s9377_s24 + $0x152] sm:$0xff]  ;;  %v7713_v36 = vld [vmem:[%s9377_s24 + $0x16a] sm:$0xff] }
  0xb4   : > { %791 = vrot.lane.b32.xlu1 %v7800_v34, %s9312_s27  ;;  %789 = vrot.lane.b32.xlu0 %v7799_v35, %s9312_s27  ;;  %v7822_v34 = vld [vmem:[%s9377_s24 + $0x131] sm:$0xff]  ;;  %v7821_v35 = vld [vmem:[%s9377_s24 + $0x129] sm:$0xff]  ;;  %15684 = vst [vmem:[#allocation58_spill] sm:$0xff] %v9846_v37 }
  0xb6   : > { %v9585_v40 = vpop.permute.xlu1 %559  ;;  %v9587_v41 = vpop.permute.xlu0 %557 }
  0xb7   : > { %15633 = vst [vmem:[#allocation7_spill] sm:$0xff] %v9585_v40  ;;  %15634 = vst [vmem:[#allocation8_spill] sm:$0xff] %v9587_v41  ;;  %v9818_v41 = vld [vmem:[%s9377_s24 + $0x132] sm:$0xff] }
  0xb8   : > { %795 = vrot.lane.b32.xlu1 %v7802_v38, %s9312_s27  ;;  %793 = vrot.lane.b32.xlu0 %v7801_v39, %s9312_s27 }
  0xba   : > { %v9593_v44 = vpop.permute.xlu1 %563  ;;  %v9595_v45 = vpop.permute.xlu0 %561 }
  0xbb   : > { %15635 = vst [vmem:[#allocation9_spill] sm:$0xff] %v9593_v44  ;;  %15636 = vst [vmem:[#allocation10_spill] sm:$0xff] %v9595_v45  ;;  %v9807_v44 = vld [vmem:[%s9377_s24 + $0x11a] sm:$0xff] }
  0xbc   : > { %799 = vrot.lane.b32.xlu1 %v7804_v42, %s9312_s27  ;;  %797 = vrot.lane.b32.xlu0 %v7803_v43, %s9312_s27  ;;  %v7824_v42 = vld [vmem:[%s9377_s24 + $0x141] sm:$0xff]  ;;  %v7823_v43 = vld [vmem:[%s9377_s24 + $0x139] sm:$0xff] }
  0xbe   : > { %v9601_v48 = vpop.permute.xlu1 %567  ;;  %v9603_v49 = vpop.permute.xlu0 %565 }
  0xbf   : > { %15637 = vst [vmem:[#allocation11_spill] sm:$0xff] %v9601_v48  ;;  %15638 = vst [vmem:[#allocation12_spill] sm:$0xff] %v9603_v49  ;;  %v9776_v49 = vld [vmem:[%s9377_s24 + $0x102] sm:$0xff] }
  0xc0   : > { %803 = vrot.lane.b32.xlu1 %v7806_v46, %s9312_s27  ;;  %801 = vrot.lane.b32.xlu0 %v7805_v47, %s9312_s27 }
  0xc2   : > { %v9609_v52 = vpop.permute.xlu1 %571  ;;  %v9611_v53 = vpop.permute.xlu0 %569 }
  0xc3   : > { %15639 = vst [vmem:[#allocation13_spill] sm:$0xff] %v9609_v52  ;;  %15640 = vst [vmem:[#allocation14_spill] sm:$0xff] %v9611_v53 }
  0xc4   : > { %807 = vrot.lane.b32.xlu1 %v7808_v50, %s9312_s27  ;;  %805 = vrot.lane.b32.xlu0 %v7807_v51, %s9312_s27  ;;  %v7826_v50 = vld [vmem:[%s9377_s24 + $0x151] sm:$0xff]  ;;  %v7825_v51 = vld [vmem:[%s9377_s24 + $0x149] sm:$0xff] }
  0xc6   : > { %v9617_v56 = vpop.permute.xlu1 %635  ;;  %v9619_v57 = vpop.permute.xlu0 %633 }
  0xc8   : > { %811 = vrot.lane.b32.xlu1 %v7810_v54, %s9312_s27  ;;  %809 = vrot.lane.b32.xlu0 %v7809_v55, %s9312_s27 }
  0xca   : > { %v9625_v62 = vpop.permute.xlu1 %639  ;;  %v9627_v63 = vpop.permute.xlu0 %637 }
  0xcc   : > { %875 = vrot.lane.b32.xlu1 %v7812_v58, %s9313_s28  ;;  %873 = vrot.lane.b32.xlu0 %v7811_v59, %s9313_s28  ;;  %v7828_v58 = vld [vmem:[%s9377_s24 + $0x161] sm:$0xff]  ;;  %v7827_v59 = vld [vmem:[%s9377_s24 + $0x159] sm:$0xff] }
  0xce   : > { %v9633_v6 = vpop.permute.xlu1 %643  ;;  %v9635_v7 = vpop.permute.xlu0 %641 }
  0xcf   : > { %15641 = vst [vmem:[#allocation15_spill] sm:$0xff] %v9633_v6  ;;  %15642 = vst [vmem:[#allocation16_spill] sm:$0xff] %v9635_v7 }
  0xd0   : > { %879 = vrot.lane.b32.xlu1 %v7814_v2, %s9313_s28  ;;  %877 = vrot.lane.b32.xlu0 %v7813_v3, %s9313_s28 }
  0xd2   : > { %v9641_v14 = vpop.permute.xlu1 %647  ;;  %v9643_v15 = vpop.permute.xlu0 %645 }
  0xd3   : > { %15643 = vst [vmem:[#allocation17_spill] sm:$0xff] %v9641_v14  ;;  %15644 = vst [vmem:[#allocation18_spill] sm:$0xff] %v9643_v15  ;;  %v10060_v15 = vld [vmem:[%s9377_s24 + $0x11f] sm:$0xff]  ;;  %v10063_v14 = vld [vmem:[%s9377_s24 + $0x117] sm:$0xff] }
  0xd4   : > { %883 = vrot.lane.b32.xlu1 %v7816_v10, %s9313_s28  ;;  %881 = vrot.lane.b32.xlu0 %v7815_v11, %s9313_s28  ;;  %v7830_v10 = vld [vmem:[%s9377_s24 + $0x171] sm:$0xff]  ;;  %v7829_v11 = vld [vmem:[%s9377_s24 + $0x169] sm:$0xff] }
  0xd6   : > { %v9649_v22 = vpop.permute.xlu1 %651  ;;  %v9651_v23 = vpop.permute.xlu0 %649 }
  0xd7   : > { %15645 = vst [vmem:[#allocation19_spill] sm:$0xff] %v9649_v22  ;;  %15646 = vst [vmem:[#allocation20_spill] sm:$0xff] %v9651_v23  ;;  %v7875_v22 = vld [vmem:[%s9377_s24 + $0x116] sm:$0xff] }
  0xd8   : > { %887 = vrot.lane.b32.xlu1 %v7818_v18, %s9313_s28  ;;  %885 = vrot.lane.b32.xlu0 %v7817_v19, %s9313_s28 }
  0xda   : > { %v9657_v30 = vpop.permute.xlu1 %655  ;;  %v9659_v31 = vpop.permute.xlu0 %653 }
  0xdb   : > { %15647 = vst [vmem:[#allocation21_spill] sm:$0xff] %v9657_v30  ;;  %15648 = vst [vmem:[#allocation22_spill] sm:$0xff] %v9659_v31  ;;  %v7714_v30 = vld [vmem:[%s9377_s24 + $0x172] sm:$0xff] }
  0xdc   : > { %891 = vrot.lane.b32.xlu1 %v7820_v26, %s9313_s28  ;;  %889 = vrot.lane.b32.xlu0 %v7819_v27, %s9313_s28  ;;  %v7832_v26 = vld [vmem:[%s9377_s24 + $0x181] sm:$0xff]  ;;  %v7831_v27 = vld [vmem:[%s9377_s24 + $0x179] sm:$0xff] }
  0xde   : > { %v9665_v38 = vpop.permute.xlu1 %659  ;;  %v9667_v39 = vpop.permute.xlu0 %657 }
  0xdf   : > { %15649 = vst [vmem:[#allocation23_spill] sm:$0xff] %v9665_v38  ;;  %15650 = vst [vmem:[#allocation24_spill] sm:$0xff] %v9667_v39  ;;  %v9832_v39 = vld [vmem:[%s9377_s24 + $0x142] sm:$0xff] }
  0xe0   : > { %895 = vrot.lane.b32.xlu1 %v7822_v34, %s9313_s28  ;;  %893 = vrot.lane.b32.xlu0 %v7821_v35, %s9313_s28 }
  0xe2   : > { %v9673_v46 = vpop.permute.xlu1 %663  ;;  %v9675_v47 = vpop.permute.xlu0 %661 }
  0xe3   : > { %15651 = vst [vmem:[#allocation25_spill] sm:$0xff] %v9673_v46  ;;  %15652 = vst [vmem:[#allocation26_spill] sm:$0xff] %v9675_v47  ;;  %v9821_v47 = vld [vmem:[%s9377_s24 + $0x12a] sm:$0xff] }
  0xe4   : > { %899 = vrot.lane.b32.xlu1 %v7824_v42, %s9313_s28  ;;  %897 = vrot.lane.b32.xlu0 %v7823_v43, %s9313_s28  ;;  %v7834_v42 = vld [vmem:[%s9377_s24 + $0x191] sm:$0xff]  ;;  %v7833_v43 = vld [vmem:[%s9377_s24 + $0x189] sm:$0xff] }
  0xe6   : > { %v9681_v54 = vpop.permute.xlu1 %667  ;;  %v9683_v55 = vpop.permute.xlu0 %665 }
  0xe7   : > { %15653 = vst [vmem:[#allocation27_spill] sm:$0xff] %v9681_v54  ;;  %15654 = vst [vmem:[#allocation28_spill] sm:$0xff] %v9683_v55 }
  0xe8   : > { %903 = vrot.lane.b32.xlu1 %v7826_v50, %s9313_s28  ;;  %901 = vrot.lane.b32.xlu0 %v7825_v51, %s9313_s28 }
  0xea   : > { %v9689_v2 = vpop.permute.xlu1 %671  ;;  %v9691_v3 = vpop.permute.xlu0 %669 }
  0xeb   : > { %15655 = vst [vmem:[#allocation29_spill] sm:$0xff] %v9689_v2  ;;  %15656 = vst [vmem:[#allocation30_spill] sm:$0xff] %v9691_v3  ;;  %v9804_v2 = vld [vmem:[%s9377_s24 + $0x122] sm:$0xff] }
  0xec   : > { %907 = vrot.lane.b32.xlu1 %v7828_v58, %s9313_s28  ;;  %905 = vrot.lane.b32.xlu0 %v7827_v59, %s9313_s28  ;;  %v7836_v58 = vld [vmem:[%s9377_s24 + $0x1a1] sm:$0xff]  ;;  %v7835_v59 = vld [vmem:[%s9377_s24 + $0x199] sm:$0xff] }
  0xee   : > { %v9697_v18 = vpop.permute.xlu1 %675  ;;  %v9699_v19 = vpop.permute.xlu0 %673 }
  0xef   : > { %15657 = vst [vmem:[#allocation31_spill] sm:$0xff] %v9697_v18  ;;  %15658 = vst [vmem:[#allocation32_spill] sm:$0xff] %v9699_v19  ;;  %v9790_v19 = vld [vmem:[%s9377_s24 + $0x112] sm:$0xff]  ;;  %v9793_v18 = vld [vmem:[%s9377_s24 + $0x10a] sm:$0xff] }
  0xf0   : > { %911 = vrot.lane.b32.xlu1 %v7830_v10, %s9313_s28  ;;  %909 = vrot.lane.b32.xlu0 %v7829_v11, %s9313_s28 }
  0xf2   : > { %v9705_v34 = vpop.permute.xlu1 %679  ;;  %v9707_v35 = vpop.permute.xlu0 %677 }
  0xf3   : > { %15659 = vst [vmem:[#allocation33_spill] sm:$0xff] %v9705_v34  ;;  %15660 = vst [vmem:[#allocation34_spill] sm:$0xff] %v9707_v35  ;;  %v9779_v35 = vld [vmem:[%s9377_s24 + $0xfa] sm:$0xff] }
  0xf4   : > { %915 = vrot.lane.b32.xlu1 %v7832_v26, %s9313_s28  ;;  %913 = vrot.lane.b32.xlu0 %v7831_v27, %s9313_s28  ;;  %v7838_v26 = vld [vmem:[%s9377_s24 + $0x1b1] sm:$0xff]  ;;  %v7837_v27 = vld [vmem:[%s9377_s24 + $0x1a9] sm:$0xff] }
  0xf6   : > { %v9713_v50 = vpop.permute.xlu1 %683  ;;  %v9715_v51 = vpop.permute.xlu0 %681 }
  0xf7   : > { %15661 = vst [vmem:[#allocation35_spill] sm:$0xff] %v9713_v50  ;;  %15662 = vst [vmem:[#allocation36_spill] sm:$0xff] %v9715_v51 }
  0xf8   : > { %919 = vrot.lane.b32.xlu1 %v7834_v42, %s9313_s28  ;;  %917 = vrot.lane.b32.xlu0 %v7833_v43, %s9313_s28  ;;  %v7840_v42 = vld [vmem:[%s9377_s24 + $0x1c1] sm:$0xff]  ;;  %v7839_v43 = vld [vmem:[%s9377_s24 + $0x1b9] sm:$0xff] }
  0xfa   : > { %v9721_v10 = vpop.permute.xlu1 %687  ;;  %v9723_v11 = vpop.permute.xlu0 %685 }
  0xfb   : > { %15663 = vst [vmem:[#allocation37_spill] sm:$0xff] %v9721_v10  ;;  %15664 = vst [vmem:[#allocation38_spill] sm:$0xff] %v9723_v11  ;;  %v9765_v10 = vld [vmem:[%s9377_s24 + $0xea] sm:$0xff] }
  0xfc   : > { %923 = vrot.lane.b32.xlu1 %v7836_v58, %s9313_s28  ;;  %921 = vrot.lane.b32.xlu0 %v7835_v59, %s9313_s28 }
  0xfe   : > { %v9729_v53 = vpop.permute.xlu1 %691  ;;  %v9731_v52 = vpop.permute.xlu0 %689 }
  0xff   : > { %15665 = vst [vmem:[#allocation39_spill] sm:$0xff] %v9729_v53  ;;  %15666 = vst [vmem:[#allocation40_spill] sm:$0xff] %v9731_v52  ;;  %v9762_v53 = vld [vmem:[%s9377_s24 + $0xf2] sm:$0xff] }
 0x100   : > { %927 = vrot.lane.b32.xlu1 %v7838_v26, %s9313_s28  ;;  %925 = vrot.lane.b32.xlu0 %v7837_v27, %s9313_s28  ;;  %v9748_v26 = vld [vmem:[%s9377_s24 + $0xe2] sm:$0xff]  ;;  %v9751_v27 = vld [vmem:[%s9377_s24 + $0xda] sm:$0xff] }
 0x102   : > { %v9737_v11 = vpop.permute.xlu1 %755  ;;  %v9739_v58 = vpop.permute.xlu0 %753 }
 0x104   : > { %931 = vrot.lane.b32.xlu1 %v7840_v42, %s9313_s28  ;;  %929 = vrot.lane.b32.xlu0 %v7839_v43, %s9313_s28 }
 0x106   : > { %v9743_v59 = vpop.permute.xlu1 %759  ;;  %v9745_v52 = vpop.permute.xlu0 %757 }
 0x107   : > { %15667 = vst [vmem:[#allocation41_spill] sm:$0xff] %v9743_v59  ;;  %15668 = vst [vmem:[#allocation42_spill] sm:$0xff] %v9745_v52 }
 0x108   : > { %995 = vrot.lane.b32.xlu1 %v9748_v26, %s9314_s29  ;;  %993 = vrot.lane.b32.xlu0 %v9751_v27, %s9314_s29 }
 0x10a   : > { %v9757_v42 = vpop.permute.xlu1 %763  ;;  %v9759_v43 = vpop.permute.xlu0 %761 }
 0x10b   : > { %15669 = vst [vmem:[#allocation43_spill] sm:$0xff] %v9757_v42  ;;  %15670 = vst [vmem:[#allocation44_spill] sm:$0xff] %v9759_v43 }
 0x10c   : > { %999 = vrot.lane.b32.xlu1 %v9762_v53, %s9314_s29  ;;  %997 = vrot.lane.b32.xlu0 %v9765_v10, %s9314_s29 }
 0x10e   : > { %v9771_v51 = vpop.permute.xlu1 %767  ;;  %v9773_v50 = vpop.permute.xlu0 %765 }
 0x10f   : > { %15671 = vst [vmem:[#allocation45_spill] sm:$0xff] %v9771_v51  ;;  %15672 = vst [vmem:[#allocation46_spill] sm:$0xff] %v9773_v50 }
 0x110   : > { %1003 = vrot.lane.b32.xlu1 %v9776_v49, %s9314_s29  ;;  %1001 = vrot.lane.b32.xlu0 %v9779_v35, %s9314_s29 }
 0x112   : > { %v9785_v34 = vpop.permute.xlu1 %771  ;;  %v9787_v48 = vpop.permute.xlu0 %769 }
 0x113   : > { %15673 = vst [vmem:[#allocation47_spill] sm:$0xff] %v9785_v34  ;;  %15674 = vst [vmem:[#allocation48_spill] sm:$0xff] %v9787_v48  ;;  %v7720_v48 = vld [vmem:[%s9377_s24 + $0x1a2] sm:$0xff] }
 0x114   : > { %1007 = vrot.lane.b32.xlu1 %v9790_v19, %s9314_s29  ;;  %1005 = vrot.lane.b32.xlu0 %v9793_v18, %s9314_s29 }
 0x116   : > { %v9799_v45 = vpop.permute.xlu1 %775  ;;  %v9801_v3 = vpop.permute.xlu0 %773 }
 0x117   : > { %15675 = vst [vmem:[#allocation49_spill] sm:$0xff] %v9799_v45  ;;  %15676 = vst [vmem:[#allocation50_spill] sm:$0xff] %v9801_v3  ;;  %v7712_v45 = vld [vmem:[%s9377_s24 + $0x162] sm:$0xff] }
 0x118   : > { %1011 = vrot.lane.b32.xlu1 %v9804_v2, %s9314_s29  ;;  %1009 = vrot.lane.b32.xlu0 %v9807_v44, %s9314_s29 }
 0x11a   : > { %v9813_v55 = vpop.permute.xlu1 %779  ;;  %v9815_v54 = vpop.permute.xlu0 %777 }
 0x11b   : > { %15677 = vst [vmem:[#allocation51_spill] sm:$0xff] %v9813_v55  ;;  %15678 = vst [vmem:[#allocation52_spill] sm:$0xff] %v9815_v54  ;;  %v9835_v55 = vld [vmem:[%s9377_s24 + $0x13a] sm:$0xff] }
 0x11c   : > { %1015 = vrot.lane.b32.xlu1 %v9818_v41, %s9314_s29  ;;  %1013 = vrot.lane.b32.xlu0 %v9821_v47, %s9314_s29  ;;  %15681 = vst [vmem:[#allocation55_spill] sm:$0xff] %v9835_v55 }
 0x11e   : > { %v9827_v46 = vpop.permute.xlu1 %783  ;;  %v9829_v40 = vpop.permute.xlu0 %781 }
 0x11f   : > { %15679 = vst [vmem:[#allocation53_spill] sm:$0xff] %v9827_v46  ;;  %15680 = vst [vmem:[#allocation54_spill] sm:$0xff] %v9829_v40  ;;  %v9849_v46 = vld [vmem:[%s9377_s24 + $0x14a] sm:$0xff] }
 0x120   : > { %1019 = vrot.lane.b32.xlu1 %v9832_v39, %s9314_s29  ;;  %1017 = vrot.lane.b32.xlu0 %v9835_v55, %s9314_s29  ;;  %15685 = vst [vmem:[#allocation59_spill] sm:$0xff] %v9849_v46 }
 0x122   : > { %v9841_v54 = vpop.permute.xlu1 %787  ;;  %v9843_v38 = vpop.permute.xlu0 %785 }
 0x123   : > { %15682 = vst [vmem:[#allocation56_spill] sm:$0xff] %v9841_v54  ;;  %15683 = vst [vmem:[#allocation57_spill] sm:$0xff] %v9843_v38  ;;  %v7711_v54 = vld [vmem:[%s9377_s24 + $0x15a] sm:$0xff] }
 0x124   : > { %1023 = vrot.lane.b32.xlu1 %v9846_v37, %s9314_s29  ;;  %1021 = vrot.lane.b32.xlu0 %v9849_v46, %s9314_s29 }
 0x126   : > { %v9855_v40 = vpop.permute.xlu1 %791  ;;  %v9857_v3 = vpop.permute.xlu0 %789 }
 0x127   : > { %15686 = vst [vmem:[#allocation60_spill] sm:$0xff] %v9855_v40  ;;  %15687 = vst [vmem:[#allocation61_spill] sm:$0xff] %v9857_v3 }
 0x128   : > { %1027 = vrot.lane.b32.xlu1 %v7712_v45, %s9314_s29  ;;  %1025 = vrot.lane.b32.xlu0 %v7711_v54, %s9314_s29  ;;  %v7716_v45 = vld [vmem:[%s9377_s24 + $0x182] sm:$0xff]  ;;  %v7715_v54 = vld [vmem:[%s9377_s24 + $0x17a] sm:$0xff] }
 0x12a   : > { %v9863_v38 = vpop.permute.xlu1 %795  ;;  %v9865_v31 = vpop.permute.xlu0 %793 }
 0x12b   : > { %15688 = vst [vmem:[#allocation62_spill] sm:$0xff] %v9863_v38  ;;  %15689 = vst [vmem:[#allocation63_spill] sm:$0xff] %v9865_v31 }
 0x12c   : > { %1031 = vrot.lane.b32.xlu1 %v7714_v30, %s9314_s29  ;;  %1029 = vrot.lane.b32.xlu0 %v7713_v36, %s9314_s29  ;;  %v7718_v30 = vld [vmem:[%s9377_s24 + $0x192] sm:$0xff]  ;;  %v7717_v36 = vld [vmem:[%s9377_s24 + $0x18a] sm:$0xff] }
 0x12e   : > { %v9871_v3 = vpop.permute.xlu1 %799  ;;  %v9873_v40 = vpop.permute.xlu0 %797 }
 0x12f   : > { %15690 = vst [vmem:[#allocation64_spill] sm:$0xff] %v9871_v3  ;;  %15691 = vst [vmem:[#allocation65_spill] sm:$0xff] %v9873_v40 }
 0x130   : > { %1035 = vrot.lane.b32.xlu1 %v7716_v45, %s9314_s29  ;;  %1033 = vrot.lane.b32.xlu0 %v7715_v54, %s9314_s29  ;;  %v7719_v45 = vld [vmem:[%s9377_s24 + $0x19a] sm:$0xff]  ;;  %v7868_v54 = vld [vmem:[%s9377_s24 + $0x1b2] sm:$0xff] }
 0x132   : > { %v9879_v31 = vpop.permute.xlu1 %803  ;;  %v9881_v38 = vpop.permute.xlu0 %801 }
 0x133   : > { %15692 = vst [vmem:[#allocation66_spill] sm:$0xff] %v9879_v31  ;;  %15693 = vst [vmem:[#allocation67_spill] sm:$0xff] %v9881_v38  ;;  %v7867_v38 = vld [vmem:[%s9377_s24 + $0x1aa] sm:$0xff] }
 0x134   : > { %1039 = vrot.lane.b32.xlu1 %v7718_v30, %s9314_s29  ;;  %1037 = vrot.lane.b32.xlu0 %v7717_v36, %s9314_s29  ;;  %v7870_v30 = vld [vmem:[%s9377_s24 + $0x1c2] sm:$0xff]  ;;  %v7869_v36 = vld [vmem:[%s9377_s24 + $0x1ba] sm:$0xff] }
 0x136   : > { %v9887_v40 = vpop.permute.xlu1 %807  ;;  %v9889_v3 = vpop.permute.xlu0 %805 }
 0x137   : > { %15694 = vst [vmem:[#allocation68_spill] sm:$0xff] %v9887_v40  ;;  %15695 = vst [vmem:[#allocation69_spill] sm:$0xff] %v9889_v3 }
 0x138   : > { %1043 = vrot.lane.b32.xlu1 %v7720_v48, %s9314_s29  ;;  %1041 = vrot.lane.b32.xlu0 %v7719_v45, %s9314_s29  ;;  %v7872_v48 = vld [vmem:[%s9377_s24 + $0xfe] sm:$0xff]  ;;  %v7871_v45 = vld [vmem:[%s9377_s24 + $0xf6] sm:$0xff] }
 0x13a   : > { %v9897_v31 = vpop.permute.xlu1 %811  ;;  %v9899_v34 = vpop.permute.xlu0 %809 }
 0x13b   : > { %15696 = vst [vmem:[#allocation70_spill] sm:$0xff] %v9897_v31  ;;  %15697 = vst [vmem:[#allocation71_spill] sm:$0xff] %v9899_v34  ;;  %v7873_v31 = vld [vmem:[%s9377_s24 + $0x106] sm:$0xff] }
 0x13c   : > { %1047 = vrot.lane.b32.xlu1 %v7868_v54, %s9314_s29  ;;  %1045 = vrot.lane.b32.xlu0 %v7867_v38, %s9314_s29  ;;  %v7874_v38 = vld [vmem:[%s9377_s24 + $0x10e] sm:$0xff] }
 0x13e   : > { %v9905_v3 = vpop.permute.xlu1 %875  ;;  %v9907_v40 = vpop.permute.xlu0 %873 }
 0x140   : > { %1051 = vrot.lane.b32.xlu1 %v7870_v30, %s9314_s29  ;;  %1049 = vrot.lane.b32.xlu0 %v7869_v36, %s9314_s29  ;;  %v7876_v36 = vld [vmem:[%s9377_s24 + $0x11e] sm:$0xff] }
 0x142   : > { %v9913_v34 = vpop.permute.xlu1 %879  ;;  %v9915_v54 = vpop.permute.xlu0 %877 }
 0x143   : > { %15698 = vst [vmem:[#allocation72_spill] sm:$0xff] %v9913_v34  ;;  %15699 = vst [vmem:[#allocation73_spill] sm:$0xff] %v9915_v54  ;;  %v7919_v34 = vld [vmem:[%s9377_s24 + $0x187] sm:$0xff] }
 0x144   : > { %1115 = vrot.lane.b32.xlu1 %v7872_v48, %s9315_s30  ;;  %1113 = vrot.lane.b32.xlu0 %v7871_v45, %s9315_s30  ;;  %v7878_v45 = vld [vmem:[%s9377_s24 + $0x12e] sm:$0xff] }
 0x146   : > { %v9921_v23 = vpop.permute.xlu1 %883  ;;  %v9923_v30 = vpop.permute.xlu0 %881 }
 0x147   : > { %15700 = vst [vmem:[#allocation74_spill] sm:$0xff] %v9921_v23  ;;  %15701 = vst [vmem:[#allocation75_spill] sm:$0xff] %v9923_v30 }
 0x148   : > { %1119 = vrot.lane.b32.xlu1 %v7874_v38, %s9315_s30  ;;  %1117 = vrot.lane.b32.xlu0 %v7873_v31, %s9315_s30  ;;  %v7880_v31 = vld [vmem:[%s9377_s24 + $0x13e] sm:$0xff] }
 0x14a   : > { %v9929_v46 = vpop.permute.xlu1 %887  ;;  %v9931_v48 = vpop.permute.xlu0 %885 }
 0x14b   : > { %15702 = vst [vmem:[#allocation76_spill] sm:$0xff] %v9929_v46  ;;  %15703 = vst [vmem:[#allocation77_spill] sm:$0xff] %v9931_v48  ;;  %v7879_v46 = vld [vmem:[%s9377_s24 + $0x136] sm:$0xff] }
 0x14c   : > { %1123 = vrot.lane.b32.xlu1 %v7876_v36, %s9315_s30  ;;  %1121 = vrot.lane.b32.xlu0 %v7875_v22, %s9315_s30  ;;  %v7882_v22 = vld [vmem:[%s9377_s24 + $0x14e] sm:$0xff] }
 0x14e   : > { %v9937_v50 = vpop.permute.xlu1 %891  ;;  %v9939_v38 = vpop.permute.xlu0 %889 }
 0x14f   : > { %15704 = vst [vmem:[#allocation78_spill] sm:$0xff] %v9937_v50  ;;  %15705 = vst [vmem:[#allocation79_spill] sm:$0xff] %v9939_v38  ;;  %v7881_v50 = vld [vmem:[%s9377_s24 + $0x146] sm:$0xff] }
 0x150   : > { %1127 = vrot.lane.b32.xlu1 %v7878_v45, %s9315_s30  ;;  %1125 = vrot.lane.b32.xlu0 %v7877_v33, %s9315_s30  ;;  %v7884_v33 = vld [vmem:[%s9377_s24 + $0x15e] sm:$0xff] }
 0x152   : > { %v9945_v48 = vpop.permute.xlu1 %895  ;;  %v9947_v36 = vpop.permute.xlu0 %893 }
 0x153   : > { %15706 = vst [vmem:[#allocation80_spill] sm:$0xff] %v9945_v48  ;;  %15707 = vst [vmem:[#allocation81_spill] sm:$0xff] %v9947_v36  ;;  %v7883_v48 = vld [vmem:[%s9377_s24 + $0x156] sm:$0xff] }
 0x154   : > { %1131 = vrot.lane.b32.xlu1 %v7880_v31, %s9315_s30  ;;  %1129 = vrot.lane.b32.xlu0 %v7879_v46, %s9315_s30  ;;  %v7886_v46 = vld [vmem:[%s9377_s24 + $0x16e] sm:$0xff] }
 0x156   : > { %v9953_v38 = vpop.permute.xlu1 %899  ;;  %v9955_v45 = vpop.permute.xlu0 %897 }
 0x157   : > { %15708 = vst [vmem:[#allocation82_spill] sm:$0xff] %v9953_v38  ;;  %15709 = vst [vmem:[#allocation83_spill] sm:$0xff] %v9955_v45  ;;  %v7885_v38 = vld [vmem:[%s9377_s24 + $0x166] sm:$0xff] }
 0x158   : > { %1135 = vrot.lane.b32.xlu1 %v7882_v22, %s9315_s30  ;;  %1133 = vrot.lane.b32.xlu0 %v7881_v50, %s9315_s30  ;;  %v7888_v50 = vld [vmem:[%s9377_s24 + $0x17e] sm:$0xff] }
 0x15a   : > { %v9961_v36 = vpop.permute.xlu1 %903  ;;  %v9963_v31 = vpop.permute.xlu0 %901 }
 0x15b   : > { %15710 = vst [vmem:[#allocation84_spill] sm:$0xff] %v9961_v36  ;;  %15711 = vst [vmem:[#allocation85_spill] sm:$0xff] %v9963_v31  ;;  %v7887_v36 = vld [vmem:[%s9377_s24 + $0x176] sm:$0xff] }
 0x15c   : > { %1139 = vrot.lane.b32.xlu1 %v7884_v33, %s9315_s30  ;;  %1137 = vrot.lane.b32.xlu0 %v7883_v48, %s9315_s30  ;;  %v7890_v48 = vld [vmem:[%s9377_s24 + $0x18e] sm:$0xff] }
 0x15e   : > { %v9969_v45 = vpop.permute.xlu1 %907  ;;  %v9971_v22 = vpop.permute.xlu0 %905 }
 0x15f   : > { %15712 = vst [vmem:[#allocation86_spill] sm:$0xff] %v9969_v45  ;;  %15713 = vst [vmem:[#allocation87_spill] sm:$0xff] %v9971_v22  ;;  %v7889_v45 = vld [vmem:[%s9377_s24 + $0x186] sm:$0xff] }
 0x160   : > { %1143 = vrot.lane.b32.xlu1 %v7886_v46, %s9315_s30  ;;  %1141 = vrot.lane.b32.xlu0 %v7885_v38, %s9315_s30  ;;  %v7892_v38 = vld [vmem:[%s9377_s24 + $0x19e] sm:$0xff] }
 0x162   : > { %v9977_v31 = vpop.permute.xlu1 %911  ;;  %v9979_v33 = vpop.permute.xlu0 %909 }
 0x163   : > { %15714 = vst [vmem:[#allocation88_spill] sm:$0xff] %v9977_v31  ;;  %15715 = vst [vmem:[#allocation89_spill] sm:$0xff] %v9979_v33  ;;  %v7891_v31 = vld [vmem:[%s9377_s24 + $0x196] sm:$0xff] }
 0x164   : > { %1147 = vrot.lane.b32.xlu1 %v7888_v50, %s9315_s30  ;;  %1145 = vrot.lane.b32.xlu0 %v7887_v36, %s9315_s30  ;;  %v7894_v36 = vld [vmem:[%s9377_s24 + $0x1ae] sm:$0xff] }
 0x166   : > { %v9985_v22 = vpop.permute.xlu1 %915  ;;  %v9987_v46 = vpop.permute.xlu0 %913 }
 0x167   : > { %15716 = vst [vmem:[#allocation90_spill] sm:$0xff] %v9985_v22  ;;  %15717 = vst [vmem:[#allocation91_spill] sm:$0xff] %v9987_v46  ;;  %v7893_v22 = vld [vmem:[%s9377_s24 + $0x1a6] sm:$0xff] }
 0x168   : > { %1151 = vrot.lane.b32.xlu1 %v7890_v48, %s9315_s30  ;;  %1149 = vrot.lane.b32.xlu0 %v7889_v45, %s9315_s30  ;;  %v7896_v45 = vld [vmem:[%s9377_s24 + $0x1be] sm:$0xff] }
 0x16a   : > { %v9993_v33 = vpop.permute.xlu1 %919  ;;  %v9995_v50 = vpop.permute.xlu0 %917 }
 0x16b   : > { %15718 = vst [vmem:[#allocation92_spill] sm:$0xff] %v9993_v33  ;;  %15719 = vst [vmem:[#allocation93_spill] sm:$0xff] %v9995_v50  ;;  %v7895_v33 = vld [vmem:[%s9377_s24 + $0x1b6] sm:$0xff] }
 0x16c   : > { %1155 = vrot.lane.b32.xlu1 %v7892_v38, %s9315_s30  ;;  %1153 = vrot.lane.b32.xlu0 %v7891_v31, %s9315_s30  ;;  %v7898_v31 = vld [vmem:[%s9377_s24 + $0x1ce] sm:$0xff] }
 0x16e   : > { %v10001_v46 = vpop.permute.xlu1 %923  ;;  %v10003_v48 = vpop.permute.xlu0 %921 }
 0x16f   : > { %15720 = vst [vmem:[#allocation94_spill] sm:$0xff] %v10001_v46  ;;  %15721 = vst [vmem:[#allocation95_spill] sm:$0xff] %v10003_v48  ;;  %v7897_v46 = vld [vmem:[%s9377_s24 + $0x1c6] sm:$0xff] }
 0x170   : > { %1159 = vrot.lane.b32.xlu1 %v7894_v36, %s9315_s30  ;;  %1157 = vrot.lane.b32.xlu0 %v7893_v22, %s9315_s30  ;;  %v7900_v22 = vld [vmem:[%s9377_s24 + $0x1de] sm:$0xff]  ;;  %v7899_v36 = vld [vmem:[%s9377_s24 + $0x1d6] sm:$0xff] }
 0x172   : > { %v10009_v50 = vpop.permute.xlu1 %927  ;;  %v10011_v38 = vpop.permute.xlu0 %925 }
 0x173   : > { %15722 = vst [vmem:[#allocation96_spill] sm:$0xff] %v10009_v50  ;;  %15723 = vst [vmem:[#allocation97_spill] sm:$0xff] %v10011_v38 }
 0x174   : > { %1163 = vrot.lane.b32.xlu1 %v7896_v45, %s9315_s30  ;;  %1161 = vrot.lane.b32.xlu0 %v7895_v33, %s9315_s30  ;;  %v10032_v33 = vld [vmem:[%s9377_s24 + $0xff] sm:$0xff]  ;;  %v10035_v45 = vld [vmem:[%s9377_s24 + $0xf7] sm:$0xff] }
 0x176   : > { %v10017_v48 = vpop.permute.xlu1 %931  ;;  %v10019_v51 = vpop.permute.xlu0 %929 }
 0x177   : > { %15724 = vst [vmem:[#allocation98_spill] sm:$0xff] %v10017_v48  ;;  %15725 = vst [vmem:[#allocation99_spill] sm:$0xff] %v10019_v51 }
 0x178   : > { %1167 = vrot.lane.b32.xlu1 %v7898_v31, %s9315_s30  ;;  %1165 = vrot.lane.b32.xlu0 %v7897_v46, %s9315_s30  ;;  %v10046_v46 = vld [vmem:[%s9377_s24 + $0x10f] sm:$0xff] }
 0x17a   : > { %v10025_v38 = vpop.permute.xlu1 %995  ;;  %v10027_v50 = vpop.permute.xlu0 %993 }
 0x17c   : > { %1171 = vrot.lane.b32.xlu1 %v7900_v22, %s9315_s30  ;;  %1169 = vrot.lane.b32.xlu0 %v7899_v36, %s9315_s30  ;;  %v10049_v22 = vld [vmem:[%s9377_s24 + $0x107] sm:$0xff] }
 0x17e   : > { %v10037_v31 = vpop.permute.xlu1 %999  ;;  %v10039_v51 = vpop.permute.xlu0 %997 }
 0x17f   : > { %15726 = vst [vmem:[#allocation100_spill] sm:$0xff] %v10037_v31  ;;  %15727 = vst [vmem:[#allocation101_spill] sm:$0xff] %v10039_v51 }
 0x180   : > { %1235 = vrot.lane.b32.xlu1 %v10032_v33, %s9316_s4  ;;  %1233 = vrot.lane.b32.xlu0 %v10035_v45, %s9316_s4 }
 0x182   : > { %v10051_v36 = vpop.permute.xlu1 %1003  ;;  %v10053_v48 = vpop.permute.xlu0 %1001 }
 0x183   : > { %15728 = vst [vmem:[#allocation102_spill] sm:$0xff] %v10051_v36  ;;  %15729 = vst [vmem:[#allocation103_spill] sm:$0xff] %v10053_v48  ;;  %v10074_v48 = vld [vmem:[%s9377_s24 + $0x12f] sm:$0xff]  ;;  %v10077_v36 = vld [vmem:[%s9377_s24 + $0x127] sm:$0xff] }
 0x184   : > { %1239 = vrot.lane.b32.xlu1 %v10046_v46, %s9316_s4  ;;  %1237 = vrot.lane.b32.xlu0 %v10049_v22, %s9316_s4 }
 0x186   : > { %v10065_v37 = vpop.permute.xlu1 %1007  ;;  %v10067_v32 = vpop.permute.xlu0 %1005 }
 0x187   : > { %15730 = vst [vmem:[#allocation104_spill] sm:$0xff] %v10065_v37  ;;  %15731 = vst [vmem:[#allocation105_spill] sm:$0xff] %v10067_v32  ;;  %v10088_v32 = vld [vmem:[%s9377_s24 + $0x13f] sm:$0xff]  ;;  %v10091_v37 = vld [vmem:[%s9377_s24 + $0x137] sm:$0xff] }
 0x188   : > { %1243 = vrot.lane.b32.xlu1 %v10060_v15, %s9316_s4  ;;  %1241 = vrot.lane.b32.xlu0 %v10063_v14, %s9316_s4 }
 0x18a   : > { %v10079_v30 = vpop.permute.xlu1 %1011  ;;  %v10081_v23 = vpop.permute.xlu0 %1009 }
 0x18b   : > { %15732 = vst [vmem:[#allocation106_spill] sm:$0xff] %v10079_v30  ;;  %15733 = vst [vmem:[#allocation107_spill] sm:$0xff] %v10081_v23  ;;  %v10102_v23 = vld [vmem:[%s9377_s24 + $0x14f] sm:$0xff]  ;;  %v10105_v30 = vld [vmem:[%s9377_s24 + $0x147] sm:$0xff] }
 0x18c   : > { %1247 = vrot.lane.b32.xlu1 %v10074_v48, %s9316_s4  ;;  %1245 = vrot.lane.b32.xlu0 %v10077_v36, %s9316_s4 }
 0x18e   : > { %v10093_v43 = vpop.permute.xlu1 %1015  ;;  %v10095_v42 = vpop.permute.xlu0 %1013 }
 0x18f   : > { %15734 = vst [vmem:[#allocation108_spill] sm:$0xff] %v10093_v43  ;;  %15735 = vst [vmem:[#allocation109_spill] sm:$0xff] %v10095_v42  ;;  %v10116_v42 = vld [vmem:[%s9377_s24 + $0x15f] sm:$0xff]  ;;  %v10119_v43 = vld [vmem:[%s9377_s24 + $0x157] sm:$0xff] }
 0x190   : > { %1251 = vrot.lane.b32.xlu1 %v10088_v32, %s9316_s4  ;;  %1249 = vrot.lane.b32.xlu0 %v10091_v37, %s9316_s4  ;;  %15738 = vst [vmem:[#allocation112_spill] sm:$0xff] %v10116_v42 }
 0x192   : > { %v10107_v7 = vpop.permute.xlu1 %1019  ;;  %v10109_v6 = vpop.permute.xlu0 %1017 }
 0x193   : > { %15736 = vst [vmem:[#allocation110_spill] sm:$0xff] %v10107_v7  ;;  %15737 = vst [vmem:[#allocation111_spill] sm:$0xff] %v10109_v6  ;;  %v7916_v6 = vld [vmem:[%s9377_s24 + $0x16f] sm:$0xff]  ;;  %v10131_v7 = vld [vmem:[%s9377_s24 + $0x167] sm:$0xff] }
 0x194   : > { %1255 = vrot.lane.b32.xlu1 %v10102_v23, %s9316_s4  ;;  %1253 = vrot.lane.b32.xlu0 %v10105_v30, %s9316_s4  ;;  %15741 = vst [vmem:[#allocation115_spill] sm:$0xff] %v10131_v7 }
 0x196   : > { %v10121_v51 = vpop.permute.xlu1 %1023  ;;  %v10123_v31 = vpop.permute.xlu0 %1021 }
 0x197   : > { %15739 = vst [vmem:[#allocation113_spill] sm:$0xff] %v10121_v51  ;;  %15740 = vst [vmem:[#allocation114_spill] sm:$0xff] %v10123_v31  ;;  %v7918_v31 = vld [vmem:[%s9377_s24 + $0x17f] sm:$0xff]  ;;  %v7917_v51 = vld [vmem:[%s9377_s24 + $0x177] sm:$0xff] }
 0x198   : > { %1259 = vrot.lane.b32.xlu1 %v10116_v42, %s9316_s4  ;;  %1257 = vrot.lane.b32.xlu0 %v10119_v43, %s9316_s4 }
 0x19a   : > { %v10133_v55 = vpop.permute.xlu1 %1027  ;;  %v10135_v29 = vpop.permute.xlu0 %1025 }
 0x19b   : > { %15742 = vst [vmem:[#allocation116_spill] sm:$0xff] %v10133_v55  ;;  %15743 = vst [vmem:[#allocation117_spill] sm:$0xff] %v10135_v29  ;;  %v7920_v55 = vld [vmem:[%s9377_s24 + $0x18f] sm:$0xff] }
 0x19c   : > { %1263 = vrot.lane.b32.xlu1 %v7916_v6, %s9316_s4  ;;  %1261 = vrot.lane.b32.xlu0 %v10131_v7, %s9316_s4 }
 0x19e   : > { %v10142_v42 = vpop.permute.xlu1 %1031  ;;  %v10144_v54 = vpop.permute.xlu0 %1029 }
 0x19f   : > { %15744 = vst [vmem:[#allocation118_spill] sm:$0xff] %v10142_v42  ;;  %15745 = vst [vmem:[#allocation119_spill] sm:$0xff] %v10144_v54  ;;  %v1691_v54 = vld [vmem:[%s15592_s1] sm:$0xff]  ;;  %v7921_v42 = vld [vmem:[%s9377_s24 + $0x197] sm:$0xff] }
 0x1a0   : > { %1267 = vrot.lane.b32.xlu1 %v7918_v31, %s9316_s4  ;;  %1265 = vrot.lane.b32.xlu0 %v7917_v51, %s9316_s4  ;;  %v1692_v51 = vld [vmem:[%s15592_s1 + $0x8] sm:$0xff]  ;;  %v7922_v31 = vld [vmem:[%s9377_s24 + $0x19f] sm:$0xff] }
 0x1a1   : > { %v9153_v7 = vpack.c.bf16 %v1692_v51, %v1691_v54  ;;  %v7924_v54 = vld [vmem:[%s9377_s24 + $0x1af] sm:$0xff]  ;;  %v7923_v51 = vld [vmem:[%s9377_s24 + $0x1a7] sm:$0xff] }
 0x1a2   : > { %v10150_v29 = vpop.permute.xlu1 %1035  ;;  %v10152_v6 = vpop.permute.xlu0 %1033 }
 0x1a3   : > { %15746 = vst [vmem:[#allocation120_spill] sm:$0xff] %v10150_v29  ;;  %15747 = vst [vmem:[#allocation121_spill] sm:$0xff] %v10152_v6  ;;  %9154 = vmatprep.subr.bf16.mxu0 %v9153_v7 }
 0x1a4   : > { %1271 = vrot.lane.b32.xlu1 %v7920_v55, %s9316_s4  ;;  %1269 = vrot.lane.b32.xlu0 %v7919_v34, %s9316_s4  ;;  %v1693_v55 = vld [vmem:[%s15592_s1 + $0x10] sm:$0xff]  ;;  %v1694_v34 = vld [vmem:[%s15592_s1 + $0x18] sm:$0xff] }
 0x1a5   : > { %9156 = vmatpush3.bf16.msra.mxu0 %v9153_v7 }
 0x1a6   : > { %v10164_v29 = vpop.permute.xlu1 %1039  ;;  %v10166_v6 = vpop.permute.xlu0 %1037 }
 0x1a7   : > { %15748 = vst [vmem:[#allocation122_spill] sm:$0xff] %v10164_v29  ;;  %15749 = vst [vmem:[#allocation123_spill] sm:$0xff] %v10166_v6  ;;  %v9157_v29 = vpack.c.bf16 %v1694_v34, %v1693_v55  ;;  %v1695_v55 = vld [vmem:[%s15592_s1 + $0x20] sm:$0xf]  ;;  %v7928_v34 = vld [vmem:[%s9377_s24 + $0x1cf] sm:$0xff] }
 0x1a8   : > { %1275 = vrot.lane.b32.xlu1 %v7922_v31, %s9316_s4  ;;  %1273 = vrot.lane.b32.xlu0 %v7921_v42, %s9316_s4  ;;  %v7926_v42 = vld [vmem:[%s9377_s24 + $0x1bf] sm:$0xff]  ;;  %v7925_v31 = vld [vmem:[%s9377_s24 + $0x1b7] sm:$0xff] }
 0x1a9   : > { %9158 = vmatprep.subr.bf16.mxu0 %v9157_v29 }
 0x1aa   : > { %v10178_v6 = vpop.permute.xlu1 %1043  ;;  %v10180_v52 = vpop.permute.xlu0 %1041  ;;  %9160 = vmatpush3.bf16.msra.mxu0 %v9157_v29  ;;  %v7927_v29 = vld [vmem:[%s9377_s24 + $0x1c7] sm:$0xff] }
 0x1ab   : > { %15750 = vst [vmem:[#allocation124_spill] sm:$0xff] %v10178_v6  ;;  %15751 = vst [vmem:[#allocation125_spill] sm:$0xff] %v10180_v52  ;;  %8941 = vmatprep.subr.msk.mxu0 %vm1787_vm0, %v1695_v55 }
 0x1ac   : > { %1279 = vrot.lane.b32.xlu1 %v7924_v54, %s9316_s4  ;;  %1277 = vrot.lane.b32.xlu0 %v7923_v51, %s9316_s4 }
 0x1ae   : > { %v10186_v59 = vpop.permute.xlu1 %1047  ;;  %v10188_v7 = vpop.permute.xlu0 %1045  ;;  %8942 = vmatpush3.msk.msra.mxu0 %vm1787_vm0, %v1695_v55  ;;  %v7931_v55 = vld [vmem:[%s9377_s24 + $0xf8] sm:$0xff] }
 0x1af   : > { %15752 = vst [vmem:[#allocation126_spill] sm:$0xff] %v10186_v59  ;;  %15753 = vst [vmem:[#allocation127_spill] sm:$0xff] %v10188_v7  ;;  %v7930_v7 = vld [vmem:[%s9377_s24 + $0x1df] sm:$0xff]  ;;  %v7929_v59 = vld [vmem:[%s9377_s24 + $0x1d7] sm:$0xff] }
 0x1b0   : > { %1283 = vrot.lane.b32.xlu1 %v7926_v42, %s9316_s4  ;;  %1281 = vrot.lane.b32.xlu0 %v7925_v31, %s9316_s4  ;;  %v7932_v31 = vld [vmem:[%s9377_s24 + $0x100] sm:$0xff] }
 0x1b2   : > { %v10199_v54 = vpop.permute.xlu1 %1051  ;;  %v10201_v51 = vpop.permute.xlu0 %1049 }
 0x1b3   : > { %15754 = vst [vmem:[#allocation128_spill] sm:$0xff] %v10199_v54  ;;  %15755 = vst [vmem:[#allocation129_spill] sm:$0xff] %v10201_v51  ;;  %v7933_v54 = vld [vmem:[%s9377_s24 + $0x108] sm:$0xff] }
 0x1b4   : > { %1287 = vrot.lane.b32.xlu1 %v7928_v34, %s9316_s4  ;;  %1285 = vrot.lane.b32.xlu0 %v7927_v29, %s9316_s4  ;;  %v7934_v29 = vld [vmem:[%s9377_s24 + $0x110] sm:$0xff] }
 0x1b6   : > { %v10207_v42 = vpop.permute.xlu1 %1115  ;;  %v10209_v52 = vpop.permute.xlu0 %1113 }
 0x1b7   : > { %15756 = vst [vmem:[#allocation130_spill] sm:$0xff] %v10207_v42  ;;  %15757 = vst [vmem:[#allocation131_spill] sm:$0xff] %v10209_v52 }
 0x1b8   : > { %1291 = vrot.lane.b32.xlu1 %v7930_v7, %s9316_s4  ;;  %1289 = vrot.lane.b32.xlu0 %v7929_v59, %s9316_s4  ;;  %v7936_v59 = vld [vmem:[%s9377_s24 + $0x120] sm:$0xff] }
 0x1ba   : > { %v10215_v51 = vpop.permute.xlu1 %1119  ;;  %v10217_v34 = vpop.permute.xlu0 %1117 }
 0x1bb   : > { %15758 = vst [vmem:[#allocation132_spill] sm:$0xff] %v10215_v51  ;;  %15759 = vst [vmem:[#allocation133_spill] sm:$0xff] %v10217_v34  ;;  %v7935_v34 = vld [vmem:[%s9377_s24 + $0x118] sm:$0xff] }
 0x1bc   : > { %1355 = vrot.lane.b32.xlu1 %v7932_v31, %s9317_s22  ;;  %1353 = vrot.lane.b32.xlu0 %v7931_v55, %s9317_s22  ;;  %v7938_v55 = vld [vmem:[%s9377_s24 + $0x130] sm:$0xff] }
 0x1be   : > { %v10223_v6 = vpop.permute.xlu1 %1123  ;;  %v10225_v7 = vpop.permute.xlu0 %1121 }
 0x1bf   : > { %15760 = vst [vmem:[#allocation134_spill] sm:$0xff] %v10223_v6  ;;  %15761 = vst [vmem:[#allocation135_spill] sm:$0xff] %v10225_v7  ;;  %v7937_v6 = vld [vmem:[%s9377_s24 + $0x128] sm:$0xff] }
 0x1c0   : > { %1359 = vrot.lane.b32.xlu1 %v7934_v29, %s9317_s22  ;;  %1357 = vrot.lane.b32.xlu0 %v7933_v54, %s9317_s22  ;;  %v7940_v54 = vld [vmem:[%s9377_s24 + $0x140] sm:$0xff] }
 0x1c2   : > { %v10231_v51 = vpop.permute.xlu1 %1127  ;;  %v10233_v31 = vpop.permute.xlu0 %1125 }
 0x1c3   : > { %15762 = vst [vmem:[#allocation136_spill] sm:$0xff] %v10231_v51  ;;  %15763 = vst [vmem:[#allocation137_spill] sm:$0xff] %v10233_v31  ;;  %v7939_v51 = vld [vmem:[%s9377_s24 + $0x138] sm:$0xff] }
 0x1c4   : > { %1363 = vrot.lane.b32.xlu1 %v7936_v59, %s9317_s22  ;;  %1361 = vrot.lane.b32.xlu0 %v7935_v34, %s9317_s22  ;;  %v7942_v34 = vld [vmem:[%s9377_s24 + $0x150] sm:$0xff] }
 0x1c6   : > { %v10239_v7 = vpop.permute.xlu1 %1131  ;;  %v10241_v29 = vpop.permute.xlu0 %1129 }
 0x1c7   : > { %15764 = vst [vmem:[#allocation138_spill] sm:$0xff] %v10239_v7  ;;  %15765 = vst [vmem:[#allocation139_spill] sm:$0xff] %v10241_v29  ;;  %v7941_v7 = vld [vmem:[%s9377_s24 + $0x148] sm:$0xff] }
 0x1c8   : > { %1367 = vrot.lane.b32.xlu1 %v7938_v55, %s9317_s22  ;;  %1365 = vrot.lane.b32.xlu0 %v7937_v6, %s9317_s22  ;;  %v7944_v6 = vld [vmem:[%s9377_s24 + $0x160] sm:$0xff] }
 0x1ca   : > { %v10247_v31 = vpop.permute.xlu1 %1135  ;;  %v10249_v59 = vpop.permute.xlu0 %1133 }
 0x1cb   : > { %15766 = vst [vmem:[#allocation140_spill] sm:$0xff] %v10247_v31  ;;  %15767 = vst [vmem:[#allocation141_spill] sm:$0xff] %v10249_v59  ;;  %v7943_v31 = vld [vmem:[%s9377_s24 + $0x158] sm:$0xff] }
 0x1cc   : > { %1371 = vrot.lane.b32.xlu1 %v7940_v54, %s9317_s22  ;;  %1369 = vrot.lane.b32.xlu0 %v7939_v51, %s9317_s22  ;;  %v7946_v51 = vld [vmem:[%s9377_s24 + $0x170] sm:$0xff] }
 0x1ce   : > { %v10255_v29 = vpop.permute.xlu1 %1139  ;;  %v10257_v55 = vpop.permute.xlu0 %1137 }
 0x1cf   : > { %15768 = vst [vmem:[#allocation142_spill] sm:$0xff] %v10255_v29  ;;  %15769 = vst [vmem:[#allocation143_spill] sm:$0xff] %v10257_v55  ;;  %v7945_v29 = vld [vmem:[%s9377_s24 + $0x168] sm:$0xff] }
 0x1d0   : > { %1375 = vrot.lane.b32.xlu1 %v7942_v34, %s9317_s22  ;;  %1373 = vrot.lane.b32.xlu0 %v7941_v7, %s9317_s22  ;;  %v7948_v7 = vld [vmem:[%s9377_s24 + $0x180] sm:$0xff] }
 0x1d2   : > { %v10263_v59 = vpop.permute.xlu1 %1143  ;;  %v10265_v54 = vpop.permute.xlu0 %1141 }
 0x1d3   : > { %15770 = vst [vmem:[#allocation144_spill] sm:$0xff] %v10263_v59  ;;  %15771 = vst [vmem:[#allocation145_spill] sm:$0xff] %v10265_v54  ;;  %v7947_v59 = vld [vmem:[%s9377_s24 + $0x178] sm:$0xff] }
 0x1d4   : > { %1379 = vrot.lane.b32.xlu1 %v7944_v6, %s9317_s22  ;;  %1377 = vrot.lane.b32.xlu0 %v7943_v31, %s9317_s22  ;;  %v7950_v31 = vld [vmem:[%s9377_s24 + $0x190] sm:$0xff] }
 0x1d6   : > { %v10271_v55 = vpop.permute.xlu1 %1147  ;;  %v10273_v34 = vpop.permute.xlu0 %1145 }
 0x1d7   : > { %15772 = vst [vmem:[#allocation146_spill] sm:$0xff] %v10271_v55  ;;  %15773 = vst [vmem:[#allocation147_spill] sm:$0xff] %v10273_v34  ;;  %v7949_v55 = vld [vmem:[%s9377_s24 + $0x188] sm:$0xff] }
 0x1d8   : > { %1383 = vrot.lane.b32.xlu1 %v7946_v51, %s9317_s22  ;;  %1381 = vrot.lane.b32.xlu0 %v7945_v29, %s9317_s22  ;;  %v7952_v29 = vld [vmem:[%s9377_s24 + $0x1a0] sm:$0xff] }
 0x1da   : > { %v10279_v54 = vpop.permute.xlu1 %1151  ;;  %v10281_v6 = vpop.permute.xlu0 %1149 }
 0x1db   : > { %15774 = vst [vmem:[#allocation148_spill] sm:$0xff] %v10279_v54  ;;  %15775 = vst [vmem:[#allocation149_spill] sm:$0xff] %v10281_v6  ;;  %v7951_v54 = vld [vmem:[%s9377_s24 + $0x198] sm:$0xff] }
 0x1dc   : > { %1387 = vrot.lane.b32.xlu1 %v7948_v7, %s9317_s22  ;;  %1385 = vrot.lane.b32.xlu0 %v7947_v59, %s9317_s22  ;;  %v7954_v59 = vld [vmem:[%s9377_s24 + $0x1b0] sm:$0xff] }
 0x1de   : > { %v10287_v34 = vpop.permute.xlu1 %1155  ;;  %v10289_v51 = vpop.permute.xlu0 %1153 }
 0x1df   : > { %15776 = vst [vmem:[#allocation150_spill] sm:$0xff] %v10287_v34  ;;  %15777 = vst [vmem:[#allocation151_spill] sm:$0xff] %v10289_v51  ;;  %v7953_v34 = vld [vmem:[%s9377_s24 + $0x1a8] sm:$0xff] }
 0x1e0   : > { %1391 = vrot.lane.b32.xlu1 %v7950_v31, %s9317_s22  ;;  %1389 = vrot.lane.b32.xlu0 %v7949_v55, %s9317_s22  ;;  %v7956_v55 = vld [vmem:[%s9377_s24 + $0x1c0] sm:$0xff] }
 0x1e2   : > { %v10295_v6 = vpop.permute.xlu1 %1159  ;;  %v10297_v7 = vpop.permute.xlu0 %1157 }
 0x1e3   : > { %15778 = vst [vmem:[#allocation152_spill] sm:$0xff] %v10295_v6  ;;  %15779 = vst [vmem:[#allocation153_spill] sm:$0xff] %v10297_v7  ;;  %v7955_v6 = vld [vmem:[%s9377_s24 + $0x1b8] sm:$0xff] }
 0x1e4   : > { %1395 = vrot.lane.b32.xlu1 %v7952_v29, %s9317_s22  ;;  %1393 = vrot.lane.b32.xlu0 %v7951_v54, %s9317_s22  ;;  %v7958_v54 = vld [vmem:[%s9377_s24 + $0x1d0] sm:$0xff] }
 0x1e6   : > { %v10303_v51 = vpop.permute.xlu1 %1163  ;;  %v10305_v31 = vpop.permute.xlu0 %1161 }
 0x1e7   : > { %15780 = vst [vmem:[#allocation154_spill] sm:$0xff] %v10303_v51  ;;  %15781 = vst [vmem:[#allocation155_spill] sm:$0xff] %v10305_v31  ;;  %v7957_v51 = vld [vmem:[%s9377_s24 + $0x1c8] sm:$0xff] }
 0x1e8   : > { %1399 = vrot.lane.b32.xlu1 %v7954_v59, %s9317_s22  ;;  %1397 = vrot.lane.b32.xlu0 %v7953_v34, %s9317_s22  ;;  %v7960_v34 = vld [vmem:[%s9377_s24 + $0x1e0] sm:$0xff] }
 0x1ea   : > { %v10311_v7 = vpop.permute.xlu1 %1167  ;;  %v10313_v29 = vpop.permute.xlu0 %1165 }
 0x1eb   : > { %15782 = vst [vmem:[#allocation156_spill] sm:$0xff] %v10311_v7  ;;  %15783 = vst [vmem:[#allocation157_spill] sm:$0xff] %v10313_v29  ;;  %v7959_v7 = vld [vmem:[%s9377_s24 + $0x1d8] sm:$0xff] }
 0x1ec   : > { %1403 = vrot.lane.b32.xlu1 %v7956_v55, %s9317_s22  ;;  %1401 = vrot.lane.b32.xlu0 %v7955_v6, %s9317_s22  ;;  %v8023_v6 = vld [vmem:[%s9377_s24 + $0x87] sm:$0xff] }
 0x1ee   : > { %v10319_v31 = vpop.permute.xlu1 %1171  ;;  %v10321_v59 = vpop.permute.xlu0 %1169 }
 0x1ef   : > { %15784 = vst [vmem:[#allocation158_spill] sm:$0xff] %v10319_v31  ;;  %15785 = vst [vmem:[#allocation159_spill] sm:$0xff] %v10321_v59  ;;  %v8022_v31 = vld [vmem:[%s9377_s24 + $0x7f] sm:$0xff] }
 0x1f0   : > { %1407 = vrot.lane.b32.xlu1 %v7958_v54, %s9317_s22  ;;  %1405 = vrot.lane.b32.xlu0 %v7957_v51, %s9317_s22  ;;  %v8025_v51 = vld [vmem:[%s9377_s24 + $0x97] sm:$0xff] }
 0x1f2   : > { %v10327_v29 = vpop.permute.xlu1 %1235  ;;  %v10329_v55 = vpop.permute.xlu0 %1233 }
 0x1f3   : > { %15786 = vst [vmem:[#allocation160_spill] sm:$0xff] %v10327_v29  ;;  %15787 = vst [vmem:[#allocation161_spill] sm:$0xff] %v10329_v55  ;;  %v8024_v29 = vld [vmem:[%s9377_s24 + $0x8f] sm:$0xff] }
 0x1f4   : > { %1411 = vrot.lane.b32.xlu1 %v7960_v34, %s9317_s22  ;;  %1409 = vrot.lane.b32.xlu0 %v7959_v7, %s9317_s22  ;;  %v8027_v7 = vld [vmem:[%s9377_s24 + $0xa7] sm:$0xff] }
 0x1f6   : > { %v10335_v59 = vpop.permute.xlu1 %1239  ;;  %v10337_v54 = vpop.permute.xlu0 %1237 }
 0x1f7   : > { %15788 = vst [vmem:[#allocation162_spill] sm:$0xff] %v10335_v59  ;;  %15789 = vst [vmem:[#allocation163_spill] sm:$0xff] %v10337_v54  ;;  %v8026_v59 = vld [vmem:[%s9377_s24 + $0x9f] sm:$0xff] }
 0x1f8   : > { %2294 = vrot.lane.b32.xlu1 %v8023_v6, %s9310_s25  ;;  %2292 = vrot.lane.b32.xlu0 %v8022_v31, %s9310_s25  ;;  %v8029_v31 = vld [vmem:[%s9377_s24 + $0xb7] sm:$0xff] }
 0x1fa   : > { %v10343_v55 = vpop.permute.xlu1 %1243  ;;  %v10345_v34 = vpop.permute.xlu0 %1241 }
 0x1fb   : > { %15790 = vst [vmem:[#allocation164_spill] sm:$0xff] %v10343_v55  ;;  %15791 = vst [vmem:[#allocation165_spill] sm:$0xff] %v10345_v34  ;;  %v8028_v55 = vld [vmem:[%s9377_s24 + $0xaf] sm:$0xff] }
 0x1fc   : > { %2298 = vrot.lane.b32.xlu1 %v8025_v51, %s9310_s25  ;;  %2296 = vrot.lane.b32.xlu0 %v8024_v29, %s9310_s25  ;;  %v8031_v29 = vld [vmem:[%s9377_s24 + $0xc7] sm:$0xff] }
 0x1fe   : > { %v10351_v54 = vpop.permute.xlu1 %1247  ;;  %v10353_v6 = vpop.permute.xlu0 %1245 }
 0x1ff   : > { %15792 = vst [vmem:[#allocation166_spill] sm:$0xff] %v10351_v54  ;;  %15793 = vst [vmem:[#allocation167_spill] sm:$0xff] %v10353_v6  ;;  %v8030_v54 = vld [vmem:[%s9377_s24 + $0xbf] sm:$0xff] }
 0x200   : > { %2302 = vrot.lane.b32.xlu1 %v8027_v7, %s9310_s25  ;;  %2300 = vrot.lane.b32.xlu0 %v8026_v59, %s9310_s25  ;;  %v8033_v59 = vld [vmem:[%s9377_s24 + $0xd7] sm:$0xff] }
 0x202   : > { %v10359_v34 = vpop.permute.xlu1 %1251  ;;  %v10361_v51 = vpop.permute.xlu0 %1249 }
 0x203   : > { %15794 = vst [vmem:[#allocation168_spill] sm:$0xff] %v10359_v34  ;;  %15795 = vst [vmem:[#allocation169_spill] sm:$0xff] %v10361_v51  ;;  %v8032_v34 = vld [vmem:[%s9377_s24 + $0xcf] sm:$0xff] }
 0x204   : > { %2306 = vrot.lane.b32.xlu1 %v8029_v31, %s9310_s25  ;;  %2304 = vrot.lane.b32.xlu0 %v8028_v55, %s9310_s25  ;;  %v8035_v55 = vld [vmem:[%s9377_s24 + $0xe7] sm:$0xff]  ;;  %v8034_v31 = vld [vmem:[%s9377_s24 + $0xdf] sm:$0xff] }
 0x206   : > { %v10367_v6 = vpop.permute.xlu1 %1255  ;;  %v10369_v7 = vpop.permute.xlu0 %1253 }
 0x207   : > { %15796 = vst [vmem:[#allocation170_spill] sm:$0xff] %v10367_v6 }
 0x208   : > { %2310 = vrot.lane.b32.xlu1 %v8031_v29, %s9310_s25  ;;  %2308 = vrot.lane.b32.xlu0 %v8030_v54, %s9310_s25  ;;  %v8036_v54 = vld [vmem:[%s9377_s24 + $0xef] sm:$0xff] }
 0x20a   : > { %v10375_v52 = vpop.permute.xlu1 %1259  ;;  %v10377_v51 = vpop.permute.xlu0 %1257 }
 0x20b   : > { %15797 = vst [vmem:[#allocation171_spill] sm:$0xff] %v10375_v52 }
 0x20c   : > { %2314 = vrot.lane.b32.xlu1 %v8033_v59, %s9310_s25  ;;  %2312 = vrot.lane.b32.xlu0 %v8032_v34, %s9310_s25 }
 0x20e   : > { %v10383_v6 = vpop.permute.xlu1 %1263  ;;  %v10385_v42 = vpop.permute.xlu0 %1261 }
 0x210   : > { %2318 = vrot.lane.b32.xlu1 %v8035_v55, %s9310_s25  ;;  %2316 = vrot.lane.b32.xlu0 %v8034_v31, %s9310_s25 }
 0x212   : > { %v10390_v29 = vpop.permute.xlu1 %1267  ;;  %v10392_v52 = vpop.permute.xlu0 %1265 }
 0x214   : > { %2322 = vrot.lane.b32.xlu1 %v10035_v45, %s9310_s25  ;;  %2320 = vrot.lane.b32.xlu0 %v8036_v54, %s9310_s25 }
 0x216   : > { %v10397_v34 = vpop.permute.xlu1 %1271  ;;  %v10399_v59 = vpop.permute.xlu0 %1269 }
 0x217   : > { %15798 = vst [vmem:[#allocation172_spill] sm:$0xff] %v10399_v59  ;;  %v7692_v59 = vld [vmem:[%s9377_s24 + $0xc2] sm:$0xff] }
 0x218   : > { %2326 = vrot.lane.b32.xlu1 %v10049_v22, %s9310_s25  ;;  %2324 = vrot.lane.b32.xlu0 %v10032_v33, %s9310_s25  ;;  %v7693_v33 = vld [vmem:[%s9377_s24 + $0xca] sm:$0xff]  ;;  %v7691_v22 = vld [vmem:[%s9377_s24 + $0xba] sm:$0xff] }
 0x21a   : > { %v10405_v55 = vpop.permute.xlu1 %1275  ;;  %v10407_v31 = vpop.permute.xlu0 %1273 }
 0x21b   : > { %15799 = vst [vmem:[#allocation173_spill] sm:$0xff] %v10405_v55  ;;  %15800 = vst [vmem:[#allocation174_spill] sm:$0xff] %v10407_v31  ;;  %v7694_v31 = vld [vmem:[%s9377_s24 + $0xd2] sm:$0xff] }
 0x21c   : > { %2330 = vrot.lane.b32.xlu1 %v10063_v14, %s9310_s25  ;;  %2328 = vrot.lane.b32.xlu0 %v10046_v46, %s9310_s25  ;;  %v1446_v46 = vsel %vm1443_vm1, %v7693_v33, %v9497_v60  ;;  %v10450_v60 = vsel %vm1443_vm1, %v9762_v53, %v9521_v8  ;;  %v10474_v8 = vsel %vm1443_vm1, %v9790_v19, %v9537_v16  ;;  %v15804_v19 = vld [vmem:[#allocation131_spill] sm:$0xff] }
 0x21d   : > { %v10498_v16 = vsel %vm1443_vm1, %v9818_v41, %v9553_v24 }
 0x21e   : > { %v10413_v45 = vpop.permute.xlu1 %1279  ;;  %v10415_v54 = vpop.permute.xlu0 %1277 }
 0x220   : > { %2334 = vrot.lane.b32.xlu1 %v10077_v36, %s9310_s25  ;;  %2332 = vrot.lane.b32.xlu0 %v10060_v15, %s9310_s25  ;;  %v1444_v15 = vsel %vm1443_vm1, %v7691_v22, %v9499_v61  ;;  %v1447_v36 = vsel %vm1443_vm1, %v7694_v31, %v9505_v0  ;;  %v15810_v22 = vld [vmem:[#allocation2_spill] sm:$0xff] }
 0x222   : > { %v10424_v55 = vpop.permute.xlu1 %1283  ;;  %v10426_v14 = vpop.permute.xlu0 %1281 }
 0x223   : > { %15801 = vst [vmem:[#allocation175_spill] sm:$0xff] %v10426_v14  ;;  %v1445_v14 = vsel %vm1443_vm1, %v7692_v59, %v9507_v1  ;;  %v10459_v1 = vsel %vm1443_vm1, %v9765_v10, %v9523_v9  ;;  %v10479_v9 = vsel %vm1443_vm1, %v9793_v18, %v9539_v17  ;;  %v15805_v10 = vld [vmem:[#allocation42_spill] sm:$0xff] }
 0x224   : > { %2338 = vrot.lane.b32.xlu1 %v10091_v37, %s9310_s25  ;;  %2336 = vrot.lane.b32.xlu0 %v10074_v48, %s9310_s25  ;;  %v1449_v37 = vsel %vm1443_vm1, %v9748_v26, %v9513_v4  ;;  %v1448_v48 = vsel %vm1443_vm1, %v9751_v27, %v9515_v5  ;;  %v10464_v4 = vsel %vm1443_vm1, %v9776_v49, %v9529_v12 }
 0x225   : > { %v10469_v5 = vsel %vm1443_vm1, %v9779_v35, %v9531_v13  ;;  %v10484_v12 = vsel %vm1443_vm1, %v9804_v2, %v9545_v20  ;;  %v10489_v13 = vsel %vm1443_vm1, %v9807_v44, %v9547_v21  ;;  %v1476_v17 = vsel %vm1474_vm2, %v1445_v14, %v9617_v56  ;;  %v15811_v14 = vld [vmem:[#allocation55_spill] sm:$0xff] }
 0x226   : > { %v10452_v61 = vpop.permute.xlu1 %1287  ;;  %v10454_v0 = vpop.permute.xlu0 %1285  ;;  %v1475_v20 = vsel %vm1474_vm2, %v1444_v15, %v9619_v57  ;;  %v10507_v21 = vsel %vm1443_vm1, %v9821_v47, %v9555_v25  ;;  %v10520_v49 = vsel %vm1443_vm1, %v9832_v39, %v9561_v28  ;;  %v1478_v56 = vsel %vm1474_vm2, %v1447_v36, %v9625_v62  ;;  %v15802_v39 = vld [vmem:[#allocation41_spill] sm:$0xff]  ;;  %v15803_v62 = vld [vmem:[#allocation130_spill] sm:$0xff]  ;;  %v15812_v15 = vld [vmem:[#allocation100_spill] sm:$0xff] }
 0x227   : > { %v1506_v44 = vsel %vm1505_vm3, %v1475_v20, %v9739_v58  ;;  %v1477_v28 = vsel %vm1474_vm2, %v1446_v46, %v9627_v63  ;;  %v1509_v2 = vsel %vm1505_vm3, %v1478_v56, %v15802_v39  ;;  %v15806_v58 = vld [vmem:[#allocation160_spill] sm:$0xff]  ;;  %v10559_v46 = vsel %vm1443_vm1, %v15811_v14, %v15810_v22  ;;  %v15819_v39 = vld [vmem:[#allocation133_spill] sm:$0xff]  ;;  %v15826_v14 = vld [vmem:[#allocation3_spill] sm:$0xff] }
 0x228   : > { %2342 = vrot.lane.b32.xlu1 %v10105_v30, %s9310_s25  ;;  %2340 = vrot.lane.b32.xlu0 %v10088_v32, %s9310_s25  ;;  %v1507_v32 = vsel %vm1505_vm3, %v1476_v17, %v9737_v11  ;;  %v1537_v53 = vsel %vm1536_vm4, %v1506_v44, %v9907_v40  ;;  %v1508_v11 = vsel %vm1505_vm3, %v1477_v28, %v15805_v10  ;;  %v15808_v30 = vld [vmem:[#allocation72_spill] sm:$0xff]  ;;  %v15813_v17 = vld [vmem:[#allocation101_spill] sm:$0xff] }
 0x229   : > { %v1538_v25 = vsel %vm1536_vm4, %v1507_v32, %v9905_v3  ;;  %v1568_v47 = vsel %vm1567_vm5, %v1537_v53, %v10027_v50  ;;  %v1540_v50 = vsel %vm1536_vm4, %v1509_v2, %v15808_v30  ;;  %v15814_v32 = vld [vmem:[#allocation115_spill] sm:$0xff]  ;;  %v15815_v44 = vld [vmem:[#allocation112_spill] sm:$0xff] }
 0x22a   : > { %v10513_v24 = vpop.permute.xlu1 %1291  ;;  %v10515_v41 = vpop.permute.xlu0 %1289  ;;  %v1569_v57 = vsel %vm1567_vm5, %v1538_v25, %v10025_v38  ;;  %v1599_v35 = vsel %vm1598_vm6, %v1568_v47, %v15804_v19  ;;  %v15809_v38 = vld [vmem:[#allocation73_spill] sm:$0xff]  ;;  %v1571_v36 = vsel %vm1567_vm5, %v1540_v50, %v15812_v15  ;;  %v15816_v25 = vld [vmem:[#allocation15_spill] sm:$0xff]  ;;  %v15817_v56 = vld [vmem:[#allocation16_spill] sm:$0xff] }
 0x22b   : > { %v1600_v18 = vsel %vm1598_vm6, %v1569_v57, %v15803_v62  ;;  %v1539_v59 = vsel %vm1536_vm4, %v1508_v11, %v15809_v38  ;;  %v1480_v53 = vsel %vm1474_vm2, %v1449_v37, %v15816_v25  ;;  %v1479_v57 = vsel %vm1474_vm2, %v1448_v48, %v15817_v56  ;;  %v15818_v47 = vld [vmem:[#allocation132_spill] sm:$0xff]  ;;  %v15820_v19 = vld [vmem:[#allocation43_spill] sm:$0xff]  ;;  %v15822_v37 = vld [vmem:[#allocation162_spill] sm:$0xff] }
 0x22c   : > { %2346 = vrot.lane.b32.xlu1 %v10119_v43, %s9310_s25  ;;  %2344 = vrot.lane.b32.xlu0 %v10102_v23, %s9310_s25  ;;  %v1631_v26 = vsel %vm1629_vm7, %v1600_v18, %v15806_v58  ;;  %v15807_v23 = vld [vmem:[#allocation161_spill] sm:$0xff]  ;;  %v1570_v20 = vsel %vm1567_vm5, %v1539_v59, %v15813_v17  ;;  %v1602_v28 = vsel %vm1598_vm6, %v1571_v36, %v15818_v47  ;;  %v8053_v62 = vld [vmem:[%s9377_s24 + $0x8a] sm:$0xff]  ;;  %v8052_v18 = vld [vmem:[%s9377_s24 + $0x82] sm:$0xff] }
 0x22d   : > { %v1630_v27 = vsel %vm1629_vm7, %v1599_v35, %v15807_v23  ;;  %v1601_v2 = vsel %vm1598_vm6, %v1570_v20, %v15819_v39  ;;  %v1511_v35 = vsel %vm1505_vm3, %v1480_v53, %v15820_v19  ;;  %v15821_v10 = vld [vmem:[#allocation44_spill] sm:$0xff]  ;;  %v1633_v58 = vsel %vm1629_vm7, %v1602_v28, %v15822_v37  ;;  %v15823_v48 = vld [vmem:[#allocation163_spill] sm:$0xff]  ;;  %v15827_v15 = vld [vmem:[#allocation58_spill] sm:$0xff] }
 0x22e   : > { %v1356_v43 = vpop.permute.xlu1 %1355  ;;  %v1354_v63 = vpop.permute.xlu0 %1353  ;;  %v1510_v11 = vsel %vm1505_vm3, %v1479_v57, %v15821_v10  ;;  %v15825_v50 = vld [vmem:[#allocation75_spill] sm:$0xff]  ;;  %v10598_v36 = vsel %vm1443_vm1, %v15827_v15, %v15826_v14  ;;  %v15831_v53 = vld [vmem:[#allocation18_spill] sm:$0xff]  ;;  %v15834_v19 = vld [vmem:[#allocation45_spill] sm:$0xff] }
 0x22f   : > { %v1662_v31 = vsel %vm1660_vm8, %v1631_v26, %v1356_v43  ;;  %v1661_v33 = vsel %vm1660_vm8, %v1630_v27, %v1354_v63  ;;  %v1632_v26 = vsel %vm1629_vm7, %v1601_v2, %v15823_v48  ;;  %v15824_v43 = vld [vmem:[#allocation74_spill] sm:$0xff]  ;;  %v1541_v59 = vsel %vm1536_vm4, %v1510_v11, %v15825_v50  ;;  %v15829_v20 = vld [vmem:[#allocation103_spill] sm:$0xff]  ;;  %v15836_v10 = vld [vmem:[#allocation164_spill] sm:$0xff] }
 0x230   : > { %2350 = vrot.lane.b32.xlu1 %v15814_v32, %s9310_s25  ;;  %2348 = vrot.lane.b32.xlu0 %v15815_v44, %s9310_s25  ;;  %v1542_v63 = vsel %vm1536_vm4, %v1511_v35, %v15824_v43  ;;  %v1572_v32 = vsel %vm1567_vm5, %v1541_v59, %v15829_v20  ;;  %v15830_v44 = vld [vmem:[#allocation17_spill] sm:$0xff]  ;;  %v1481_v56 = vsel %vm1474_vm2, %v10459_v1, %v15831_v53  ;;  %v15832_v57 = vld [vmem:[#allocation134_spill] sm:$0xff]  ;;  %v15833_v28 = vld [vmem:[#allocation135_spill] sm:$0xff] }
 0x231   : > { %8943 = vmatprep.mubr.msk.f32.mxu0 %vm1696_vm9, %v1661_v33  ;;  %v1482_v25 = vsel %vm1474_vm2, %v10450_v60, %v15830_v44  ;;  %v1603_v39 = vsel %vm1598_vm6, %v1572_v32, %v15833_v28  ;;  %v8055_v2 = vld [vmem:[%s9377_s24 + $0x9a] sm:$0xff]  ;;  %v15840_v14 = vld [vmem:[#allocation4_spill] sm:$0xff]  ;;  %v15841_v15 = vld [vmem:[#allocation59_spill] sm:$0xff] }
 0x232   : > { %8944 = vmatmul.mubr.msk.f32.vlgmr.msra.gmra.mrb[0].mxu0 %vm1696_vm9, %v1662_v31  ;;  %v1360_v23 = vpop.permute.xlu1 %1359  ;;  %v1358_v27 = vpop.permute.xlu0 %1357  ;;  %v15828_v31 = vld [vmem:[#allocation102_spill] sm:$0xff]  ;;  %v15837_v1 = vld [vmem:[#allocation165_spill] sm:$0xff]  ;;  %v15844_v44 = vld [vmem:[#allocation19_spill] sm:$0xff] }
 0x233   : > { %v1664_v33 = vsel %vm1660_vm8, %v1633_v58, %v1360_v23  ;;  %v1663_v22 = vsel %vm1660_vm8, %v1632_v26, %v1358_v27  ;;  %v1573_v17 = vsel %vm1567_vm5, %v1542_v63, %v15828_v31  ;;  %v15835_v35 = vld [vmem:[#allocation46_spill] sm:$0xff]  ;;  %v1634_v37 = vsel %vm1629_vm7, %v1603_v39, %v15837_v1  ;;  %v15838_v26 = vld [vmem:[#allocation76_spill] sm:$0xff]  ;;  %v15839_v27 = vld [vmem:[#allocation77_spill] sm:$0xff] }
 0x234   : > { %2414 = vrot.lane.b32.xlu1 %v8053_v62, %s9311_s26  ;;  %2412 = vrot.lane.b32.xlu0 %v8052_v18, %s9311_s26  ;;  %v1604_v47 = vsel %vm1598_vm6, %v1573_v17, %v15832_v57  ;;  %v8054_v62 = vld [vmem:[%s9377_s24 + $0x92] sm:$0xff]  ;;  %v1513_v18 = vsel %vm1505_vm3, %v1482_v25, %v15834_v19  ;;  %v1512_v60 = vsel %vm1505_vm3, %v1481_v56, %v15835_v35  ;;  %v8056_v19 = vld [vmem:[%s9377_s24 + $0xa2] sm:$0xff] }
 0x235   : > { %8946 = vmatprep.mubr.msk.f32.mxu0 %vm1696_vm9, %v1663_v22  ;;  %v1635_v11 = vsel %vm1629_vm7, %v1604_v47, %v15836_v10  ;;  %v1544_v23 = vsel %vm1536_vm4, %v1513_v18, %v15838_v26  ;;  %v1543_v63 = vsel %vm1536_vm4, %v1512_v60, %v15839_v27  ;;  %v10637_v31 = vsel %vm1443_vm1, %v15841_v15, %v15840_v14  ;;  %v15843_v20 = vld [vmem:[#allocation105_spill] sm:$0xff]  ;;  %v15845_v53 = vld [vmem:[#allocation20_spill] sm:$0xff]  ;;  %v15850_v60 = vld [vmem:[#allocation166_spill] sm:$0xff] }
 0x236   : > { %8947 = vmatmul.mubr.msk.f32.gmra.mrb[2].mxu0 %vm1696_vm9, %v1664_v33  ;;  %v1364_v58 = vpop.permute.xlu1 %1363  ;;  %v1362_v48 = vpop.permute.xlu0 %1361  ;;  %v15842_v33 = vld [vmem:[#allocation104_spill] sm:$0xff]  ;;  %v1574_v32 = vsel %vm1567_vm5, %v1543_v63, %v15843_v20  ;;  %v1484_v25 = vsel %vm1474_vm2, %v10464_v4, %v15844_v44  ;;  %v1483_v56 = vsel %vm1474_vm2, %v10469_v5, %v15845_v53  ;;  %v15847_v28 = vld [vmem:[#allocation137_spill] sm:$0xff]  ;;  %v15851_v10 = vld [vmem:[#allocation167_spill] sm:$0xff] }
 0x237   : > { %v1666_v59 = vsel %vm1660_vm8, %v1635_v11, %v1364_v58  ;;  %v1665_v22 = vsel %vm1660_vm8, %v1634_v37, %v1362_v48  ;;  %v1575_v17 = vsel %vm1567_vm5, %v1544_v23, %v15842_v33  ;;  %v15846_v57 = vld [vmem:[#allocation136_spill] sm:$0xff]  ;;  %v1605_v39 = vsel %vm1598_vm6, %v1574_v32, %v15847_v28  ;;  %v15852_v58 = vld [vmem:[#allocation78_spill] sm:$0xff]  ;;  %v15853_v23 = vld [vmem:[#allocation79_spill] sm:$0xff] }
 0x238   : > { %2418 = vrot.lane.b32.xlu1 %v8055_v2, %s9311_s26  ;;  %2416 = vrot.lane.b32.xlu0 %v8054_v62, %s9311_s26  ;;  %v1606_v47 = vsel %vm1598_vm6, %v1575_v17, %v15846_v57  ;;  %v8057_v2 = vld [vmem:[%s9377_s24 + $0xaa] sm:$0xff]  ;;  %v1636_v11 = vsel %vm1629_vm7, %v1605_v39, %v15851_v10  ;;  %v9235_v15 = vld [vmem:[%s9377_s24 + $0x162] sm:$0xff]  ;;  %v15854_v33 = vld [vmem:[#allocation5_spill] sm:$0xff] }
 0x239   : > { %8949 = vmatprep.mubr.msk.f32.mxu0 %vm1696_vm9, %v1665_v22  ;;  %v15848_v62 = vld [vmem:[#allocation47_spill] sm:$0xff]  ;;  %v15849_v35 = vld [vmem:[#allocation48_spill] sm:$0xff]  ;;  %v1637_v5 = vsel %vm1629_vm7, %v1606_v47, %v15850_v60  ;;  %v10676_v17 = vsel %vm1443_vm1, %v9235_v15, %v15854_v33  ;;  %v15859_v47 = vld [vmem:[#allocation138_spill] sm:$0xff] }
 0x23a   : > { %v1515_v18 = vsel %vm1505_vm3, %v1484_v25, %v15848_v62  ;;  %v1514_v4 = vsel %vm1505_vm3, %v1483_v56, %v15849_v35  ;;  %8950 = vmatmul.mubr.msk.f32.gmra.mrb[4].mxu0 %vm1696_vm9, %v1666_v59  ;;  %v1368_v1 = vpop.permute.xlu1 %1367  ;;  %v1366_v37 = vpop.permute.xlu0 %1365  ;;  %v15855_v59 = vld [vmem:[#allocation106_spill] sm:$0xff]  ;;  %v15856_v32 = vld [vmem:[#allocation107_spill] sm:$0xff]  ;;  %v15857_v25 = vld [vmem:[#allocation21_spill] sm:$0xff] }
 0x23b   : > { %v1546_v48 = vsel %vm1536_vm4, %v1515_v18, %v15852_v58  ;;  %v1545_v63 = vsel %vm1536_vm4, %v1514_v4, %v15853_v23  ;;  %v1668_v22 = vsel %vm1660_vm8, %v1637_v5, %v1368_v1  ;;  %v1667_v14 = vsel %vm1660_vm8, %v1636_v11, %v1366_v37  ;;  %v15858_v56 = vld [vmem:[#allocation22_spill] sm:$0xff]  ;;  %v15860_v39 = vld [vmem:[#allocation139_spill] sm:$0xff]  ;;  %v8058_v18 = vld [vmem:[%s9377_s24 + $0xb2] sm:$0xff] }
 0x23c   : > { %v1577_v20 = vsel %vm1567_vm5, %v1546_v48, %v15855_v59  ;;  %v1576_v44 = vsel %vm1567_vm5, %v1545_v63, %v15856_v32  ;;  %2422 = vrot.lane.b32.xlu1 %v8057_v2, %s9311_s26  ;;  %2420 = vrot.lane.b32.xlu0 %v8056_v19, %s9311_s26  ;;  %v1486_v53 = vsel %vm1474_vm2, %v10474_v8, %v15857_v25  ;;  %v8059_v2 = vld [vmem:[%s9377_s24 + $0xba] sm:$0xff]  ;;  %v15863_v60 = vld [vmem:[#allocation168_spill] sm:$0xff]  ;;  %v8013_v26 = vld [vmem:[%s9377_s24 + $0x124] sm:$0xff] }
 0x23d   : > { %v1485_v57 = vsel %vm1474_vm2, %v10479_v9, %v15858_v56  ;;  %v1608_v28 = vsel %vm1598_vm6, %v1577_v20, %v15859_v47  ;;  %v1607_v62 = vsel %vm1598_vm6, %v1576_v44, %v15860_v39  ;;  %8952 = vmatprep.mubr.msk.f32.mxu0 %vm1696_vm9, %v1667_v14  ;;  %v15861_v19 = vld [vmem:[#allocation49_spill] sm:$0xff]  ;;  %v15862_v4 = vld [vmem:[#allocation50_spill] sm:$0xff]  ;;  %v15865_v37 = vld [vmem:[#allocation80_spill] sm:$0xff] }
 0x23e   : > { %v1517_v35 = vsel %vm1505_vm3, %v1486_v53, %v15861_v19  ;;  %v1516_v8 = vsel %vm1505_vm3, %v1485_v57, %v15862_v4  ;;  %v1639_v9 = vsel %vm1629_vm7, %v1608_v28, %v15863_v60  ;;  %v15864_v5 = vld [vmem:[#allocation169_spill] sm:$0xff]  ;;  %8953 = vmatmul.mubr.msk.f32.gmra.mrb[6].mxu0 %vm1696_vm9, %v1668_v22  ;;  %v1372_v11 = vpop.permute.xlu1 %1371  ;;  %v1370_v1 = vpop.permute.xlu0 %1369  ;;  %v15867_v20 = vld [vmem:[#allocation6_spill] sm:$0xff]  ;;  %v15868_v22 = vld [vmem:[#allocation108_spill] sm:$0xff] }
 0x23f   : > { %v1638_v10 = vsel %vm1629_vm7, %v1607_v62, %v15864_v5  ;;  %v1548_v48 = vsel %vm1536_vm4, %v1517_v35, %v15865_v37  ;;  %v15866_v63 = vld [vmem:[#allocation81_spill] sm:$0xff]  ;;  %v1670_v15 = vsel %vm1660_vm8, %v1639_v9, %v1372_v11  ;;  %v15870_v56 = vld [vmem:[#allocation23_spill] sm:$0xff]  ;;  %v15871_v47 = vld [vmem:[#allocation24_spill] sm:$0xff] }
 0x240   : > { %v1547_v14 = vsel %vm1536_vm4, %v1516_v8, %v15866_v63  ;;  %v1669_v33 = vsel %vm1660_vm8, %v1638_v10, %v1370_v1  ;;  %v9236_v59 = vld [vmem:[%s9377_s24 + $0x15a] sm:$0xff]  ;;  %v1579_v44 = vsel %vm1567_vm5, %v1548_v48, %v15868_v22  ;;  %2426 = vrot.lane.b32.xlu1 %v8059_v2, %s9311_s26  ;;  %2424 = vrot.lane.b32.xlu0 %v8058_v18, %s9311_s26  ;;  %v15872_v39 = vld [vmem:[#allocation140_spill] sm:$0xff]  ;;  %v8060_v4 = vld [vmem:[%s9377_s24 + $0xc2] sm:$0xff] }
 0x241   : > { %v10715_v32 = vsel %vm1443_vm1, %v9236_v59, %v15867_v20  ;;  %v15869_v25 = vld [vmem:[#allocation109_spill] sm:$0xff]  ;;  %v1488_v57 = vsel %vm1474_vm2, %v10484_v12, %v15870_v56  ;;  %v1487_v28 = vsel %vm1474_vm2, %v10489_v13, %v15871_v47  ;;  %v1610_v62 = vsel %vm1598_vm6, %v1579_v44, %v15872_v39  ;;  %8955 = vmatprep.mubr.msk.f32.mxu0 %vm1696_vm9, %v1669_v33  ;;  %v8061_v2 = vld [vmem:[%s9377_s24 + $0xca] sm:$0xff]  ;;  %v15876_v9 = vld [vmem:[#allocation170_spill] sm:$0xff] }
 0x242   : > { %v1578_v53 = vsel %vm1567_vm5, %v1547_v14, %v15869_v25  ;;  %v15873_v19 = vld [vmem:[#allocation141_spill] sm:$0xff]  ;;  %v15874_v18 = vld [vmem:[#allocation51_spill] sm:$0xff]  ;;  %v15875_v60 = vld [vmem:[#allocation52_spill] sm:$0xff]  ;;  %v1641_v13 = vsel %vm1629_vm7, %v1610_v62, %v15876_v9  ;;  %8956 = vmatmul.mubr.msk.f32.gmra.mrb[8].mxu0 %vm1696_vm9, %v1670_v15  ;;  %v1376_v10 = vpop.permute.xlu1 %1375  ;;  %v1374_v11 = vpop.permute.xlu0 %1373 }
 0x243   : > { %v1609_v35 = vsel %vm1598_vm6, %v1578_v53, %v15873_v19  ;;  %v1519_v8 = vsel %vm1505_vm3, %v1488_v57, %v15874_v18  ;;  %v1518_v12 = vsel %vm1505_vm3, %v1487_v28, %v15875_v60  ;;  %v15877_v1 = vld [vmem:[#allocation82_spill] sm:$0xff]  ;;  %v15878_v14 = vld [vmem:[#allocation83_spill] sm:$0xff]  ;;  %v1672_v59 = vsel %vm1660_vm8, %v1641_v13, %v1376_v10  ;;  %v9237_v22 = vld [vmem:[%s9377_s24 + $0x172] sm:$0xff] }
 0x244   : > { %v1640_v5 = vsel %vm1629_vm7, %v1609_v35, %v10369_v7  ;;  %v1550_v48 = vsel %vm1536_vm4, %v1519_v8, %v15877_v1  ;;  %v1549_v33 = vsel %vm1536_vm4, %v1518_v12, %v15878_v14  ;;  %v15879_v44 = vld [vmem:[#allocation7_spill] sm:$0xff]  ;;  %v15880_v15 = vld [vmem:[#allocation110_spill] sm:$0xff]  ;;  %2430 = vrot.lane.b32.xlu1 %v8061_v2, %s9311_s26  ;;  %2428 = vrot.lane.b32.xlu0 %v8060_v4, %s9311_s26  ;;  %v15882_v57 = vld [vmem:[#allocation25_spill] sm:$0xff] }
 0x245   : > { %v1671_v20 = vsel %vm1660_vm8, %v1640_v5, %v1374_v11  ;;  %v10754_v7 = vsel %vm1443_vm1, %v9237_v22, %v15879_v44  ;;  %v1581_v25 = vsel %vm1567_vm5, %v1550_v48, %v15880_v15  ;;  %v15881_v53 = vld [vmem:[#allocation111_spill] sm:$0xff]  ;;  %v1490_v47 = vsel %vm1474_vm2, %v10498_v16, %v15882_v57  ;;  %v15883_v28 = vld [vmem:[#allocation26_spill] sm:$0xff]  ;;  %v8062_v8 = vld [vmem:[%s9377_s24 + $0xd2] sm:$0xff] }
 0x246   : > { %v1580_v56 = vsel %vm1567_vm5, %v1549_v33, %v15881_v53  ;;  %v1489_v39 = vsel %vm1474_vm2, %v10507_v21, %v15883_v28  ;;  %v15884_v62 = vld [vmem:[#allocation142_spill] sm:$0xff]  ;;  %v15885_v35 = vld [vmem:[#allocation143_spill] sm:$0xff]  ;;  %8958 = vmatprep.mubr.msk.f32.mxu0 %vm1696_vm9, %v1671_v20  ;;  %v15886_v4 = vld [vmem:[#allocation53_spill] sm:$0xff]  ;;  %v1380_v5 = vpop.permute.xlu1 %1379  ;;  %v1378_v10 = vpop.permute.xlu0 %1377 }
 0x247   : > { %v1612_v19 = vsel %vm1598_vm6, %v1581_v25, %v15884_v62  ;;  %v1611_v18 = vsel %vm1598_vm6, %v1580_v56, %v15885_v35  ;;  %v8063_v2 = vld [vmem:[%s9377_s24 + $0xda] sm:$0xff]  ;;  %v1521_v60 = vsel %vm1505_vm3, %v1490_v47, %v15886_v4  ;;  %v15888_v9 = vld [vmem:[#allocation171_spill] sm:$0xff]  ;;  %8959 = vmatmul.mubr.msk.f32.gmra.mrb[10].mxu0 %vm1696_vm9, %v1672_v59  ;;  %v15889_v11 = vld [vmem:[#allocation84_spill] sm:$0xff] }
 0x248   : > { %v15887_v12 = vld [vmem:[#allocation54_spill] sm:$0xff]  ;;  %v1643_v21 = vsel %vm1629_vm7, %v1612_v19, %v15888_v9  ;;  %v1642_v13 = vsel %vm1629_vm7, %v1611_v18, %v10377_v51  ;;  %v1552_v48 = vsel %vm1536_vm4, %v1521_v60, %v15889_v11  ;;  %v15890_v33 = vld [vmem:[#allocation85_spill] sm:$0xff]  ;;  %v9238_v15 = vld [vmem:[%s9377_s24 + $0x16a] sm:$0xff]  ;;  %2434 = vrot.lane.b32.xlu1 %v8063_v2, %s9311_s26  ;;  %2432 = vrot.lane.b32.xlu0 %v8062_v8, %s9311_s26 }
 0x249   : > { %v1520_v16 = vsel %vm1505_vm3, %v1489_v39, %v15887_v12  ;;  %v1674_v22 = vsel %vm1660_vm8, %v1643_v21, %v1380_v5  ;;  %v1673_v44 = vsel %vm1660_vm8, %v1642_v13, %v1378_v10  ;;  %v15891_v25 = vld [vmem:[#allocation8_spill] sm:$0xff]  ;;  %v15892_v59 = vld [vmem:[#allocation113_spill] sm:$0xff]  ;;  %v15893_v56 = vld [vmem:[#allocation114_spill] sm:$0xff] }
 0x24a   : > { %v1551_v20 = vsel %vm1536_vm4, %v1520_v16, %v15890_v33  ;;  %v10793_v51 = vsel %vm1443_vm1, %v9238_v15, %v15891_v25  ;;  %v1583_v53 = vsel %vm1567_vm5, %v1552_v48, %v15892_v59  ;;  %v15894_v47 = vld [vmem:[#allocation27_spill] sm:$0xff]  ;;  %v15895_v39 = vld [vmem:[#allocation28_spill] sm:$0xff]  ;;  %v15897_v18 = vld [vmem:[#allocation145_spill] sm:$0xff]  ;;  %8961 = vmatprep.mubr.msk.f32.mxu0 %vm1696_vm9, %v1673_v44  ;;  %v1384_v21 = vpop.permute.xlu1 %1383  ;;  %v1382_v13 = vpop.permute.xlu0 %1381 }
 0x24b   : > { %v1582_v57 = vsel %vm1567_vm5, %v1551_v20, %v15893_v56  ;;  %v1492_v28 = vsel %vm1474_vm2, %v10520_v49, %v15894_v47  ;;  %v1491_v62 = vsel %vm1474_vm2, %v10559_v46, %v15895_v39  ;;  %v15896_v19 = vld [vmem:[#allocation144_spill] sm:$0xff]  ;;  %v8064_v60 = vld [vmem:[%s9377_s24 + $0xe2] sm:$0xff]  ;;  %v15899_v16 = vld [vmem:[#allocation57_spill] sm:$0xff]  ;;  %8962 = vmatmul.mubr.msk.f32.gmra.mrb[12].mxu0 %vm1696_vm9, %v1674_v22 }
 0x24c   : > { %v1614_v35 = vsel %vm1598_vm6, %v1583_v53, %v15896_v19  ;;  %v1613_v4 = vsel %vm1598_vm6, %v1582_v57, %v15897_v18  ;;  %v8065_v2 = vld [vmem:[%s9377_s24 + $0xea] sm:$0xff]  ;;  %v1522_v49 = vsel %vm1505_vm3, %v1491_v62, %v15899_v16  ;;  %v15900_v5 = vld [vmem:[#allocation86_spill] sm:$0xff]  ;;  %v15902_v25 = vld [vmem:[#allocation9_spill] sm:$0xff]  ;;  %2436 = vrot.lane.b32.xlu0 %v8064_v60, %s9311_s26 }
 0x24d   : > { %v15898_v8 = vld [vmem:[#allocation56_spill] sm:$0xff]  ;;  %v1645_v46 = vsel %vm1629_vm7, %v1614_v35, %v10383_v6  ;;  %v1644_v9 = vsel %vm1629_vm7, %v1613_v4, %v10385_v42  ;;  %v15901_v48 = vld [vmem:[#allocation87_spill] sm:$0xff]  ;;  %v15904_v53 = vld [vmem:[#allocation117_spill] sm:$0xff]  ;;  %2438 = vrot.lane.b32.xlu1 %v8065_v2, %s9311_s26 }
 0x24e   : > { %v1523_v12 = vsel %vm1505_vm3, %v1492_v28, %v15898_v8  ;;  %v1553_v20 = vsel %vm1536_vm4, %v1522_v49, %v15901_v48  ;;  %v1676_v44 = vsel %vm1660_vm8, %v1645_v46, %v1384_v21  ;;  %v1675_v15 = vsel %vm1660_vm8, %v1644_v9, %v1382_v13  ;;  %v9239_v6 = vld [vmem:[%s9377_s24 + $0x182] sm:$0xff]  ;;  %v15903_v22 = vld [vmem:[#allocation116_spill] sm:$0xff]  ;;  %v15905_v57 = vld [vmem:[#allocation29_spill] sm:$0xff]  ;;  %v1388_v49 = vpop.permute.xlu1 %1387  ;;  %v1386_v46 = vpop.permute.xlu0 %1385 }
 0x24f   : > { %v1554_v10 = vsel %vm1536_vm4, %v1523_v12, %v15900_v5  ;;  %v10832_v42 = vsel %vm1443_vm1, %v9239_v6, %v15902_v25  ;;  %v1584_v56 = vsel %vm1567_vm5, %v1553_v20, %v15904_v53  ;;  %v1494_v47 = vsel %vm1474_vm2, %v10598_v36, %v15905_v57  ;;  %v15906_v28 = vld [vmem:[#allocation30_spill] sm:$0xff]  ;;  %v15908_v35 = vld [vmem:[#allocation147_spill] sm:$0xff]  ;;  %8964 = vmatprep.mubr.msk.f32.mxu0 %vm1696_vm9, %v1675_v15  ;;  %v8066_v2 = vld [vmem:[%s9377_s24 + $0xf2] sm:$0xff] }
 0x250   : > { %v1585_v59 = vsel %vm1567_vm5, %v1554_v10, %v15903_v22  ;;  %v1493_v39 = vsel %vm1474_vm2, %v10637_v31, %v15906_v28  ;;  %v15907_v62 = vld [vmem:[#allocation146_spill] sm:$0xff]  ;;  %v1615_v18 = vsel %vm1598_vm6, %v1584_v56, %v15908_v35  ;;  %v15909_v60 = vld [vmem:[#allocation60_spill] sm:$0xff]  ;;  %v15910_v12 = vld [vmem:[#allocation61_spill] sm:$0xff]  ;;  %8965 = vmatmul.mubr.msk.f32.gmra.mrb[14].mxu0 %vm1696_vm9, %v1676_v44  ;;  %2440 = vrot.lane.b32.xlu0 %v8066_v2, %s9311_s26 }
 0x251   : > { %v1616_v19 = vsel %vm1598_vm6, %v1585_v59, %v15907_v62  ;;  %v8067_v4 = vld [vmem:[%s9377_s24 + $0xfa] sm:$0xff]  ;;  %v1525_v8 = vsel %vm1505_vm3, %v1494_v47, %v15909_v60  ;;  %v1524_v36 = vsel %vm1505_vm3, %v1493_v39, %v15910_v12  ;;  %v1646_v16 = vsel %vm1629_vm7, %v1615_v18, %v10392_v52  ;;  %v15911_v9 = vld [vmem:[#allocation88_spill] sm:$0xff]  ;;  %v15915_v22 = vld [vmem:[#allocation119_spill] sm:$0xff] }
 0x252   : > { %v1647_v31 = vsel %vm1629_vm7, %v1616_v19, %v10390_v29  ;;  %v1556_v21 = vsel %vm1536_vm4, %v1525_v8, %v15911_v9  ;;  %v15912_v13 = vld [vmem:[#allocation89_spill] sm:$0xff]  ;;  %v1677_v15 = vsel %vm1660_vm8, %v1646_v16, %v1386_v46  ;;  %v15913_v6 = vld [vmem:[#allocation10_spill] sm:$0xff]  ;;  %2442 = vrot.lane.b32.xlu1 %v8067_v4, %s9311_s26  ;;  %v15916_v53 = vld [vmem:[#allocation31_spill] sm:$0xff] }
 0x253   : > { %v1555_v10 = vsel %vm1536_vm4, %v1524_v36, %v15912_v13  ;;  %v1678_v20 = vsel %vm1660_vm8, %v1647_v31, %v1388_v49  ;;  %v9240_v29 = vld [vmem:[%s9377_s24 + $0x17a] sm:$0xff]  ;;  %v1496_v56 = vsel %vm1474_vm2, %v10676_v17, %v15916_v53  ;;  %v15917_v57 = vld [vmem:[#allocation32_spill] sm:$0xff]  ;;  %8967 = vmatprep.mubr.msk.f32.mxu0 %vm1696_vm9, %v1677_v15  ;;  %v8068_v18 = vld [vmem:[%s9377_s24 + $0x102] sm:$0xff]  ;;  %v1392_v36 = vpop.permute.xlu1 %1391  ;;  %v1390_v31 = vpop.permute.xlu0 %1389 }
 0x254   : > { %v1468_v52 = vsel %vm1443_vm1, %v9240_v29, %v15913_v6  ;;  %v15914_v25 = vld [vmem:[#allocation118_spill] sm:$0xff]  ;;  %v1586_v59 = vsel %vm1567_vm5, %v1555_v10, %v15915_v22  ;;  %v1495_v47 = vsel %vm1474_vm2, %v10715_v32, %v15917_v57  ;;  %v15918_v28 = vld [vmem:[#allocation148_spill] sm:$0xff]  ;;  %v15919_v62 = vld [vmem:[#allocation149_spill] sm:$0xff]  ;;  %8968 = vmatmul.mubr.msk.f32.gmra.mrb[16].mxu0 %vm1696_vm9, %v1678_v20  ;;  %2444 = vrot.lane.b32.xlu0 %v8068_v18, %s9311_s26 }
 0x255   : > { %v1587_v44 = vsel %vm1567_vm5, %v1556_v21, %v15914_v25  ;;  %v1617_v19 = vsel %vm1598_vm6, %v1586_v59, %v15919_v62  ;;  %v8069_v35 = vld [vmem:[%s9377_s24 + $0x10a] sm:$0xff]  ;;  %v15920_v4 = vld [vmem:[#allocation62_spill] sm:$0xff]  ;;  %v15928_v59 = vld [vmem:[#allocation33_spill] sm:$0xff] }
 0x256   : > { %v1618_v39 = vsel %vm1598_vm6, %v1587_v44, %v15918_v28  ;;  %v1527_v2 = vsel %vm1505_vm3, %v1496_v56, %v15920_v4  ;;  %v15921_v60 = vld [vmem:[#allocation63_spill] sm:$0xff]  ;;  %v15922_v8 = vld [vmem:[#allocation172_spill] sm:$0xff]  ;;  %v15923_v16 = vld [vmem:[#allocation90_spill] sm:$0xff]  ;;  %2446 = vrot.lane.b32.xlu1 %v8069_v35, %s9311_s26  ;;  %v1498_v53 = vsel %vm1474_vm2, %v10754_v7, %v15928_v59 }
 0x257   : > { %v1526_v17 = vsel %vm1505_vm3, %v1495_v47, %v15921_v60  ;;  %v1649_v32 = vsel %vm1629_vm7, %v1618_v39, %v10397_v34  ;;  %v1648_v12 = vsel %vm1629_vm7, %v1617_v19, %v15922_v8  ;;  %v1558_v49 = vsel %vm1536_vm4, %v1527_v2, %v15923_v16  ;;  %v15924_v46 = vld [vmem:[#allocation91_spill] sm:$0xff]  ;;  %v9241_v34 = vld [vmem:[%s9377_s24 + $0x192] sm:$0xff]  ;;  %v15929_v56 = vld [vmem:[#allocation34_spill] sm:$0xff]  ;;  %v1396_v8 = vpop.permute.xlu1 %1395 }
 0x258   : > { %v1557_v21 = vsel %vm1536_vm4, %v1526_v17, %v15924_v46  ;;  %v1680_v10 = vsel %vm1660_vm8, %v1649_v32, %v1392_v36  ;;  %v1679_v15 = vsel %vm1660_vm8, %v1648_v12, %v1390_v31  ;;  %v15925_v29 = vld [vmem:[#allocation11_spill] sm:$0xff]  ;;  %v15926_v25 = vld [vmem:[#allocation120_spill] sm:$0xff]  ;;  %v15927_v44 = vld [vmem:[#allocation121_spill] sm:$0xff]  ;;  %v1497_v57 = vsel %vm1474_vm2, %v10793_v51, %v15929_v56  ;;  %v1394_v12 = vpop.permute.xlu0 %1393 }
 0x259   : > { %v1471_v6 = vsel %vm1443_vm1, %v9241_v34, %v15925_v29  ;;  %v1589_v20 = vsel %vm1567_vm5, %v1558_v49, %v15926_v25  ;;  %v1588_v22 = vsel %vm1567_vm5, %v1557_v21, %v15927_v44  ;;  %v15930_v47 = vld [vmem:[#allocation150_spill] sm:$0xff]  ;;  %v15931_v39 = vld [vmem:[#allocation151_spill] sm:$0xff]  ;;  %8970 = vmatprep.mubr.msk.f32.mxu0 %vm1696_vm9, %v1679_v15  ;;  %v8070_v35 = vld [vmem:[%s9377_s24 + $0x112] sm:$0xff] }
 0x25a   : > { %v1620_v28 = vsel %vm1598_vm6, %v1589_v20, %v15930_v47  ;;  %v1619_v62 = vsel %vm1598_vm6, %v1588_v22, %v15931_v39  ;;  %v8071_v19 = vld [vmem:[%s9377_s24 + $0x11a] sm:$0xff]  ;;  %v15932_v18 = vld [vmem:[#allocation64_spill] sm:$0xff]  ;;  %8971 = vmatmul.mubr.msk.f32.gmra.mrb[18].mxu0 %vm1696_vm9, %v1680_v10  ;;  %v15940_v22 = vld [vmem:[#allocation123_spill] sm:$0xff]  ;;  %2448 = vrot.lane.b32.xlu0 %v8070_v35, %s9311_s26 }
 0x25b   : > { %v1529_v4 = vsel %vm1505_vm3, %v1498_v53, %v15932_v18  ;;  %v15933_v2 = vld [vmem:[#allocation65_spill] sm:$0xff]  ;;  %v15935_v17 = vld [vmem:[#allocation174_spill] sm:$0xff]  ;;  %v15936_v36 = vld [vmem:[#allocation92_spill] sm:$0xff]  ;;  %2450 = vrot.lane.b32.xlu1 %v8071_v19, %s9311_s26 }
 0x25c   : > { %v1528_v7 = vsel %vm1505_vm3, %v1497_v57, %v15933_v2  ;;  %v15934_v60 = vld [vmem:[#allocation173_spill] sm:$0xff]  ;;  %v1650_v32 = vsel %vm1629_vm7, %v1619_v62, %v15935_v17  ;;  %v1560_v31 = vsel %vm1536_vm4, %v1529_v4, %v15936_v36  ;;  %v9242_v29 = vld [vmem:[%s9377_s24 + $0x18a] sm:$0xff]  ;;  %v15939_v44 = vld [vmem:[#allocation122_spill] sm:$0xff]  ;;  %v1398_v17 = vpop.permute.xlu0 %1397 }
 0x25d   : > { %v1651_v51 = vsel %vm1629_vm7, %v1620_v28, %v15934_v60  ;;  %v15937_v49 = vld [vmem:[#allocation93_spill] sm:$0xff]  ;;  %v1681_v34 = vsel %vm1660_vm8, %v1650_v32, %v1394_v12  ;;  %v15938_v25 = vld [vmem:[#allocation12_spill] sm:$0xff]  ;;  %v1591_v10 = vsel %vm1567_vm5, %v1560_v31, %v15939_v44  ;;  %v15941_v53 = vld [vmem:[#allocation35_spill] sm:$0xff] }
 0x25e   : > { %v1559_v21 = vsel %vm1536_vm4, %v1528_v7, %v15937_v49  ;;  %v1682_v15 = vsel %vm1660_vm8, %v1651_v51, %v1396_v8  ;;  %v1470_v20 = vsel %vm1443_vm1, %v9242_v29, %v15938_v25  ;;  %v1500_v56 = vsel %vm1474_vm2, %v10832_v42, %v15941_v53  ;;  %v15942_v57 = vld [vmem:[#allocation36_spill] sm:$0xff]  ;;  %v15944_v62 = vld [vmem:[#allocation153_spill] sm:$0xff]  ;;  %8973 = vmatprep.mubr.msk.f32.mxu0 %vm1696_vm9, %v1681_v34  ;;  %v8072_v19 = vld [vmem:[%s9377_s24 + $0x122] sm:$0xff]  ;;  %v1400_v51 = vpop.permute.xlu1 %1399 }
 0x25f   : > { %v1590_v59 = vsel %vm1567_vm5, %v1559_v21, %v15940_v22  ;;  %v1499_v47 = vsel %vm1474_vm2, %v1468_v52, %v15942_v57  ;;  %v15943_v28 = vld [vmem:[#allocation152_spill] sm:$0xff]  ;;  %v15945_v2 = vld [vmem:[#allocation66_spill] sm:$0xff]  ;;  %v15946_v7 = vld [vmem:[#allocation67_spill] sm:$0xff]  ;;  %8974 = vmatmul.mubr.msk.f32.gmra.mrb[20].mxu0 %vm1696_vm9, %v1682_v15  ;;  %2452 = vrot.lane.b32.xlu0 %v8072_v19, %s9311_s26 }
 0x260   : > { %v1622_v39 = vsel %vm1598_vm6, %v1591_v10, %v15943_v28  ;;  %v1621_v18 = vsel %vm1598_vm6, %v1590_v59, %v15944_v62  ;;  %v8073_v4 = vld [vmem:[%s9377_s24 + $0x12a] sm:$0xff]  ;;  %v1531_v35 = vsel %vm1505_vm3, %v1500_v56, %v15945_v2  ;;  %v1530_v42 = vsel %vm1505_vm3, %v1499_v47, %v15946_v7  ;;  %v15947_v32 = vld [vmem:[#allocation94_spill] sm:$0xff]  ;;  %v15949_v29 = vld [vmem:[#allocation13_spill] sm:$0xff] }
 0x261   : > { %v1653_v52 = vsel %vm1629_vm7, %v1622_v39, %v10413_v45  ;;  %v1652_v60 = vsel %vm1629_vm7, %v1621_v18, %v10415_v54  ;;  %v1562_v8 = vsel %vm1536_vm4, %v1531_v35, %v15947_v32  ;;  %v15948_v12 = vld [vmem:[#allocation95_spill] sm:$0xff]  ;;  %v15950_v25 = vld [vmem:[#allocation124_spill] sm:$0xff]  ;;  %v15951_v44 = vld [vmem:[#allocation125_spill] sm:$0xff]  ;;  %2454 = vrot.lane.b32.xlu1 %v8073_v4, %s9311_s26 }
 0x262   : > { %v1561_v31 = vsel %vm1536_vm4, %v1530_v42, %v15948_v12  ;;  %v1684_v21 = vsel %vm1660_vm8, %v1653_v52, %v1400_v51  ;;  %v1683_v34 = vsel %vm1660_vm8, %v1652_v60, %v1398_v17  ;;  %v9243_v45 = vld [vmem:[%s9377_s24 + $0x1a2] sm:$0xff]  ;;  %v1593_v15 = vsel %vm1567_vm5, %v1562_v8, %v15950_v25  ;;  %v15952_v22 = vld [vmem:[#allocation37_spill] sm:$0xff]  ;;  %v15956_v4 = vld [vmem:[#allocation68_spill] sm:$0xff]  ;;  %v1404_v42 = vpop.permute.xlu1 %1403  ;;  %v1402_v52 = vpop.permute.xlu0 %1401 }
 0x263   : > { %v1473_v54 = vsel %vm1443_vm1, %v9243_v45, %v15949_v29  ;;  %v1592_v10 = vsel %vm1567_vm5, %v1561_v31, %v15951_v44  ;;  %v1502_v59 = vsel %vm1474_vm2, %v1471_v6, %v15952_v22  ;;  %v15953_v53 = vld [vmem:[#allocation38_spill] sm:$0xff]  ;;  %v15955_v28 = vld [vmem:[#allocation155_spill] sm:$0xff]  ;;  %8976 = vmatprep.mubr.msk.f32.mxu0 %vm1696_vm9, %v1683_v34  ;;  %v8074_v18 = vld [vmem:[%s9377_s24 + $0x132] sm:$0xff] }
 0x264   : > { %v1501_v56 = vsel %vm1474_vm2, %v1470_v20, %v15953_v53  ;;  %v15954_v57 = vld [vmem:[#allocation154_spill] sm:$0xff]  ;;  %v1623_v39 = vsel %vm1598_vm6, %v1592_v10, %v15955_v28  ;;  %v1533_v19 = vsel %vm1505_vm3, %v1502_v59, %v15956_v4  ;;  %v15957_v2 = vld [vmem:[#allocation69_spill] sm:$0xff]  ;;  %v15958_v35 = vld [vmem:[#allocation175_spill] sm:$0xff]  ;;  %8977 = vmatmul.mubr.msk.f32.gmra.mrb[22].mxu0 %vm1696_vm9, %v1684_v21  ;;  %2456 = vrot.lane.b32.xlu0 %v8074_v18, %s9311_s26 }
 0x265   : > { %v1624_v47 = vsel %vm1598_vm6, %v1593_v15, %v15954_v57  ;;  %v8075_v62 = vld [vmem:[%s9377_s24 + $0x13a] sm:$0xff]  ;;  %v1532_v6 = vsel %vm1505_vm3, %v1501_v56, %v15957_v2  ;;  %v1654_v7 = vsel %vm1629_vm7, %v1623_v39, %v15958_v35  ;;  %v15959_v60 = vld [vmem:[#allocation96_spill] sm:$0xff]  ;;  %v15963_v15 = vld [vmem:[#allocation127_spill] sm:$0xff] }
 0x266   : > { %v1655_v20 = vsel %vm1629_vm7, %v1624_v47, %v10424_v55  ;;  %v1564_v51 = vsel %vm1536_vm4, %v1533_v19, %v15959_v60  ;;  %v15960_v17 = vld [vmem:[#allocation97_spill] sm:$0xff]  ;;  %v1685_v34 = vsel %vm1660_vm8, %v1654_v7, %v1402_v52  ;;  %v15961_v45 = vld [vmem:[#allocation14_spill] sm:$0xff]  ;;  %2458 = vrot.lane.b32.xlu1 %v8075_v62, %s9311_s26  ;;  %v15964_v10 = vld [vmem:[#allocation39_spill] sm:$0xff]  ;;  %v1406_v35 = vpop.permute.xlu0 %1405 }
 0x267   : > { %v1563_v8 = vsel %vm1536_vm4, %v1532_v6, %v15960_v17  ;;  %v1686_v31 = vsel %vm1660_vm8, %v1655_v20, %v1404_v42  ;;  %v9244_v55 = vld [vmem:[%s9377_s24 + $0x19a] sm:$0xff]  ;;  %v1504_v22 = vsel %vm1474_vm2, %v1473_v54, %v15964_v10  ;;  %v15965_v59 = vld [vmem:[#allocation40_spill] sm:$0xff]  ;;  %8979 = vmatprep.mubr.msk.f32.mxu0 %vm1696_vm9, %v1685_v34  ;;  %v8076_v4 = vld [vmem:[%s9377_s24 + $0x142] sm:$0xff]  ;;  %v1408_v20 = vpop.permute.xlu1 %1407 }
 0x268   : > { %v1472_v29 = vsel %vm1443_vm1, %v9244_v55, %v15961_v45  ;;  %v15962_v25 = vld [vmem:[#allocation126_spill] sm:$0xff]  ;;  %v1594_v44 = vsel %vm1567_vm5, %v1563_v8, %v15963_v15  ;;  %v15966_v56 = vld [vmem:[#allocation156_spill] sm:$0xff]  ;;  %v15967_v47 = vld [vmem:[#allocation157_spill] sm:$0xff]  ;;  %8980 = vmatmul.mubr.msk.f32.gmra.mrb[24].mxu0 %vm1696_vm9, %v1686_v31  ;;  %2460 = vrot.lane.b32.xlu0 %v8076_v4, %s9311_s26 }
 0x269   : > { %v1595_v21 = vsel %vm1567_vm5, %v1564_v51, %v15962_v25  ;;  %v1503_v53 = vsel %vm1474_vm2, %v1472_v29, %v15965_v59  ;;  %v1625_v28 = vsel %vm1598_vm6, %v1594_v44, %v15967_v47  ;;  %v8077_v39 = vld [vmem:[%s9377_s24 + $0x14a] sm:$0xff]  ;;  %v15968_v19 = vld [vmem:[#allocation70_spill] sm:$0xff]  ;;  %v15973_v45 = vld [vmem:[#allocation129_spill] sm:$0xff] }
 0x26a   : > { %v1626_v57 = vsel %vm1598_vm6, %v1595_v21, %v15966_v56  ;;  %v1535_v62 = vsel %vm1505_vm3, %v1504_v22, %v15968_v19  ;;  %v15969_v18 = vld [vmem:[#allocation71_spill] sm:$0xff]  ;;  %v1656_v6 = vsel %vm1629_vm7, %v1625_v28, %v10454_v0  ;;  %v15970_v7 = vld [vmem:[#allocation98_spill] sm:$0xff]  ;;  %2462 = vrot.lane.b32.xlu1 %v8077_v39, %s9311_s26  ;;  %v8078_v44 = vld [vmem:[%s9377_s24 + $0x152] sm:$0xff] }
 0x26b   : > { %v1534_v2 = vsel %vm1505_vm3, %v1503_v53, %v15969_v18  ;;  %v1657_v54 = vsel %vm1629_vm7, %v1626_v57, %v10452_v61  ;;  %v1566_v42 = vsel %vm1536_vm4, %v1535_v62, %v15970_v7  ;;  %v15971_v52 = vld [vmem:[#allocation99_spill] sm:$0xff]  ;;  %v1687_v34 = vsel %vm1660_vm8, %v1656_v6, %v1406_v35  ;;  %v15972_v61 = vld [vmem:[#allocation128_spill] sm:$0xff]  ;;  %v15974_v31 = vld [vmem:[#allocation158_spill] sm:$0xff]  ;;  %v1412_v59 = vpop.permute.xlu1 %1411  ;;  %v1410_v53 = vpop.permute.xlu0 %1409 }
 0x26c   : > { %v1565_v51 = vsel %vm1536_vm4, %v1534_v2, %v15971_v52  ;;  %v1688_v8 = vsel %vm1660_vm8, %v1657_v54, %v1408_v20  ;;  %v1597_v55 = vsel %vm1567_vm5, %v1566_v42, %v15972_v61  ;;  %v15975_v25 = vld [vmem:[#allocation159_spill] sm:$0xff]  ;;  %8982 = vmatprep.mubr.msk.f32.mxu0 %vm1696_vm9, %v1687_v34  ;;  %v8079_v15 = vld [vmem:[%s9377_s24 + $0x15a] sm:$0xff]  ;;  %2464 = vrot.lane.b32.xlu0 %v8078_v44, %s9311_s26 }
 0x26d   : > { %v1596_v0 = vsel %vm1567_vm5, %v1565_v51, %v15973_v45  ;;  %v1628_v29 = vsel %vm1598_vm6, %v1597_v55, %v15974_v31  ;;  %8983 = vmatmul.mubr.msk.f32.gmra.mrb[26].mxu0 %vm1696_vm9, %v1688_v8  ;;  %v8083_v39 = vld [vmem:[%s9377_s24 + $0xde] sm:$0xff]  ;;  %v8082_v4 = vld [vmem:[%s9377_s24 + $0xd6] sm:$0xff]  ;;  %v8085_v18 = vld [vmem:[%s9377_s24 + $0xee] sm:$0xff] }
 0x26e   : > { %v1627_v21 = vsel %vm1598_vm6, %v1596_v0, %v15975_v25  ;;  %v1659_v10 = vsel %vm1629_vm7, %v1628_v29, %v10513_v24  ;;  %2466 = vrot.lane.b32.xlu1 %v8079_v15, %s9311_s26  ;;  %v8081_v24 = vld [vmem:[%s9377_s24 + $0x16a] sm:$0xff]  ;;  %v8087_v20 = vld [vmem:[%s9377_s24 + $0xfe] sm:$0xff]  ;;  %v8086_v35 = vld [vmem:[%s9377_s24 + $0xf6] sm:$0xff] }
 0x26f   : > { %v1658_v22 = vsel %vm1629_vm7, %v1627_v21, %v10515_v41  ;;  %v1690_v56 = vsel %vm1660_vm8, %v1659_v10, %v1412_v59  ;;  %v8080_v41 = vld [vmem:[%s9377_s24 + $0x162] sm:$0xff]  ;;  %v11074_v47 = vpop.permute.xlu1 %2294  ;;  %v11076_v28 = vpop.permute.xlu0 %2292  ;;  %v8089_v8 = vld [vmem:[%s9377_s24 + $0x10e] sm:$0xff]  ;;  %v8090_v0 = vld [vmem:[%s9377_s24 + $0x116] sm:$0xff] }
 0x270   : > { %v1689_v57 = vsel %vm1660_vm8, %v1658_v22, %v1410_v53  ;;  %2468 = vrot.lane.b32.xlu0 %v8080_v41, %s9311_s26  ;;  %v8084_v2 = vld [vmem:[%s9377_s24 + $0xe6] sm:$0xff]  ;;  %v8091_v45 = vld [vmem:[%s9377_s24 + $0x11e] sm:$0xff]  ;;  %v8093_v25 = vld [vmem:[%s9377_s24 + $0x12e] sm:$0xff] }
 0x271   : > { %8985 = vmatprep.mubr.msk.f32.mxu0 %vm1696_vm9, %v1689_v57  ;;  %v8088_v34 = vld [vmem:[%s9377_s24 + $0x106] sm:$0xff]  ;;  %v11129_v10 = vld [vmem:[%s9377_s24 + $0x13e] sm:$0xff]  ;;  %v11132_v22 = vld [vmem:[%s9377_s24 + $0x136] sm:$0xff] }
 0x272   : > { %8986 = vmatmul.mubr.msk.f32.gmra.mrb[28].mxu0 %vm1696_vm9, %v1690_v56  ;;  %2470 = vrot.lane.b32.xlu1 %v8081_v24, %s9311_s26  ;;  %v8092_v21 = vld [vmem:[%s9377_s24 + $0x126] sm:$0xff]  ;;  %v11143_v56 = vld [vmem:[%s9377_s24 + $0x14e] sm:$0xff]  ;;  %v11213_v12 = vld [vmem:[%s9377_s24 + $0x19e] sm:$0xff] }
 0x273   : > { %v11082_v19 = vpop.permute.xlu1 %2298  ;;  %v11084_v62 = vpop.permute.xlu0 %2296  ;;  %v11146_v57 = vld [vmem:[%s9377_s24 + $0x146] sm:$0xff]  ;;  %v11199_v52 = vld [vmem:[%s9377_s24 + $0x18e] sm:$0xff]  ;;  %v11216_v32 = vld [vmem:[%s9377_s24 + $0x196] sm:$0xff] }
 0x274   : > { %2532 = vrot.lane.b32.xlu0 %v8082_v4, %s9312_s27  ;;  %v11160_v4 = vld [vmem:[%s9377_s24 + $0x156] sm:$0xff]  ;;  %v11202_v7 = vld [vmem:[%s9377_s24 + $0x186] sm:$0xff]  ;;  %v11227_v46 = vld [vmem:[%s9377_s24 + $0x1ae] sm:$0xff] }
 0x275   : > { %v11230_v16 = vld [vmem:[%s9377_s24 + $0x1a6] sm:$0xff]  ;;  %v11262_v5 = vld [vmem:[%s9377_s24 + $0xdc] sm:$0xff]  ;;  %v11273_v11 = vld [vmem:[%s9377_s24 + $0xf4] sm:$0xff] }
 0x276   : > { %2534 = vrot.lane.b32.xlu1 %v8083_v39, %s9312_s27  ;;  %v11157_v39 = vld [vmem:[%s9377_s24 + $0x15e] sm:$0xff]  ;;  %v8011_v23 = vld [vmem:[%s9377_s24 + $0x114] sm:$0xff]  ;;  %v8010_v58 = vld [vmem:[%s9377_s24 + $0x10c] sm:$0xff] }
 0x277   : > { %v11090_v54 = vpop.permute.xlu1 %2302  ;;  %v11092_v6 = vpop.permute.xlu0 %2300  ;;  %v11259_v48 = vld [vmem:[%s9377_s24 + $0xe4] sm:$0xff]  ;;  %v8008_v63 = vld [vmem:[%s9377_s24 + $0xfc] sm:$0xff] }
 0x278   : > { %2536 = vrot.lane.b32.xlu0 %v8084_v2, %s9312_s27  ;;  %v8144_v50 = vld [vmem:[%s9377_s24 + $0x140] sm:$0xff] }
 0x27a   : > { %2538 = vrot.lane.b32.xlu1 %v8085_v18, %s9312_s27 }
 0x27b   : > { %v11098_v42 = vpop.permute.xlu1 %2306  ;;  %v11100_v51 = vpop.permute.xlu0 %2304 }
 0x27c   : > { %2540 = vrot.lane.b32.xlu0 %v8086_v35, %s9312_s27  ;;  %v11174_v35 = vld [vmem:[%s9377_s24 + $0x166] sm:$0xff] }
 0x27e   : > { %2542 = vrot.lane.b32.xlu1 %v8087_v20, %s9312_s27  ;;  %v11171_v20 = vld [vmem:[%s9377_s24 + $0x16e] sm:$0xff] }
 0x27f   : > { %v11106_v61 = vpop.permute.xlu1 %2310  ;;  %v11108_v55 = vpop.permute.xlu0 %2308 }
 0x280   : > { %2544 = vrot.lane.b32.xlu0 %v8088_v34, %s9312_s27 }
 0x282   : > { %2546 = vrot.lane.b32.xlu1 %v8089_v8, %s9312_s27 }
 0x283   : > { %v11114_v31 = vpop.permute.xlu1 %2314  ;;  %v11116_v29 = vpop.permute.xlu0 %2312 }
 0x284   : > { %2548 = vrot.lane.b32.xlu0 %v8090_v0, %s9312_s27  ;;  %v11188_v0 = vld [vmem:[%s9377_s24 + $0x176] sm:$0xff] }
 0x286   : > { %2550 = vrot.lane.b32.xlu1 %v8091_v45, %s9312_s27  ;;  %v11185_v45 = vld [vmem:[%s9377_s24 + $0x17e] sm:$0xff] }
 0x287   : > { %v11122_v15 = vpop.permute.xlu1 %2318  ;;  %v11124_v44 = vpop.permute.xlu0 %2316 }
 0x288   : > { %2552 = vrot.lane.b32.xlu0 %v8092_v21, %s9312_s27 }
 0x28a   : > { %2554 = vrot.lane.b32.xlu1 %v8093_v25, %s9312_s27 }
 0x28b   : > { %v11134_v59 = vpop.permute.xlu1 %2322  ;;  %v11136_v53 = vpop.permute.xlu0 %2320 }
 0x28c   : > { %2556 = vrot.lane.b32.xlu0 %v11132_v22, %s9312_s27 }
 0x28e   : > { %2558 = vrot.lane.b32.xlu1 %v11129_v10, %s9312_s27 }
 0x28f   : > { %v11148_v24 = vpop.permute.xlu1 %2326  ;;  %v11150_v41 = vpop.permute.xlu0 %2324 }
 0x290   : > { %15976 = vst [vmem:[#allocation41_spill] sm:$0xff] %v11150_v41  ;;  %2560 = vrot.lane.b32.xlu0 %v11146_v57, %s9312_s27  ;;  %v8148_v41 = vld [vmem:[%s9377_s24 + $0x160] sm:$0xff] }
 0x292   : > { %2562 = vrot.lane.b32.xlu1 %v11143_v56, %s9312_s27 }
 0x293   : > { %v11162_v18 = vpop.permute.xlu1 %2330  ;;  %v11164_v2 = vpop.permute.xlu0 %2328 }
 0x294   : > { %15977 = vst [vmem:[#allocation130_spill] sm:$0xff] %v11162_v18  ;;  %15978 = vst [vmem:[#allocation131_spill] sm:$0xff] %v11164_v2  ;;  %2564 = vrot.lane.b32.xlu0 %v11160_v4, %s9312_s27  ;;  %v8012_v18 = vld [vmem:[%s9377_s24 + $0x11c] sm:$0xff] }
 0x296   : > { %2566 = vrot.lane.b32.xlu1 %v11157_v39, %s9312_s27 }
 0x297   : > { %v11176_v8 = vpop.permute.xlu1 %2334  ;;  %v11178_v34 = vpop.permute.xlu0 %2332 }
 0x298   : > { %15979 = vst [vmem:[#allocation42_spill] sm:$0xff] %v11176_v8  ;;  %15980 = vst [vmem:[#allocation160_spill] sm:$0xff] %v11178_v34  ;;  %2568 = vrot.lane.b32.xlu0 %v11174_v35, %s9312_s27  ;;  %v11287_v34 = vld [vmem:[%s9377_s24 + $0x104] sm:$0xff] }
 0x29a   : > { %2570 = vrot.lane.b32.xlu1 %v11171_v20, %s9312_s27 }
 0x29b   : > { %v11190_v25 = vpop.permute.xlu1 %2338  ;;  %v11192_v21 = vpop.permute.xlu0 %2336 }
 0x29c   : > { %15981 = vst [vmem:[#allocation161_spill] sm:$0xff] %v11190_v25  ;;  %15982 = vst [vmem:[#allocation2_spill] sm:$0xff] %v11192_v21  ;;  %2572 = vrot.lane.b32.xlu0 %v11188_v0, %s9312_s27  ;;  %v11276_v25 = vld [vmem:[%s9377_s24 + $0xec] sm:$0xff] }
 0x29e   : > { %2574 = vrot.lane.b32.xlu1 %v11185_v45, %s9312_s27 }
 0x29f   : > { %v11204_v17 = vpop.permute.xlu1 %2342  ;;  %v11206_v60 = vpop.permute.xlu0 %2340 }
 0x2a0   : > { %15983 = vst [vmem:[#allocation55_spill] sm:$0xff] %v11204_v17  ;;  %15984 = vst [vmem:[#allocation100_spill] sm:$0xff] %v11206_v60  ;;  %2576 = vrot.lane.b32.xlu0 %v11202_v7, %s9312_s27 }
 0x2a2   : > { %2578 = vrot.lane.b32.xlu1 %v11199_v52, %s9312_s27 }
 0x2a3   : > { %v11218_v49 = vpop.permute.xlu1 %2346  ;;  %v11220_v36 = vpop.permute.xlu0 %2344 }
 0x2a4   : > { %15985 = vst [vmem:[#allocation101_spill] sm:$0xff] %v11218_v49  ;;  %15986 = vst [vmem:[#allocation115_spill] sm:$0xff] %v11220_v36  ;;  %2580 = vrot.lane.b32.xlu0 %v11216_v32, %s9312_s27  ;;  %v11241_v36 = vld [vmem:[%s9377_s24 + $0x1be] sm:$0xff]  ;;  %v11244_v49 = vld [vmem:[%s9377_s24 + $0x1b6] sm:$0xff] }
 0x2a6   : > { %2582 = vrot.lane.b32.xlu1 %v11213_v12, %s9312_s27 }
 0x2a7   : > { %v11232_v60 = vpop.permute.xlu1 %2350  ;;  %v11234_v13 = vpop.permute.xlu0 %2348 }
 0x2a8   : > { %15987 = vst [vmem:[#allocation112_spill] sm:$0xff] %v11232_v60  ;;  %15988 = vst [vmem:[#allocation15_spill] sm:$0xff] %v11234_v13  ;;  %2584 = vrot.lane.b32.xlu0 %v11230_v16, %s9312_s27 }
 0x2aa   : > { %2586 = vrot.lane.b32.xlu1 %v11227_v46, %s9312_s27 }
 0x2ab   : > { %v11246_v9 = vpop.permute.xlu1 %2414  ;;  %v11248_v17 = vpop.permute.xlu0 %2412 }
 0x2ac   : > { %2588 = vrot.lane.b32.xlu0 %v11244_v49, %s9312_s27 }
 0x2ae   : > { %2590 = vrot.lane.b32.xlu1 %v11241_v36, %s9312_s27 }
 0x2af   : > { %v11254_v13 = vpop.permute.xlu1 %2418  ;;  %v11256_v60 = vpop.permute.xlu0 %2416 }
 0x2b0   : > { %2652 = vrot.lane.b32.xlu0 %v11262_v5, %s9314_s29 }
 0x2b2   : > { %2654 = vrot.lane.b32.xlu1 %v11259_v48, %s9314_s29 }
 0x2b3   : > { %v11268_v21 = vpop.permute.xlu1 %2422  ;;  %v11270_v33 = vpop.permute.xlu0 %2420 }
 0x2b4   : > { %15989 = vst [vmem:[#allocation16_spill] sm:$0xff] %v11270_v33  ;;  %2656 = vrot.lane.b32.xlu0 %v11276_v25, %s9314_s29 }
 0x2b6   : > { %2658 = vrot.lane.b32.xlu1 %v11273_v11, %s9314_s29 }
 0x2b7   : > { %v11282_v14 = vpop.permute.xlu1 %2426  ;;  %v11284_v1 = vpop.permute.xlu0 %2424 }
 0x2b8   : > { %15990 = vst [vmem:[#allocation132_spill] sm:$0xff] %v11282_v14  ;;  %15991 = vst [vmem:[#allocation133_spill] sm:$0xff] %v11284_v1  ;;  %2660 = vrot.lane.b32.xlu0 %v8008_v63, %s9314_s29  ;;  %v8146_v1 = vld [vmem:[%s9377_s24 + $0x150] sm:$0xff] }
 0x2ba   : > { %2662 = vrot.lane.b32.xlu1 %v11287_v34, %s9314_s29 }
 0x2bb   : > { %v11293_v37 = vpop.permute.xlu1 %2430  ;;  %v11295_v8 = vpop.permute.xlu0 %2428 }
 0x2bc   : > { %15992 = vst [vmem:[#allocation43_spill] sm:$0xff] %v11293_v37  ;;  %15993 = vst [vmem:[#allocation44_spill] sm:$0xff] %v11295_v8  ;;  %2664 = vrot.lane.b32.xlu0 %v8010_v58, %s9314_s29  ;;  %v8014_v37 = vld [vmem:[%s9377_s24 + $0x12c] sm:$0xff] }
 0x2be   : > { %2666 = vrot.lane.b32.xlu1 %v8011_v23, %s9314_s29  ;;  %v8015_v23 = vld [vmem:[%s9377_s24 + $0x134] sm:$0xff] }
 0x2bf   : > { %v11301_v2 = vpop.permute.xlu1 %2434  ;;  %v11303_v27 = vpop.permute.xlu0 %2432 }
 0x2c0   : > { %15994 = vst [vmem:[#allocation162_spill] sm:$0xff] %v11301_v2  ;;  %15995 = vst [vmem:[#allocation163_spill] sm:$0xff] %v11303_v27  ;;  %2668 = vrot.lane.b32.xlu0 %v8012_v18, %s9314_s29  ;;  %v8016_v18 = vld [vmem:[%s9377_s24 + $0x13c] sm:$0xff]  ;;  %v8021_v2 = vld [vmem:[%s9377_s24 + $0x164] sm:$0xff] }
 0x2c2   : > { %2670 = vrot.lane.b32.xlu1 %v8013_v26, %s9314_s29  ;;  %v8017_v26 = vld [vmem:[%s9377_s24 + $0x144] sm:$0xff] }
 0x2c3   : > { %v11309_v63 = vpop.permute.xlu1 %2438  ;;  %v11311_v8 = vpop.permute.xlu0 %2436 }
 0x2c4   : > { %15996 = vst [vmem:[#allocation3_spill] sm:$0xff] %v11309_v63  ;;  %15997 = vst [vmem:[#allocation58_spill] sm:$0xff] %v11311_v8  ;;  %2672 = vrot.lane.b32.xlu0 %v8014_v37, %s9314_s29  ;;  %v8018_v37 = vld [vmem:[%s9377_s24 + $0x14c] sm:$0xff] }
 0x2c6   : > { %2674 = vrot.lane.b32.xlu1 %v8015_v23, %s9314_s29  ;;  %v8019_v23 = vld [vmem:[%s9377_s24 + $0x154] sm:$0xff] }
 0x2c7   : > { %v11317_v58 = vpop.permute.xlu1 %2442  ;;  %v11319_v27 = vpop.permute.xlu0 %2440 }
 0x2c8   : > { %15998 = vst [vmem:[#allocation102_spill] sm:$0xff] %v11317_v58  ;;  %15999 = vst [vmem:[#allocation103_spill] sm:$0xff] %v11319_v27  ;;  %2676 = vrot.lane.b32.xlu0 %v8016_v18, %s9314_s29  ;;  %v8131_v18 = vld [vmem:[%s9377_s24 + $0x174] sm:$0xff] }
 0x2ca   : > { %2678 = vrot.lane.b32.xlu1 %v8017_v26, %s9314_s29  ;;  %v8020_v26 = vld [vmem:[%s9377_s24 + $0x15c] sm:$0xff] }
 0x2cb   : > { %v11325_v8 = vpop.permute.xlu1 %2446  ;;  %v11327_v63 = vpop.permute.xlu0 %2444 }
 0x2cc   : > { %16000 = vst [vmem:[#allocation17_spill] sm:$0xff] %v11325_v8  ;;  %16001 = vst [vmem:[#allocation18_spill] sm:$0xff] %v11327_v63  ;;  %2680 = vrot.lane.b32.xlu0 %v8018_v37, %s9314_s29  ;;  %v8130_v63 = vld [vmem:[%s9377_s24 + $0x16c] sm:$0xff]  ;;  %v8133_v37 = vld [vmem:[%s9377_s24 + $0x184] sm:$0xff] }
 0x2ce   : > { %2682 = vrot.lane.b32.xlu1 %v8019_v23, %s9314_s29 }
 0x2cf   : > { %v11333_v27 = vpop.permute.xlu1 %2450  ;;  %v11335_v58 = vpop.permute.xlu0 %2448 }
 0x2d0   : > { %16002 = vst [vmem:[#allocation134_spill] sm:$0xff] %v11333_v27  ;;  %16003 = vst [vmem:[#allocation135_spill] sm:$0xff] %v11335_v58  ;;  %2684 = vrot.lane.b32.xlu0 %v8020_v26, %s9314_s29  ;;  %v8132_v58 = vld [vmem:[%s9377_s24 + $0x17c] sm:$0xff]  ;;  %v8135_v26 = vld [vmem:[%s9377_s24 + $0x194] sm:$0xff] }
 0x2d2   : > { %2686 = vrot.lane.b32.xlu1 %v8021_v2, %s9314_s29 }
 0x2d3   : > { %v11343_v8 = vpop.permute.xlu1 %2454  ;;  %v11345_v23 = vpop.permute.xlu0 %2452 }
 0x2d4   : > { %16004 = vst [vmem:[#allocation45_spill] sm:$0xff] %v11343_v8  ;;  %16005 = vst [vmem:[#allocation46_spill] sm:$0xff] %v11345_v23  ;;  %2688 = vrot.lane.b32.xlu0 %v8130_v63, %s9314_s29  ;;  %v8134_v8 = vld [vmem:[%s9377_s24 + $0x18c] sm:$0xff]  ;;  %v8137_v63 = vld [vmem:[%s9377_s24 + $0x1a4] sm:$0xff] }
 0x2d6   : > { %2690 = vrot.lane.b32.xlu1 %v8131_v18, %s9314_s29 }
 0x2d7   : > { %v11353_v2 = vpop.permute.xlu0 %2456 }
 0x2d8   : > { %v11351_v27 = vpop.permute.xlu1 %2458  ;;  %16007 = vst [vmem:[#allocation165_spill] sm:$0xff] %v11353_v2  ;;  %2692 = vrot.lane.b32.xlu0 %v8132_v58, %s9314_s29  ;;  %v8139_v58 = vld [vmem:[%s9377_s24 + $0x1b4] sm:$0xff] }
 0x2d9   : > { %16006 = vst [vmem:[#allocation164_spill] sm:$0xff] %v11351_v27  ;;  %v8136_v27 = vld [vmem:[%s9377_s24 + $0x19c] sm:$0xff] }
 0x2da   : > { %2694 = vrot.lane.b32.xlu1 %v8133_v37, %s9314_s29 }
 0x2db   : > { %v11361_v18 = vpop.permute.xlu0 %2460 }
 0x2dc   : > { %v11359_v23 = vpop.permute.xlu1 %2462  ;;  %16009 = vst [vmem:[#allocation59_spill] sm:$0xff] %v11361_v18  ;;  %2696 = vrot.lane.b32.xlu0 %v8134_v8, %s9314_s29  ;;  %v8141_v8 = vld [vmem:[%s9377_s24 + $0x1c4] sm:$0xff] }
 0x2dd   : > { %16008 = vst [vmem:[#allocation4_spill] sm:$0xff] %v11359_v23  ;;  %v8138_v23 = vld [vmem:[%s9377_s24 + $0x1ac] sm:$0xff] }
 0x2de   : > { %2698 = vrot.lane.b32.xlu1 %v8135_v26, %s9314_s29 }
 0x2df   : > { %v11369_v37 = vpop.permute.xlu0 %2464 }
 0x2e0   : > { %v11367_v2 = vpop.permute.xlu1 %2466  ;;  %16011 = vst [vmem:[#allocation105_spill] sm:$0xff] %v11369_v37  ;;  %2700 = vrot.lane.b32.xlu0 %v8136_v27, %s9314_s29  ;;  %v8143_v27 = vld [vmem:[%s9377_s24 + $0x138] sm:$0xff] }
 0x2e1   : > { %16010 = vst [vmem:[#allocation104_spill] sm:$0xff] %v11367_v2  ;;  %v8140_v2 = vld [vmem:[%s9377_s24 + $0x1bc] sm:$0xff] }
 0x2e2   : > { %2702 = vrot.lane.b32.xlu1 %v8137_v63, %s9314_s29 }
 0x2e3   : > { %v11377_v26 = vpop.permute.xlu0 %2468 }
 0x2e4   : > { %v11375_v18 = vpop.permute.xlu1 %2470  ;;  %16013 = vst [vmem:[#allocation20_spill] sm:$0xff] %v11377_v26  ;;  %2704 = vrot.lane.b32.xlu0 %v8138_v23, %s9314_s29  ;;  %v8145_v23 = vld [vmem:[%s9377_s24 + $0x148] sm:$0xff] }
 0x2e5   : > { %16012 = vst [vmem:[#allocation19_spill] sm:$0xff] %v11375_v18  ;;  %v8142_v18 = vld [vmem:[%s9377_s24 + $0x130] sm:$0xff] }
 0x2e6   : > { %2706 = vrot.lane.b32.xlu1 %v8139_v58, %s9314_s29 }
 0x2e7   : > { %v11385_v63 = vpop.permute.xlu0 %2532 }
 0x2e8   : > { %v11383_v37 = vpop.permute.xlu1 %2534  ;;  %2708 = vrot.lane.b32.xlu0 %v8140_v2, %s9314_s29  ;;  %v8147_v2 = vld [vmem:[%s9377_s24 + $0x158] sm:$0xff] }
 0x2ea   : > { %2710 = vrot.lane.b32.xlu1 %v8141_v8, %s9314_s29 }
 0x2eb   : > { %v11393_v58 = vpop.permute.xlu0 %2536 }
 0x2ec   : > { %v11391_v26 = vpop.permute.xlu1 %2538  ;;  %2772 = vrot.lane.b32.xlu0 %v8142_v18, %s9315_s30  ;;  %v8149_v18 = vld [vmem:[%s9377_s24 + $0x168] sm:$0xff] }
 0x2ee   : > { %2774 = vrot.lane.b32.xlu1 %v8143_v27, %s9315_s30 }
 0x2ef   : > { %v11401_v8 = vpop.permute.xlu0 %2540 }
 0x2f0   : > { %v11399_v43 = vpop.permute.xlu1 %2542  ;;  %16015 = vst [vmem:[#allocation137_spill] sm:$0xff] %v11401_v8  ;;  %2776 = vrot.lane.b32.xlu0 %v8144_v50, %s9315_s30  ;;  %v8151_v50 = vld [vmem:[%s9377_s24 + $0x178] sm:$0xff] }
 0x2f1   : > { %16014 = vst [vmem:[#allocation136_spill] sm:$0xff] %v11399_v43 }
 0x2f2   : > { %2778 = vrot.lane.b32.xlu1 %v8145_v23, %s9315_s30 }
 0x2f3   : > { %v11409_v27 = vpop.permute.xlu0 %2544 }
 0x2f4   : > { %v11407_v14 = vpop.permute.xlu1 %2546  ;;  %16017 = vst [vmem:[#allocation48_spill] sm:$0xff] %v11409_v27  ;;  %2780 = vrot.lane.b32.xlu0 %v8146_v1, %s9315_s30  ;;  %v8153_v1 = vld [vmem:[%s9377_s24 + $0x188] sm:$0xff] }
 0x2f5   : > { %16016 = vst [vmem:[#allocation47_spill] sm:$0xff] %v11407_v14  ;;  %v8150_v14 = vld [vmem:[%s9377_s24 + $0x170] sm:$0xff] }
 0x2f6   : > { %2782 = vrot.lane.b32.xlu1 %v8147_v2, %s9315_s30 }
 0x2f7   : > { %v11417_v23 = vpop.permute.xlu0 %2548 }
 0x2f8   : > { %v11415_v8 = vpop.permute.xlu1 %2550  ;;  %16019 = vst [vmem:[#allocation167_spill] sm:$0xff] %v11417_v23  ;;  %2784 = vrot.lane.b32.xlu0 %v8148_v41, %s9315_s30  ;;  %v8155_v41 = vld [vmem:[%s9377_s24 + $0x198] sm:$0xff] }
 0x2f9   : > { %16018 = vst [vmem:[#allocation166_spill] sm:$0xff] %v11415_v8  ;;  %v8152_v8 = vld [vmem:[%s9377_s24 + $0x180] sm:$0xff] }
 0x2fa   : > { %2786 = vrot.lane.b32.xlu1 %v8149_v18, %s9315_s30  ;;  %v8154_v18 = vld [vmem:[%s9377_s24 + $0x190] sm:$0xff] }
 0x2fb   : > { %v11425_v2 = vpop.permute.xlu0 %2552 }
 0x2fc   : > { %v11423_v27 = vpop.permute.xlu1 %2554  ;;  %16021 = vst [vmem:[#allocation106_spill] sm:$0xff] %v11425_v2  ;;  %2788 = vrot.lane.b32.xlu0 %v8150_v14, %s9315_s30  ;;  %v8157_v14 = vld [vmem:[%s9377_s24 + $0x1a8] sm:$0xff] }
 0x2fd   : > { %16020 = vst [vmem:[#allocation5_spill] sm:$0xff] %v11423_v27 }
 0x2fe   : > { %2790 = vrot.lane.b32.xlu1 %v8151_v50, %s9315_s30  ;;  %v8156_v50 = vld [vmem:[%s9377_s24 + $0x1a0] sm:$0xff] }
 0x2ff   : > { %v11433_v38 = vpop.permute.xlu0 %2556 }
 0x300   : > { %v11431_v23 = vpop.permute.xlu1 %2558  ;;  %16023 = vst [vmem:[#allocation21_spill] sm:$0xff] %v11433_v38  ;;  %2792 = vrot.lane.b32.xlu0 %v8152_v8, %s9315_s30 }
 0x301   : > { %16022 = vst [vmem:[#allocation107_spill] sm:$0xff] %v11431_v23 }
 0x302   : > { %2794 = vrot.lane.b32.xlu1 %v8153_v1, %s9315_s30 }
 0x303   : > { %v11441_v27 = vpop.permute.xlu0 %2560 }
 0x304   : > { %v11439_v2 = vpop.permute.xlu1 %2562  ;;  %16025 = vst [vmem:[#allocation138_spill] sm:$0xff] %v11441_v27  ;;  %2796 = vrot.lane.b32.xlu0 %v8154_v18, %s9315_s30  ;;  %v8158_v27 = vld [vmem:[%s9377_s24 + $0x1b0] sm:$0xff] }
 0x305   : > { %16024 = vst [vmem:[#allocation22_spill] sm:$0xff] %v11439_v2  ;;  %v11453_v8 = vpop.f32.mrb[0].mxu0  ;;  %v8159_v2 = vld [vmem:[%s9377_s24 + $0x1b8] sm:$0xff] }
 0x306   : > { %2798 = vrot.lane.b32.xlu1 %v8155_v41, %s9315_s30  ;;  %16028 = vst [vmem:[#allocation50_spill] sm:$0xff] %v11453_v8  ;;  %v11457_v41 = vpop.f32.mrb[1].mxu0 }
 0x307   : > { %v11449_v1 = vpop.permute.xlu0 %2564  ;;  %16029 = vst [vmem:[#allocation168_spill] sm:$0xff] %v11457_v41 }
 0x308   : > { %v11447_v38 = vpop.permute.xlu1 %2566  ;;  %16027 = vst [vmem:[#allocation49_spill] sm:$0xff] %v11449_v1  ;;  %2800 = vrot.lane.b32.xlu0 %v8156_v50, %s9315_s30  ;;  %v8160_v50 = vld [vmem:[%s9377_s24 + $0x1c0] sm:$0xff] }
 0x309   : > { %16026 = vst [vmem:[#allocation139_spill] sm:$0xff] %v11447_v38  ;;  %v11465_v1 = vpop.f32.mrb[2].mxu0 }
 0x30a   : > { %2802 = vrot.lane.b32.xlu1 %v8157_v14, %s9315_s30  ;;  %16032 = vst [vmem:[#allocation108_spill] sm:$0xff] %v11465_v1  ;;  %v8161_v14 = vld [vmem:[%s9377_s24 + $0x1c8] sm:$0xff]  ;;  %v11469_v8 = vpop.f32.mrb[3].mxu0 }
 0x30b   : > { %v11461_v23 = vpop.permute.xlu0 %2568  ;;  %16033 = vst [vmem:[#allocation109_spill] sm:$0xff] %v11469_v8 }
 0x30c   : > { %v11459_v18 = vpop.permute.xlu1 %2570  ;;  %16031 = vst [vmem:[#allocation6_spill] sm:$0xff] %v11461_v23  ;;  %2804 = vrot.lane.b32.xlu0 %v8158_v27, %s9315_s30  ;;  %v8162_v27 = vld [vmem:[%s9377_s24 + $0x1d0] sm:$0xff] }
 0x30d   : > { %16030 = vst [vmem:[#allocation169_spill] sm:$0xff] %v11459_v18  ;;  %v11477_v41 = vpop.f32.mrb[4].mxu0 }
 0x30e   : > { %2806 = vrot.lane.b32.xlu1 %v8159_v2, %s9315_s30  ;;  %16036 = vst [vmem:[#allocation140_spill] sm:$0xff] %v11477_v41  ;;  %v8163_v2 = vld [vmem:[%s9377_s24 + $0x1d8] sm:$0xff]  ;;  %v11481_v1 = vpop.f32.mrb[5].mxu0 }
 0x30f   : > { %v11473_v43 = vpop.permute.xlu0 %2572  ;;  %16037 = vst [vmem:[#allocation141_spill] sm:$0xff] %v11481_v1 }
 0x310   : > { %v11471_v38 = vpop.permute.xlu1 %2574  ;;  %16035 = vst [vmem:[#allocation24_spill] sm:$0xff] %v11473_v43  ;;  %2808 = vrot.lane.b32.xlu0 %v8160_v50, %s9315_s30  ;;  %v8164_v50 = vld [vmem:[%s9377_s24 + $0x1e0] sm:$0xff] }
 0x311   : > { %16034 = vst [vmem:[#allocation23_spill] sm:$0xff] %v11471_v38  ;;  %v11489_v8 = vpop.f32.mrb[6].mxu0 }
 0x312   : > { %2810 = vrot.lane.b32.xlu1 %v8161_v14, %s9315_s30  ;;  %16040 = vst [vmem:[#allocation170_spill] sm:$0xff] %v11489_v8  ;;  %v8165_v14 = vld [vmem:[%s9377_s24 + $0x1e8] sm:$0xff]  ;;  %v11493_v41 = vpop.f32.mrb[7].mxu0 }
 0x313   : > { %v11485_v18 = vpop.permute.xlu0 %2576  ;;  %16041 = vst [vmem:[#allocation7_spill] sm:$0xff] %v11493_v41 }
 0x314   : > { %v11483_v23 = vpop.permute.xlu1 %2578  ;;  %16039 = vst [vmem:[#allocation52_spill] sm:$0xff] %v11485_v18  ;;  %2812 = vrot.lane.b32.xlu0 %v8162_v27, %s9315_s30  ;;  %v8166_v27 = vld [vmem:[%s9377_s24 + $0x1f0] sm:$0xff] }
 0x315   : > { %16038 = vst [vmem:[#allocation51_spill] sm:$0xff] %v11483_v23  ;;  %v11501_v1 = vpop.f32.mrb[8].mxu0 }
 0x316   : > { %2814 = vrot.lane.b32.xlu1 %v8163_v2, %s9315_s30  ;;  %16044 = vst [vmem:[#allocation25_spill] sm:$0xff] %v11501_v1  ;;  %v8167_v2 = vld [vmem:[%s9377_s24 + $0x1f8] sm:$0xff]  ;;  %v11505_v8 = vpop.f32.mrb[9].mxu0 }
 0x317   : > { %v11497_v38 = vpop.permute.xlu0 %2580  ;;  %16045 = vst [vmem:[#allocation26_spill] sm:$0xff] %v11505_v8 }
 0x318   : > { %v11495_v43 = vpop.permute.xlu1 %2582  ;;  %16043 = vst [vmem:[#allocation111_spill] sm:$0xff] %v11497_v38  ;;  %2816 = vrot.lane.b32.xlu0 %v8164_v50, %s9315_s30  ;;  %v8168_v50 = vld [vmem:[%s9377_s24 + $0x200] sm:$0xff] }
 0x319   : > { %16042 = vst [vmem:[#allocation110_spill] sm:$0xff] %v11495_v43 }
 0x31a   : > { %2818 = vrot.lane.b32.xlu1 %v8165_v14, %s9315_s30  ;;  %v11513_v41 = vpop.f32.mrb[10].mxu0  ;;  %v8169_v14 = vld [vmem:[%s9377_s24 + $0x208] sm:$0xff] }
 0x31b   : > { %v11509_v23 = vpop.permute.xlu0 %2584  ;;  %16048 = vst [vmem:[#allocation53_spill] sm:$0xff] %v11513_v41  ;;  %v11517_v1 = vpop.f32.mrb[11].mxu0 }
 0x31c   : > { %v11507_v18 = vpop.permute.xlu1 %2586  ;;  %16047 = vst [vmem:[#allocation143_spill] sm:$0xff] %v11509_v23  ;;  %2820 = vrot.lane.b32.xlu0 %v8166_v27, %s9315_s30  ;;  %16049 = vst [vmem:[#allocation54_spill] sm:$0xff] %v11517_v1  ;;  %v8170_v27 = vld [vmem:[%s9377_s24 + $0x210] sm:$0xff] }
 0x31d   : > { %16046 = vst [vmem:[#allocation142_spill] sm:$0xff] %v11507_v18 }
 0x31e   : > { %2822 = vrot.lane.b32.xlu1 %v8167_v2, %s9315_s30  ;;  %v11525_v8 = vpop.f32.mrb[12].mxu0  ;;  %v8171_v2 = vld [vmem:[%s9377_s24 + $0x218] sm:$0xff] }
 0x31f   : > { %v11521_v43 = vpop.permute.xlu0 %2588  ;;  %16052 = vst [vmem:[#allocation113_spill] sm:$0xff] %v11525_v8  ;;  %v11529_v41 = vpop.f32.mrb[13].mxu0 }
 0x320   : > { %v11519_v38 = vpop.permute.xlu1 %2590  ;;  %16051 = vst [vmem:[#allocation8_spill] sm:$0xff] %v11521_v43  ;;  %2824 = vrot.lane.b32.xlu0 %v8168_v50, %s9315_s30  ;;  %16053 = vst [vmem:[#allocation114_spill] sm:$0xff] %v11529_v41  ;;  %v8172_v50 = vld [vmem:[%s9377_s24 + $0x133] sm:$0xff] }
 0x321   : > { %16050 = vst [vmem:[#allocation171_spill] sm:$0xff] %v11519_v38 }
 0x322   : > { %2826 = vrot.lane.b32.xlu1 %v8169_v14, %s9315_s30  ;;  %v8173_v14 = vld [vmem:[%s9377_s24 + $0x13b] sm:$0xff] }
 0x323   : > { %v11533_v18 = vpop.permute.xlu0 %2652  ;;  %v11537_v1 = vpop.f32.mrb[14].mxu0 }
 0x324   : > { %v11531_v23 = vpop.permute.xlu1 %2654  ;;  %16054 = vst [vmem:[#allocation27_spill] sm:$0xff] %v11533_v18  ;;  %2828 = vrot.lane.b32.xlu0 %v8170_v27, %s9315_s30  ;;  %16055 = vst [vmem:[#allocation28_spill] sm:$0xff] %v11537_v1  ;;  %v11541_v8 = vpop.f32.mrb[15].mxu0  ;;  %v8174_v27 = vld [vmem:[%s9377_s24 + $0x143] sm:$0xff] }
 0x325   : > { %16056 = vst [vmem:[#allocation144_spill] sm:$0xff] %v11541_v8 }
 0x326   : > { %2830 = vrot.lane.b32.xlu1 %v8171_v2, %s9315_s30  ;;  %v8175_v2 = vld [vmem:[%s9377_s24 + $0x14b] sm:$0xff] }
 0x327   : > { %v11545_v38 = vpop.permute.xlu0 %2656  ;;  %v11549_v41 = vpop.f32.mrb[16].mxu0 }
 0x328   : > { %v11543_v43 = vpop.permute.xlu1 %2658  ;;  %16058 = vst [vmem:[#allocation56_spill] sm:$0xff] %v11545_v38  ;;  %2892 = vrot.lane.b32.xlu0 %v8172_v50, %s9316_s4  ;;  %16059 = vst [vmem:[#allocation57_spill] sm:$0xff] %v11549_v41  ;;  %v11553_v1 = vpop.f32.mrb[17].mxu0  ;;  %v8176_v50 = vld [vmem:[%s9377_s24 + $0x153] sm:$0xff] }
 0x329   : > { %16057 = vst [vmem:[#allocation145_spill] sm:$0xff] %v11543_v43  ;;  %16060 = vst [vmem:[#allocation9_spill] sm:$0xff] %v11553_v1 }
 0x32a   : > { %2894 = vrot.lane.b32.xlu1 %v8173_v14, %s9316_s4  ;;  %v8177_v14 = vld [vmem:[%s9377_s24 + $0x15b] sm:$0xff] }
 0x32b   : > { %v11557_v33 = vpop.permute.xlu0 %2660 }
 0x32c   : > { %v11555_v30 = vpop.permute.xlu1 %2662  ;;  %16062 = vst [vmem:[#allocation117_spill] sm:$0xff] %v11557_v33  ;;  %2896 = vrot.lane.b32.xlu0 %v8174_v27, %s9316_s4  ;;  %v8178_v27 = vld [vmem:[%s9377_s24 + $0x163] sm:$0xff] }
 0x32d   : > { %16061 = vst [vmem:[#allocation116_spill] sm:$0xff] %v11555_v30  ;;  %v11561_v8 = vpop.f32.mrb[18].mxu0 }
 0x32e   : > { %2898 = vrot.lane.b32.xlu1 %v8175_v2, %s9316_s4  ;;  %16063 = vst [vmem:[#allocation29_spill] sm:$0xff] %v11561_v8  ;;  %v11565_v41 = vpop.f32.mrb[19].mxu0  ;;  %v8179_v2 = vld [vmem:[%s9377_s24 + $0x16b] sm:$0xff] }
 0x32f   : > { %16064 = vst [vmem:[#allocation30_spill] sm:$0xff] %v11565_v41  ;;  %v11569_v43 = vpop.permute.xlu0 %2664 }
 0x330   : > { %v11567_v38 = vpop.permute.xlu1 %2666  ;;  %16066 = vst [vmem:[#allocation147_spill] sm:$0xff] %v11569_v43  ;;  %2900 = vrot.lane.b32.xlu0 %v8176_v50, %s9316_s4  ;;  %v8180_v50 = vld [vmem:[%s9377_s24 + $0x173] sm:$0xff] }
 0x331   : > { %16065 = vst [vmem:[#allocation146_spill] sm:$0xff] %v11567_v38 }
 0x332   : > { %2902 = vrot.lane.b32.xlu1 %v8177_v14, %s9316_s4  ;;  %v11573_v1 = vpop.f32.mrb[20].mxu0  ;;  %v8181_v14 = vld [vmem:[%s9377_s24 + $0x17b] sm:$0xff] }
 0x333   : > { %16067 = vst [vmem:[#allocation60_spill] sm:$0xff] %v11573_v1  ;;  %v11577_v8 = vpop.f32.mrb[21].mxu0  ;;  %v11581_v30 = vpop.permute.xlu0 %2668 }
 0x334   : > { %16068 = vst [vmem:[#allocation61_spill] sm:$0xff] %v11577_v8  ;;  %v11579_v33 = vpop.permute.xlu1 %2670  ;;  %16070 = vst [vmem:[#allocation118_spill] sm:$0xff] %v11581_v30  ;;  %2904 = vrot.lane.b32.xlu0 %v8178_v27, %s9316_s4  ;;  %v8182_v27 = vld [vmem:[%s9377_s24 + $0x183] sm:$0xff] }
 0x335   : > { %16069 = vst [vmem:[#allocation10_spill] sm:$0xff] %v11579_v33 }
 0x336   : > { %2906 = vrot.lane.b32.xlu1 %v8179_v2, %s9316_s4  ;;  %v8183_v2 = vld [vmem:[%s9377_s24 + $0x18b] sm:$0xff] }
 0x337   : > { %v11585_v41 = vpop.f32.mrb[22].mxu0  ;;  %v11593_v38 = vpop.permute.xlu0 %2672 }
 0x338   : > { %16071 = vst [vmem:[#allocation119_spill] sm:$0xff] %v11585_v41  ;;  %v11589_v1 = vpop.f32.mrb[23].mxu0  ;;  %v11591_v43 = vpop.permute.xlu1 %2674  ;;  %16074 = vst [vmem:[#allocation148_spill] sm:$0xff] %v11593_v38  ;;  %2908 = vrot.lane.b32.xlu0 %v8180_v50, %s9316_s4  ;;  %v8184_v50 = vld [vmem:[%s9377_s24 + $0x193] sm:$0xff] }
 0x339   : > { %16072 = vst [vmem:[#allocation31_spill] sm:$0xff] %v11589_v1  ;;  %16073 = vst [vmem:[#allocation32_spill] sm:$0xff] %v11591_v43 }
 0x33a   : > { %2910 = vrot.lane.b32.xlu1 %v8181_v14, %s9316_s4  ;;  %v8185_v14 = vld [vmem:[%s9377_s24 + $0x19b] sm:$0xff] }
 0x33b   : > { %v11597_v8 = vpop.f32.mrb[24].mxu0  ;;  %v11605_v33 = vpop.permute.xlu0 %2676 }
 0x33c   : > { %16075 = vst [vmem:[#allocation149_spill] sm:$0xff] %v11597_v8  ;;  %v11601_v41 = vpop.f32.mrb[25].mxu0  ;;  %v11603_v30 = vpop.permute.xlu1 %2678  ;;  %16078 = vst [vmem:[#allocation172_spill] sm:$0xff] %v11605_v33  ;;  %2912 = vrot.lane.b32.xlu0 %v8182_v27, %s9316_s4  ;;  %v8187_v27 = vld [vmem:[%s9377_s24 + $0x1ab] sm:$0xff] }
 0x33d   : > { %16076 = vst [vmem:[#allocation62_spill] sm:$0xff] %v11601_v41  ;;  %16077 = vst [vmem:[#allocation63_spill] sm:$0xff] %v11603_v30 }
 0x33e   : > { %2914 = vrot.lane.b32.xlu1 %v8183_v2, %s9316_s4 }
 0x33f   : > { %v11617_v43 = vpop.permute.xlu0 %2680 }
 0x340   : > { %v11609_v1 = vpop.f32.mrb[26].mxu0  ;;  %v11615_v38 = vpop.permute.xlu1 %2682  ;;  %16082 = vst [vmem:[#allocation33_spill] sm:$0xff] %v11617_v43  ;;  %2916 = vrot.lane.b32.xlu0 %v8184_v50, %s9316_s4  ;;  %v8188_v43 = vld [vmem:[%s9377_s24 + $0x1b3] sm:$0xff] }
 0x341   : > { %16079 = vst [vmem:[#allocation11_spill] sm:$0xff] %v11609_v1  ;;  %v11613_v8 = vpop.f32.mrb[27].mxu0  ;;  %16081 = vst [vmem:[#allocation121_spill] sm:$0xff] %v11615_v38  ;;  %v8186_v1 = vld [vmem:[%s9377_s24 + $0x1a3] sm:$0xff] }
 0x342   : > { %16080 = vst [vmem:[#allocation120_spill] sm:$0xff] %v11613_v8  ;;  %2918 = vrot.lane.b32.xlu1 %v8185_v14, %s9316_s4  ;;  %v8189_v14 = vld [vmem:[%s9377_s24 + $0x1bb] sm:$0xff] }
 0x343   : > { %v11629_v8 = vpop.permute.xlu0 %2684 }
 0x344   : > { %v11627_v33 = vpop.permute.xlu1 %2686  ;;  %16086 = vst [vmem:[#allocation64_spill] sm:$0xff] %v11629_v8  ;;  %2920 = vrot.lane.b32.xlu0 %v8186_v1, %s9316_s4  ;;  %v8193_v1 = vld [vmem:[%s9377_s24 + $0x1db] sm:$0xff] }
 0x345   : > { %v11621_v2 = vpop.f32.mrb[28].mxu0  ;;  %16085 = vst [vmem:[#allocation151_spill] sm:$0xff] %v11627_v33 }
 0x346   : > { %16083 = vst [vmem:[#allocation34_spill] sm:$0xff] %v11621_v2  ;;  %v11625_v41 = vpop.f32.mrb[29].mxu0  ;;  %2922 = vrot.lane.b32.xlu1 %v8187_v27, %s9316_s4  ;;  %v8190_v2 = vld [vmem:[%s9377_s24 + $0x1c3] sm:$0xff]  ;;  %v8192_v27 = vld [vmem:[%s9377_s24 + $0x1d3] sm:$0xff] }
 0x347   : > { %16084 = vst [vmem:[#allocation150_spill] sm:$0xff] %v11625_v41  ;;  %v11637_v38 = vpop.permute.xlu0 %2688  ;;  %v8191_v41 = vld [vmem:[%s9377_s24 + $0x1cb] sm:$0xff] }
 0x348   : > { %v11635_v50 = vpop.permute.xlu1 %2690  ;;  %16088 = vst [vmem:[#allocation173_spill] sm:$0xff] %v11637_v38  ;;  %2924 = vrot.lane.b32.xlu0 %v8188_v43, %s9316_s4  ;;  %v8233_v43 = vld [vmem:[%s15592_s1 + $0x30] sm:$0xff] }
 0x349   : > { %16087 = vst [vmem:[#allocation65_spill] sm:$0xff] %v11635_v50  ;;  %v8234_v50 = vld [vmem:[%s15592_s1 + $0x38] sm:$0xff] }
 0x34a   : > { %2926 = vrot.lane.b32.xlu1 %v8189_v14, %s9316_s4  ;;  %v8232_v14 = vld [vmem:[%s15592_s1 + $0x28] sm:$0xff] }
 0x34b   : > { %v11645_v33 = vpop.permute.xlu0 %2692 }
 0x34c   : > { %v11643_v8 = vpop.permute.xlu1 %2694  ;;  %16090 = vst [vmem:[#allocation12_spill] sm:$0xff] %v11645_v33  ;;  %2928 = vrot.lane.b32.xlu0 %v8190_v2, %s9316_s4  ;;  %v8194_v2 = vld [vmem:[%s9377_s24 + $0x1e3] sm:$0xff] }
 0x34d   : > { %16089 = vst [vmem:[#allocation174_spill] sm:$0xff] %v11643_v8  ;;  %v9161_v8 = vpack.c.bf16 %v8233_v43, %v8232_v14 }
 0x34e   : > { %2930 = vrot.lane.b32.xlu1 %v8191_v41, %s9316_s4  ;;  %v8195_v41 = vld [vmem:[%s9377_s24 + $0x1eb] sm:$0xff] }
 0x34f   : > { %v11659_v33 = vpop.permute.xlu0 %2696  ;;  %9162 = vmatprep.subr.bf16.mxu1 %v9161_v8 }
 0x350   : > { %v11657_v38 = vpop.permute.xlu1 %2698  ;;  %16092 = vst [vmem:[#allocation123_spill] sm:$0xff] %v11659_v33  ;;  %2932 = vrot.lane.b32.xlu0 %v8192_v27, %s9316_s4  ;;  %9164 = vmatpush3.bf16.msra.mxu1 %v9161_v8  ;;  %v8197_v27 = vld [vmem:[%s9377_s24 + $0x1fb] sm:$0xff]  ;;  %v8196_v33 = vld [vmem:[%s9377_s24 + $0x1f3] sm:$0xff]  ;;  %v8199_v8 = vld [vmem:[%s9377_s24 + $0x20b] sm:$0xff] }
 0x351   : > { %16091 = vst [vmem:[#allocation122_spill] sm:$0xff] %v11657_v38  ;;  %v8235_v38 = vld [vmem:[%s15592_s1 + $0x40] sm:$0xff] }
 0x352   : > { %2934 = vrot.lane.b32.xlu1 %v8193_v1, %s9316_s4  ;;  %v9165_v43 = vpack.c.bf16 %v8235_v38, %v8234_v50  ;;  %v8236_v38 = vld [vmem:[%s15592_s1 + $0x48] sm:$0xf] }
 0x353   : > { %v11673_v1 = vpop.permute.xlu0 %2700  ;;  %v8198_v50 = vld [vmem:[%s9377_s24 + $0x203] sm:$0xff] }
 0x354   : > { %v11671_v14 = vpop.permute.xlu1 %2702  ;;  %16094 = vst [vmem:[#allocation36_spill] sm:$0xff] %v11673_v1  ;;  %2936 = vrot.lane.b32.xlu0 %v8194_v2, %s9316_s4  ;;  %9166 = vmatprep.subr.bf16.mxu1 %v9165_v43 }
 0x355   : > { %16093 = vst [vmem:[#allocation35_spill] sm:$0xff] %v11671_v14  ;;  %9168 = vmatpush3.bf16.msra.mxu1 %v9165_v43  ;;  %v8201_v43 = vld [vmem:[%s9377_s24 + $0x21b] sm:$0xff]  ;;  %v8224_v14 = vld [vmem:[%s9377_s24 + $0x1e6] sm:$0xff] }
 0x356   : > { %2938 = vrot.lane.b32.xlu1 %v8195_v41, %s9316_s4  ;;  %8996 = vmatprep.subr.msk.mxu1 %vm1787_vm0, %v8236_v38 }
 0x357   : > { %v11681_v18 = vpop.permute.xlu0 %2704 }
 0x358   : > { %v11679_v30 = vpop.permute.xlu1 %2706  ;;  %16096 = vst [vmem:[#allocation153_spill] sm:$0xff] %v11681_v18  ;;  %2940 = vrot.lane.b32.xlu0 %v8196_v33, %s9316_s4  ;;  %v8200_v18 = vld [vmem:[%s9377_s24 + $0x213] sm:$0xff] }
 0x359   : > { %16095 = vst [vmem:[#allocation152_spill] sm:$0xff] %v11679_v30  ;;  %8997 = vmatpush3.msk.msra.mxu1 %vm1787_vm0, %v8236_v38 }
 0x35a   : > { %2942 = vrot.lane.b32.xlu1 %v8197_v27, %s9316_s4 }
 0x35b   : > { %v11694_v2 = vpop.permute.xlu0 %2708 }
 0x35c   : > { %v11691_v41 = vpop.permute.xlu1 %2710  ;;  %16098 = vst [vmem:[#allocation67_spill] sm:$0xff] %v11694_v2  ;;  %2944 = vrot.lane.b32.xlu0 %v8198_v50, %s9316_s4  ;;  %v8222_v2 = vld [vmem:[%s9377_s24 + $0x1d6] sm:$0xff] }
 0x35d   : > { %16097 = vst [vmem:[#allocation66_spill] sm:$0xff] %v11691_v41 }
 0x35e   : > { %2946 = vrot.lane.b32.xlu1 %v8199_v8, %s9316_s4 }
 0x35f   : > { %v11702_v27 = vpop.permute.xlu0 %2772 }
 0x360   : > { %v11700_v30 = vpop.permute.xlu1 %2774  ;;  %2948 = vrot.lane.b32.xlu0 %v8200_v18, %s9316_s4 }
 0x362   : > { %2950 = vrot.lane.b32.xlu1 %v8201_v43, %s9316_s4 }
 0x363   : > { %v11708_v41 = vpop.permute.xlu0 %2776 }
 0x364   : > { %v11706_v33 = vpop.permute.xlu1 %2778  ;;  %3012 = vrot.lane.b32.xlu0 %v11132_v22, %s9317_s22 }
 0x366   : > { %3014 = vrot.lane.b32.xlu1 %v11129_v10, %s9317_s22 }
 0x367   : > { %v11716_v8 = vpop.permute.xlu0 %2780 }
 0x368   : > { %v11714_v38 = vpop.permute.xlu1 %2782  ;;  %3016 = vrot.lane.b32.xlu0 %v11146_v57, %s9317_s22 }
 0x36a   : > { %3018 = vrot.lane.b32.xlu1 %v11143_v56, %s9317_s22 }
 0x36b   : > { %v11724_v50 = vpop.permute.xlu0 %2784 }
 0x36c   : > { %v11722_v18 = vpop.permute.xlu1 %2786  ;;  %16100 = vst [vmem:[#allocation124_spill] sm:$0xff] %v11724_v50  ;;  %3020 = vrot.lane.b32.xlu0 %v11160_v4, %s9317_s22 }
 0x36d   : > { %16099 = vst [vmem:[#allocation13_spill] sm:$0xff] %v11722_v18  ;;  %v8000_v18 = vld [vmem:[%s9377_s24 + $0xbc] sm:$0xff] }
 0x36e   : > { %3022 = vrot.lane.b32.xlu1 %v11157_v39, %s9317_s22 }
 0x36f   : > { %v11732_v22 = vpop.permute.xlu0 %2788 }
 0x370   : > { %v11730_v10 = vpop.permute.xlu1 %2790  ;;  %16102 = vst [vmem:[#allocation37_spill] sm:$0xff] %v11732_v22  ;;  %3024 = vrot.lane.b32.xlu0 %v11174_v35, %s9317_s22 }
 0x371   : > { %16101 = vst [vmem:[#allocation125_spill] sm:$0xff] %v11730_v10  ;;  %v8001_v10 = vld [vmem:[%s9377_s24 + $0xc4] sm:$0xff] }
 0x372   : > { %3026 = vrot.lane.b32.xlu1 %v11171_v20, %s9317_s22 }
 0x373   : > { %v11740_v57 = vpop.permute.xlu0 %2792 }
 0x374   : > { %v11738_v56 = vpop.permute.xlu1 %2794  ;;  %16104 = vst [vmem:[#allocation154_spill] sm:$0xff] %v11740_v57  ;;  %3028 = vrot.lane.b32.xlu0 %v11188_v0, %s9317_s22 }
 0x375   : > { %16103 = vst [vmem:[#allocation38_spill] sm:$0xff] %v11738_v56 }
 0x376   : > { %3030 = vrot.lane.b32.xlu1 %v11185_v45, %s9317_s22 }
 0x377   : > { %v11748_v4 = vpop.permute.xlu0 %2796 }
 0x378   : > { %v11746_v39 = vpop.permute.xlu1 %2798  ;;  %16106 = vst [vmem:[#allocation68_spill] sm:$0xff] %v11748_v4  ;;  %3032 = vrot.lane.b32.xlu0 %v11202_v7, %s9317_s22 }
 0x379   : > { %16105 = vst [vmem:[#allocation155_spill] sm:$0xff] %v11746_v39  ;;  %v8308_v39 = vld [vmem:[%s9377_s24 + $0x93] sm:$0xff] }
 0x37a   : > { %3034 = vrot.lane.b32.xlu1 %v11199_v52, %s9317_s22 }
 0x37b   : > { %v11756_v35 = vpop.permute.xlu0 %2800 }
 0x37c   : > { %v11754_v20 = vpop.permute.xlu1 %2802  ;;  %16108 = vst [vmem:[#allocation175_spill] sm:$0xff] %v11756_v35  ;;  %3036 = vrot.lane.b32.xlu0 %v11216_v32, %s9317_s22  ;;  %v8221_v32 = vld [vmem:[%s9377_s24 + $0x1ce] sm:$0xff] }
 0x37d   : > { %16107 = vst [vmem:[#allocation69_spill] sm:$0xff] %v11754_v20  ;;  %v8306_v20 = vld [vmem:[%s9377_s24 + $0x83] sm:$0xff] }
 0x37e   : > { %3038 = vrot.lane.b32.xlu1 %v11213_v12, %s9317_s22  ;;  %v8220_v12 = vld [vmem:[%s9377_s24 + $0x1c6] sm:$0xff] }
 0x37f   : > { %v11764_v0 = vpop.permute.xlu0 %2804 }
 0x380   : > { %v11762_v45 = vpop.permute.xlu1 %2806  ;;  %16110 = vst [vmem:[#allocation126_spill] sm:$0xff] %v11764_v0  ;;  %3040 = vrot.lane.b32.xlu0 %v11230_v16, %s9317_s22  ;;  %v8223_v16 = vld [vmem:[%s9377_s24 + $0x1de] sm:$0xff] }
 0x381   : > { %16109 = vst [vmem:[#allocation14_spill] sm:$0xff] %v11762_v45  ;;  %v8304_v45 = vld [vmem:[%s9377_s24 + $0x73] sm:$0xff] }
 0x382   : > { %3042 = vrot.lane.b32.xlu1 %v11227_v46, %s9317_s22 }
 0x383   : > { %v11772_v52 = vpop.permute.xlu0 %2808 }
 0x384   : > { %v11770_v7 = vpop.permute.xlu1 %2810  ;;  %16112 = vst [vmem:[#allocation39_spill] sm:$0xff] %v11772_v52  ;;  %3044 = vrot.lane.b32.xlu0 %v11244_v49, %s9317_s22  ;;  %v8225_v49 = vld [vmem:[%s9377_s24 + $0x1ee] sm:$0xff] }
 0x385   : > { %16111 = vst [vmem:[#allocation127_spill] sm:$0xff] %v11770_v7  ;;  %v8302_v7 = vld [vmem:[%s9377_s24 + $0x63] sm:$0xff] }
 0x386   : > { %3046 = vrot.lane.b32.xlu1 %v11241_v36, %s9317_s22 }
 0x387   : > { %v11782_v46 = vpop.permute.xlu0 %2812 }
 0x388   : > { %v11780_v43 = vpop.permute.xlu1 %2814  ;;  %16114 = vst [vmem:[#allocation156_spill] sm:$0xff] %v11782_v46  ;;  %3048 = vrot.lane.b32.xlu0 %v8220_v12, %s9317_s22  ;;  %v8227_v12 = vld [vmem:[%s9377_s24 + $0x1fe] sm:$0xff] }
 0x389   : > { %16113 = vst [vmem:[#allocation40_spill] sm:$0xff] %v11780_v43  ;;  %v8300_v43 = vld [vmem:[%s9377_s24 + $0x53] sm:$0xff] }
 0x38a   : > { %3050 = vrot.lane.b32.xlu1 %v8221_v32, %s9317_s22 }
 0x38b   : > { %v11790_v36 = vpop.permute.xlu0 %2816 }
 0x38c   : > { %v11788_v1 = vpop.permute.xlu1 %2818  ;;  %16116 = vst [vmem:[#allocation70_spill] sm:$0xff] %v11790_v36  ;;  %3052 = vrot.lane.b32.xlu0 %v8222_v2, %s9317_s22  ;;  %v8229_v2 = vld [vmem:[%s9377_s24 + $0x20e] sm:$0xff] }
 0x38d   : > { %16115 = vst [vmem:[#allocation157_spill] sm:$0xff] %v11788_v1  ;;  %v8226_v1 = vld [vmem:[%s9377_s24 + $0x1f6] sm:$0xff] }
 0x38e   : > { %3054 = vrot.lane.b32.xlu1 %v8223_v16, %s9317_s22 }
 0x38f   : > { %v11798_v32 = vpop.permute.xlu0 %2820 }
 0x390   : > { %v11796_v46 = vpop.permute.xlu1 %2822  ;;  %16118 = vst [vmem:[#allocation128_spill] sm:$0xff] %v11798_v32  ;;  %3056 = vrot.lane.b32.xlu0 %v8224_v14, %s9317_s22  ;;  %v8231_v14 = vld [vmem:[%s9377_s24 + $0x21e] sm:$0xff] }
 0x391   : > { %16117 = vst [vmem:[#allocation71_spill] sm:$0xff] %v11796_v46  ;;  %v8228_v46 = vld [vmem:[%s9377_s24 + $0x206] sm:$0xff] }
 0x392   : > { %3058 = vrot.lane.b32.xlu1 %v8225_v49, %s9317_s22 }
 0x393   : > { %v11806_v16 = vpop.permute.xlu0 %2824 }
 0x394   : > { %v11804_v36 = vpop.permute.xlu1 %2826  ;;  %16120 = vst [vmem:[#allocation158_spill] sm:$0xff] %v11806_v16  ;;  %3060 = vrot.lane.b32.xlu0 %v8226_v1, %s9317_s22  ;;  %v8299_v1 = vld [vmem:[%s9377_s24 + $0x4b] sm:$0xff] }
 0x395   : > { %16119 = vst [vmem:[#allocation129_spill] sm:$0xff] %v11804_v36  ;;  %v8230_v36 = vld [vmem:[%s9377_s24 + $0x216] sm:$0xff] }
 0x396   : > { %3062 = vrot.lane.b32.xlu1 %v8227_v12, %s9317_s22 }
 0x397   : > { %v11814_v49 = vpop.permute.xlu0 %2828 }
 0x398   : > { %v11812_v32 = vpop.permute.xlu1 %2830  ;;  %16122 = vst [vmem:[#allocation176_spill] sm:$0xff] %v11814_v49  ;;  %3064 = vrot.lane.b32.xlu0 %v8228_v46, %s9317_s22  ;;  %v8301_v46 = vld [vmem:[%s9377_s24 + $0x5b] sm:$0xff] }
 0x399   : > { %16121 = vst [vmem:[#allocation159_spill] sm:$0xff] %v11812_v32  ;;  %v8298_v32 = vld [vmem:[%s9377_s24 + $0x43] sm:$0xff] }
 0x39a   : > { %3066 = vrot.lane.b32.xlu1 %v8229_v2, %s9317_s22 }
 0x39b   : > { %v11822_v12 = vpop.permute.xlu0 %2892 }
 0x39c   : > { %v11820_v16 = vpop.permute.xlu1 %2894  ;;  %3068 = vrot.lane.b32.xlu0 %v8230_v36, %s9317_s22  ;;  %v8303_v36 = vld [vmem:[%s9377_s24 + $0x6b] sm:$0xff] }
 0x39e   : > { %3070 = vrot.lane.b32.xlu1 %v8231_v14, %s9317_s22 }
 0x39f   : > { %v11830_v2 = vpop.permute.xlu0 %2896 }
 0x3a0   : > { %v11828_v49 = vpop.permute.xlu1 %2898  ;;  %3942 = vrot.lane.b32.xlu0 %v8298_v32, %s9310_s25  ;;  %v8305_v32 = vld [vmem:[%s9377_s24 + $0x7b] sm:$0xff] }
 0x3a2   : > { %3944 = vrot.lane.b32.xlu1 %v8299_v1, %s9310_s25 }
 0x3a3   : > { %v11838_v14 = vpop.permute.xlu0 %2900 }
 0x3a4   : > { %v11836_v52 = vpop.permute.xlu1 %2902  ;;  %16123 = vst [vmem:[#allocation177_spill] sm:$0xff] %v11838_v14  ;;  %3946 = vrot.lane.b32.xlu0 %v8300_v43, %s9310_s25  ;;  %v8307_v43 = vld [vmem:[%s9377_s24 + $0x8b] sm:$0xff] }
 0x3a5   : > { %v8002_v14 = vld [vmem:[%s9377_s24 + $0xcc] sm:$0xff] }
 0x3a6   : > { %3948 = vrot.lane.b32.xlu1 %v8301_v46, %s9310_s25 }
 0x3a7   : > { %v11846_v1 = vpop.permute.xlu0 %2904 }
 0x3a8   : > { %v11844_v0 = vpop.permute.xlu1 %2906  ;;  %16125 = vst [vmem:[#allocation179_spill] sm:$0xff] %v11846_v1  ;;  %3950 = vrot.lane.b32.xlu0 %v8302_v7, %s9310_s25  ;;  %v8309_v7 = vld [vmem:[%s9377_s24 + $0x9b] sm:$0xff]  ;;  %v8323_v1 = vld [vmem:[%s9377_s24 + $0x10b] sm:$0xff] }
 0x3a9   : > { %16124 = vst [vmem:[#allocation178_spill] sm:$0xff] %v11844_v0 }
 0x3aa   : > { %3952 = vrot.lane.b32.xlu1 %v8303_v36, %s9310_s25 }
 0x3ab   : > { %v11854_v46 = vpop.permute.xlu0 %2908 }
 0x3ac   : > { %v11852_v35 = vpop.permute.xlu1 %2910  ;;  %16127 = vst [vmem:[#allocation181_spill] sm:$0xff] %v11854_v46  ;;  %3954 = vrot.lane.b32.xlu0 %v8304_v45, %s9310_s25  ;;  %v8311_v45 = vld [vmem:[%s9377_s24 + $0xab] sm:$0xff] }
 0x3ad   : > { %16126 = vst [vmem:[#allocation180_spill] sm:$0xff] %v11852_v35  ;;  %v7994_v46 = vld [vmem:[%s9377_s24 + $0x8c] sm:$0xff]  ;;  %v7997_v35 = vld [vmem:[%s9377_s24 + $0xa4] sm:$0xff] }
 0x3ae   : > { %3956 = vrot.lane.b32.xlu1 %v8305_v32, %s9310_s25 }
 0x3af   : > { %v11862_v36 = vpop.permute.xlu0 %2912 }
 0x3b0   : > { %v11860_v4 = vpop.permute.xlu1 %2914  ;;  %16129 = vst [vmem:[#allocation183_spill] sm:$0xff] %v11862_v36  ;;  %3958 = vrot.lane.b32.xlu0 %v8306_v20, %s9310_s25  ;;  %v8313_v20 = vld [vmem:[%s9377_s24 + $0xbb] sm:$0xff] }
 0x3b1   : > { %16128 = vst [vmem:[#allocation182_spill] sm:$0xff] %v11860_v4  ;;  %v8310_v4 = vld [vmem:[%s9377_s24 + $0xa3] sm:$0xff] }
 0x3b2   : > { %3960 = vrot.lane.b32.xlu1 %v8307_v43, %s9310_s25 }
 0x3b3   : > { %v11870_v32 = vpop.permute.xlu0 %2916 }
 0x3b4   : > { %v11868_v57 = vpop.permute.xlu1 %2918  ;;  %16131 = vst [vmem:[#allocation185_spill] sm:$0xff] %v11870_v32  ;;  %3962 = vrot.lane.b32.xlu0 %v8308_v39, %s9310_s25  ;;  %v8315_v39 = vld [vmem:[%s9377_s24 + $0xcb] sm:$0xff] }
 0x3b5   : > { %16130 = vst [vmem:[#allocation184_spill] sm:$0xff] %v11868_v57  ;;  %v8312_v57 = vld [vmem:[%s9377_s24 + $0xb3] sm:$0xff] }
 0x3b6   : > { %3964 = vrot.lane.b32.xlu1 %v8309_v7, %s9310_s25 }
 0x3b7   : > { %v11878_v43 = vpop.permute.xlu0 %2920 }
 0x3b8   : > { %v11876_v36 = vpop.permute.xlu1 %2922  ;;  %16133 = vst [vmem:[#allocation187_spill] sm:$0xff] %v11878_v43  ;;  %3966 = vrot.lane.b32.xlu0 %v8310_v4, %s9310_s25  ;;  %v8317_v4 = vld [vmem:[%s9377_s24 + $0xdb] sm:$0xff] }
 0x3b9   : > { %16132 = vst [vmem:[#allocation186_spill] sm:$0xff] %v11876_v36  ;;  %v8314_v36 = vld [vmem:[%s9377_s24 + $0xc3] sm:$0xff] }
 0x3ba   : > { %3968 = vrot.lane.b32.xlu1 %v8311_v45, %s9310_s25 }
 0x3bb   : > { %v11886_v7 = vpop.permute.xlu0 %2924 }
 0x3bc   : > { %v11884_v32 = vpop.permute.xlu1 %2926  ;;  %16135 = vst [vmem:[#allocation189_spill] sm:$0xff] %v11886_v7  ;;  %3970 = vrot.lane.b32.xlu0 %v8312_v57, %s9310_s25  ;;  %v8316_v7 = vld [vmem:[%s9377_s24 + $0xd3] sm:$0xff] }
 0x3bd   : > { %16134 = vst [vmem:[#allocation188_spill] sm:$0xff] %v11884_v32  ;;  %v7992_v32 = vld [vmem:[%s9377_s24 + $0x7c] sm:$0xff] }
 0x3be   : > { %3972 = vrot.lane.b32.xlu1 %v8313_v20, %s9310_s25  ;;  %v3102_v0 = vsel %vm1443_vm1, %v7992_v32, %v11076_v28 }
 0x3bf   : > { %v11894_v45 = vpop.permute.xlu0 %2928 }
 0x3c0   : > { %v11892_v43 = vpop.permute.xlu1 %2930  ;;  %16137 = vst [vmem:[#allocation191_spill] sm:$0xff] %v11894_v45  ;;  %3974 = vrot.lane.b32.xlu0 %v8314_v36, %s9310_s25  ;;  %v8319_v45 = vld [vmem:[%s9377_s24 + $0xeb] sm:$0xff] }
 0x3c1   : > { %16136 = vst [vmem:[#allocation190_spill] sm:$0xff] %v11892_v43 }
 0x3c2   : > { %3976 = vrot.lane.b32.xlu1 %v8315_v39, %s9310_s25  ;;  %v8318_v39 = vld [vmem:[%s9377_s24 + $0xe3] sm:$0xff] }
 0x3c3   : > { %v11902_v57 = vpop.permute.xlu0 %2932 }
 0x3c4   : > { %v11900_v20 = vpop.permute.xlu1 %2934  ;;  %16139 = vst [vmem:[#allocation193_spill] sm:$0xff] %v11902_v57  ;;  %3978 = vrot.lane.b32.xlu0 %v8316_v7, %s9310_s25  ;;  %v8321_v57 = vld [vmem:[%s9377_s24 + $0xfb] sm:$0xff] }
 0x3c5   : > { %16138 = vst [vmem:[#allocation192_spill] sm:$0xff] %v11900_v20  ;;  %v8320_v20 = vld [vmem:[%s9377_s24 + $0xf3] sm:$0xff] }
 0x3c6   : > { %3980 = vrot.lane.b32.xlu1 %v8317_v4, %s9310_s25  ;;  %v7993_v4 = vld [vmem:[%s9377_s24 + $0x84] sm:$0xff]  ;;  %v7995_v7 = vld [vmem:[%s9377_s24 + $0x94] sm:$0xff] }
 0x3c7   : > { %v11910_v43 = vpop.permute.xlu0 %2936  ;;  %v3103_v22 = vsel %vm1443_vm1, %v7993_v4, %v11074_v47  ;;  %v3105_v50 = vsel %vm1443_vm1, %v7995_v7, %v11082_v19 }
 0x3c8   : > { %v11908_v36 = vpop.permute.xlu1 %2938  ;;  %16141 = vst [vmem:[#allocation195_spill] sm:$0xff] %v11910_v43  ;;  %3982 = vrot.lane.b32.xlu0 %v8318_v39, %s9310_s25  ;;  %v7998_v39 = vld [vmem:[%s9377_s24 + $0xac] sm:$0xff] }
 0x3c9   : > { %16140 = vst [vmem:[#allocation194_spill] sm:$0xff] %v11908_v36  ;;  %v7996_v36 = vld [vmem:[%s9377_s24 + $0x9c] sm:$0xff]  ;;  %v3108_v19 = vsel %vm1443_vm1, %v7998_v39, %v11100_v51  ;;  %v11978_v51 = vsel %vm1443_vm1, %v8002_v14, %v11116_v29  ;;  %v3135_v29 = vsel %vm1474_vm2, %v3105_v50, %v11254_v13 }
 0x3ca   : > { %3984 = vrot.lane.b32.xlu1 %v8319_v45, %s9310_s25  ;;  %v7999_v45 = vld [vmem:[%s9377_s24 + $0xb4] sm:$0xff]  ;;  %v3106_v4 = vsel %vm1443_vm1, %v7996_v36, %v11092_v6  ;;  %v8326_v50 = vld [vmem:[%s9377_s24 + $0x123] sm:$0xff] }
 0x3cb   : > { %v11924_v43 = vpop.permute.xlu0 %2940  ;;  %v3109_v28 = vsel %vm1443_vm1, %v7999_v45, %v11098_v42  ;;  %v11970_v42 = vsel %vm1443_vm1, %v8000_v18, %v11108_v55  ;;  %v11992_v55 = vsel %vm1443_vm1, %v11262_v5, %v11124_v44  ;;  %v8327_v18 = vld [vmem:[%s9377_s24 + $0x12b] sm:$0xff]  ;;  %v16149_v39 = vld [vmem:[#allocation137_spill] sm:$0xff] }
 0x3cc   : > { %v11919_v56 = vpop.permute.xlu1 %2942  ;;  %16143 = vst [vmem:[#allocation197_spill] sm:$0xff] %v11924_v43  ;;  %3986 = vrot.lane.b32.xlu0 %v8320_v20, %s9310_s25  ;;  %v3104_v43 = vsel %vm1443_vm1, %v7994_v46, %v11084_v62  ;;  %v8003_v20 = vld [vmem:[%s9377_s24 + $0xd4] sm:$0xff]  ;;  %v3133_v62 = vsel %vm1474_vm2, %v3103_v22, %v11246_v9  ;;  %v3132_v46 = vsel %vm1474_vm2, %v3102_v0, %v11248_v17 }
 0x3cd   : > { %16142 = vst [vmem:[#allocation196_spill] sm:$0xff] %v11919_v56  ;;  %v8322_v56 = vld [vmem:[%s9377_s24 + $0x103] sm:$0xff]  ;;  %v3163_v6 = vsel %vm1505_vm3, %v3133_v62, %v11383_v37  ;;  %v11974_v9 = vsel %vm1443_vm1, %v8003_v20, %v11114_v31  ;;  %v3162_v17 = vsel %vm1505_vm3, %v3132_v46, %v11385_v63  ;;  %v8324_v37 = vld [vmem:[%s9377_s24 + $0x113] sm:$0xff]  ;;  %v11997_v31 = vsel %vm1443_vm1, %v11273_v11, %v11134_v59 }
 0x3ce   : > { %3988 = vrot.lane.b32.xlu1 %v8321_v57, %s9310_s25  ;;  %v3107_v57 = vsel %vm1443_vm1, %v7997_v35, %v11090_v54  ;;  %v11960_v35 = vsel %vm1443_vm1, %v8001_v10, %v11106_v61  ;;  %v8325_v61 = vld [vmem:[%s9377_s24 + $0x11b] sm:$0xff]  ;;  %v11987_v10 = vsel %vm1443_vm1, %v11259_v48, %v11122_v15  ;;  %v12006_v48 = vsel %vm1443_vm1, %v11276_v25, %v11136_v53  ;;  %v16145_v22 = vld [vmem:[#allocation16_spill] sm:$0xff] }
 0x3cf   : > { %v11956_v54 = vpop.permute.xlu0 %2944  ;;  %v3134_v5 = vsel %vm1474_vm2, %v3104_v43, %v11256_v60  ;;  %v3165_v15 = vsel %vm1505_vm3, %v3135_v29, %v11391_v26  ;;  %v3193_v11 = vsel %vm1536_vm4, %v3163_v6, %v9905_v3  ;;  %v3192_v53 = vsel %vm1536_vm4, %v3162_v17, %v9907_v40  ;;  %v16144_v26 = vld [vmem:[#allocation27_spill] sm:$0xff]  ;;  %v16146_v0 = vld [vmem:[#allocation72_spill] sm:$0xff]  ;;  %v16151_v62 = vld [vmem:[#allocation41_spill] sm:$0xff] }
 0x3d0   : > { %v11946_v47 = vpop.permute.xlu1 %2946  ;;  %3990 = vrot.lane.b32.xlu0 %v8322_v56, %s9310_s25  ;;  %v3164_v13 = vsel %vm1505_vm3, %v3134_v5, %v11393_v58  ;;  %v3223_v59 = vsel %vm1567_vm5, %v3193_v11, %v11531_v23  ;;  %v12027_v60 = vsel %vm1443_vm1, %v11287_v34, %v11148_v24  ;;  %v3137_v25 = vsel %vm1474_vm2, %v3107_v57, %v11268_v21  ;;  %v16150_v57 = vld [vmem:[#allocation145_spill] sm:$0xff]  ;;  %v16153_v17 = vld [vmem:[#allocation56_spill] sm:$0xff]  ;;  %v8328_v5 = vld [vmem:[%s9377_s24 + $0x48] sm:$0xff] }
 0x3d1   : > { %v3222_v58 = vsel %vm1567_vm5, %v3192_v53, %v16144_v26  ;;  %v3253_v23 = vsel %vm1598_vm6, %v3223_v59, %v11700_v30  ;;  %v3136_v56 = vsel %vm1474_vm2, %v3106_v4, %v16145_v22  ;;  %v3195_v14 = vsel %vm1536_vm4, %v3165_v15, %v16146_v0  ;;  %v16148_v30 = vld [vmem:[#allocation73_spill] sm:$0xff]  ;;  %v8329_v29 = vld [vmem:[%s9377_s24 + $0x50] sm:$0xff] }
 0x3d2   : > { %3992 = vrot.lane.b32.xlu1 %v8323_v1, %s9310_s25  ;;  %v3252_v24 = vsel %vm1598_vm6, %v3222_v58, %v11702_v27  ;;  %v3283_v34 = vsel %vm1629_vm7, %v3253_v23, %v11820_v16  ;;  %v16147_v1 = vld [vmem:[#allocation136_spill] sm:$0xff]  ;;  %v3194_v43 = vsel %vm1536_vm4, %v3164_v13, %v16148_v30  ;;  %v3166_v27 = vsel %vm1505_vm3, %v3136_v56, %v16149_v39  ;;  %v9245_v4 = vld [vmem:[%s9377_s24 + $0xfc] sm:$0xff]  ;;  %v16157_v58 = vld [vmem:[#allocation75_spill] sm:$0xff] }
 0x3d3   : > { %v12014_v44 = vpop.permute.xlu0 %2948  ;;  %v3167_v32 = vsel %vm1505_vm3, %v3137_v25, %v16147_v1  ;;  %v3282_v36 = vsel %vm1629_vm7, %v3252_v24, %v11822_v12  ;;  %v3225_v16 = vsel %vm1567_vm5, %v3195_v14, %v16150_v57  ;;  %v12062_v46 = vsel %vm1443_vm1, %v9245_v4, %v16151_v62  ;;  %v16152_v12 = vld [vmem:[#allocation132_spill] sm:$0xff]  ;;  %v16154_v15 = vld [vmem:[#allocation133_spill] sm:$0xff]  ;;  %v16155_v13 = vld [vmem:[#allocation74_spill] sm:$0xff] }
 0x3d4   : > { %v12001_v63 = vpop.permute.xlu1 %2950  ;;  %3994 = vrot.lane.b32.xlu0 %v8324_v37, %s9310_s25  ;;  %v3139_v6 = vsel %vm1474_vm2, %v3109_v28, %v16152_v12  ;;  %v3255_v37 = vsel %vm1598_vm6, %v3225_v16, %v11706_v33  ;;  %v3138_v11 = vsel %vm1474_vm2, %v3108_v19, %v16154_v15  ;;  %v3197_v59 = vsel %vm1536_vm4, %v3167_v32, %v16155_v13  ;;  %v16156_v25 = vld [vmem:[#allocation47_spill] sm:$0xff]  ;;  %v16159_v22 = vld [vmem:[#allocation116_spill] sm:$0xff]  ;;  %v16162_v32 = vld [vmem:[#allocation117_spill] sm:$0xff] }
 0x3d5   : > { %v3285_v53 = vsel %vm1629_vm7, %v3255_v37, %v11828_v49  ;;  %v3169_v26 = vsel %vm1505_vm3, %v3139_v6, %v16156_v25  ;;  %v3196_v19 = vsel %vm1536_vm4, %v3166_v27, %v16157_v58  ;;  %v3227_v56 = vsel %vm1567_vm5, %v3197_v59, %v16159_v22  ;;  %v9246_v24 = vld [vmem:[%s9377_s24 + $0x114] sm:$0xff]  ;;  %v16165_v4 = vld [vmem:[#allocation166_spill] sm:$0xff]  ;;  %v16168_v37 = vld [vmem:[#allocation167_spill] sm:$0xff] }
 0x3d6   : > { %3996 = vrot.lane.b32.xlu1 %v8325_v61, %s9310_s25  ;;  %v3224_v61 = vsel %vm1567_vm5, %v3194_v43, %v16153_v17  ;;  %v3226_v43 = vsel %vm1567_vm5, %v3196_v19, %v16162_v32  ;;  %v16163_v39 = vld [vmem:[#allocation44_spill] sm:$0xff]  ;;  %v16166_v12 = vld [vmem:[#allocation77_spill] sm:$0xff]  ;;  %v16170_v59 = vld [vmem:[#allocation131_spill] sm:$0xff] }
 0x3d7   : > { %v3013_v45 = vpop.permute.xlu0 %3012  ;;  %v3254_v28 = vsel %vm1598_vm6, %v3224_v61, %v11708_v41  ;;  %v3140_v27 = vsel %vm1474_vm2, %v11970_v42, %v16163_v39  ;;  %v16164_v57 = vld [vmem:[#allocation76_spill] sm:$0xff]  ;;  %v16167_v6 = vld [vmem:[#allocation177_spill] sm:$0xff]  ;;  %v16172_v25 = vld [vmem:[#allocation147_spill] sm:$0xff] }
 0x3d8   : > { %v3015_v21 = vpop.permute.xlu1 %3014  ;;  %3998 = vrot.lane.b32.xlu0 %v8326_v50, %s9310_s25  ;;  %v3312_v20 = vsel %vm1660_vm8, %v3282_v36, %v3013_v45  ;;  %v3284_v23 = vsel %vm1629_vm7, %v3254_v28, %v11830_v2  ;;  %v16158_v50 = vld [vmem:[#allocation48_spill] sm:$0xff]  ;;  %v16161_v2 = vld [vmem:[#allocation43_spill] sm:$0xff]  ;;  %v3257_v36 = vsel %vm1598_vm6, %v3227_v56, %v11714_v38  ;;  %v8330_v45 = vld [vmem:[%s9377_s24 + $0x58] sm:$0xff]  ;;  %v3199_v16 = vsel %vm1536_vm4, %v3169_v26, %v16164_v57 }
 0x3d9   : > { %v3313_v7 = vsel %vm1660_vm8, %v3283_v34, %v3015_v21  ;;  %8998 = vmatprep.mubr.msk.f32.mxu1 %vm1696_vm9, %v3312_v20  ;;  %v3168_v49 = vsel %vm1505_vm3, %v3138_v11, %v16158_v50  ;;  %v16160_v34 = vld [vmem:[#allocation130_spill] sm:$0xff]  ;;  %v3141_v1 = vsel %vm1474_vm2, %v11960_v35, %v16161_v2  ;;  %v3256_v35 = vsel %vm1598_vm6, %v3226_v43, %v11716_v8  ;;  %v9247_v11 = vld [vmem:[%s9377_s24 + $0x10c] sm:$0xff]  ;;  %v16173_v19 = vld [vmem:[#allocation13_spill] sm:$0xff] }
 0x3da   : > { %4000 = vrot.lane.b32.xlu1 %v8327_v18, %s9310_s25  ;;  %8999 = vmatmul.mubr.msk.f32.vlgmr.msra.gmra.mrb[0].mxu1 %vm1696_vm9, %v3313_v7  ;;  %v12099_v21 = vsel %vm1443_vm1, %v9246_v24, %v16160_v34  ;;  %v8331_v7 = vld [vmem:[%s9377_s24 + $0x60] sm:$0xff]  ;;  %v3287_v20 = vsel %vm1629_vm7, %v3257_v36, %v11836_v52  ;;  %v3171_v62 = vsel %vm1505_vm3, %v3141_v1, %v16165_v4  ;;  %v16174_v50 = vld [vmem:[#allocation163_spill] sm:$0xff]  ;;  %v16178_v1 = vld [vmem:[#allocation5_spill] sm:$0xff] }
 0x3db   : > { %v3017_v41 = vpop.permute.xlu0 %3016  ;;  %v3198_v42 = vsel %vm1536_vm4, %v3168_v49, %v16166_v12  ;;  %v3286_v17 = vsel %vm1629_vm7, %v3256_v35, %v16167_v6  ;;  %v3170_v52 = vsel %vm1505_vm3, %v3140_v27, %v16168_v37  ;;  %v12138_v28 = vsel %vm1443_vm1, %v9247_v11, %v16170_v59  ;;  %v16175_v22 = vld [vmem:[#allocation78_spill] sm:$0xff]  ;;  %v16179_v43 = vld [vmem:[#allocation79_spill] sm:$0xff]  ;;  %v16186_v37 = vld [vmem:[#allocation125_spill] sm:$0xff] }
 0x3dc   : > { %v3019_v33 = vpop.permute.xlu1 %3018  ;;  %v3314_v14 = vsel %vm1660_vm8, %v3284_v23, %v3017_v41  ;;  %4062 = vrot.lane.b32.xlu0 %v8328_v5, %s9311_s26  ;;  %v3228_v26 = vsel %vm1567_vm5, %v3198_v42, %v16172_v25  ;;  %v8332_v41 = vld [vmem:[%s9377_s24 + $0x68] sm:$0xff]  ;;  %v3142_v49 = vsel %vm1474_vm2, %v11978_v51, %v16174_v50  ;;  %v3201_v56 = vsel %vm1536_vm4, %v3171_v62, %v16175_v22  ;;  %v16177_v24 = vld [vmem:[#allocation178_spill] sm:$0xff]  ;;  %v16188_v59 = vld [vmem:[#allocation80_spill] sm:$0xff] }
 0x3dd   : > { %v3315_v18 = vsel %vm1660_vm8, %v3285_v53, %v3019_v33  ;;  %9001 = vmatprep.mubr.msk.f32.mxu1 %vm1696_vm9, %v3314_v14  ;;  %v16171_v53 = vld [vmem:[#allocation162_spill] sm:$0xff]  ;;  %v16176_v14 = vld [vmem:[#allocation124_spill] sm:$0xff]  ;;  %v3200_v51 = vsel %vm1536_vm4, %v3170_v52, %v16179_v43  ;;  %v16180_v36 = vld [vmem:[#allocation179_spill] sm:$0xff] }
 0x3de   : > { %4064 = vrot.lane.b32.xlu1 %v8329_v29, %s9311_s26  ;;  %9002 = vmatmul.mubr.msk.f32.gmra.mrb[2].mxu1 %vm1696_vm9, %v3315_v18  ;;  %v16169_v29 = vld [vmem:[#allocation146_spill] sm:$0xff]  ;;  %v3143_v33 = vsel %vm1474_vm2, %v11974_v9, %v16171_v53  ;;  %v8333_v18 = vld [vmem:[%s9377_s24 + $0x70] sm:$0xff]  ;;  %v3258_v9 = vsel %vm1598_vm6, %v3228_v26, %v16176_v14  ;;  %v16184_v6 = vld [vmem:[#allocation3_spill] sm:$0xff] }
 0x3df   : > { %v3021_v8 = vpop.permute.xlu0 %3020  ;;  %v3229_v5 = vsel %vm1567_vm5, %v3199_v16, %v16169_v29  ;;  %v3173_v32 = vsel %vm1505_vm3, %v3143_v33, %v16178_v1  ;;  %v16181_v27 = vld [vmem:[#allocation106_spill] sm:$0xff]  ;;  %v16189_v33 = vld [vmem:[#allocation37_spill] sm:$0xff]  ;;  %v16190_v25 = vld [vmem:[#allocation180_spill] sm:$0xff] }
 0x3e0   : > { %v3023_v38 = vpop.permute.xlu1 %3022  ;;  %v3316_v15 = vsel %vm1660_vm8, %v3286_v17, %v3021_v8  ;;  %4066 = vrot.lane.b32.xlu0 %v8330_v45, %s9311_s26  ;;  %v3259_v23 = vsel %vm1598_vm6, %v3229_v5, %v16173_v19  ;;  %v3172_v16 = vsel %vm1505_vm3, %v3142_v49, %v16181_v27  ;;  %v16182_v35 = vld [vmem:[#allocation10_spill] sm:$0xff]  ;;  %v3145_v17 = vsel %vm1474_vm2, %v11987_v10, %v16184_v6  ;;  %v8334_v5 = vld [vmem:[%s9377_s24 + $0x78] sm:$0xff] }
 0x3e1   : > { %v3317_v61 = vsel %vm1660_vm8, %v3287_v20, %v3023_v38  ;;  %9004 = vmatprep.mubr.msk.f32.mxu1 %vm1696_vm9, %v3316_v15  ;;  %v3289_v34 = vsel %vm1629_vm7, %v3259_v23, %v16177_v24  ;;  %v3231_v20 = vsel %vm1567_vm5, %v3201_v56, %v16182_v35  ;;  %v9248_v4 = vld [vmem:[%s9377_s24 + $0x124] sm:$0xff]  ;;  %v3203_v53 = vsel %vm1536_vm4, %v3173_v32, %v16188_v59  ;;  %v16193_v50 = vld [vmem:[#allocation181_spill] sm:$0xff] }
 0x3e2   : > { %4068 = vrot.lane.b32.xlu1 %v8331_v7, %s9311_s26  ;;  %9005 = vmatmul.mubr.msk.f32.gmra.mrb[4].mxu1 %vm1696_vm9, %v3317_v61  ;;  %v3288_v7 = vsel %vm1629_vm7, %v3258_v9, %v16180_v36  ;;  %v16183_v62 = vld [vmem:[#allocation42_spill] sm:$0xff]  ;;  %v3261_v52 = vsel %vm1598_vm6, %v3231_v20, %v16186_v37  ;;  %v16191_v23 = vld [vmem:[#allocation107_spill] sm:$0xff]  ;;  %v16194_v9 = vld [vmem:[#allocation21_spill] sm:$0xff] }
 0x3e3   : > { %v3025_v39 = vpop.permute.xlu0 %3024  ;;  %v12177_v42 = vsel %vm1443_vm1, %v9248_v4, %v16183_v62  ;;  %v16185_v61 = vld [vmem:[#allocation118_spill] sm:$0xff]  ;;  %v3291_v26 = vsel %vm1629_vm7, %v3261_v52, %v16190_v25  ;;  %v8337_v20 = vld [vmem:[%s9377_s24 + $0x90] sm:$0xff]  ;;  %v16200_v4 = vld [vmem:[#allocation103_spill] sm:$0xff] }
 0x3e4   : > { %v3027_v2 = vpop.permute.xlu1 %3026  ;;  %v3318_v38 = vsel %vm1660_vm8, %v3288_v7, %v3025_v39  ;;  %4070 = vrot.lane.b32.xlu0 %v8332_v41, %s9311_s26  ;;  %v3230_v8 = vsel %vm1567_vm5, %v3200_v51, %v16185_v61  ;;  %v8335_v29 = vld [vmem:[%s9377_s24 + $0x80] sm:$0xff]  ;;  %v16192_v41 = vld [vmem:[#allocation81_spill] sm:$0xff]  ;;  %v16196_v51 = vld [vmem:[#allocation160_spill] sm:$0xff]  ;;  %v3146_v62 = vsel %vm1474_vm2, %v12006_v48, %v16200_v4 }
 0x3e5   : > { %v3319_v45 = vsel %vm1660_vm8, %v3289_v34, %v3027_v2  ;;  %9007 = vmatprep.mubr.msk.f32.mxu1 %vm1696_vm9, %v3318_v38  ;;  %v16187_v15 = vld [vmem:[#allocation58_spill] sm:$0xff]  ;;  %v3260_v10 = vsel %vm1598_vm6, %v3230_v8, %v16189_v33  ;;  %v16195_v34 = vld [vmem:[#allocation32_spill] sm:$0xff]  ;;  %v8336_v38 = vld [vmem:[%s9377_s24 + $0x88] sm:$0xff] }
 0x3e6   : > { %4072 = vrot.lane.b32.xlu1 %v8333_v18, %s9311_s26  ;;  %v3144_v11 = vsel %vm1474_vm2, %v11992_v55, %v16187_v15  ;;  %9008 = vmatmul.mubr.msk.f32.gmra.mrb[6].mxu1 %vm1696_vm9, %v3319_v45  ;;  %v3175_v18 = vsel %vm1505_vm3, %v3145_v17, %v16191_v23  ;;  %v3202_v55 = vsel %vm1536_vm4, %v3172_v16, %v16192_v41  ;;  %v9249_v32 = vld [vmem:[%s9377_s24 + $0x11c] sm:$0xff]  ;;  %v16198_v39 = vld [vmem:[#allocation148_spill] sm:$0xff]  ;;  %v16205_v15 = vld [vmem:[#allocation83_spill] sm:$0xff] }
 0x3e7   : > { %v3290_v49 = vsel %vm1629_vm7, %v3260_v10, %v16193_v50  ;;  %v3029_v14 = vpop.permute.xlu0 %3028  ;;  %v3174_v24 = vsel %vm1505_vm3, %v3144_v11, %v16194_v9  ;;  %v3233_v2 = vsel %vm1567_vm5, %v3203_v53, %v16195_v34  ;;  %v12216_v36 = vsel %vm1443_vm1, %v9249_v32, %v16196_v51  ;;  %v16197_v7 = vld [vmem:[#allocation102_spill] sm:$0xff]  ;;  %v16206_v11 = vld [vmem:[#allocation183_spill] sm:$0xff]  ;;  %v16209_v50 = vld [vmem:[#allocation161_spill] sm:$0xff] }
 0x3e8   : > { %v3031_v19 = vpop.permute.xlu1 %3030  ;;  %v3320_v1 = vsel %vm1660_vm8, %v3290_v49, %v3029_v14  ;;  %4074 = vrot.lane.b32.xlu0 %v8334_v5, %s9311_s26  ;;  %v3147_v45 = vsel %vm1474_vm2, %v11997_v31, %v16197_v7  ;;  %v3232_v27 = vsel %vm1567_vm5, %v3202_v55, %v16198_v39  ;;  %v16199_v16 = vld [vmem:[#allocation38_spill] sm:$0xff]  ;;  %v3204_v48 = vsel %vm1536_vm4, %v3174_v24, %v16205_v15  ;;  %v9250_v55 = vld [vmem:[%s9377_s24 + $0x134] sm:$0xff]  ;;  %v16212_v34 = vld [vmem:[#allocation155_spill] sm:$0xff] }
 0x3e9   : > { %v3321_v56 = vsel %vm1660_vm8, %v3291_v26, %v3031_v19  ;;  %v3263_v35 = vsel %vm1598_vm6, %v3233_v2, %v16199_v16  ;;  %9010 = vmatprep.mubr.msk.f32.mxu1 %vm1696_vm9, %v3320_v1  ;;  %v16201_v6 = vld [vmem:[#allocation82_spill] sm:$0xff]  ;;  %v16208_v19 = vld [vmem:[#allocation63_spill] sm:$0xff]  ;;  %v12255_v49 = vsel %vm1443_vm1, %v9250_v55, %v16209_v50  ;;  %v16211_v9 = vld [vmem:[#allocation172_spill] sm:$0xff] }
 0x3ea   : > { %4076 = vrot.lane.b32.xlu1 %v8335_v29, %s9311_s26  ;;  %v3205_v17 = vsel %vm1536_vm4, %v3175_v18, %v16201_v6  ;;  %v16202_v61 = vld [vmem:[#allocation154_spill] sm:$0xff]  ;;  %9011 = vmatmul.mubr.msk.f32.gmra.mrb[8].mxu1 %vm1696_vm9, %v3321_v56  ;;  %v16210_v56 = vld [vmem:[#allocation17_spill] sm:$0xff]  ;;  %v3234_v24 = vsel %vm1567_vm5, %v3204_v48, %v16211_v9  ;;  %v16216_v16 = vld [vmem:[#allocation184_spill] sm:$0xff] }
 0x3eb   : > { %v3262_v31 = vsel %vm1598_vm6, %v3232_v27, %v16202_v61  ;;  %v16203_v8 = vld [vmem:[#allocation182_spill] sm:$0xff]  ;;  %v3033_v10 = vpop.permute.xlu0 %3032  ;;  %v3235_v23 = vsel %vm1567_vm5, %v3205_v17, %v16208_v19  ;;  %v3149_v14 = vsel %vm1474_vm2, %v12027_v60, %v16210_v56  ;;  %v8338_v32 = vld [vmem:[%s9377_s24 + $0x98] sm:$0xff]  ;;  %v16215_v27 = vld [vmem:[#allocation68_spill] sm:$0xff] }
 0x3ec   : > { %v3293_v37 = vsel %vm1629_vm7, %v3263_v35, %v16203_v8  ;;  %v3035_v52 = vpop.permute.xlu1 %3034  ;;  %v16204_v29 = vld [vmem:[#allocation22_spill] sm:$0xff]  ;;  %v3292_v53 = vsel %vm1629_vm7, %v3262_v31, %v16206_v11  ;;  %4078 = vrot.lane.b32.xlu0 %v8336_v38, %s9311_s26  ;;  %v3265_v2 = vsel %vm1598_vm6, %v3235_v23, %v16212_v34  ;;  %v3264_v60 = vsel %vm1598_vm6, %v3234_v24, %v16215_v27  ;;  %v16217_v38 = vld [vmem:[#allocation139_spill] sm:$0xff]  ;;  %v16219_v17 = vld [vmem:[#allocation185_spill] sm:$0xff] }
 0x3ed   : > { %v3177_v5 = vsel %vm1505_vm3, %v3147_v45, %v16204_v29  ;;  %v3323_v33 = vsel %vm1660_vm8, %v3293_v37, %v3035_v52  ;;  %v16207_v25 = vld [vmem:[#allocation138_spill] sm:$0xff]  ;;  %v3322_v18 = vsel %vm1660_vm8, %v3292_v53, %v3033_v10  ;;  %v16214_v45 = vld [vmem:[#allocation84_spill] sm:$0xff]  ;;  %v3295_v35 = vsel %vm1629_vm7, %v3265_v2, %v16216_v16  ;;  %v16220_v37 = vld [vmem:[#allocation49_spill] sm:$0xff] }
 0x3ee   : > { %v3176_v26 = vsel %vm1505_vm3, %v3146_v62, %v16207_v25  ;;  %4080 = vrot.lane.b32.xlu1 %v8337_v20, %s9311_s26  ;;  %9013 = vmatprep.mubr.msk.f32.mxu1 %vm1696_vm9, %v3322_v18  ;;  %v8339_v1 = vld [vmem:[%s9377_s24 + $0xa0] sm:$0xff]  ;;  %v3207_v39 = vsel %vm1536_vm4, %v3177_v5, %v16214_v45  ;;  %v3179_v4 = vsel %vm1505_vm3, %v3149_v14, %v16217_v38  ;;  %v16218_v62 = vld [vmem:[#allocation85_spill] sm:$0xff]  ;;  %v9251_v11 = vld [vmem:[%s9377_s24 + $0x12c] sm:$0xff] }
 0x3ef   : > { %v16213_v51 = vld [vmem:[#allocation18_spill] sm:$0xff]  ;;  %9014 = vmatmul.mubr.msk.f32.gmra.mrb[10].mxu1 %vm1696_vm9, %v3323_v33  ;;  %v3294_v61 = vsel %vm1629_vm7, %v3264_v60, %v16219_v17  ;;  %v3037_v8 = vpop.permute.xlu0 %3036  ;;  %v16221_v29 = vld [vmem:[#allocation121_spill] sm:$0xff]  ;;  %v8341_v55 = vld [vmem:[%s9377_s24 + $0xb0] sm:$0xff] }
 0x3f0   : > { %v3148_v7 = vsel %vm1474_vm2, %v12062_v46, %v16213_v51  ;;  %v3039_v20 = vpop.permute.xlu1 %3038  ;;  %v3206_v46 = vsel %vm1536_vm4, %v3176_v26, %v16218_v62  ;;  %v3237_v5 = vsel %vm1567_vm5, %v3207_v39, %v16221_v29  ;;  %v3324_v48 = vsel %vm1660_vm8, %v3294_v61, %v3037_v8  ;;  %4082 = vrot.lane.b32.xlu0 %v8338_v32, %s9311_s26  ;;  %v16222_v53 = vld [vmem:[#allocation2_spill] sm:$0xff]  ;;  %v16224_v26 = vld [vmem:[#allocation33_spill] sm:$0xff]  ;;  %v8340_v50 = vld [vmem:[%s9377_s24 + $0xa8] sm:$0xff] }
 0x3f1   : > { %v3325_v31 = vsel %vm1660_vm8, %v3295_v35, %v3039_v20  ;;  %v3178_v52 = vsel %vm1505_vm3, %v3148_v7, %v16220_v37  ;;  %v3124_v33 = vsel %vm1443_vm1, %v9251_v11, %v16222_v53  ;;  %v16223_v10 = vld [vmem:[#allocation134_spill] sm:$0xff]  ;;  %v3236_v19 = vsel %vm1567_vm5, %v3206_v46, %v16224_v26  ;;  %v16225_v23 = vld [vmem:[#allocation69_spill] sm:$0xff]  ;;  %9016 = vmatprep.mubr.msk.f32.mxu1 %vm1696_vm9, %v3324_v48  ;;  %v16226_v56 = vld [vmem:[#allocation135_spill] sm:$0xff] }
 0x3f2   : > { %4084 = vrot.lane.b32.xlu1 %v8339_v1, %s9311_s26  ;;  %v3151_v25 = vsel %vm1474_vm2, %v12099_v21, %v16223_v10  ;;  %v3267_v18 = vsel %vm1598_vm6, %v3237_v5, %v16225_v23  ;;  %v3150_v14 = vsel %vm1474_vm2, %v12138_v28, %v16226_v56  ;;  %v16227_v9 = vld [vmem:[#allocation86_spill] sm:$0xff]  ;;  %v16228_v34 = vld [vmem:[#allocation175_spill] sm:$0xff]  ;;  %v16230_v51 = vld [vmem:[#allocation169_spill] sm:$0xff] }
 0x3f3   : > { %v3209_v24 = vsel %vm1536_vm4, %v3179_v4, %v16227_v9  ;;  %v3266_v21 = vsel %vm1598_vm6, %v3236_v19, %v16228_v34  ;;  %v16229_v2 = vld [vmem:[#allocation186_spill] sm:$0xff]  ;;  %9017 = vmatmul.mubr.msk.f32.gmra.mrb[12].mxu1 %vm1696_vm9, %v3325_v31  ;;  %v3181_v7 = vsel %vm1505_vm3, %v3151_v25, %v16230_v51  ;;  %v16231_v39 = vld [vmem:[#allocation87_spill] sm:$0xff]  ;;  %v3041_v35 = vpop.permute.xlu0 %3040  ;;  %v16236_v37 = vld [vmem:[#allocation45_spill] sm:$0xff] }
 0x3f4   : > { %v3297_v1 = vsel %vm1629_vm7, %v3267_v18, %v16229_v2  ;;  %v3043_v32 = vpop.permute.xlu1 %3042  ;;  %v3208_v28 = vsel %vm1536_vm4, %v3178_v52, %v16231_v39  ;;  %v16232_v27 = vld [vmem:[#allocation187_spill] sm:$0xff]  ;;  %v16233_v20 = vld [vmem:[#allocation6_spill] sm:$0xff]  ;;  %4086 = vrot.lane.b32.xlu0 %v8340_v50, %s9311_s26  ;;  %v3153_v52 = vsel %vm1474_vm2, %v12177_v42, %v16236_v37  ;;  %v16237_v29 = vld [vmem:[#allocation64_spill] sm:$0xff] }
 0x3f5   : > { %v3296_v60 = vsel %vm1629_vm7, %v3266_v21, %v16232_v27  ;;  %v3327_v16 = vsel %vm1660_vm8, %v3297_v1, %v3043_v32  ;;  %v3180_v38 = vsel %vm1505_vm3, %v3150_v14, %v16233_v20  ;;  %v16234_v4 = vld [vmem:[#allocation151_spill] sm:$0xff]  ;;  %v3238_v5 = vsel %vm1567_vm5, %v3208_v28, %v16237_v29  ;;  %v16238_v48 = vld [vmem:[#allocation14_spill] sm:$0xff]  ;;  %v8342_v10 = vld [vmem:[%s9377_s24 + $0xb8] sm:$0xff] }
 0x3f6   : > { %v3239_v46 = vsel %vm1567_vm5, %v3209_v24, %v16234_v4  ;;  %v3326_v17 = vsel %vm1660_vm8, %v3296_v60, %v3041_v35  ;;  %4088 = vrot.lane.b32.xlu1 %v8341_v55, %s9311_s26  ;;  %v9252_v61 = vld [vmem:[%s9377_s24 + $0x144] sm:$0xff]  ;;  %v16240_v19 = vld [vmem:[#allocation88_spill] sm:$0xff]  ;;  %v16244_v34 = vld [vmem:[#allocation89_spill] sm:$0xff] }
 0x3f7   : > { %v16235_v31 = vld [vmem:[#allocation55_spill] sm:$0xff]  ;;  %v3269_v11 = vsel %vm1598_vm6, %v3239_v46, %v16238_v48  ;;  %9019 = vmatprep.mubr.msk.f32.mxu1 %vm1696_vm9, %v3326_v17  ;;  %v8343_v53 = vld [vmem:[%s9377_s24 + $0xc0] sm:$0xff]  ;;  %v3211_v23 = vsel %vm1536_vm4, %v3181_v7, %v16240_v19  ;;  %v16242_v55 = vld [vmem:[#allocation188_spill] sm:$0xff]  ;;  %v3045_v32 = vpop.permute.xlu0 %3044 }
 0x3f8   : > { %v3127_v8 = vsel %vm1443_vm1, %v9252_v61, %v16235_v31  ;;  %v16239_v25 = vld [vmem:[#allocation46_spill] sm:$0xff]  ;;  %v3299_v50 = vsel %vm1629_vm7, %v3269_v11, %v16242_v55  ;;  %9020 = vmatmul.mubr.msk.f32.gmra.mrb[14].mxu1 %vm1696_vm9, %v3327_v16  ;;  %v3047_v56 = vpop.permute.xlu1 %3046  ;;  %v16243_v14 = vld [vmem:[#allocation23_spill] sm:$0xff]  ;;  %v16245_v21 = vld [vmem:[#allocation189_spill] sm:$0xff]  ;;  %4090 = vrot.lane.b32.xlu0 %v8342_v10, %s9311_s26 }
 0x3f9   : > { %v3152_v26 = vsel %vm1474_vm2, %v12216_v36, %v16239_v25  ;;  %v16241_v18 = vld [vmem:[#allocation126_spill] sm:$0xff]  ;;  %v3183_v24 = vsel %vm1505_vm3, %v3153_v52, %v16243_v14  ;;  %v3210_v36 = vsel %vm1536_vm4, %v3180_v38, %v16244_v34  ;;  %v3329_v1 = vsel %vm1660_vm8, %v3299_v50, %v3047_v56  ;;  %v16246_v51 = vld [vmem:[#allocation24_spill] sm:$0xff]  ;;  %v16247_v28 = vld [vmem:[#allocation65_spill] sm:$0xff] }
 0x3fa   : > { %v3268_v42 = vsel %vm1598_vm6, %v3238_v5, %v16241_v18  ;;  %v3182_v7 = vsel %vm1505_vm3, %v3152_v26, %v16246_v51  ;;  %v3241_v27 = vsel %vm1567_vm5, %v3211_v23, %v16247_v28  ;;  %4092 = vrot.lane.b32.xlu1 %v8343_v53, %s9311_s26  ;;  %v9253_v16 = vld [vmem:[%s9377_s24 + $0x13c] sm:$0xff]  ;;  %v16248_v35 = vld [vmem:[#allocation100_spill] sm:$0xff]  ;;  %v16251_v61 = vld [vmem:[#allocation127_spill] sm:$0xff] }
 0x3fb   : > { %v3298_v2 = vsel %vm1629_vm7, %v3268_v42, %v16245_v21  ;;  %v3126_v20 = vsel %vm1443_vm1, %v9253_v16, %v16248_v35  ;;  %v16249_v38 = vld [vmem:[#allocation164_spill] sm:$0xff]  ;;  %v16250_v46 = vld [vmem:[#allocation173_spill] sm:$0xff]  ;;  %v3271_v31 = vsel %vm1598_vm6, %v3241_v27, %v16251_v61  ;;  %v8344_v52 = vld [vmem:[%s9377_s24 + $0xc8] sm:$0xff]  ;;  %v3049_v14 = vpop.permute.xlu0 %3048 }
 0x3fc   : > { %v3328_v60 = vsel %vm1660_vm8, %v3298_v2, %v3045_v32  ;;  %v3155_v4 = vsel %vm1474_vm2, %v12255_v49, %v16249_v38  ;;  %v3240_v17 = vsel %vm1567_vm5, %v3210_v36, %v16250_v46  ;;  %v8345_v37 = vld [vmem:[%s9377_s24 + $0xd0] sm:$0xff]  ;;  %v16252_v29 = vld [vmem:[#allocation165_spill] sm:$0xff]  ;;  %v16253_v48 = vld [vmem:[#allocation90_spill] sm:$0xff]  ;;  %v3051_v26 = vpop.permute.xlu1 %3050  ;;  %4094 = vrot.lane.b32.xlu0 %v8344_v52, %s9311_s26 }
 0x3fd   : > { %9022 = vmatprep.mubr.msk.f32.mxu1 %vm1696_vm9, %v3328_v60  ;;  %v3154_v5 = vsel %vm1474_vm2, %v3124_v33, %v16252_v29  ;;  %v3213_v11 = vsel %vm1536_vm4, %v3183_v24, %v16253_v48  ;;  %v16254_v53 = vld [vmem:[#allocation39_spill] sm:$0xff]  ;;  %v16255_v10 = vld [vmem:[#allocation190_spill] sm:$0xff]  ;;  %v16259_v24 = vld [vmem:[#allocation52_spill] sm:$0xff] }
 0x3fe   : > { %v3270_v49 = vsel %vm1598_vm6, %v3240_v17, %v16254_v53  ;;  %v3301_v25 = vsel %vm1629_vm7, %v3271_v31, %v16255_v10  ;;  %9023 = vmatmul.mubr.msk.f32.gmra.mrb[16].mxu1 %vm1696_vm9, %v3329_v1  ;;  %v16256_v23 = vld [vmem:[#allocation51_spill] sm:$0xff]  ;;  %v3184_v36 = vsel %vm1505_vm3, %v3154_v5, %v16259_v24  ;;  %v16260_v21 = vld [vmem:[#allocation174_spill] sm:$0xff]  ;;  %4096 = vrot.lane.b32.xlu1 %v8345_v37, %s9311_s26  ;;  %v9254_v32 = vld [vmem:[%s9377_s24 + $0x154] sm:$0xff] }
 0x3ff   : > { %v3185_v18 = vsel %vm1505_vm3, %v3155_v4, %v16256_v23  ;;  %v16257_v42 = vld [vmem:[#allocation91_spill] sm:$0xff]  ;;  %v3331_v56 = vsel %vm1660_vm8, %v3301_v25, %v3051_v26  ;;  %v3243_v2 = vsel %vm1567_vm5, %v3213_v11, %v16260_v21  ;;  %v16261_v51 = vld [vmem:[#allocation101_spill] sm:$0xff]  ;;  %v16262_v28 = vld [vmem:[#allocation4_spill] sm:$0xff] }
 0x400   : > { %v3212_v33 = vsel %vm1536_vm4, %v3182_v7, %v16257_v42  ;;  %v16258_v55 = vld [vmem:[#allocation191_spill] sm:$0xff]  ;;  %v3129_v7 = vsel %vm1443_vm1, %v9254_v32, %v16261_v51  ;;  %v3157_v27 = vsel %vm1474_vm2, %v3127_v8, %v16262_v28  ;;  %v16263_v60 = vld [vmem:[#allocation12_spill] sm:$0xff]  ;;  %v8347_v4 = vld [vmem:[%s9377_s24 + $0xe0] sm:$0xff]  ;;  %v3055_v11 = vpop.permute.xlu1 %3054 }
 0x401   : > { %v3300_v50 = vsel %vm1629_vm7, %v3270_v49, %v16258_v55  ;;  %v3242_v16 = vsel %vm1567_vm5, %v3212_v33, %v16263_v60  ;;  %v16264_v35 = vld [vmem:[#allocation40_spill] sm:$0xff]  ;;  %v8346_v46 = vld [vmem:[%s9377_s24 + $0xd8] sm:$0xff]  ;;  %v16265_v17 = vld [vmem:[#allocation59_spill] sm:$0xff] }
 0x402   : > { %v3330_v1 = vsel %vm1660_vm8, %v3300_v50, %v3049_v14  ;;  %v3273_v38 = vsel %vm1598_vm6, %v3243_v2, %v16264_v35  ;;  %v3156_v61 = vsel %vm1474_vm2, %v3126_v20, %v16265_v17  ;;  %v16266_v31 = vld [vmem:[#allocation92_spill] sm:$0xff]  ;;  %v16269_v53 = vld [vmem:[#allocation110_spill] sm:$0xff]  ;;  %v16270_v10 = vld [vmem:[#allocation93_spill] sm:$0xff]  ;;  %4100 = vrot.lane.b32.xlu1 %v8347_v4, %s9311_s26  ;;  %4098 = vrot.lane.b32.xlu0 %v8346_v46, %s9311_s26 }
 0x403   : > { %9025 = vmatprep.mubr.msk.f32.mxu1 %vm1696_vm9, %v3330_v1  ;;  %v3215_v37 = vsel %vm1536_vm4, %v3185_v18, %v16266_v31  ;;  %v16267_v52 = vld [vmem:[#allocation156_spill] sm:$0xff]  ;;  %v3187_v49 = vsel %vm1505_vm3, %v3157_v27, %v16269_v53  ;;  %v3214_v20 = vsel %vm1536_vm4, %v3184_v36, %v16270_v10  ;;  %v16271_v25 = vld [vmem:[#allocation193_spill] sm:$0xff]  ;;  %v3053_v18 = vpop.permute.xlu0 %3052  ;;  %v16272_v33 = vld [vmem:[#allocation111_spill] sm:$0xff] }
 0x404   : > { %v3272_v8 = vsel %vm1598_vm6, %v3242_v16, %v16267_v52  ;;  %v16268_v29 = vld [vmem:[#allocation192_spill] sm:$0xff]  ;;  %9026 = vmatmul.mubr.msk.f32.gmra.mrb[18].mxu1 %vm1696_vm9, %v3331_v56  ;;  %v3186_v55 = vsel %vm1505_vm3, %v3156_v61, %v16272_v33  ;;  %v16273_v50 = vld [vmem:[#allocation122_spill] sm:$0xff]  ;;  %v16274_v36 = vld [vmem:[#allocation115_spill] sm:$0xff]  ;;  %v3059_v52 = vpop.permute.xlu1 %3058 }
 0x405   : > { %v3303_v5 = vsel %vm1629_vm7, %v3273_v38, %v16268_v29  ;;  %v3302_v26 = vsel %vm1629_vm7, %v3272_v8, %v16271_v25  ;;  %v3245_v56 = vsel %vm1567_vm5, %v3215_v37, %v16273_v50  ;;  %v9255_v24 = vld [vmem:[%s9377_s24 + $0x14c] sm:$0xff]  ;;  %v16277_v28 = vld [vmem:[#allocation157_spill] sm:$0xff]  ;;  %v16279_v4 = vld [vmem:[#allocation94_spill] sm:$0xff] }
 0x406   : > { %v3333_v23 = vsel %vm1660_vm8, %v3303_v5, %v3055_v11  ;;  %v3332_v14 = vsel %vm1660_vm8, %v3302_v26, %v3053_v18  ;;  %v3128_v21 = vsel %vm1443_vm1, %v9255_v24, %v16274_v36  ;;  %v16275_v2 = vld [vmem:[#allocation104_spill] sm:$0xff]  ;;  %v16276_v32 = vld [vmem:[#allocation123_spill] sm:$0xff]  ;;  %v3275_v27 = vsel %vm1598_vm6, %v3245_v56, %v16277_v28  ;;  %v16278_v35 = vld [vmem:[#allocation105_spill] sm:$0xff] }
 0x407   : > { %v3159_v1 = vsel %vm1474_vm2, %v3129_v7, %v16275_v2  ;;  %v3244_v51 = vsel %vm1567_vm5, %v3214_v20, %v16276_v32  ;;  %9028 = vmatprep.mubr.msk.f32.mxu1 %vm1696_vm9, %v3332_v14  ;;  %v8349_v60 = vld [vmem:[%s9377_s24 + $0xf0] sm:$0xff]  ;;  %v8348_v16 = vld [vmem:[%s9377_s24 + $0xe8] sm:$0xff]  ;;  %v3158_v38 = vsel %vm1474_vm2, %v3128_v21, %v16278_v35  ;;  %v3217_v46 = vsel %vm1536_vm4, %v3187_v49, %v16279_v4  ;;  %v16280_v17 = vld [vmem:[#allocation70_spill] sm:$0xff]  ;;  %v3057_v25 = vpop.permute.xlu0 %3056 }
 0x408   : > { %v3274_v7 = vsel %vm1598_vm6, %v3244_v51, %v16280_v17  ;;  %v16281_v61 = vld [vmem:[#allocation194_spill] sm:$0xff]  ;;  %9029 = vmatmul.mubr.msk.f32.gmra.mrb[20].mxu1 %vm1696_vm9, %v3333_v23  ;;  %v16283_v5 = vld [vmem:[#allocation95_spill] sm:$0xff]  ;;  %4104 = vrot.lane.b32.xlu1 %v8349_v60, %s9311_s26  ;;  %v16287_v56 = vld [vmem:[#allocation112_spill] sm:$0xff] }
 0x409   : > { %v3305_v37 = vsel %vm1629_vm7, %v3275_v27, %v16281_v61  ;;  %v16282_v8 = vld [vmem:[#allocation142_spill] sm:$0xff]  ;;  %v3216_v11 = vsel %vm1536_vm4, %v3186_v55, %v16283_v5  ;;  %v16284_v53 = vld [vmem:[#allocation195_spill] sm:$0xff]  ;;  %4102 = vrot.lane.b32.xlu0 %v8348_v16, %s9311_s26  ;;  %v16289_v2 = vld [vmem:[#allocation36_spill] sm:$0xff] }
 0x40a   : > { %v3189_v29 = vsel %vm1505_vm3, %v3159_v1, %v16282_v8  ;;  %v3304_v49 = vsel %vm1629_vm7, %v3274_v7, %v16284_v53  ;;  %v3335_v20 = vsel %vm1660_vm8, %v3305_v37, %v3059_v52  ;;  %v16285_v26 = vld [vmem:[#allocation143_spill] sm:$0xff]  ;;  %v9257_v24 = vld [vmem:[%s9377_s24 + $0x15c] sm:$0xff]  ;;  %v3246_v1 = vsel %vm1567_vm5, %v3216_v11, %v16289_v2  ;;  %v16292_v35 = vld [vmem:[#allocation20_spill] sm:$0xff]  ;;  %v3063_v37 = vpop.permute.xlu1 %3062 }
 0x40b   : > { %v3188_v18 = vsel %vm1505_vm3, %v3158_v38, %v16285_v26  ;;  %v16286_v33 = vld [vmem:[#allocation35_spill] sm:$0xff]  ;;  %v3334_v50 = vsel %vm1660_vm8, %v3304_v49, %v3057_v25  ;;  %v8351_v28 = vld [vmem:[%s9377_s24 + $0x100] sm:$0xff]  ;;  %v8350_v27 = vld [vmem:[%s9377_s24 + $0xf8] sm:$0xff] }
 0x40c   : > { %v3247_v23 = vsel %vm1567_vm5, %v3217_v46, %v16286_v33  ;;  %v9256_v55 = vld [vmem:[%s9377_s24 + $0x164] sm:$0xff]  ;;  %9031 = vmatprep.mubr.msk.f32.mxu1 %vm1696_vm9, %v3334_v50  ;;  %v16293_v46 = vld [vmem:[#allocation128_spill] sm:$0xff]  ;;  %v16296_v11 = vld [vmem:[#allocation97_spill] sm:$0xff]  ;;  %v3061_v33 = vpop.permute.xlu0 %3060  ;;  %4108 = vrot.lane.b32.xlu1 %v8351_v28, %s9311_s26 }
 0x40d   : > { %v3131_v14 = vsel %vm1443_vm1, %v9256_v55, %v16287_v56  ;;  %v16288_v36 = vld [vmem:[#allocation15_spill] sm:$0xff]  ;;  %v3276_v17 = vsel %vm1598_vm6, %v3246_v1, %v16293_v46  ;;  %v16294_v7 = vld [vmem:[#allocation196_spill] sm:$0xff]  ;;  %9032 = vmatmul.mubr.msk.f32.gmra.mrb[22].mxu1 %vm1696_vm9, %v3335_v20  ;;  %v3218_v53 = vsel %vm1536_vm4, %v3188_v18, %v16296_v11  ;;  %v16297_v49 = vld [vmem:[#allocation197_spill] sm:$0xff]  ;;  %4106 = vrot.lane.b32.xlu0 %v8350_v27, %s9311_s26 }
 0x40e   : > { %v3130_v21 = vsel %vm1443_vm1, %v9257_v24, %v16288_v36  ;;  %v16290_v32 = vld [vmem:[#allocation71_spill] sm:$0xff]  ;;  %v16295_v52 = vld [vmem:[#allocation96_spill] sm:$0xff]  ;;  %v3306_v25 = vsel %vm1629_vm7, %v3276_v17, %v16297_v49  ;;  %v16302_v36 = vld [vmem:[#allocation129_spill] sm:$0xff]  ;;  %v3067_v27 = vpop.permute.xlu1 %3066 }
 0x40f   : > { %v3277_v51 = vsel %vm1598_vm6, %v3247_v23, %v16290_v32  ;;  %v16291_v60 = vld [vmem:[#allocation19_spill] sm:$0xff]  ;;  %v3160_v38 = vsel %vm1474_vm2, %v3130_v21, %v16292_v35  ;;  %v3219_v8 = vsel %vm1536_vm4, %v3189_v29, %v16295_v52  ;;  %v16299_v55 = vld [vmem:[#allocation152_spill] sm:$0xff]  ;;  %v3336_v56 = vsel %vm1660_vm8, %v3306_v25, %v3061_v33  ;;  %v16303_v32 = vld [vmem:[#allocation158_spill] sm:$0xff] }
 0x410   : > { %v3161_v16 = vsel %vm1474_vm2, %v3131_v14, %v16291_v60  ;;  %v3307_v61 = vsel %vm1629_vm7, %v3277_v51, %v16294_v7  ;;  %v16298_v23 = vld [vmem:[#allocation171_spill] sm:$0xff]  ;;  %v3249_v20 = vsel %vm1567_vm5, %v3219_v8, %v16299_v55  ;;  %v16300_v29 = vld [vmem:[#allocation8_spill] sm:$0xff]  ;;  %v16301_v14 = vld [vmem:[#allocation153_spill] sm:$0xff]  ;;  %9034 = vmatprep.mubr.msk.f32.mxu1 %vm1696_vm9, %v3336_v56  ;;  %v3065_v46 = vpop.permute.xlu0 %3064 }
 0x411   : > { %v3337_v26 = vsel %vm1660_vm8, %v3307_v61, %v3063_v37  ;;  %v3191_v50 = vsel %vm1505_vm3, %v3161_v16, %v16298_v23  ;;  %v3190_v18 = vsel %vm1505_vm3, %v3160_v38, %v16300_v29  ;;  %v3248_v24 = vsel %vm1567_vm5, %v3218_v53, %v16301_v14  ;;  %v8353_v2 = vld [vmem:[%s9377_s24 + $0x110] sm:$0xff]  ;;  %v8352_v1 = vld [vmem:[%s9377_s24 + $0x108] sm:$0xff]  ;;  %v16304_v60 = vld [vmem:[#allocation98_spill] sm:$0xff] }
 0x412   : > { %v3279_v21 = vsel %vm1598_vm6, %v3249_v20, %v16302_v36  ;;  %v3278_v51 = vsel %vm1598_vm6, %v3248_v24, %v16303_v32  ;;  %9035 = vmatmul.mubr.msk.f32.gmra.mrb[24].mxu1 %vm1696_vm9, %v3337_v26  ;;  %v3221_v16 = vsel %vm1536_vm4, %v3191_v50, %v16304_v60  ;;  %v16305_v17 = vld [vmem:[#allocation66_spill] sm:$0xff]  ;;  %v16306_v61 = vld [vmem:[#allocation99_spill] sm:$0xff]  ;;  %4112 = vrot.lane.b32.xlu1 %v8353_v2, %s9311_s26  ;;  %v8354_v26 = vld [vmem:[%s9377_s24 + $0x118] sm:$0xff]  ;;  %v3071_v55 = vpop.permute.xlu1 %3070 }
 0x413   : > { %v3309_v28 = vsel %vm1629_vm7, %v3279_v21, %v11946_v47  ;;  %v3308_v35 = vsel %vm1629_vm7, %v3278_v51, %v11956_v54  ;;  %v3251_v7 = vsel %vm1567_vm5, %v3221_v16, %v16305_v17  ;;  %v3220_v37 = vsel %vm1536_vm4, %v3190_v18, %v16306_v61  ;;  %4110 = vrot.lane.b32.xlu0 %v8352_v1, %s9311_s26  ;;  %v16307_v8 = vld [vmem:[#allocation67_spill] sm:$0xff]  ;;  %v8355_v25 = vld [vmem:[%s9377_s24 + $0x120] sm:$0xff]  ;;  %v16309_v33 = vld [vmem:[#allocation176_spill] sm:$0xff] }
 0x414   : > { %v3339_v38 = vsel %vm1660_vm8, %v3309_v28, %v3067_v27  ;;  %v3338_v47 = vsel %vm1660_vm8, %v3308_v35, %v3065_v46  ;;  %v3250_v53 = vsel %vm1567_vm5, %v3220_v37, %v16307_v8  ;;  %v16308_v49 = vld [vmem:[#allocation159_spill] sm:$0xff]  ;;  %v3069_v29 = vpop.permute.xlu0 %3068  ;;  %v8359_v36 = vld [vmem:[%s9377_s24 + $0xdc] sm:$0xff]  ;;  %v8358_v21 = vld [vmem:[%s9377_s24 + $0xd4] sm:$0xff] }
 0x415   : > { %v3281_v54 = vsel %vm1598_vm6, %v3251_v7, %v16308_v49  ;;  %9037 = vmatprep.mubr.msk.f32.mxu1 %vm1696_vm9, %v3338_v47  ;;  %v3280_v23 = vsel %vm1598_vm6, %v3250_v53, %v16309_v33  ;;  %v8356_v14 = vld [vmem:[%s9377_s24 + $0x128] sm:$0xff]  ;;  %v8363_v16 = vld [vmem:[%s9377_s24 + $0xfc] sm:$0xff]  ;;  %v8362_v35 = vld [vmem:[%s9377_s24 + $0xf4] sm:$0xff] }
 0x416   : > { %v3311_v50 = vsel %vm1629_vm7, %v3281_v54, %v12001_v63  ;;  %9038 = vmatmul.mubr.msk.f32.gmra.mrb[26].mxu1 %vm1696_vm9, %v3339_v38  ;;  %v3310_v20 = vsel %vm1629_vm7, %v3280_v23, %v12014_v44  ;;  %4116 = vrot.lane.b32.xlu1 %v8355_v25, %s9311_s26  ;;  %v8357_v63 = vld [vmem:[%s9377_s24 + $0x130] sm:$0xff]  ;;  %v12555_v24 = vpop.permute.xlu1 %3944  ;;  %v8360_v51 = vld [vmem:[%s9377_s24 + $0xe4] sm:$0xff]  ;;  %v8367_v8 = vld [vmem:[%s9377_s24 + $0x11c] sm:$0xff] }
 0x417   : > { %v3341_v56 = vsel %vm1660_vm8, %v3311_v50, %v3071_v55  ;;  %v3340_v18 = vsel %vm1660_vm8, %v3310_v20, %v3069_v29  ;;  %4114 = vrot.lane.b32.xlu0 %v8354_v26, %s9311_s26  ;;  %v8361_v32 = vld [vmem:[%s9377_s24 + $0xec] sm:$0xff]  ;;  %v8364_v7 = vld [vmem:[%s9377_s24 + $0x104] sm:$0xff]  ;;  %v8366_v53 = vld [vmem:[%s9377_s24 + $0x114] sm:$0xff] }
 0x418   : > { %9040 = vmatprep.mubr.msk.f32.mxu1 %vm1696_vm9, %v3340_v18  ;;  %v12557_v44 = vpop.permute.xlu0 %3942  ;;  %v8365_v17 = vld [vmem:[%s9377_s24 + $0x10c] sm:$0xff]  ;;  %v8368_v26 = vld [vmem:[%s9377_s24 + $0x124] sm:$0xff]  ;;  %v8371_v50 = vld [vmem:[%s9377_s24 + $0x13c] sm:$0xff] }
 0x419   : > { %v8369_v25 = vld [vmem:[%s9377_s24 + $0x12c] sm:$0xff]  ;;  %v8370_v55 = vld [vmem:[%s9377_s24 + $0x134] sm:$0xff]  ;;  %v8372_v18 = vld [vmem:[%s9377_s24 + $0x144] sm:$0xff] }
 0x41a   : > { %9041 = vmatmul.mubr.msk.f32.gmra.mrb[28].mxu1 %vm1696_vm9, %v3341_v56  ;;  %4120 = vrot.lane.b32.xlu1 %v8357_v63, %s9311_s26  ;;  %v12563_v2 = vpop.permute.xlu1 %3948  ;;  %v8373_v29 = vld [vmem:[%s9377_s24 + $0x14c] sm:$0xff]  ;;  %v12687_v60 = vld [vmem:[%s9377_s24 + $0x1a4] sm:$0xff]  ;;  %v12698_v5 = vld [vmem:[%s9377_s24 + $0x1bc] sm:$0xff] }
 0x41b   : > { %4118 = vrot.lane.b32.xlu0 %v8356_v14, %s9311_s26  ;;  %v12684_v61 = vld [vmem:[%s9377_s24 + $0x1ac] sm:$0xff]  ;;  %v12701_v4 = vld [vmem:[%s9377_s24 + $0x1b4] sm:$0xff]  ;;  %v8288_v31 = vld [vmem:[%s9377_s24 + $0xde] sm:$0xff] }
 0x41c   : > { %v12565_v1 = vpop.permute.xlu0 %3946  ;;  %v8291_v48 = vld [vmem:[%s9377_s24 + $0xf6] sm:$0xff]  ;;  %v8292_v39 = vld [vmem:[%s9377_s24 + $0xfe] sm:$0xff]  ;;  %v8297_v62 = vld [vmem:[%s9377_s24 + $0x126] sm:$0xff] }
 0x41d   : > { %v8295_v9 = vld [vmem:[%s9377_s24 + $0x116] sm:$0xff]  ;;  %v8296_v45 = vld [vmem:[%s9377_s24 + $0x11e] sm:$0xff]  ;;  %v8402_v41 = vld [vmem:[%s9377_s24 + $0x14e] sm:$0xff] }
 0x41e   : > { %4184 = vrot.lane.b32.xlu1 %v8359_v36, %s9312_s27  ;;  %v12571_v28 = vpop.permute.xlu1 %3952  ;;  %v8375_v36 = vld [vmem:[%s9377_s24 + $0x15c] sm:$0xff] }
 0x41f   : > { %4182 = vrot.lane.b32.xlu0 %v8358_v21, %s9312_s27  ;;  %v8374_v21 = vld [vmem:[%s9377_s24 + $0x154] sm:$0xff]  ;;  %v8400_v6 = vld [vmem:[%s9377_s24 + $0x13e] sm:$0xff] }
 0x420   : > { %v12573_v27 = vpop.permute.xlu0 %3950  ;;  %v8424_v22 = vld [vmem:[%s9377_s24 + $0x19a] sm:$0xff] }
 0x421   : > { %v8428_v12 = vld [vmem:[%s9377_s24 + $0x1ba] sm:$0xff] }
 0x422   : > { %4188 = vrot.lane.b32.xlu1 %v8361_v32, %s9312_s27  ;;  %v12579_v38 = vpop.permute.xlu1 %3956 }
 0x423   : > { %4186 = vrot.lane.b32.xlu0 %v8360_v51, %s9312_s27 }
 0x424   : > { %v12581_v46 = vpop.permute.xlu0 %3954 }
 0x426   : > { %4192 = vrot.lane.b32.xlu1 %v8363_v16, %s9312_s27  ;;  %v12587_v37 = vpop.permute.xlu1 %3960  ;;  %v8377_v16 = vld [vmem:[%s9377_s24 + $0x16c] sm:$0xff] }
 0x427   : > { %4190 = vrot.lane.b32.xlu0 %v8362_v35, %s9312_s27  ;;  %v8376_v35 = vld [vmem:[%s9377_s24 + $0x164] sm:$0xff] }
 0x428   : > { %v12589_v47 = vpop.permute.xlu0 %3958 }
 0x42a   : > { %4196 = vrot.lane.b32.xlu1 %v8365_v17, %s9312_s27  ;;  %v12595_v49 = vpop.permute.xlu1 %3964 }
 0x42b   : > { %4194 = vrot.lane.b32.xlu0 %v8364_v7, %s9312_s27 }
 0x42c   : > { %v12597_v54 = vpop.permute.xlu0 %3962 }
 0x42e   : > { %4200 = vrot.lane.b32.xlu1 %v8367_v8, %s9312_s27  ;;  %v12603_v33 = vpop.permute.xlu1 %3968  ;;  %v12642_v8 = vld [vmem:[%s9377_s24 + $0x17c] sm:$0xff] }
 0x42f   : > { %4198 = vrot.lane.b32.xlu0 %v8366_v53, %s9312_s27  ;;  %v12645_v53 = vld [vmem:[%s9377_s24 + $0x174] sm:$0xff] }
 0x430   : > { %v12605_v23 = vpop.permute.xlu0 %3966 }
 0x432   : > { %4204 = vrot.lane.b32.xlu1 %v8369_v25, %s9312_s27  ;;  %v12611_v20 = vpop.permute.xlu1 %3972 }
 0x433   : > { %4202 = vrot.lane.b32.xlu0 %v8368_v26, %s9312_s27 }
 0x434   : > { %v12613_v56 = vpop.permute.xlu0 %3970 }
 0x436   : > { %4208 = vrot.lane.b32.xlu1 %v8371_v50, %s9312_s27  ;;  %v12619_v63 = vpop.permute.xlu1 %3976  ;;  %v12656_v50 = vld [vmem:[%s9377_s24 + $0x18c] sm:$0xff] }
 0x437   : > { %4206 = vrot.lane.b32.xlu0 %v8370_v55, %s9312_s27  ;;  %v12659_v55 = vld [vmem:[%s9377_s24 + $0x184] sm:$0xff] }
 0x438   : > { %v12621_v14 = vpop.permute.xlu0 %3974 }
 0x43a   : > { %4212 = vrot.lane.b32.xlu1 %v8373_v29, %s9312_s27  ;;  %v12627_v32 = vpop.permute.xlu1 %3980 }
 0x43b   : > { %4210 = vrot.lane.b32.xlu0 %v8372_v18, %s9312_s27  ;;  %16310 = vst [vmem:[#allocation27_spill] sm:$0xff] %v12627_v32 }
 0x43c   : > { %v12629_v51 = vpop.permute.xlu0 %3978 }
 0x43d   : > { %16311 = vst [vmem:[#allocation16_spill] sm:$0xff] %v12629_v51 }
 0x43e   : > { %4216 = vrot.lane.b32.xlu1 %v8375_v36, %s9312_s27  ;;  %v12635_v17 = vpop.permute.xlu1 %3984  ;;  %v12670_v36 = vld [vmem:[%s9377_s24 + $0x19c] sm:$0xff] }
 0x43f   : > { %4214 = vrot.lane.b32.xlu0 %v8374_v21, %s9312_s27  ;;  %16312 = vst [vmem:[#allocation72_spill] sm:$0xff] %v12635_v17  ;;  %v12673_v21 = vld [vmem:[%s9377_s24 + $0x194] sm:$0xff]  ;;  %v8422_v17 = vld [vmem:[%s9377_s24 + $0x18a] sm:$0xff] }
 0x440   : > { %v12637_v7 = vpop.permute.xlu0 %3982 }
 0x441   : > { %16313 = vst [vmem:[#allocation136_spill] sm:$0xff] %v12637_v7 }
 0x442   : > { %4220 = vrot.lane.b32.xlu1 %v8377_v16, %s9312_s27  ;;  %v12647_v25 = vpop.permute.xlu1 %3988 }
 0x443   : > { %4218 = vrot.lane.b32.xlu0 %v8376_v35, %s9312_s27  ;;  %16314 = vst [vmem:[#allocation73_spill] sm:$0xff] %v12647_v25  ;;  %v8398_v25 = vld [vmem:[%s9377_s24 + $0x12e] sm:$0xff] }
 0x444   : > { %v12649_v26 = vpop.permute.xlu0 %3986 }
 0x445   : > { %16315 = vst [vmem:[#allocation137_spill] sm:$0xff] %v12649_v26  ;;  %v8294_v26 = vld [vmem:[%s9377_s24 + $0x10e] sm:$0xff] }
 0x446   : > { %4224 = vrot.lane.b32.xlu1 %v12642_v8, %s9312_s27  ;;  %v12661_v29 = vpop.permute.xlu1 %3992 }
 0x447   : > { %4222 = vrot.lane.b32.xlu0 %v12645_v53, %s9312_s27  ;;  %16316 = vst [vmem:[#allocation145_spill] sm:$0xff] %v12661_v29  ;;  %v8293_v29 = vld [vmem:[%s9377_s24 + $0x106] sm:$0xff] }
 0x448   : > { %v12663_v18 = vpop.permute.xlu0 %3990 }
 0x449   : > { %16317 = vst [vmem:[#allocation41_spill] sm:$0xff] %v12663_v18  ;;  %v8290_v18 = vld [vmem:[%s9377_s24 + $0xee] sm:$0xff] }
 0x44a   : > { %4228 = vrot.lane.b32.xlu1 %v12656_v50, %s9312_s27  ;;  %v12675_v16 = vpop.permute.xlu1 %3996 }
 0x44b   : > { %4226 = vrot.lane.b32.xlu0 %v12659_v55, %s9312_s27  ;;  %16318 = vst [vmem:[#allocation132_spill] sm:$0xff] %v12675_v16 }
 0x44c   : > { %v12677_v35 = vpop.permute.xlu0 %3994 }
 0x44d   : > { %16319 = vst [vmem:[#allocation56_spill] sm:$0xff] %v12677_v35 }
 0x44e   : > { %4232 = vrot.lane.b32.xlu1 %v12670_v36, %s9312_s27  ;;  %v12689_v11 = vpop.permute.xlu1 %4000 }
 0x44f   : > { %4230 = vrot.lane.b32.xlu0 %v12673_v21, %s9312_s27  ;;  %16320 = vst [vmem:[#allocation133_spill] sm:$0xff] %v12689_v11  ;;  %v8289_v11 = vld [vmem:[%s9377_s24 + $0xe6] sm:$0xff] }
 0x450   : > { %v12691_v52 = vpop.permute.xlu0 %3998 }
 0x451   : > { %16321 = vst [vmem:[#allocation47_spill] sm:$0xff] %v12691_v52 }
 0x452   : > { %4236 = vrot.lane.b32.xlu1 %v12684_v61, %s9312_s27  ;;  %v12703_v35 = vpop.permute.xlu1 %4064 }
 0x453   : > { %4234 = vrot.lane.b32.xlu0 %v12687_v60, %s9312_s27 }
 0x454   : > { %v12705_v10 = vpop.permute.xlu0 %4062 }
 0x456   : > { %4240 = vrot.lane.b32.xlu1 %v12698_v5, %s9312_s27  ;;  %v12711_v52 = vpop.permute.xlu1 %4068 }
 0x457   : > { %4238 = vrot.lane.b32.xlu0 %v12701_v4, %s9312_s27 }
 0x458   : > { %v12715_v16 = vpop.permute.xlu0 %4066 }
 0x45a   : > { %4304 = vrot.lane.b32.xlu1 %v8289_v11, %s9314_s29  ;;  %v12719_v42 = vpop.permute.xlu1 %4072 }
 0x45b   : > { %4302 = vrot.lane.b32.xlu0 %v8288_v31, %s9314_s29 }
 0x45c   : > { %v12723_v34 = vpop.permute.xlu0 %4070 }
 0x45e   : > { %4308 = vrot.lane.b32.xlu1 %v8291_v48, %s9314_s29  ;;  %v12727_v19 = vpop.permute.xlu1 %4076 }
 0x45f   : > { %4306 = vrot.lane.b32.xlu0 %v8290_v18, %s9314_s29 }
 0x460   : > { %v12731_v11 = vpop.permute.xlu0 %4074 }
 0x462   : > { %4312 = vrot.lane.b32.xlu1 %v8293_v29, %s9314_s29  ;;  %v12735_v31 = vpop.permute.xlu1 %4080 }
 0x463   : > { %4310 = vrot.lane.b32.xlu0 %v8292_v39, %s9314_s29  ;;  %16322 = vst [vmem:[#allocation48_spill] sm:$0xff] %v12735_v31  ;;  %v8399_v39 = vld [vmem:[%s9377_s24 + $0x136] sm:$0xff] }
 0x464   : > { %v12739_v48 = vpop.permute.xlu0 %4078 }
 0x465   : > { %16323 = vst [vmem:[#allocation116_spill] sm:$0xff] %v12739_v48 }
 0x466   : > { %4316 = vrot.lane.b32.xlu1 %v8295_v9, %s9314_s29  ;;  %v12743_v18 = vpop.permute.xlu1 %4084 }
 0x467   : > { %4314 = vrot.lane.b32.xlu0 %v8294_v26, %s9314_s29  ;;  %16324 = vst [vmem:[#allocation130_spill] sm:$0xff] %v12743_v18  ;;  %v8401_v26 = vld [vmem:[%s9377_s24 + $0x146] sm:$0xff] }
 0x468   : > { %v12747_v29 = vpop.permute.xlu0 %4082  ;;  %v8426_v18 = vld [vmem:[%s9377_s24 + $0x1aa] sm:$0xff] }
 0x469   : > { %16325 = vst [vmem:[#allocation43_spill] sm:$0xff] %v12747_v29 }
 0x46a   : > { %4320 = vrot.lane.b32.xlu1 %v8297_v62, %s9314_s29  ;;  %v12753_v15 = vpop.permute.xlu1 %4088 }
 0x46b   : > { %4318 = vrot.lane.b32.xlu0 %v8296_v45, %s9314_s29  ;;  %16326 = vst [vmem:[#allocation117_spill] sm:$0xff] %v12753_v15  ;;  %v8403_v45 = vld [vmem:[%s9377_s24 + $0x156] sm:$0xff] }
 0x46c   : > { %v12755_v9 = vpop.permute.xlu0 %4086 }
 0x46d   : > { %16327 = vst [vmem:[#allocation44_spill] sm:$0xff] %v12755_v9  ;;  %v8420_v9 = vld [vmem:[%s9377_s24 + $0x17a] sm:$0xff] }
 0x46e   : > { %4324 = vrot.lane.b32.xlu1 %v8399_v39, %s9314_s29  ;;  %v12761_v7 = vpop.permute.xlu1 %4092 }
 0x46f   : > { %4322 = vrot.lane.b32.xlu0 %v8398_v25, %s9314_s29  ;;  %16328 = vst [vmem:[#allocation166_spill] sm:$0xff] %v12761_v7  ;;  %v8405_v25 = vld [vmem:[%s9377_s24 + $0x166] sm:$0xff]  ;;  %v8404_v7 = vld [vmem:[%s9377_s24 + $0x15e] sm:$0xff] }
 0x470   : > { %v12763_v62 = vpop.permute.xlu0 %4090 }
 0x471   : > { %16329 = vst [vmem:[#allocation177_spill] sm:$0xff] %v12763_v62 }
 0x472   : > { %4328 = vrot.lane.b32.xlu1 %v8401_v26, %s9314_s29  ;;  %v12769_v59 = vpop.permute.xlu1 %4096 }
 0x473   : > { %4326 = vrot.lane.b32.xlu0 %v8400_v6, %s9314_s29  ;;  %16330 = vst [vmem:[#allocation167_spill] sm:$0xff] %v12769_v59  ;;  %v8407_v6 = vld [vmem:[%s9377_s24 + $0x176] sm:$0xff]  ;;  %v8406_v59 = vld [vmem:[%s9377_s24 + $0x16e] sm:$0xff] }
 0x474   : > { %v12771_v39 = vpop.permute.xlu0 %4094 }
 0x475   : > { %16331 = vst [vmem:[#allocation146_spill] sm:$0xff] %v12771_v39 }
 0x476   : > { %4332 = vrot.lane.b32.xlu1 %v8403_v45, %s9314_s29  ;;  %v12777_v62 = vpop.permute.xlu1 %4100 }
 0x477   : > { %4330 = vrot.lane.b32.xlu0 %v8402_v41, %s9314_s29  ;;  %16332 = vst [vmem:[#allocation131_spill] sm:$0xff] %v12777_v62  ;;  %v8409_v41 = vld [vmem:[%s9377_s24 + $0x186] sm:$0xff]  ;;  %v8408_v62 = vld [vmem:[%s9377_s24 + $0x17e] sm:$0xff] }
 0x478   : > { %v12779_v26 = vpop.permute.xlu0 %4098 }
 0x479   : > { %16333 = vst [vmem:[#allocation162_spill] sm:$0xff] %v12779_v26 }
 0x47a   : > { %4336 = vrot.lane.b32.xlu1 %v8405_v25, %s9314_s29  ;;  %v12785_v39 = vpop.permute.xlu1 %4104 }
 0x47b   : > { %4334 = vrot.lane.b32.xlu0 %v8404_v7, %s9314_s29  ;;  %16334 = vst [vmem:[#allocation147_spill] sm:$0xff] %v12785_v39  ;;  %v8411_v7 = vld [vmem:[%s9377_s24 + $0x196] sm:$0xff]  ;;  %v8410_v39 = vld [vmem:[%s9377_s24 + $0x18e] sm:$0xff] }
 0x47c   : > { %v12787_v45 = vpop.permute.xlu0 %4102 }
 0x47d   : > { %16335 = vst [vmem:[#allocation13_spill] sm:$0xff] %v12787_v45 }
 0x47e   : > { %4340 = vrot.lane.b32.xlu1 %v8407_v6, %s9314_s29  ;;  %v12793_v26 = vpop.permute.xlu1 %4108 }
 0x47f   : > { %4338 = vrot.lane.b32.xlu0 %v8406_v59, %s9314_s29  ;;  %16336 = vst [vmem:[#allocation163_spill] sm:$0xff] %v12793_v26  ;;  %v8413_v59 = vld [vmem:[%s9377_s24 + $0x1a6] sm:$0xff]  ;;  %v8412_v26 = vld [vmem:[%s9377_s24 + $0x19e] sm:$0xff] }
 0x480   : > { %v12795_v25 = vpop.permute.xlu0 %4106 }
 0x481   : > { %16337 = vst [vmem:[#allocation124_spill] sm:$0xff] %v12795_v25 }
 0x482   : > { %4344 = vrot.lane.b32.xlu1 %v8409_v41, %s9314_s29 }
 0x483   : > { %4342 = vrot.lane.b32.xlu0 %v8408_v62, %s9314_s29  ;;  %v8415_v62 = vld [vmem:[%s9377_s24 + $0x1b6] sm:$0xff] }
 0x484   : > { %v12801_v45 = vpop.permute.xlu1 %4112 }
 0x485   : > { %16338 = vst [vmem:[#allocation178_spill] sm:$0xff] %v12801_v45  ;;  %v12803_v6 = vpop.permute.xlu0 %4110  ;;  %v8414_v45 = vld [vmem:[%s9377_s24 + $0x1ae] sm:$0xff] }
 0x486   : > { %16339 = vst [vmem:[#allocation5_spill] sm:$0xff] %v12803_v6  ;;  %4348 = vrot.lane.b32.xlu1 %v8411_v7, %s9314_s29 }
 0x487   : > { %4346 = vrot.lane.b32.xlu0 %v8410_v39, %s9314_s29  ;;  %v8417_v39 = vld [vmem:[%s9377_s24 + $0x1c6] sm:$0xff] }
 0x488   : > { %v12809_v25 = vpop.permute.xlu1 %4116 }
 0x489   : > { %16340 = vst [vmem:[#allocation179_spill] sm:$0xff] %v12809_v25  ;;  %v12811_v41 = vpop.permute.xlu0 %4114  ;;  %v8416_v25 = vld [vmem:[%s9377_s24 + $0x1be] sm:$0xff] }
 0x48a   : > { %16341 = vst [vmem:[#allocation106_spill] sm:$0xff] %v12811_v41  ;;  %4352 = vrot.lane.b32.xlu1 %v8413_v59, %s9314_s29 }
 0x48b   : > { %4350 = vrot.lane.b32.xlu0 %v8412_v26, %s9314_s29  ;;  %v8419_v26 = vld [vmem:[%s9377_s24 + $0x172] sm:$0xff] }
 0x48c   : > { %v12817_v6 = vpop.permute.xlu1 %4120 }
 0x48d   : > { %16342 = vst [vmem:[#allocation10_spill] sm:$0xff] %v12817_v6  ;;  %v12819_v7 = vpop.permute.xlu0 %4118  ;;  %v8418_v6 = vld [vmem:[%s9377_s24 + $0x16a] sm:$0xff] }
 0x48e   : > { %16343 = vst [vmem:[#allocation42_spill] sm:$0xff] %v12819_v7  ;;  %4356 = vrot.lane.b32.xlu1 %v8415_v62, %s9314_s29 }
 0x48f   : > { %4354 = vrot.lane.b32.xlu0 %v8414_v45, %s9314_s29  ;;  %v8421_v45 = vld [vmem:[%s9377_s24 + $0x182] sm:$0xff] }
 0x490   : > { %v12825_v41 = vpop.permute.xlu1 %4184 }
 0x491   : > { %v12827_v59 = vpop.permute.xlu0 %4182 }
 0x492   : > { %4360 = vrot.lane.b32.xlu1 %v8417_v39, %s9314_s29 }
 0x493   : > { %4358 = vrot.lane.b32.xlu0 %v8416_v25, %s9314_s29  ;;  %v8423_v25 = vld [vmem:[%s9377_s24 + $0x192] sm:$0xff] }
 0x494   : > { %v12833_v7 = vpop.permute.xlu1 %4188 }
 0x495   : > { %v12835_v62 = vpop.permute.xlu0 %4186 }
 0x496   : > { %4424 = vrot.lane.b32.xlu1 %v8419_v26, %s9315_s30 }
 0x497   : > { %4422 = vrot.lane.b32.xlu0 %v8418_v6, %s9315_s30  ;;  %v8425_v6 = vld [vmem:[%s9377_s24 + $0x1a2] sm:$0xff] }
 0x498   : > { %v12841_v15 = vpop.permute.xlu1 %4192 }
 0x499   : > { %v12843_v39 = vpop.permute.xlu0 %4190 }
 0x49a   : > { %4428 = vrot.lane.b32.xlu1 %v8421_v45, %s9315_s30 }
 0x49b   : > { %4426 = vrot.lane.b32.xlu0 %v8420_v9, %s9315_s30  ;;  %v8427_v9 = vld [vmem:[%s9377_s24 + $0x1b2] sm:$0xff] }
 0x49c   : > { %v12849_v43 = vpop.permute.xlu1 %4196 }
 0x49d   : > { %16344 = vst [vmem:[#allocation3_spill] sm:$0xff] %v12849_v43  ;;  %v12851_v26 = vpop.permute.xlu0 %4194 }
 0x49e   : > { %16345 = vst [vmem:[#allocation118_spill] sm:$0xff] %v12851_v26  ;;  %4432 = vrot.lane.b32.xlu1 %v8423_v25, %s9315_s30 }
 0x49f   : > { %4430 = vrot.lane.b32.xlu0 %v8422_v17, %s9315_s30  ;;  %v8429_v17 = vld [vmem:[%s9377_s24 + $0x1c2] sm:$0xff] }
 0x4a0   : > { %v12857_v29 = vpop.permute.xlu1 %4200 }
 0x4a1   : > { %16346 = vst [vmem:[#allocation125_spill] sm:$0xff] %v12857_v29  ;;  %v12859_v45 = vpop.permute.xlu0 %4198 }
 0x4a2   : > { %16347 = vst [vmem:[#allocation58_spill] sm:$0xff] %v12859_v45  ;;  %4436 = vrot.lane.b32.xlu1 %v8425_v6, %s9315_s30  ;;  %v8430_v6 = vld [vmem:[%s9377_s24 + $0x1ca] sm:$0xff] }
 0x4a3   : > { %4434 = vrot.lane.b32.xlu0 %v8424_v22, %s9315_s30  ;;  %v8431_v22 = vld [vmem:[%s9377_s24 + $0x1d2] sm:$0xff] }
 0x4a4   : > { %v12865_v51 = vpop.permute.xlu1 %4204 }
 0x4a5   : > { %16348 = vst [vmem:[#allocation37_spill] sm:$0xff] %v12865_v51  ;;  %v12867_v25 = vpop.permute.xlu0 %4202 }
 0x4a6   : > { %16349 = vst [vmem:[#allocation180_spill] sm:$0xff] %v12867_v25  ;;  %4440 = vrot.lane.b32.xlu1 %v8427_v9, %s9315_s30  ;;  %v8432_v9 = vld [vmem:[%s9377_s24 + $0x1da] sm:$0xff] }
 0x4a7   : > { %4438 = vrot.lane.b32.xlu0 %v8426_v18, %s9315_s30  ;;  %v8433_v18 = vld [vmem:[%s9377_s24 + $0x1e2] sm:$0xff] }
 0x4a8   : > { %v12873_v45 = vpop.permute.xlu1 %4208 }
 0x4a9   : > { %16350 = vst [vmem:[#allocation107_spill] sm:$0xff] %v12873_v45  ;;  %v12875_v29 = vpop.permute.xlu0 %4206 }
 0x4aa   : > { %16351 = vst [vmem:[#allocation181_spill] sm:$0xff] %v12875_v29  ;;  %4444 = vrot.lane.b32.xlu1 %v8429_v17, %s9315_s30 }
 0x4ab   : > { %4442 = vrot.lane.b32.xlu0 %v8428_v12, %s9315_s30 }
 0x4ac   : > { %v12881_v25 = vpop.permute.xlu1 %4212 }
 0x4ad   : > { %16352 = vst [vmem:[#allocation21_spill] sm:$0xff] %v12881_v25  ;;  %v12883_v51 = vpop.permute.xlu0 %4210  ;;  %v12895_v12 = vpop.f32.mrb[0].mxu1  ;;  %v8435_v25 = vld [vmem:[%s9377_s24 + $0x1f2] sm:$0xff] }
 0x4ae   : > { %16353 = vst [vmem:[#allocation32_spill] sm:$0xff] %v12883_v51  ;;  %4448 = vrot.lane.b32.xlu1 %v8431_v22, %s9315_s30  ;;  %16356 = vst [vmem:[#allocation148_spill] sm:$0xff] %v12895_v12  ;;  %v8434_v51 = vld [vmem:[%s9377_s24 + $0x1ea] sm:$0xff]  ;;  %v12899_v22 = vpop.f32.mrb[1].mxu1 }
 0x4af   : > { %4446 = vrot.lane.b32.xlu0 %v8430_v6, %s9315_s30  ;;  %16357 = vst [vmem:[#allocation38_spill] sm:$0xff] %v12899_v22 }
 0x4b0   : > { %v12889_v29 = vpop.permute.xlu1 %4216 }
 0x4b1   : > { %16354 = vst [vmem:[#allocation160_spill] sm:$0xff] %v12889_v29  ;;  %v12891_v17 = vpop.permute.xlu0 %4214 }
 0x4b2   : > { %16355 = vst [vmem:[#allocation102_spill] sm:$0xff] %v12891_v17  ;;  %4452 = vrot.lane.b32.xlu1 %v8433_v18, %s9315_s30  ;;  %v12907_v17 = vpop.f32.mrb[2].mxu1  ;;  %v8437_v18 = vld [vmem:[%s9377_s24 + $0x202] sm:$0xff] }
 0x4b3   : > { %4450 = vrot.lane.b32.xlu0 %v8432_v9, %s9315_s30  ;;  %16360 = vst [vmem:[#allocation182_spill] sm:$0xff] %v12907_v17  ;;  %v8436_v9 = vld [vmem:[%s9377_s24 + $0x1fa] sm:$0xff]  ;;  %v12911_v12 = vpop.f32.mrb[3].mxu1 }
 0x4b4   : > { %v12901_v6 = vpop.permute.xlu1 %4220  ;;  %16361 = vst [vmem:[#allocation22_spill] sm:$0xff] %v12911_v12 }
 0x4b5   : > { %16358 = vst [vmem:[#allocation103_spill] sm:$0xff] %v12901_v6  ;;  %v12903_v45 = vpop.permute.xlu0 %4218  ;;  %v12919_v22 = vpop.f32.mrb[4].mxu1 }
 0x4b6   : > { %16359 = vst [vmem:[#allocation154_spill] sm:$0xff] %v12903_v45  ;;  %4456 = vrot.lane.b32.xlu1 %v8435_v25, %s9315_s30  ;;  %16364 = vst [vmem:[#allocation63_spill] sm:$0xff] %v12919_v22  ;;  %v8439_v25 = vld [vmem:[%s9377_s24 + $0x212] sm:$0xff]  ;;  %v12923_v17 = vpop.f32.mrb[5].mxu1 }
 0x4b7   : > { %4454 = vrot.lane.b32.xlu0 %v8434_v51, %s9315_s30  ;;  %v8438_v51 = vld [vmem:[%s9377_s24 + $0x20a] sm:$0xff]  ;;  %16365 = vst [vmem:[#allocation161_spill] sm:$0xff] %v12923_v17 }
 0x4b8   : > { %v12913_v29 = vpop.permute.xlu1 %4224 }
 0x4b9   : > { %16362 = vst [vmem:[#allocation183_spill] sm:$0xff] %v12913_v29  ;;  %v12915_v57 = vpop.permute.xlu0 %4222  ;;  %v12931_v12 = vpop.f32.mrb[6].mxu1 }
 0x4ba   : > { %16363 = vst [vmem:[#allocation138_spill] sm:$0xff] %v12915_v57  ;;  %4460 = vrot.lane.b32.xlu1 %v8437_v18, %s9315_s30  ;;  %16368 = vst [vmem:[#allocation155_spill] sm:$0xff] %v12931_v12  ;;  %v8441_v18 = vld [vmem:[%s9377_s24 + $0x222] sm:$0xff]  ;;  %v12935_v22 = vpop.f32.mrb[7].mxu1 }
 0x4bb   : > { %4458 = vrot.lane.b32.xlu0 %v8436_v9, %s9315_s30  ;;  %v8440_v9 = vld [vmem:[%s9377_s24 + $0x21a] sm:$0xff]  ;;  %16369 = vst [vmem:[#allocation18_spill] sm:$0xff] %v12935_v22 }
 0x4bc   : > { %v12925_v45 = vpop.permute.xlu1 %4228 }
 0x4bd   : > { %16366 = vst [vmem:[#allocation17_spill] sm:$0xff] %v12925_v45  ;;  %v12927_v6 = vpop.permute.xlu0 %4226  ;;  %v12943_v17 = vpop.f32.mrb[8].mxu1 }
 0x4be   : > { %16367 = vst [vmem:[#allocation172_spill] sm:$0xff] %v12927_v6  ;;  %4464 = vrot.lane.b32.xlu1 %v8439_v25, %s9315_s30  ;;  %16372 = vst [vmem:[#allocation139_spill] sm:$0xff] %v12943_v17  ;;  %v8443_v25 = vld [vmem:[%s9377_s24 + $0x232] sm:$0xff]  ;;  %v12947_v12 = vpop.f32.mrb[9].mxu1 }
 0x4bf   : > { %4462 = vrot.lane.b32.xlu0 %v8438_v51, %s9315_s30  ;;  %v8442_v51 = vld [vmem:[%s9377_s24 + $0x22a] sm:$0xff]  ;;  %16373 = vst [vmem:[#allocation185_spill] sm:$0xff] %v12947_v12 }
 0x4c0   : > { %v12937_v57 = vpop.permute.xlu1 %4232 }
 0x4c1   : > { %16370 = vst [vmem:[#allocation68_spill] sm:$0xff] %v12937_v57  ;;  %v12939_v29 = vpop.permute.xlu0 %4230 }
 0x4c2   : > { %16371 = vst [vmem:[#allocation184_spill] sm:$0xff] %v12939_v29  ;;  %4468 = vrot.lane.b32.xlu1 %v8441_v18, %s9315_s30  ;;  %v12955_v22 = vpop.f32.mrb[10].mxu1  ;;  %v8445_v18 = vld [vmem:[%s9377_s24 + $0x242] sm:$0xff] }
 0x4c3   : > { %4466 = vrot.lane.b32.xlu0 %v8440_v9, %s9315_s30  ;;  %16376 = vst [vmem:[#allocation2_spill] sm:$0xff] %v12955_v22  ;;  %v8444_v9 = vld [vmem:[%s9377_s24 + $0x23a] sm:$0xff]  ;;  %v12959_v17 = vpop.f32.mrb[11].mxu1 }
 0x4c4   : > { %v12949_v6 = vpop.permute.xlu1 %4236  ;;  %16377 = vst [vmem:[#allocation134_spill] sm:$0xff] %v12959_v17 }
 0x4c5   : > { %16374 = vst [vmem:[#allocation49_spill] sm:$0xff] %v12949_v6  ;;  %v12951_v45 = vpop.permute.xlu0 %4234 }
 0x4c6   : > { %16375 = vst [vmem:[#allocation121_spill] sm:$0xff] %v12951_v45  ;;  %4472 = vrot.lane.b32.xlu1 %v8443_v25, %s9315_s30  ;;  %v12967_v12 = vpop.f32.mrb[12].mxu1  ;;  %v8447_v25 = vld [vmem:[%s9377_s24 + $0x252] sm:$0xff] }
 0x4c7   : > { %4470 = vrot.lane.b32.xlu0 %v8442_v51, %s9315_s30  ;;  %16380 = vst [vmem:[#allocation135_spill] sm:$0xff] %v12967_v12  ;;  %v8446_v51 = vld [vmem:[%s9377_s24 + $0x24a] sm:$0xff]  ;;  %v12971_v22 = vpop.f32.mrb[13].mxu1 }
 0x4c8   : > { %v12961_v29 = vpop.permute.xlu1 %4240  ;;  %16381 = vst [vmem:[#allocation175_spill] sm:$0xff] %v12971_v22 }
 0x4c9   : > { %16378 = vst [vmem:[#allocation33_spill] sm:$0xff] %v12961_v29  ;;  %v12963_v57 = vpop.permute.xlu0 %4238 }
 0x4ca   : > { %16379 = vst [vmem:[#allocation69_spill] sm:$0xff] %v12963_v57  ;;  %4476 = vrot.lane.b32.xlu1 %v8445_v18, %s9315_s30  ;;  %v8449_v18 = vld [vmem:[%s9377_s24 + $0x177] sm:$0xff] }
 0x4cb   : > { %4474 = vrot.lane.b32.xlu0 %v8444_v9, %s9315_s30  ;;  %v12979_v17 = vpop.f32.mrb[14].mxu1  ;;  %v8448_v9 = vld [vmem:[%s9377_s24 + $0x16f] sm:$0xff] }
 0x4cc   : > { %v12973_v45 = vpop.permute.xlu1 %4304  ;;  %16382 = vst [vmem:[#allocation186_spill] sm:$0xff] %v12979_v17  ;;  %v12983_v12 = vpop.f32.mrb[15].mxu1 }
 0x4cd   : > { %v12975_v6 = vpop.permute.xlu0 %4302  ;;  %16383 = vst [vmem:[#allocation169_spill] sm:$0xff] %v12983_v12 }
 0x4ce   : > { %4480 = vrot.lane.b32.xlu1 %v8447_v25, %s9315_s30  ;;  %v8451_v25 = vld [vmem:[%s9377_s24 + $0x187] sm:$0xff] }
 0x4cf   : > { %4478 = vrot.lane.b32.xlu0 %v8446_v51, %s9315_s30  ;;  %v8450_v51 = vld [vmem:[%s9377_s24 + $0x17f] sm:$0xff] }
 0x4d0   : > { %v12985_v57 = vpop.permute.xlu1 %4308 }
 0x4d1   : > { %v12987_v29 = vpop.permute.xlu0 %4306  ;;  %v12991_v22 = vpop.f32.mrb[16].mxu1 }
 0x4d2   : > { %4544 = vrot.lane.b32.xlu1 %v8449_v18, %s9316_s4  ;;  %16384 = vst [vmem:[#allocation187_spill] sm:$0xff] %v12991_v22  ;;  %v12995_v17 = vpop.f32.mrb[17].mxu1  ;;  %v8453_v18 = vld [vmem:[%s9377_s24 + $0x197] sm:$0xff] }
 0x4d3   : > { %4542 = vrot.lane.b32.xlu0 %v8448_v9, %s9316_s4  ;;  %16385 = vst [vmem:[#allocation6_spill] sm:$0xff] %v12995_v17  ;;  %v8452_v9 = vld [vmem:[%s9377_s24 + $0x18f] sm:$0xff] }
 0x4d4   : > { %v12997_v48 = vpop.permute.xlu1 %4312 }
 0x4d5   : > { %16386 = vst [vmem:[#allocation151_spill] sm:$0xff] %v12997_v48  ;;  %v12999_v31 = vpop.permute.xlu0 %4310 }
 0x4d6   : > { %16387 = vst [vmem:[#allocation55_spill] sm:$0xff] %v12999_v31  ;;  %4548 = vrot.lane.b32.xlu1 %v8451_v25, %s9316_s4  ;;  %v8455_v25 = vld [vmem:[%s9377_s24 + $0x1a7] sm:$0xff] }
 0x4d7   : > { %4546 = vrot.lane.b32.xlu0 %v8450_v51, %s9316_s4  ;;  %v13003_v12 = vpop.f32.mrb[18].mxu1  ;;  %v8454_v51 = vld [vmem:[%s9377_s24 + $0x19f] sm:$0xff] }
 0x4d8   : > { %16388 = vst [vmem:[#allocation45_spill] sm:$0xff] %v13003_v12  ;;  %v13007_v22 = vpop.f32.mrb[19].mxu1  ;;  %v13009_v32 = vpop.permute.xlu1 %4316 }
 0x4d9   : > { %16389 = vst [vmem:[#allocation64_spill] sm:$0xff] %v13007_v22  ;;  %16390 = vst [vmem:[#allocation14_spill] sm:$0xff] %v13009_v32  ;;  %v13011_v26 = vpop.permute.xlu0 %4314 }
 0x4da   : > { %16391 = vst [vmem:[#allocation46_spill] sm:$0xff] %v13011_v26  ;;  %4552 = vrot.lane.b32.xlu1 %v8453_v18, %s9316_s4  ;;  %v8457_v18 = vld [vmem:[%s9377_s24 + $0x1b7] sm:$0xff] }
 0x4db   : > { %4550 = vrot.lane.b32.xlu0 %v8452_v9, %s9316_s4  ;;  %v13015_v17 = vpop.f32.mrb[20].mxu1  ;;  %v8456_v9 = vld [vmem:[%s9377_s24 + $0x1af] sm:$0xff] }
 0x4dc   : > { %16392 = vst [vmem:[#allocation126_spill] sm:$0xff] %v13015_v17  ;;  %v13019_v12 = vpop.f32.mrb[21].mxu1  ;;  %v13021_v31 = vpop.permute.xlu1 %4320 }
 0x4dd   : > { %16393 = vst [vmem:[#allocation188_spill] sm:$0xff] %v13019_v12  ;;  %16394 = vst [vmem:[#allocation23_spill] sm:$0xff] %v13021_v31  ;;  %v13023_v48 = vpop.permute.xlu0 %4318 }
 0x4de   : > { %16395 = vst [vmem:[#allocation189_spill] sm:$0xff] %v13023_v48  ;;  %4556 = vrot.lane.b32.xlu1 %v8455_v25, %s9316_s4  ;;  %v8459_v25 = vld [vmem:[%s9377_s24 + $0x1c7] sm:$0xff] }
 0x4df   : > { %4554 = vrot.lane.b32.xlu0 %v8454_v51, %s9316_s4  ;;  %v8458_v51 = vld [vmem:[%s9377_s24 + $0x1bf] sm:$0xff] }
 0x4e0   : > { %v13027_v22 = vpop.f32.mrb[22].mxu1  ;;  %v13033_v26 = vpop.permute.xlu1 %4324 }
 0x4e1   : > { %16396 = vst [vmem:[#allocation24_spill] sm:$0xff] %v13027_v22  ;;  %v13031_v17 = vpop.f32.mrb[23].mxu1  ;;  %16398 = vst [vmem:[#allocation100_spill] sm:$0xff] %v13033_v26  ;;  %v13035_v32 = vpop.permute.xlu0 %4322 }
 0x4e2   : > { %16397 = vst [vmem:[#allocation65_spill] sm:$0xff] %v13031_v17  ;;  %16399 = vst [vmem:[#allocation164_spill] sm:$0xff] %v13035_v32  ;;  %4560 = vrot.lane.b32.xlu1 %v8457_v18, %s9316_s4  ;;  %v8461_v18 = vld [vmem:[%s9377_s24 + $0x1d7] sm:$0xff] }
 0x4e3   : > { %4558 = vrot.lane.b32.xlu0 %v8456_v9, %s9316_s4  ;;  %v8460_v9 = vld [vmem:[%s9377_s24 + $0x1cf] sm:$0xff] }
 0x4e4   : > { %v13045_v48 = vpop.permute.xlu1 %4328 }
 0x4e5   : > { %v13039_v12 = vpop.f32.mrb[24].mxu1  ;;  %16402 = vst [vmem:[#allocation165_spill] sm:$0xff] %v13045_v48  ;;  %v13047_v31 = vpop.permute.xlu0 %4326 }
 0x4e6   : > { %16400 = vst [vmem:[#allocation173_spill] sm:$0xff] %v13039_v12  ;;  %v13043_v22 = vpop.f32.mrb[25].mxu1  ;;  %16403 = vst [vmem:[#allocation39_spill] sm:$0xff] %v13047_v31  ;;  %4564 = vrot.lane.b32.xlu1 %v8459_v25, %s9316_s4 }
 0x4e7   : > { %16401 = vst [vmem:[#allocation127_spill] sm:$0xff] %v13043_v22  ;;  %4562 = vrot.lane.b32.xlu0 %v8458_v51, %s9316_s4  ;;  %v8463_v51 = vld [vmem:[%s9377_s24 + $0x1e7] sm:$0xff] }
 0x4e8   : > { %v13057_v32 = vpop.permute.xlu1 %4332 }
 0x4e9   : > { %v13051_v17 = vpop.f32.mrb[26].mxu1  ;;  %16406 = vst [vmem:[#allocation191_spill] sm:$0xff] %v13057_v32  ;;  %v13059_v26 = vpop.permute.xlu0 %4330 }
 0x4ea   : > { %16404 = vst [vmem:[#allocation190_spill] sm:$0xff] %v13051_v17  ;;  %v13055_v12 = vpop.f32.mrb[27].mxu1  ;;  %16407 = vst [vmem:[#allocation52_spill] sm:$0xff] %v13059_v26  ;;  %4568 = vrot.lane.b32.xlu1 %v8461_v18, %s9316_s4  ;;  %v8462_v17 = vld [vmem:[%s9377_s24 + $0x1df] sm:$0xff]  ;;  %v8465_v18 = vld [vmem:[%s9377_s24 + $0x1f7] sm:$0xff] }
 0x4eb   : > { %16405 = vst [vmem:[#allocation51_spill] sm:$0xff] %v13055_v12  ;;  %4566 = vrot.lane.b32.xlu0 %v8460_v9, %s9316_s4  ;;  %v8464_v26 = vld [vmem:[%s9377_s24 + $0x1ef] sm:$0xff] }
 0x4ec   : > { %v13069_v31 = vpop.permute.xlu1 %4336 }
 0x4ed   : > { %v13063_v25 = vpop.f32.mrb[28].mxu1  ;;  %16410 = vst [vmem:[#allocation4_spill] sm:$0xff] %v13069_v31  ;;  %v13071_v12 = vpop.permute.xlu0 %4334 }
 0x4ee   : > { %16408 = vst [vmem:[#allocation174_spill] sm:$0xff] %v13063_v25  ;;  %v13067_v22 = vpop.f32.mrb[29].mxu1  ;;  %16411 = vst [vmem:[#allocation12_spill] sm:$0xff] %v13071_v12  ;;  %4572 = vrot.lane.b32.xlu1 %v8463_v51, %s9316_s4  ;;  %v8466_v25 = vld [vmem:[%s9377_s24 + $0x1ff] sm:$0xff]  ;;  %v8468_v51 = vld [vmem:[%s9377_s24 + $0x20f] sm:$0xff] }
 0x4ef   : > { %16409 = vst [vmem:[#allocation101_spill] sm:$0xff] %v13067_v22  ;;  %4570 = vrot.lane.b32.xlu0 %v8462_v17, %s9316_s4  ;;  %v8467_v22 = vld [vmem:[%s9377_s24 + $0x207] sm:$0xff]  ;;  %v8469_v17 = vld [vmem:[%s9377_s24 + $0x217] sm:$0xff] }
 0x4f0   : > { %v13077_v9 = vpop.permute.xlu1 %4340 }
 0x4f1   : > { %16412 = vst [vmem:[#allocation40_spill] sm:$0xff] %v13077_v9  ;;  %v13079_v32 = vpop.permute.xlu0 %4338  ;;  %v8510_v9 = vld [vmem:[%s15592_s1 + $0x60] sm:$0xff] }
 0x4f2   : > { %16413 = vst [vmem:[#allocation59_spill] sm:$0xff] %v13079_v32  ;;  %4576 = vrot.lane.b32.xlu1 %v8465_v18, %s9316_s4  ;;  %v8508_v18 = vld [vmem:[%s15592_s1 + $0x50] sm:$0xff] }
 0x4f3   : > { %4574 = vrot.lane.b32.xlu0 %v8464_v26, %s9316_s4  ;;  %v8509_v26 = vld [vmem:[%s15592_s1 + $0x58] sm:$0xff] }
 0x4f4   : > { %v13085_v12 = vpop.permute.xlu1 %4344 }
 0x4f5   : > { %16414 = vst [vmem:[#allocation156_spill] sm:$0xff] %v13085_v12  ;;  %v13087_v31 = vpop.permute.xlu0 %4342  ;;  %v9169_v12 = vpack.c.bf16 %v8509_v26, %v8508_v18 }
 0x4f6   : > { %16415 = vst [vmem:[#allocation192_spill] sm:$0xff] %v13087_v31  ;;  %4580 = vrot.lane.b32.xlu1 %v8467_v22, %s9316_s4  ;;  %v8471_v22 = vld [vmem:[%s9377_s24 + $0x227] sm:$0xff] }
 0x4f7   : > { %4578 = vrot.lane.b32.xlu0 %v8466_v25, %s9316_s4  ;;  %v8470_v25 = vld [vmem:[%s9377_s24 + $0x21f] sm:$0xff]  ;;  %9170 = vmatprep.subr.bf16.mxu0 %v9169_v12 }
 0x4f8   : > { %v13099_v32 = vpop.permute.xlu1 %4348  ;;  %9172 = vmatpush3.bf16.msra.mxu0 %v9169_v12  ;;  %v8475_v12 = vld [vmem:[%s9377_s24 + $0x247] sm:$0xff] }
 0x4f9   : > { %16416 = vst [vmem:[#allocation110_spill] sm:$0xff] %v13099_v32  ;;  %v13101_v31 = vpop.permute.xlu0 %4346  ;;  %v8511_v32 = vld [vmem:[%s15592_s1 + $0x68] sm:$0xff] }
 0x4fa   : > { %16417 = vst [vmem:[#allocation193_spill] sm:$0xff] %v13101_v31  ;;  %4584 = vrot.lane.b32.xlu1 %v8469_v17, %s9316_s4  ;;  %v9173_v26 = vpack.c.bf16 %v8511_v32, %v8510_v9  ;;  %v8472_v31 = vld [vmem:[%s9377_s24 + $0x22f] sm:$0xff]  ;;  %v8474_v9 = vld [vmem:[%s9377_s24 + $0x23f] sm:$0xff] }
 0x4fb   : > { %4582 = vrot.lane.b32.xlu0 %v8468_v51, %s9316_s4  ;;  %v8473_v51 = vld [vmem:[%s9377_s24 + $0x237] sm:$0xff]  ;;  %v8512_v32 = vld [vmem:[%s15592_s1 + $0x70] sm:$0xf] }
 0x4fc   : > { %v13113_v18 = vpop.permute.xlu1 %4352  ;;  %9174 = vmatprep.subr.bf16.mxu0 %v9173_v26 }
 0x4fd   : > { %16418 = vst [vmem:[#allocation111_spill] sm:$0xff] %v13113_v18  ;;  %v13115_v17 = vpop.permute.xlu0 %4350  ;;  %9176 = vmatpush3.bf16.msra.mxu0 %v9173_v26  ;;  %v8477_v26 = vld [vmem:[%s9377_s24 + $0x257] sm:$0xff]  ;;  %v8492_v18 = vld [vmem:[%s9377_s24 + $0x1e4] sm:$0xff] }
 0x4fe   : > { %16419 = vst [vmem:[#allocation122_spill] sm:$0xff] %v13115_v17  ;;  %4588 = vrot.lane.b32.xlu1 %v8471_v22, %s9316_s4  ;;  %9051 = vmatprep.subr.msk.mxu0 %vm1787_vm0, %v8512_v32 }
 0x4ff   : > { %4586 = vrot.lane.b32.xlu0 %v8470_v25, %s9316_s4 }
 0x500   : > { %v13121_v48 = vpop.permute.xlu1 %4356 }
 0x501   : > { %16420 = vst [vmem:[#allocation115_spill] sm:$0xff] %v13121_v48  ;;  %v13123_v58 = vpop.permute.xlu0 %4354  ;;  %9052 = vmatpush3.msk.msra.mxu0 %vm1787_vm0, %v8512_v32 }
 0x502   : > { %16421 = vst [vmem:[#allocation104_spill] sm:$0xff] %v13123_v58  ;;  %4592 = vrot.lane.b32.xlu1 %v8473_v51, %s9316_s4  ;;  %v8476_v58 = vld [vmem:[%s9377_s24 + $0x24f] sm:$0xff] }
 0x503   : > { %4590 = vrot.lane.b32.xlu0 %v8472_v31, %s9316_s4 }
 0x504   : > { %v13133_v22 = vpop.permute.xlu1 %4360 }
 0x505   : > { %16422 = vst [vmem:[#allocation123_spill] sm:$0xff] %v13133_v22  ;;  %v13136_v25 = vpop.permute.xlu0 %4358 }
 0x506   : > { %16423 = vst [vmem:[#allocation157_spill] sm:$0xff] %v13136_v25  ;;  %4596 = vrot.lane.b32.xlu1 %v8475_v12, %s9316_s4  ;;  %v8490_v25 = vld [vmem:[%s9377_s24 + $0x1d4] sm:$0xff] }
 0x507   : > { %4594 = vrot.lane.b32.xlu0 %v8474_v9, %s9316_s4 }
 0x508   : > { %v13142_v48 = vpop.permute.xlu1 %4424 }
 0x509   : > { %v13144_v51 = vpop.permute.xlu0 %4422 }
 0x50a   : > { %4600 = vrot.lane.b32.xlu1 %v8477_v26, %s9316_s4 }
 0x50b   : > { %4598 = vrot.lane.b32.xlu0 %v8476_v58, %s9316_s4 }
 0x50c   : > { %v13148_v31 = vpop.permute.xlu1 %4428 }
 0x50d   : > { %v13150_v22 = vpop.permute.xlu0 %4426 }
 0x50e   : > { %16424 = vst [vmem:[#allocation105_spill] sm:$0xff] %v13150_v22  ;;  %4664 = vrot.lane.b32.xlu1 %v12642_v8, %s9317_s22 }
 0x50f   : > { %4662 = vrot.lane.b32.xlu0 %v12645_v53, %s9317_s22 }
 0x510   : > { %v13156_v32 = vpop.permute.xlu1 %4432 }
 0x511   : > { %16425 = vst [vmem:[#allocation70_spill] sm:$0xff] %v13156_v32  ;;  %v13158_v12 = vpop.permute.xlu0 %4430  ;;  %v8569_v32 = vld [vmem:[%s9377_s24 + $0xcf] sm:$0xff] }
 0x512   : > { %16426 = vst [vmem:[#allocation194_spill] sm:$0xff] %v13158_v12  ;;  %4668 = vrot.lane.b32.xlu1 %v12656_v50, %s9317_s22 }
 0x513   : > { %4666 = vrot.lane.b32.xlu0 %v12659_v55, %s9317_s22 }
 0x514   : > { %v13164_v58 = vpop.permute.xlu1 %4436 }
 0x515   : > { %16427 = vst [vmem:[#allocation142_spill] sm:$0xff] %v13164_v58  ;;  %v13166_v9 = vpop.permute.xlu0 %4434 }
 0x516   : > { %16428 = vst [vmem:[#allocation195_spill] sm:$0xff] %v13166_v9  ;;  %4672 = vrot.lane.b32.xlu1 %v12670_v36, %s9317_s22  ;;  %v8489_v36 = vld [vmem:[%s9377_s24 + $0x1cc] sm:$0xff] }
 0x517   : > { %4670 = vrot.lane.b32.xlu0 %v12673_v21, %s9317_s22  ;;  %v8488_v21 = vld [vmem:[%s9377_s24 + $0x1c4] sm:$0xff] }
 0x518   : > { %v13172_v8 = vpop.permute.xlu1 %4440 }
 0x519   : > { %16429 = vst [vmem:[#allocation143_spill] sm:$0xff] %v13172_v8  ;;  %v13174_v53 = vpop.permute.xlu0 %4438  ;;  %v8550_v8 = vld [vmem:[%s9377_s24 + $0x37] sm:$0xff] }
 0x51a   : > { %16430 = vst [vmem:[#allocation35_spill] sm:$0xff] %v13174_v53  ;;  %4676 = vrot.lane.b32.xlu1 %v12684_v61, %s9317_s22 }
 0x51b   : > { %4674 = vrot.lane.b32.xlu0 %v12687_v60, %s9317_s22  ;;  %v8491_v60 = vld [vmem:[%s9377_s24 + $0x1dc] sm:$0xff] }
 0x51c   : > { %v13180_v50 = vpop.permute.xlu1 %4444 }
 0x51d   : > { %16431 = vst [vmem:[#allocation112_spill] sm:$0xff] %v13180_v50  ;;  %v13182_v55 = vpop.permute.xlu0 %4442  ;;  %v8548_v50 = vld [vmem:[%s9377_s24 + $0x27] sm:$0xff] }
 0x51e   : > { %16432 = vst [vmem:[#allocation15_spill] sm:$0xff] %v13182_v55  ;;  %4680 = vrot.lane.b32.xlu1 %v12698_v5, %s9317_s22 }
 0x51f   : > { %4678 = vrot.lane.b32.xlu0 %v12701_v4, %s9317_s22  ;;  %v8493_v4 = vld [vmem:[%s9377_s24 + $0x1ec] sm:$0xff] }
 0x520   : > { %v13190_v26 = vpop.permute.xlu1 %4448 }
 0x521   : > { %16433 = vst [vmem:[#allocation36_spill] sm:$0xff] %v13190_v26  ;;  %v13192_v61 = vpop.permute.xlu0 %4446  ;;  %v8546_v26 = vld [vmem:[%s9377_s24 + $0x17] sm:$0xff] }
 0x522   : > { %16434 = vst [vmem:[#allocation71_spill] sm:$0xff] %v13192_v61  ;;  %4684 = vrot.lane.b32.xlu1 %v8489_v36, %s9317_s22 }
 0x523   : > { %4682 = vrot.lane.b32.xlu0 %v8488_v21, %s9317_s22  ;;  %v8495_v21 = vld [vmem:[%s9377_s24 + $0x1fc] sm:$0xff] }
 0x524   : > { %v13198_v17 = vpop.permute.xlu1 %4452 }
 0x525   : > { %16435 = vst [vmem:[#allocation19_spill] sm:$0xff] %v13198_v17  ;;  %v13200_v5 = vpop.permute.xlu0 %4450  ;;  %v8494_v17 = vld [vmem:[%s9377_s24 + $0x1f4] sm:$0xff] }
 0x526   : > { %16436 = vst [vmem:[#allocation20_spill] sm:$0xff] %v13200_v5  ;;  %4688 = vrot.lane.b32.xlu1 %v8491_v60, %s9317_s22 }
 0x527   : > { %4686 = vrot.lane.b32.xlu0 %v8490_v25, %s9317_s22  ;;  %v8497_v25 = vld [vmem:[%s9377_s24 + $0x20c] sm:$0xff] }
 0x528   : > { %v13206_v61 = vpop.permute.xlu1 %4456 }
 0x529   : > { %16437 = vst [vmem:[#allocation128_spill] sm:$0xff] %v13206_v61  ;;  %v13208_v36 = vpop.permute.xlu0 %4454  ;;  %v8496_v61 = vld [vmem:[%s9377_s24 + $0x204] sm:$0xff] }
 0x52a   : > { %16438 = vst [vmem:[#allocation196_spill] sm:$0xff] %v13208_v36  ;;  %4692 = vrot.lane.b32.xlu1 %v8493_v4, %s9317_s22 }
 0x52b   : > { %4690 = vrot.lane.b32.xlu0 %v8492_v18, %s9317_s22  ;;  %v8499_v18 = vld [vmem:[%s9377_s24 + $0x21c] sm:$0xff] }
 0x52c   : > { %v13214_v5 = vpop.permute.xlu1 %4460 }
 0x52d   : > { %16439 = vst [vmem:[#allocation197_spill] sm:$0xff] %v13214_v5  ;;  %v13216_v60 = vpop.permute.xlu0 %4458  ;;  %v8498_v5 = vld [vmem:[%s9377_s24 + $0x214] sm:$0xff] }
 0x52e   : > { %16440 = vst [vmem:[#allocation171_spill] sm:$0xff] %v13216_v60  ;;  %4696 = vrot.lane.b32.xlu1 %v8495_v21, %s9317_s22 }
 0x52f   : > { %4694 = vrot.lane.b32.xlu0 %v8494_v17, %s9317_s22  ;;  %v8501_v17 = vld [vmem:[%s9377_s24 + $0x22c] sm:$0xff] }
 0x530   : > { %v13222_v36 = vpop.permute.xlu1 %4464 }
 0x531   : > { %16441 = vst [vmem:[#allocation152_spill] sm:$0xff] %v13222_v36  ;;  %v13224_v4 = vpop.permute.xlu0 %4462  ;;  %v8500_v36 = vld [vmem:[%s9377_s24 + $0x224] sm:$0xff] }
 0x532   : > { %16442 = vst [vmem:[#allocation8_spill] sm:$0xff] %v13224_v4  ;;  %4700 = vrot.lane.b32.xlu1 %v8497_v25, %s9317_s22 }
 0x533   : > { %4698 = vrot.lane.b32.xlu0 %v8496_v61, %s9317_s22  ;;  %v8503_v61 = vld [vmem:[%s9377_s24 + $0x23c] sm:$0xff] }
 0x534   : > { %v13230_v60 = vpop.permute.xlu1 %4468 }
 0x535   : > { %16443 = vst [vmem:[#allocation153_spill] sm:$0xff] %v13230_v60  ;;  %v13232_v21 = vpop.permute.xlu0 %4466  ;;  %v8502_v60 = vld [vmem:[%s9377_s24 + $0x234] sm:$0xff] }
 0x536   : > { %16444 = vst [vmem:[#allocation129_spill] sm:$0xff] %v13232_v21  ;;  %4704 = vrot.lane.b32.xlu1 %v8499_v18, %s9317_s22 }
 0x537   : > { %4702 = vrot.lane.b32.xlu0 %v8498_v5, %s9317_s22  ;;  %v8505_v5 = vld [vmem:[%s9377_s24 + $0x24c] sm:$0xff] }
 0x538   : > { %v13238_v4 = vpop.permute.xlu1 %4472 }
 0x539   : > { %16445 = vst [vmem:[#allocation158_spill] sm:$0xff] %v13238_v4  ;;  %v13240_v25 = vpop.permute.xlu0 %4470  ;;  %v8504_v4 = vld [vmem:[%s9377_s24 + $0x244] sm:$0xff] }
 0x53a   : > { %16446 = vst [vmem:[#allocation66_spill] sm:$0xff] %v13240_v25  ;;  %4708 = vrot.lane.b32.xlu1 %v8501_v17, %s9317_s22 }
 0x53b   : > { %4706 = vrot.lane.b32.xlu0 %v8500_v36, %s9317_s22  ;;  %v8507_v36 = vld [vmem:[%s9377_s24 + $0x25c] sm:$0xff] }
 0x53c   : > { %v13246_v21 = vpop.permute.xlu1 %4476 }
 0x53d   : > { %16447 = vst [vmem:[#allocation67_spill] sm:$0xff] %v13246_v21  ;;  %v13248_v18 = vpop.permute.xlu0 %4474  ;;  %v8506_v21 = vld [vmem:[%s9377_s24 + $0x254] sm:$0xff] }
 0x53e   : > { %16448 = vst [vmem:[#allocation159_spill] sm:$0xff] %v13248_v18  ;;  %4712 = vrot.lane.b32.xlu1 %v8503_v61, %s9317_s22 }
 0x53f   : > { %4710 = vrot.lane.b32.xlu0 %v8502_v60, %s9317_s22  ;;  %v8545_v60 = vld [vmem:[%s9377_s24 + $0xf] sm:$0xff] }
 0x540   : > { %v13254_v25 = vpop.permute.xlu1 %4480 }
 0x541   : > { %16449 = vst [vmem:[#allocation176_spill] sm:$0xff] %v13254_v25  ;;  %v13256_v17 = vpop.permute.xlu0 %4478  ;;  %v8544_v25 = vld [vmem:[%s9377_s24 + $0x7] sm:$0xff] }
 0x542   : > { %16450 = vst [vmem:[#allocation198_spill] sm:$0xff] %v13256_v17  ;;  %4716 = vrot.lane.b32.xlu1 %v8505_v5, %s9317_s22 }
 0x543   : > { %4714 = vrot.lane.b32.xlu0 %v8504_v4, %s9317_s22  ;;  %v8547_v4 = vld [vmem:[%s9377_s24 + $0x1f] sm:$0xff] }
 0x544   : > { %v13262_v18 = vpop.permute.xlu1 %4544 }
 0x545   : > { %v13264_v61 = vpop.permute.xlu0 %4542 }
 0x546   : > { %4720 = vrot.lane.b32.xlu1 %v8507_v36, %s9317_s22 }
 0x547   : > { %4718 = vrot.lane.b32.xlu0 %v8506_v21, %s9317_s22  ;;  %v8549_v21 = vld [vmem:[%s9377_s24 + $0x2f] sm:$0xff] }
 0x548   : > { %v13270_v17 = vpop.permute.xlu1 %4548 }
 0x549   : > { %16451 = vst [vmem:[#allocation199_spill] sm:$0xff] %v13270_v17  ;;  %v13272_v5 = vpop.permute.xlu0 %4546  ;;  %v8276_v17 = vld [vmem:[%s9377_s24 + $0x7e] sm:$0xff] }
 0x54a   : > { %16452 = vst [vmem:[#allocation200_spill] sm:$0xff] %v13272_v5  ;;  %5593 = vrot.lane.b32.xlu1 %v8545_v60, %s9310_s25  ;;  %v8568_v5 = vld [vmem:[%s9377_s24 + $0xc7] sm:$0xff] }
 0x54b   : > { %5591 = vrot.lane.b32.xlu0 %v8544_v25, %s9310_s25  ;;  %v8551_v25 = vld [vmem:[%s9377_s24 + $0x3f] sm:$0xff] }
 0x54c   : > { %v13278_v55 = vpop.permute.xlu1 %4552 }
 0x54d   : > { %16453 = vst [vmem:[#allocation201_spill] sm:$0xff] %v13278_v55  ;;  %v13280_v36 = vpop.permute.xlu0 %4550  ;;  %v8273_v55 = vld [vmem:[%s9377_s24 + $0x66] sm:$0xff] }
 0x54e   : > { %16454 = vst [vmem:[#allocation202_spill] sm:$0xff] %v13280_v36  ;;  %5597 = vrot.lane.b32.xlu1 %v8547_v4, %s9310_s25  ;;  %v8270_v36 = vld [vmem:[%s9377_s24 + $0x4e] sm:$0xff] }
 0x54f   : > { %5595 = vrot.lane.b32.xlu0 %v8546_v26, %s9310_s25  ;;  %v8553_v26 = vld [vmem:[%s9377_s24 + $0x4f] sm:$0xff] }
 0x550   : > { %v13286_v53 = vpop.permute.xlu1 %4556 }
 0x551   : > { %16455 = vst [vmem:[#allocation203_spill] sm:$0xff] %v13286_v53  ;;  %v13288_v60 = vpop.permute.xlu0 %4554  ;;  %v8552_v53 = vld [vmem:[%s9377_s24 + $0x47] sm:$0xff] }
 0x552   : > { %16456 = vst [vmem:[#allocation204_spill] sm:$0xff] %v13288_v60  ;;  %5601 = vrot.lane.b32.xlu1 %v8549_v21, %s9310_s25 }
 0x553   : > { %5599 = vrot.lane.b32.xlu0 %v8548_v50, %s9310_s25  ;;  %v8555_v50 = vld [vmem:[%s9377_s24 + $0x5f] sm:$0xff] }
 0x554   : > { %v13294_v9 = vpop.permute.xlu1 %4560 }
 0x555   : > { %16457 = vst [vmem:[#allocation205_spill] sm:$0xff] %v13294_v9  ;;  %v13296_v4 = vpop.permute.xlu0 %4558  ;;  %v8554_v9 = vld [vmem:[%s9377_s24 + $0x57] sm:$0xff] }
 0x556   : > { %16458 = vst [vmem:[#allocation206_spill] sm:$0xff] %v13296_v4  ;;  %5605 = vrot.lane.b32.xlu1 %v8551_v25, %s9310_s25 }
 0x557   : > { %5603 = vrot.lane.b32.xlu0 %v8550_v8, %s9310_s25  ;;  %v8557_v8 = vld [vmem:[%s9377_s24 + $0x6f] sm:$0xff] }
 0x558   : > { %v13302_v60 = vpop.permute.xlu1 %4564 }
 0x559   : > { %16459 = vst [vmem:[#allocation207_spill] sm:$0xff] %v13302_v60  ;;  %v13304_v21 = vpop.permute.xlu0 %4562  ;;  %v8556_v60 = vld [vmem:[%s9377_s24 + $0x67] sm:$0xff] }
 0x55a   : > { %16460 = vst [vmem:[#allocation208_spill] sm:$0xff] %v13304_v21  ;;  %5609 = vrot.lane.b32.xlu1 %v8553_v26, %s9310_s25 }
 0x55b   : > { %5607 = vrot.lane.b32.xlu0 %v8552_v53, %s9310_s25  ;;  %v8559_v53 = vld [vmem:[%s9377_s24 + $0x7f] sm:$0xff] }
 0x55c   : > { %v13310_v4 = vpop.permute.xlu1 %4568 }
 0x55d   : > { %16461 = vst [vmem:[#allocation209_spill] sm:$0xff] %v13310_v4  ;;  %v13312_v25 = vpop.permute.xlu0 %4566  ;;  %v8558_v4 = vld [vmem:[%s9377_s24 + $0x77] sm:$0xff] }
 0x55e   : > { %16462 = vst [vmem:[#allocation210_spill] sm:$0xff] %v13312_v25  ;;  %5613 = vrot.lane.b32.xlu1 %v8555_v50, %s9310_s25 }
 0x55f   : > { %5611 = vrot.lane.b32.xlu0 %v8554_v9, %s9310_s25  ;;  %v8561_v9 = vld [vmem:[%s9377_s24 + $0x8f] sm:$0xff] }
 0x560   : > { %v13318_v21 = vpop.permute.xlu1 %4572 }
 0x561   : > { %16463 = vst [vmem:[#allocation211_spill] sm:$0xff] %v13318_v21  ;;  %v13320_v26 = vpop.permute.xlu0 %4570  ;;  %v8560_v21 = vld [vmem:[%s9377_s24 + $0x87] sm:$0xff] }
 0x562   : > { %16464 = vst [vmem:[#allocation212_spill] sm:$0xff] %v13320_v26  ;;  %5617 = vrot.lane.b32.xlu1 %v8557_v8, %s9310_s25 }
 0x563   : > { %5615 = vrot.lane.b32.xlu0 %v8556_v60, %s9310_s25  ;;  %v8563_v60 = vld [vmem:[%s9377_s24 + $0x9f] sm:$0xff] }
 0x564   : > { %v13326_v25 = vpop.permute.xlu1 %4576 }
 0x565   : > { %16465 = vst [vmem:[#allocation213_spill] sm:$0xff] %v13326_v25  ;;  %v13328_v50 = vpop.permute.xlu0 %4574  ;;  %v8268_v25 = vld [vmem:[%s9377_s24 + $0x3e] sm:$0xff] }
 0x566   : > { %16466 = vst [vmem:[#allocation214_spill] sm:$0xff] %v13328_v50  ;;  %5621 = vrot.lane.b32.xlu1 %v8559_v53, %s9310_s25  ;;  %v8562_v50 = vld [vmem:[%s9377_s24 + $0x97] sm:$0xff]  ;;  %v4752_v43 = vsel %vm1443_vm1, %v8268_v25, %v12557_v44 }
 0x567   : > { %5619 = vrot.lane.b32.xlu0 %v8558_v4, %s9310_s25 }
 0x568   : > { %v13334_v26 = vpop.permute.xlu1 %4580 }
 0x569   : > { %16467 = vst [vmem:[#allocation215_spill] sm:$0xff] %v13334_v26  ;;  %v13336_v8 = vpop.permute.xlu0 %4578 }
 0x56a   : > { %16468 = vst [vmem:[#allocation216_spill] sm:$0xff] %v13336_v8  ;;  %5625 = vrot.lane.b32.xlu1 %v8561_v9, %s9310_s25  ;;  %v8565_v8 = vld [vmem:[%s9377_s24 + $0xaf] sm:$0xff]  ;;  %v8564_v9 = vld [vmem:[%s9377_s24 + $0xa7] sm:$0xff] }
 0x56b   : > { %5623 = vrot.lane.b32.xlu0 %v8560_v21, %s9310_s25 }
 0x56c   : > { %v13342_v53 = vpop.permute.xlu1 %4584 }
 0x56d   : > { %16469 = vst [vmem:[#allocation217_spill] sm:$0xff] %v13342_v53  ;;  %v13344_v4 = vpop.permute.xlu0 %4582  ;;  %v8566_v53 = vld [vmem:[%s9377_s24 + $0xb7] sm:$0xff] }
 0x56e   : > { %16470 = vst [vmem:[#allocation218_spill] sm:$0xff] %v13344_v4  ;;  %5629 = vrot.lane.b32.xlu1 %v8563_v60, %s9310_s25  ;;  %v8567_v4 = vld [vmem:[%s9377_s24 + $0xbf] sm:$0xff] }
 0x56f   : > { %5627 = vrot.lane.b32.xlu0 %v8562_v50, %s9310_s25  ;;  %v8269_v60 = vld [vmem:[%s9377_s24 + $0x46] sm:$0xff]  ;;  %v8271_v50 = vld [vmem:[%s9377_s24 + $0x56] sm:$0xff] }
 0x570   : > { %v13350_v21 = vpop.permute.xlu1 %4588  ;;  %v4753_v12 = vsel %vm1443_vm1, %v8269_v60, %v12555_v24  ;;  %v8279_v24 = vld [vmem:[%s9377_s24 + $0x96] sm:$0xff]  ;;  %v8278_v60 = vld [vmem:[%s9377_s24 + $0x8e] sm:$0xff] }
 0x571   : > { %16471 = vst [vmem:[#allocation219_spill] sm:$0xff] %v13350_v21  ;;  %v13352_v26 = vpop.permute.xlu0 %4586  ;;  %v8272_v21 = vld [vmem:[%s9377_s24 + $0x5e] sm:$0xff] }
 0x572   : > { %16472 = vst [vmem:[#allocation220_spill] sm:$0xff] %v13352_v26  ;;  %5633 = vrot.lane.b32.xlu1 %v8565_v8, %s9310_s25  ;;  %v8275_v8 = vld [vmem:[%s9377_s24 + $0x76] sm:$0xff]  ;;  %v4756_v13 = vsel %vm1443_vm1, %v8272_v21, %v12573_v27 }
 0x573   : > { %5631 = vrot.lane.b32.xlu0 %v8564_v9, %s9310_s25  ;;  %v8274_v9 = vld [vmem:[%s9377_s24 + $0x6e] sm:$0xff]  ;;  %v4759_v44 = vsel %vm1443_vm1, %v8275_v8, %v12579_v38 }
 0x574   : > { %v13361_v58 = vpop.permute.xlu1 %4592  ;;  %v8282_v38 = vld [vmem:[%s9377_s24 + $0xae] sm:$0xff] }
 0x575   : > { %16473 = vst [vmem:[#allocation221_spill] sm:$0xff] %v13361_v58  ;;  %v13366_v26 = vpop.permute.xlu0 %4590  ;;  %v8277_v58 = vld [vmem:[%s9377_s24 + $0x86] sm:$0xff] }
 0x576   : > { %16474 = vst [vmem:[#allocation222_spill] sm:$0xff] %v13366_v26  ;;  %5637 = vrot.lane.b32.xlu1 %v8567_v4, %s9310_s25  ;;  %v4755_v26 = vsel %vm1443_vm1, %v8271_v50, %v12563_v2  ;;  %v4754_v4 = vsel %vm1443_vm1, %v8270_v36, %v12565_v1  ;;  %v13396_v2 = vsel %vm1443_vm1, %v8274_v9, %v12581_v46  ;;  %v8281_v1 = vld [vmem:[%s9377_s24 + $0xa6] sm:$0xff]  ;;  %v8280_v36 = vld [vmem:[%s9377_s24 + $0x9e] sm:$0xff]  ;;  %v8573_v50 = vld [vmem:[%s9377_s24 + $0xef] sm:$0xff] }
 0x577   : > { %5635 = vrot.lane.b32.xlu0 %v8566_v53, %s9310_s25  ;;  %v4757_v53 = vsel %vm1443_vm1, %v8273_v55, %v12571_v28  ;;  %v8283_v28 = vld [vmem:[%s9377_s24 + $0xb6] sm:$0xff]  ;;  %v4783_v55 = vsel %vm1474_vm2, %v4753_v12, %v12703_v35  ;;  %v13407_v27 = vsel %vm1443_vm1, %v8277_v58, %v12587_v37  ;;  %v4782_v46 = vsel %vm1474_vm2, %v4752_v43, %v12705_v10  ;;  %v8571_v10 = vld [vmem:[%s9377_s24 + $0xdf] sm:$0xff]  ;;  %v8572_v8 = vld [vmem:[%s9377_s24 + $0xe7] sm:$0xff] }
 0x578   : > { %v13388_v22 = vpop.permute.xlu1 %4596  ;;  %v4813_v21 = vsel %vm1505_vm3, %v4783_v55, %v12825_v41  ;;  %v13418_v35 = vsel %vm1443_vm1, %v8276_v17, %v12589_v47  ;;  %v13422_v12 = vsel %vm1443_vm1, %v8279_v24, %v12595_v49  ;;  %v13426_v37 = vsel %vm1443_vm1, %v8278_v60, %v12597_v54  ;;  %v8570_v41 = vld [vmem:[%s9377_s24 + $0xd7] sm:$0xff]  ;;  %v8285_v58 = vld [vmem:[%s9377_s24 + $0xc6] sm:$0xff] }
 0x579   : > { %v13403_v25 = vpop.permute.xlu0 %4594  ;;  %v4812_v43 = vsel %vm1505_vm3, %v4782_v46, %v12827_v59  ;;  %v13438_v47 = vsel %vm1443_vm1, %v8280_v36, %v12605_v23  ;;  %v13442_v49 = vsel %vm1443_vm1, %v8283_v28, %v12611_v20  ;;  %v4785_v54 = vsel %vm1474_vm2, %v4755_v26, %v12711_v52  ;;  %v8284_v9 = vld [vmem:[%s9377_s24 + $0xbe] sm:$0xff]  ;;  %v8574_v28 = vld [vmem:[%s9377_s24 + $0xe] sm:$0xff]  ;;  %v8287_v55 = vld [vmem:[%s9377_s24 + $0xd6] sm:$0xff] }
 0x57a   : > { %5641 = vrot.lane.b32.xlu1 %v8569_v32, %s9310_s25  ;;  %v13434_v32 = vsel %vm1443_vm1, %v8281_v1, %v12603_v33  ;;  %v13451_v33 = vsel %vm1443_vm1, %v8282_v38, %v12613_v56  ;;  %v4784_v23 = vsel %vm1474_vm2, %v4754_v4, %v12715_v16  ;;  %v4815_v20 = vsel %vm1505_vm3, %v4785_v54, %v12833_v7 }
 0x57b   : > { %5639 = vrot.lane.b32.xlu0 %v8568_v5, %s9310_s25  ;;  %v4843_v17 = vsel %vm1536_vm4, %v4813_v21, %v9905_v3  ;;  %v4814_v52 = vsel %vm1505_vm3, %v4784_v23, %v12835_v62  ;;  %v4842_v56 = vsel %vm1536_vm4, %v4812_v43, %v9907_v40  ;;  %v13471_v16 = vsel %vm1443_vm1, %v8285_v58, %v12619_v63  ;;  %v16476_v21 = vld [vmem:[#allocation105_spill] sm:$0xff]  ;;  %v16478_v43 = vld [vmem:[#allocation3_spill] sm:$0xff] }
 0x57c   : > { %v13447_v59 = vpop.permute.xlu1 %4600  ;;  %v4873_v26 = vsel %vm1567_vm5, %v4843_v17, %v12973_v45  ;;  %v4787_v7 = vsel %vm1474_vm2, %v4757_v53, %v12719_v42  ;;  %v4872_v62 = vsel %vm1567_vm5, %v4842_v56, %v12975_v6  ;;  %v4786_v4 = vsel %vm1474_vm2, %v4756_v13, %v12723_v34 }
 0x57d   : > { %v13459_v5 = vpop.permute.xlu0 %4598  ;;  %v4903_v45 = vsel %vm1598_vm6, %v4873_v26, %v13142_v48  ;;  %v4845_v24 = vsel %vm1536_vm4, %v4815_v20, %v16146_v0  ;;  %v4902_v63 = vsel %vm1598_vm6, %v4872_v62, %v13144_v51  ;;  %v4817_v48 = vsel %vm1505_vm3, %v4787_v7, %v12841_v15  ;;  %v16481_v20 = vld [vmem:[#allocation118_spill] sm:$0xff]  ;;  %v16483_v7 = vld [vmem:[#allocation27_spill] sm:$0xff] }
 0x57e   : > { %5645 = vrot.lane.b32.xlu1 %v8571_v10, %s9310_s25  ;;  %v4933_v42 = vsel %vm1629_vm7, %v4903_v45, %v13262_v18  ;;  %v4844_v6 = vsel %vm1536_vm4, %v4814_v52, %v16148_v30  ;;  %v4932_v13 = vsel %vm1629_vm7, %v4902_v63, %v13264_v61  ;;  %v4816_v51 = vsel %vm1505_vm3, %v4786_v4, %v12843_v39  ;;  %v16482_v52 = vld [vmem:[#allocation151_spill] sm:$0xff]  ;;  %v16484_v45 = vld [vmem:[#allocation48_spill] sm:$0xff]  ;;  %v16486_v4 = vld [vmem:[#allocation70_spill] sm:$0xff] }
 0x57f   : > { %5643 = vrot.lane.b32.xlu0 %v8570_v41, %s9310_s25  ;;  %v4875_v18 = vsel %vm1567_vm5, %v4845_v24, %v12985_v57  ;;  %v13506_v15 = vsel %vm1443_vm1, %v8284_v9, %v12621_v14  ;;  %v4789_v61 = vsel %vm1474_vm2, %v4759_v44, %v12727_v19  ;;  %v4874_v36 = vsel %vm1567_vm5, %v4844_v6, %v12987_v29  ;;  %v8575_v57 = vld [vmem:[%s9377_s24 + $0x16] sm:$0xff]  ;;  %v16475_v14 = vld [vmem:[#allocation74_spill] sm:$0xff]  ;;  %v16477_v44 = vld [vmem:[#allocation199_spill] sm:$0xff] }
 0x580   : > { %v4665_v53 = vpop.permute.xlu1 %4664  ;;  %v4905_v39 = vsel %vm1598_vm6, %v4875_v18, %v13148_v31  ;;  %v4788_v38 = vsel %vm1474_vm2, %v13396_v2, %v12731_v11  ;;  %v4847_v46 = vsel %vm1536_vm4, %v4817_v48, %v16475_v14  ;;  %v4904_v19 = vsel %vm1598_vm6, %v4874_v36, %v16476_v21  ;;  %v16479_v41 = vld [vmem:[#allocation75_spill] sm:$0xff]  ;;  %v16480_v2 = vld [vmem:[#allocation200_spill] sm:$0xff] }
 0x581   : > { %v4963_v34 = vsel %vm1660_vm8, %v4933_v42, %v4665_v53  ;;  %v4663_v60 = vpop.permute.xlu0 %4662  ;;  %v4935_v29 = vsel %vm1629_vm7, %v4905_v39, %v16477_v44  ;;  %v4819_v10 = vsel %vm1505_vm3, %v4789_v61, %v16478_v43  ;;  %v4846_v11 = vsel %vm1536_vm4, %v4816_v51, %v16479_v41  ;;  %v8577_v63 = vld [vmem:[%s9377_s24 + $0x26] sm:$0xff]  ;;  %v8576_v42 = vld [vmem:[%s9377_s24 + $0x1e] sm:$0xff]  ;;  %v8286_v53 = vld [vmem:[%s9377_s24 + $0xce] sm:$0xff] }
 0x582   : > { %v4962_v1 = vsel %vm1660_vm8, %v4932_v13, %v4663_v60  ;;  %5649 = vrot.lane.b32.xlu1 %v8573_v50, %s9310_s25  ;;  %v4934_v58 = vsel %vm1629_vm7, %v4904_v19, %v16480_v2  ;;  %v4818_v17 = vsel %vm1505_vm3, %v4788_v38, %v16481_v20  ;;  %v4877_v26 = vsel %vm1567_vm5, %v4847_v46, %v16482_v52  ;;  %v16487_v48 = vld [vmem:[#allocation116_spill] sm:$0xff]  ;;  %v16489_v60 = vld [vmem:[#allocation194_spill] sm:$0xff]  ;;  %v16490_v51 = vld [vmem:[#allocation201_spill] sm:$0xff] }
 0x583   : > { %5647 = vrot.lane.b32.xlu0 %v8572_v8, %s9310_s25  ;;  %9053 = vmatprep.mubr.msk.f32.mxu0 %vm1696_vm9, %v4962_v1  ;;  %v13544_v62 = vsel %vm1443_vm1, %v8287_v55, %v16483_v7  ;;  %v4791_v50 = vsel %vm1474_vm2, %v13407_v27, %v16484_v45  ;;  %v16485_v8 = vld [vmem:[#allocation55_spill] sm:$0xff]  ;;  %v4907_v24 = vsel %vm1598_vm6, %v4877_v26, %v16486_v4  ;;  %v16488_v13 = vld [vmem:[#allocation76_spill] sm:$0xff]  ;;  %v16491_v61 = vld [vmem:[#allocation125_spill] sm:$0xff] }
 0x584   : > { %9054 = vmatmul.mubr.msk.f32.vlgmr.msra.gmra.mrb[30].mxu0 %vm1696_vm9, %v4963_v34  ;;  %v4669_v31 = vpop.permute.xlu1 %4668  ;;  %v4876_v9 = vsel %vm1567_vm5, %v4846_v11, %v16485_v8  ;;  %v4790_v6 = vsel %vm1474_vm2, %v13418_v35, %v16487_v48  ;;  %v4849_v34 = vsel %vm1536_vm4, %v4819_v10, %v16488_v13  ;;  %v4937_v18 = vsel %vm1629_vm7, %v4907_v24, %v16490_v51  ;;  %v16492_v39 = vld [vmem:[#allocation77_spill] sm:$0xff]  ;;  %v16494_v46 = vld [vmem:[#allocation58_spill] sm:$0xff]  ;;  %v16500_v52 = vld [vmem:[#allocation43_spill] sm:$0xff] }
 0x585   : > { %v4965_v54 = vsel %vm1660_vm8, %v4935_v29, %v4669_v31  ;;  %v4667_v23 = vpop.permute.xlu0 %4666  ;;  %v4906_v27 = vsel %vm1598_vm6, %v4876_v9, %v16489_v60  ;;  %v4821_v36 = vsel %vm1505_vm3, %v4791_v50, %v16491_v61  ;;  %v4848_v35 = vsel %vm1536_vm4, %v4818_v17, %v16492_v39  ;;  %v16495_v19 = vld [vmem:[#allocation14_spill] sm:$0xff]  ;;  %v16496_v31 = vld [vmem:[#allocation16_spill] sm:$0xff]  ;;  %v16502_v45 = vld [vmem:[#allocation195_spill] sm:$0xff] }
 0x586   : > { %v4964_v56 = vsel %vm1660_vm8, %v4934_v58, %v4667_v23  ;;  %5713 = vrot.lane.b32.xlu1 %v8575_v57, %s9311_s26  ;;  %v16493_v57 = vld [vmem:[#allocation202_spill] sm:$0xff]  ;;  %v4820_v21 = vsel %vm1505_vm3, %v4790_v6, %v16494_v46  ;;  %v4879_v44 = vsel %vm1567_vm5, %v4849_v34, %v16495_v19  ;;  %v13583_v43 = vsel %vm1443_vm1, %v8286_v53, %v16496_v31  ;;  %v8579_v20 = vld [vmem:[%s9377_s24 + $0x36] sm:$0xff]  ;;  %v8578_v17 = vld [vmem:[%s9377_s24 + $0x2e] sm:$0xff] }
 0x587   : > { %5711 = vrot.lane.b32.xlu0 %v8574_v28, %s9311_s26  ;;  %9056 = vmatprep.mubr.msk.f32.mxu0 %vm1696_vm9, %v4964_v56  ;;  %v4936_v28 = vsel %vm1629_vm7, %v4906_v27, %v16493_v57  ;;  %v16497_v10 = vld [vmem:[#allocation130_spill] sm:$0xff]  ;;  %v4792_v26 = vsel %vm1474_vm2, %v13426_v37, %v16500_v52  ;;  %v16503_v50 = vld [vmem:[#allocation203_spill] sm:$0xff]  ;;  %v16504_v4 = vld [vmem:[#allocation37_spill] sm:$0xff] }
 0x588   : > { %9057 = vmatmul.mubr.msk.f32.gmra.mrb[32].mxu0 %vm1696_vm9, %v4965_v54  ;;  %v4673_v1 = vpop.permute.xlu1 %4672  ;;  %v4793_v11 = vsel %vm1474_vm2, %v13422_v12, %v16497_v10  ;;  %v16498_v2 = vld [vmem:[#allocation46_spill] sm:$0xff]  ;;  %v16507_v34 = vld [vmem:[#allocation180_spill] sm:$0xff]  ;;  %v16508_v27 = vld [vmem:[#allocation23_spill] sm:$0xff] }
 0x589   : > { %v4967_v55 = vsel %vm1660_vm8, %v4937_v18, %v4673_v1  ;;  %v4671_v38 = vpop.permute.xlu0 %4670  ;;  %v4878_v58 = vsel %vm1567_vm5, %v4848_v35, %v16498_v2  ;;  %v16499_v54 = vld [vmem:[#allocation142_spill] sm:$0xff]  ;;  %v4823_v24 = vsel %vm1505_vm3, %v4793_v11, %v16504_v4  ;;  %v4822_v60 = vsel %vm1505_vm3, %v4792_v26, %v16507_v34  ;;  %v16509_v61 = vld [vmem:[#allocation72_spill] sm:$0xff]  ;;  %v16510_v35 = vld [vmem:[#allocation117_spill] sm:$0xff] }
 0x58a   : > { %v4966_v29 = vsel %vm1660_vm8, %v4936_v28, %v4671_v38  ;;  %5717 = vrot.lane.b32.xlu1 %v8577_v63, %s9311_s26  ;;  %v4909_v23 = vsel %vm1598_vm6, %v4879_v44, %v16499_v54  ;;  %v16501_v56 = vld [vmem:[#allocation78_spill] sm:$0xff]  ;;  %v4908_v12 = vsel %vm1598_vm6, %v4878_v58, %v16502_v45  ;;  %v16505_v63 = vld [vmem:[#allocation79_spill] sm:$0xff]  ;;  %v4795_v57 = vsel %vm1474_vm2, %v13434_v32, %v16510_v35  ;;  %v16511_v28 = vld [vmem:[#allocation189_spill] sm:$0xff] }
 0x58b   : > { %5715 = vrot.lane.b32.xlu0 %v8576_v42, %s9311_s26  ;;  %9059 = vmatprep.mubr.msk.f32.mxu0 %vm1696_vm9, %v4966_v29  ;;  %v4851_v7 = vsel %vm1536_vm4, %v4821_v36, %v16501_v56  ;;  %v4939_v8 = vsel %vm1629_vm7, %v4909_v23, %v16503_v50  ;;  %v4850_v37 = vsel %vm1536_vm4, %v4820_v21, %v16505_v63  ;;  %v16506_v42 = vld [vmem:[#allocation204_spill] sm:$0xff]  ;;  %v9258_v1 = vld [vmem:[%s9377_s24 + $0xe6] sm:$0xff]  ;;  %v8580_v19 = vld [vmem:[%s9377_s24 + $0x3e] sm:$0xff] }
 0x58c   : > { %9060 = vmatmul.mubr.msk.f32.gmra.mrb[34].mxu0 %vm1696_vm9, %v4967_v55  ;;  %v4677_v9 = vpop.permute.xlu1 %4676  ;;  %v4938_v53 = vsel %vm1629_vm7, %v4908_v12, %v16506_v42  ;;  %v4881_v51 = vsel %vm1567_vm5, %v4851_v7, %v16508_v27  ;;  %v13622_v36 = vsel %vm1443_vm1, %v9258_v1, %v16509_v61  ;;  %v4880_v55 = vsel %vm1567_vm5, %v4850_v37, %v16511_v28  ;;  %v16512_v38 = vld [vmem:[#allocation143_spill] sm:$0xff]  ;;  %v16513_v44 = vld [vmem:[#allocation44_spill] sm:$0xff]  ;;  %v16516_v2 = vld [vmem:[#allocation205_spill] sm:$0xff] }
 0x58d   : > { %v4969_v48 = vsel %vm1660_vm8, %v4939_v8, %v4677_v9  ;;  %v4675_v6 = vpop.permute.xlu0 %4674  ;;  %v4911_v46 = vsel %vm1598_vm6, %v4881_v51, %v16512_v38  ;;  %v8581_v21 = vld [vmem:[%s9377_s24 + $0x46] sm:$0xff]  ;;  %v4794_v29 = vsel %vm1474_vm2, %v13438_v47, %v16513_v44  ;;  %v16514_v31 = vld [vmem:[#allocation80_spill] sm:$0xff]  ;;  %v16520_v12 = vld [vmem:[#allocation181_spill] sm:$0xff] }
 0x58e   : > { %v4968_v18 = vsel %vm1660_vm8, %v4938_v53, %v4675_v6  ;;  %5721 = vrot.lane.b32.xlu1 %v8579_v20, %s9311_s26  ;;  %v4853_v10 = vsel %vm1536_vm4, %v4823_v24, %v16514_v31  ;;  %v16515_v11 = vld [vmem:[#allocation35_spill] sm:$0xff]  ;;  %v4941_v58 = vsel %vm1629_vm7, %v4911_v46, %v16516_v2  ;;  %v16519_v52 = vld [vmem:[#allocation206_spill] sm:$0xff]  ;;  %v4824_v50 = vsel %vm1505_vm3, %v4794_v29, %v16520_v12  ;;  %v16521_v8 = vld [vmem:[#allocation100_spill] sm:$0xff] }
 0x58f   : > { %5719 = vrot.lane.b32.xlu0 %v8578_v17, %s9311_s26  ;;  %9062 = vmatprep.mubr.msk.f32.mxu0 %vm1696_vm9, %v4968_v18  ;;  %v4910_v32 = vsel %vm1598_vm6, %v4880_v55, %v16515_v11  ;;  %v16517_v23 = vld [vmem:[#allocation107_spill] sm:$0xff]  ;;  %v16518_v17 = vld [vmem:[#allocation81_spill] sm:$0xff]  ;;  %v4883_v9 = vsel %vm1567_vm5, %v4853_v10, %v16521_v8  ;;  %v16522_v37 = vld [vmem:[#allocation136_spill] sm:$0xff] }
 0x590   : > { %9063 = vmatmul.mubr.msk.f32.gmra.mrb[36].mxu0 %vm1696_vm9, %v4969_v48  ;;  %v4681_v54 = vpop.permute.xlu1 %4680  ;;  %v4825_v20 = vsel %vm1505_vm3, %v4795_v57, %v16517_v23  ;;  %v4852_v47 = vsel %vm1536_vm4, %v4822_v60, %v16518_v17  ;;  %v4940_v26 = vsel %vm1629_vm7, %v4910_v32, %v16519_v52  ;;  %v9259_v24 = vld [vmem:[%s9377_s24 + $0xde] sm:$0xff]  ;;  %v16524_v6 = vld [vmem:[#allocation164_spill] sm:$0xff]  ;;  %v16528_v28 = vld [vmem:[#allocation15_spill] sm:$0xff] }
 0x591   : > { %v4971_v7 = vsel %vm1660_vm8, %v4941_v58, %v4681_v54  ;;  %v4679_v45 = vpop.permute.xlu0 %4678  ;;  %v13661_v42 = vsel %vm1443_vm1, %v9259_v24, %v16522_v37  ;;  %v16523_v53 = vld [vmem:[#allocation166_spill] sm:$0xff]  ;;  %v4882_v34 = vsel %vm1567_vm5, %v4852_v47, %v16524_v6  ;;  %v16525_v60 = vld [vmem:[#allocation112_spill] sm:$0xff]  ;;  %v16526_v1 = vld [vmem:[#allocation177_spill] sm:$0xff] }
 0x592   : > { %v4970_v4 = vsel %vm1660_vm8, %v4940_v26, %v4679_v45  ;;  %5725 = vrot.lane.b32.xlu1 %v8581_v21, %s9311_s26  ;;  %v4797_v48 = vsel %vm1474_vm2, %v13442_v49, %v16523_v53  ;;  %v4913_v27 = vsel %vm1598_vm6, %v4883_v9, %v16525_v60  ;;  %v8583_v51 = vld [vmem:[%s9377_s24 + $0x56] sm:$0xff]  ;;  %v8582_v18 = vld [vmem:[%s9377_s24 + $0x4e] sm:$0xff]  ;;  %v4796_v61 = vsel %vm1474_vm2, %v13451_v33, %v16526_v1  ;;  %v16527_v35 = vld [vmem:[#allocation82_spill] sm:$0xff] }
 0x593   : > { %5723 = vrot.lane.b32.xlu0 %v8580_v19, %s9311_s26  ;;  %9065 = vmatprep.mubr.msk.f32.mxu0 %vm1696_vm9, %v4970_v4  ;;  %v4855_v57 = vsel %vm1536_vm4, %v4825_v20, %v16527_v35  ;;  %v4912_v49 = vsel %vm1598_vm6, %v4882_v34, %v16528_v28  ;;  %v16529_v55 = vld [vmem:[#allocation207_spill] sm:$0xff]  ;;  %v16530_v21 = vld [vmem:[#allocation21_spill] sm:$0xff]  ;;  %v16532_v29 = vld [vmem:[#allocation208_spill] sm:$0xff] }
 0x594   : > { %v4943_v38 = vsel %vm1629_vm7, %v4913_v27, %v16529_v55  ;;  %9066 = vmatmul.mubr.msk.f32.gmra.mrb[38].mxu0 %vm1696_vm9, %v4971_v7  ;;  %v4685_v46 = vpop.permute.xlu1 %4684  ;;  %v4827_v19 = vsel %vm1505_vm3, %v4797_v48, %v16530_v21  ;;  %v16531_v44 = vld [vmem:[#allocation83_spill] sm:$0xff]  ;;  %v4942_v10 = vsel %vm1629_vm7, %v4912_v49, %v16532_v29  ;;  %v16533_v2 = vld [vmem:[#allocation32_spill] sm:$0xff]  ;;  %v16534_v54 = vld [vmem:[#allocation165_spill] sm:$0xff] }
 0x595   : > { %v4854_v33 = vsel %vm1536_vm4, %v4824_v50, %v16531_v44  ;;  %v4973_v11 = vsel %vm1660_vm8, %v4943_v38, %v4685_v46  ;;  %v4683_v32 = vpop.permute.xlu0 %4682  ;;  %v4826_v58 = vsel %vm1505_vm3, %v4796_v61, %v16533_v2  ;;  %v4885_v23 = vsel %vm1567_vm5, %v4855_v57, %v16534_v54  ;;  %v9260_v47 = vld [vmem:[%s9377_s24 + $0xf6] sm:$0xff]  ;;  %v16536_v7 = vld [vmem:[#allocation167_spill] sm:$0xff]  ;;  %v8584_v24 = vld [vmem:[%s9377_s24 + $0x5e] sm:$0xff] }
 0x596   : > { %v4972_v20 = vsel %vm1660_vm8, %v4942_v10, %v4683_v32  ;;  %5729 = vrot.lane.b32.xlu1 %v8583_v51, %s9311_s26  ;;  %v16535_v52 = vld [vmem:[#allocation73_spill] sm:$0xff]  ;;  %v4799_v45 = vsel %vm1474_vm2, %v13471_v16, %v16536_v7  ;;  %v16537_v12 = vld [vmem:[#allocation39_spill] sm:$0xff]  ;;  %v16538_v8 = vld [vmem:[#allocation36_spill] sm:$0xff] }
 0x597   : > { %5727 = vrot.lane.b32.xlu0 %v8582_v18, %s9311_s26  ;;  %v13700_v26 = vsel %vm1443_vm1, %v9260_v47, %v16535_v52  ;;  %v4884_v50 = vsel %vm1567_vm5, %v4854_v33, %v16537_v12  ;;  %v4915_v9 = vsel %vm1598_vm6, %v4885_v23, %v16538_v8  ;;  %9068 = vmatprep.mubr.msk.f32.mxu0 %vm1696_vm9, %v4972_v20  ;;  %v8585_v4 = vld [vmem:[%s9377_s24 + $0x66] sm:$0xff]  ;;  %v16540_v48 = vld [vmem:[#allocation84_spill] sm:$0xff]  ;;  %v16542_v60 = vld [vmem:[#allocation209_spill] sm:$0xff] }
 0x598   : > { %v16539_v37 = vld [vmem:[#allocation146_spill] sm:$0xff]  ;;  %v4857_v6 = vsel %vm1536_vm4, %v4827_v19, %v16540_v48  ;;  %v16541_v34 = vld [vmem:[#allocation71_spill] sm:$0xff]  ;;  %v4945_v27 = vsel %vm1629_vm7, %v4915_v9, %v16542_v60  ;;  %9069 = vmatmul.mubr.msk.f32.gmra.mrb[40].mxu0 %vm1696_vm9, %v4973_v11  ;;  %v4689_v51 = vpop.permute.xlu1 %4688  ;;  %v16543_v18 = vld [vmem:[#allocation160_spill] sm:$0xff] }
 0x599   : > { %v4798_v53 = vsel %vm1474_vm2, %v13506_v15, %v16539_v37  ;;  %v4914_v16 = vsel %vm1598_vm6, %v4884_v50, %v16541_v34  ;;  %v4829_v1 = vsel %vm1505_vm3, %v4799_v45, %v16543_v18  ;;  %v16544_v61 = vld [vmem:[#allocation85_spill] sm:$0xff]  ;;  %v16545_v57 = vld [vmem:[#allocation210_spill] sm:$0xff]  ;;  %v4975_v49 = vsel %vm1660_vm8, %v4945_v27, %v4689_v51  ;;  %v4687_v55 = vpop.permute.xlu0 %4686  ;;  %v16547_v21 = vld [vmem:[#allocation191_spill] sm:$0xff] }
 0x59a   : > { %v4856_v15 = vsel %vm1536_vm4, %v4826_v58, %v16544_v61  ;;  %v4944_v28 = vsel %vm1629_vm7, %v4914_v16, %v16545_v57  ;;  %v16546_v38 = vld [vmem:[#allocation102_spill] sm:$0xff]  ;;  %v4887_v19 = vsel %vm1567_vm5, %v4857_v6, %v16547_v21  ;;  %5733 = vrot.lane.b32.xlu1 %v8585_v4, %s9311_s26  ;;  %v9261_v29 = vld [vmem:[%s9377_s24 + $0xee] sm:$0xff]  ;;  %v16548_v10 = vld [vmem:[#allocation137_spill] sm:$0xff] }
 0x59b   : > { %v4828_v46 = vsel %vm1505_vm3, %v4798_v53, %v16546_v38  ;;  %v4974_v33 = vsel %vm1660_vm8, %v4944_v28, %v4687_v55  ;;  %5731 = vrot.lane.b32.xlu0 %v8584_v24, %s9311_s26  ;;  %v4774_v11 = vsel %vm1443_vm1, %v9261_v29, %v16548_v10  ;;  %v16549_v32 = vld [vmem:[#allocation131_spill] sm:$0xff]  ;;  %v16550_v58 = vld [vmem:[#allocation52_spill] sm:$0xff]  ;;  %v16552_v7 = vld [vmem:[#allocation162_spill] sm:$0xff] }
 0x59c   : > { %v4801_v2 = vsel %vm1474_vm2, %v13544_v62, %v16549_v32  ;;  %v4886_v54 = vsel %vm1567_vm5, %v4856_v15, %v16550_v58  ;;  %v16551_v23 = vld [vmem:[#allocation19_spill] sm:$0xff]  ;;  %9071 = vmatprep.mubr.msk.f32.mxu0 %vm1696_vm9, %v4974_v33  ;;  %v8587_v47 = vld [vmem:[%s9377_s24 + $0x76] sm:$0xff]  ;;  %v4800_v45 = vsel %vm1474_vm2, %v13583_v43, %v16552_v7  ;;  %v16553_v12 = vld [vmem:[#allocation86_spill] sm:$0xff]  ;;  %v4693_v24 = vpop.permute.xlu1 %4692 }
 0x59d   : > { %v4917_v20 = vsel %vm1598_vm6, %v4887_v19, %v16551_v23  ;;  %v8586_v52 = vld [vmem:[%s9377_s24 + $0x6e] sm:$0xff]  ;;  %v4859_v50 = vsel %vm1536_vm4, %v4829_v1, %v16553_v12  ;;  %9072 = vmatmul.mubr.msk.f32.gmra.mrb[42].mxu0 %vm1696_vm9, %v4975_v49  ;;  %v4691_v27 = vpop.permute.xlu0 %4690  ;;  %v16559_v51 = vld [vmem:[#allocation154_spill] sm:$0xff]  ;;  %v16561_v49 = vld [vmem:[#allocation145_spill] sm:$0xff] }
 0x59e   : > { %v16554_v8 = vld [vmem:[#allocation20_spill] sm:$0xff]  ;;  %v16555_v9 = vld [vmem:[#allocation211_spill] sm:$0xff]  ;;  %v4830_v18 = vsel %vm1505_vm3, %v4800_v45, %v16559_v51  ;;  %5737 = vrot.lane.b32.xlu1 %v8587_v47, %s9311_s26  ;;  %v8588_v32 = vld [vmem:[%s9377_s24 + $0x7e] sm:$0xff] }
 0x59f   : > { %v4916_v62 = vsel %vm1598_vm6, %v4886_v54, %v16554_v8  ;;  %v4947_v4 = vsel %vm1629_vm7, %v4917_v20, %v16555_v9  ;;  %v16556_v37 = vld [vmem:[#allocation103_spill] sm:$0xff]  ;;  %v16558_v34 = vld [vmem:[#allocation212_spill] sm:$0xff]  ;;  %5735 = vrot.lane.b32.xlu0 %v8586_v52, %s9311_s26  ;;  %v16568_v47 = vld [vmem:[#allocation213_spill] sm:$0xff] }
 0x5a0   : > { %v4831_v53 = vsel %vm1505_vm3, %v4801_v2, %v16556_v37  ;;  %v16557_v6 = vld [vmem:[#allocation87_spill] sm:$0xff]  ;;  %v4946_v16 = vsel %vm1629_vm7, %v4916_v62, %v16558_v34  ;;  %v4977_v60 = vsel %vm1660_vm8, %v4947_v4, %v4693_v24  ;;  %v16560_v1 = vld [vmem:[#allocation4_spill] sm:$0xff]  ;;  %v16565_v2 = vld [vmem:[#allocation13_spill] sm:$0xff]  ;;  %v4697_v7 = vpop.permute.xlu1 %4696 }
 0x5a1   : > { %v4858_v43 = vsel %vm1536_vm4, %v4828_v46, %v16557_v6  ;;  %v4889_v15 = vsel %vm1567_vm5, %v4859_v50, %v16560_v1  ;;  %v4976_v57 = vsel %vm1660_vm8, %v4946_v16, %v4691_v27  ;;  %v9262_v28 = vld [vmem:[%s9377_s24 + $0x106] sm:$0xff]  ;;  %v16563_v21 = vld [vmem:[#allocation12_spill] sm:$0xff]  ;;  %v4802_v58 = vsel %vm1474_vm2, %v13661_v42, %v16565_v2  ;;  %v16570_v8 = vld [vmem:[#allocation89_spill] sm:$0xff]  ;;  %v4695_v24 = vpop.permute.xlu0 %4694 }
 0x5a2   : > { %v4777_v55 = vsel %vm1443_vm1, %v9262_v28, %v16561_v49  ;;  %v16562_v38 = vld [vmem:[#allocation147_spill] sm:$0xff]  ;;  %v4888_v19 = vsel %vm1567_vm5, %v4858_v43, %v16563_v21  ;;  %v16564_v33 = vld [vmem:[#allocation128_spill] sm:$0xff]  ;;  %9074 = vmatprep.mubr.msk.f32.mxu0 %vm1696_vm9, %v4976_v57  ;;  %v4860_v42 = vsel %vm1536_vm4, %v4830_v18, %v16570_v8  ;;  %v16571_v62 = vld [vmem:[#allocation214_spill] sm:$0xff] }
 0x5a3   : > { %v4803_v46 = vsel %vm1474_vm2, %v13622_v36, %v16562_v38  ;;  %v4919_v29 = vsel %vm1598_vm6, %v4889_v15, %v16564_v33  ;;  %v8589_v10 = vld [vmem:[%s9377_s24 + $0x86] sm:$0xff]  ;;  %v16566_v54 = vld [vmem:[#allocation88_spill] sm:$0xff]  ;;  %9075 = vmatmul.mubr.msk.f32.gmra.mrb[44].mxu0 %vm1696_vm9, %v4977_v60  ;;  %5739 = vrot.lane.b32.xlu0 %v8588_v32, %s9311_s26  ;;  %v9263_v60 = vld [vmem:[%s9377_s24 + $0xfe] sm:$0xff] }
 0x5a4   : > { %v4861_v23 = vsel %vm1536_vm4, %v4831_v53, %v16566_v54  ;;  %v16567_v20 = vld [vmem:[#allocation196_spill] sm:$0xff]  ;;  %v4949_v52 = vsel %vm1629_vm7, %v4919_v29, %v16568_v47  ;;  %v16569_v45 = vld [vmem:[#allocation183_spill] sm:$0xff]  ;;  %v16572_v37 = vld [vmem:[#allocation138_spill] sm:$0xff]  ;;  %5741 = vrot.lane.b32.xlu1 %v8589_v10, %s9311_s26 }
 0x5a5   : > { %v4918_v36 = vsel %vm1598_vm6, %v4888_v19, %v16567_v20  ;;  %v4833_v50 = vsel %vm1505_vm3, %v4803_v46, %v16569_v45  ;;  %v4979_v4 = vsel %vm1660_vm8, %v4949_v52, %v4697_v7  ;;  %v4832_v53 = vsel %vm1505_vm3, %v4802_v58, %v16572_v37  ;;  %v16573_v43 = vld [vmem:[#allocation40_spill] sm:$0xff]  ;;  %v16574_v27 = vld [vmem:[#allocation41_spill] sm:$0xff]  ;;  %v16575_v18 = vld [vmem:[#allocation163_spill] sm:$0xff]  ;;  %v4701_v58 = vpop.permute.xlu1 %4700  ;;  %v4699_v45 = vpop.permute.xlu0 %4698 }
 0x5a6   : > { %v4948_v9 = vsel %vm1629_vm7, %v4918_v36, %v16571_v62  ;;  %v4891_v34 = vsel %vm1567_vm5, %v4861_v23, %v16573_v43  ;;  %v4776_v51 = vsel %vm1443_vm1, %v9263_v60, %v16574_v27  ;;  %v4805_v1 = vsel %vm1474_vm2, %v13700_v26, %v16575_v18  ;;  %v16576_v15 = vld [vmem:[#allocation59_spill] sm:$0xff]  ;;  %v16577_v28 = vld [vmem:[#allocation197_spill] sm:$0xff]  ;;  %v16578_v21 = vld [vmem:[#allocation124_spill] sm:$0xff] }
 0x5a7   : > { %v4978_v16 = vsel %vm1660_vm8, %v4948_v9, %v4695_v24  ;;  %v4890_v57 = vsel %vm1567_vm5, %v4860_v42, %v16576_v15  ;;  %v4921_v49 = vsel %vm1598_vm6, %v4891_v34, %v16577_v28  ;;  %v8591_v38 = vld [vmem:[%s9377_s24 + $0x96] sm:$0xff]  ;;  %v8590_v46 = vld [vmem:[%s9377_s24 + $0x8e] sm:$0xff]  ;;  %v4804_v19 = vsel %vm1474_vm2, %v4774_v11, %v16578_v21  ;;  %v16579_v33 = vld [vmem:[#allocation90_spill] sm:$0xff] }
 0x5a8   : > { %9077 = vmatprep.mubr.msk.f32.mxu0 %vm1696_vm9, %v4978_v16  ;;  %v4863_v29 = vsel %vm1536_vm4, %v4833_v50, %v16579_v33  ;;  %v16580_v10 = vld [vmem:[#allocation171_spill] sm:$0xff]  ;;  %v16582_v23 = vld [vmem:[#allocation17_spill] sm:$0xff]  ;;  %v16584_v47 = vld [vmem:[#allocation216_spill] sm:$0xff]  ;;  %5745 = vrot.lane.b32.xlu1 %v8591_v38, %s9311_s26 }
 0x5a9   : > { %v4920_v26 = vsel %vm1598_vm6, %v4890_v57, %v16580_v10  ;;  %v16581_v32 = vld [vmem:[#allocation215_spill] sm:$0xff]  ;;  %9078 = vmatmul.mubr.msk.f32.gmra.mrb[46].mxu0 %vm1696_vm9, %v4979_v4  ;;  %v4835_v20 = vsel %vm1505_vm3, %v4805_v1, %v16582_v23  ;;  %v16585_v50 = vld [vmem:[#allocation172_spill] sm:$0xff]  ;;  %5743 = vrot.lane.b32.xlu0 %v8590_v46, %s9311_s26  ;;  %v16588_v43 = vld [vmem:[#allocation178_spill] sm:$0xff] }
 0x5aa   : > { %v4951_v2 = vsel %vm1629_vm7, %v4921_v49, %v16581_v32  ;;  %v16583_v36 = vld [vmem:[#allocation91_spill] sm:$0xff]  ;;  %v4950_v52 = vsel %vm1629_vm7, %v4920_v26, %v16584_v47  ;;  %v4834_v42 = vsel %vm1505_vm3, %v4804_v19, %v16585_v50  ;;  %v16586_v62 = vld [vmem:[#allocation156_spill] sm:$0xff]  ;;  %v4807_v34 = vsel %vm1474_vm2, %v4777_v55, %v16588_v43  ;;  %v8592_v15 = vld [vmem:[%s9377_s24 + $0x9e] sm:$0xff] }
 0x5ab   : > { %v4862_v11 = vsel %vm1536_vm4, %v4832_v53, %v16583_v36  ;;  %v4981_v7 = vsel %vm1660_vm8, %v4951_v2, %v4701_v58  ;;  %v4893_v9 = vsel %vm1567_vm5, %v4863_v29, %v16586_v62  ;;  %v4980_v4 = vsel %vm1660_vm8, %v4950_v52, %v4699_v45  ;;  %v9264_v24 = vld [vmem:[%s9377_s24 + $0x116] sm:$0xff]  ;;  %v8593_v1 = vld [vmem:[%s9377_s24 + $0xa6] sm:$0xff]  ;;  %v4705_v29 = vpop.permute.xlu1 %4704  ;;  %v9265_v50 = vld [vmem:[%s9377_s24 + $0x10e] sm:$0xff] }
 0x5ac   : > { %v16587_v37 = vld [vmem:[#allocation132_spill] sm:$0xff]  ;;  %9080 = vmatprep.mubr.msk.f32.mxu0 %vm1696_vm9, %v4980_v4  ;;  %v16591_v57 = vld [vmem:[#allocation5_spill] sm:$0xff]  ;;  %v16597_v2 = vld [vmem:[#allocation218_spill] sm:$0xff]  ;;  %5749 = vrot.lane.b32.xlu1 %v8593_v1, %s9311_s26 }
 0x5ad   : > { %v4779_v53 = vsel %vm1443_vm1, %v9264_v24, %v16587_v37  ;;  %v16589_v16 = vld [vmem:[#allocation192_spill] sm:$0xff]  ;;  %v4806_v28 = vsel %vm1474_vm2, %v4776_v51, %v16591_v57  ;;  %v16594_v21 = vld [vmem:[#allocation217_spill] sm:$0xff]  ;;  %9081 = vmatmul.mubr.msk.f32.gmra.mrb[48].mxu0 %vm1696_vm9, %v4981_v7  ;;  %v16599_v52 = vld [vmem:[#allocation110_spill] sm:$0xff]  ;;  %5747 = vrot.lane.b32.xlu0 %v8592_v15, %s9311_s26 }
 0x5ae   : > { %v4892_v60 = vsel %vm1567_vm5, %v4862_v11, %v16589_v16  ;;  %v16590_v27 = vld [vmem:[#allocation152_spill] sm:$0xff]  ;;  %v16596_v32 = vld [vmem:[#allocation93_spill] sm:$0xff]  ;;  %v16605_v1 = vld [vmem:[#allocation94_spill] sm:$0xff] }
 0x5af   : > { %v4923_v18 = vsel %vm1598_vm6, %v4893_v9, %v16590_v27  ;;  %v16592_v49 = vld [vmem:[#allocation92_spill] sm:$0xff]  ;;  %v4864_v51 = vsel %vm1536_vm4, %v4834_v42, %v16596_v32  ;;  %v16601_v9 = vld [vmem:[#allocation179_spill] sm:$0xff]  ;;  %v16602_v24 = vld [vmem:[#allocation193_spill] sm:$0xff] }
 0x5b0   : > { %v4865_v38 = vsel %vm1536_vm4, %v4835_v20, %v16592_v49  ;;  %v16593_v46 = vld [vmem:[#allocation8_spill] sm:$0xff]  ;;  %v4953_v19 = vsel %vm1629_vm7, %v4923_v18, %v16594_v21  ;;  %v4703_v20 = vpop.permute.xlu0 %4702  ;;  %v4809_v4 = vsel %vm1474_vm2, %v4779_v53, %v16601_v9  ;;  %v4894_v37 = vsel %vm1567_vm5, %v4864_v51, %v16602_v24  ;;  %v16603_v43 = vld [vmem:[#allocation153_spill] sm:$0xff]  ;;  %v16604_v27 = vld [vmem:[#allocation106_spill] sm:$0xff] }
 0x5b1   : > { %v4922_v55 = vsel %vm1598_vm6, %v4892_v60, %v16593_v46  ;;  %v16595_v10 = vld [vmem:[#allocation68_spill] sm:$0xff]  ;;  %v4983_v23 = vsel %vm1660_vm8, %v4953_v19, %v4705_v29  ;;  %v4895_v7 = vsel %vm1567_vm5, %v4865_v38, %v16599_v52  ;;  %v16606_v57 = vld [vmem:[#allocation129_spill] sm:$0xff]  ;;  %v4709_v46 = vpop.permute.xlu1 %4708  ;;  %v16609_v19 = vld [vmem:[#allocation95_spill] sm:$0xff] }
 0x5b2   : > { %v4837_v26 = vsel %vm1505_vm3, %v4807_v34, %v16595_v10  ;;  %v4952_v58 = vsel %vm1629_vm7, %v4922_v55, %v16597_v2  ;;  %v16598_v11 = vld [vmem:[#allocation184_spill] sm:$0xff]  ;;  %v4925_v34 = vsel %vm1598_vm6, %v4895_v7, %v16603_v43  ;;  %v4924_v53 = vsel %vm1598_vm6, %v4894_v37, %v16606_v57  ;;  %v16608_v55 = vld [vmem:[#allocation49_spill] sm:$0xff]  ;;  %v16615_v9 = vld [vmem:[#allocation122_spill] sm:$0xff] }
 0x5b3   : > { %v4836_v47 = vsel %vm1505_vm3, %v4806_v28, %v16598_v11  ;;  %v4982_v45 = vsel %vm1660_vm8, %v4952_v58, %v4703_v20  ;;  %v16600_v42 = vld [vmem:[#allocation56_spill] sm:$0xff]  ;;  %v4867_v15 = vsel %vm1536_vm4, %v4837_v26, %v16605_v1  ;;  %v16607_v28 = vld [vmem:[#allocation219_spill] sm:$0xff]  ;;  %v4839_v21 = vsel %vm1505_vm3, %v4809_v4, %v16608_v55  ;;  %v16611_v58 = vld [vmem:[#allocation121_spill] sm:$0xff] }
 0x5b4   : > { %v4778_v62 = vsel %vm1443_vm1, %v9265_v50, %v16600_v42  ;;  %9083 = vmatprep.mubr.msk.f32.mxu0 %vm1696_vm9, %v4982_v45  ;;  %v8595_v16 = vld [vmem:[%s9377_s24 + $0xb6] sm:$0xff]  ;;  %v8594_v60 = vld [vmem:[%s9377_s24 + $0xae] sm:$0xff]  ;;  %v4955_v38 = vsel %vm1629_vm7, %v4925_v34, %v16607_v28  ;;  %v4866_v29 = vsel %vm1536_vm4, %v4836_v47, %v16609_v19  ;;  %v4707_v2 = vpop.permute.xlu0 %4706  ;;  %v9266_v47 = vld [vmem:[%s9377_s24 + $0x126] sm:$0xff] }
 0x5b5   : > { %v4808_v18 = vsel %vm1474_vm2, %v4778_v62, %v16604_v27  ;;  %9084 = vmatmul.mubr.msk.f32.gmra.mrb[50].mxu0 %vm1696_vm9, %v4983_v23  ;;  %v16610_v10 = vld [vmem:[#allocation220_spill] sm:$0xff]  ;;  %v4985_v51 = vsel %vm1660_vm8, %v4955_v38, %v4709_v46  ;;  %v16612_v11 = vld [vmem:[#allocation111_spill] sm:$0xff]  ;;  %5753 = vrot.lane.b32.xlu1 %v8595_v16, %s9311_s26  ;;  %v16613_v7 = vld [vmem:[#allocation133_spill] sm:$0xff]  ;;  %v4896_v4 = vsel %vm1567_vm5, %v4866_v29, %v16615_v9  ;;  %v4713_v38 = vpop.permute.xlu1 %4712 }
 0x5b6   : > { %v4954_v26 = vsel %vm1629_vm7, %v4924_v53, %v16610_v10  ;;  %v4838_v20 = vsel %vm1505_vm3, %v4808_v18, %v16611_v58  ;;  %v4897_v23 = vsel %vm1567_vm5, %v4867_v15, %v16612_v11  ;;  %5751 = vrot.lane.b32.xlu0 %v8594_v60, %s9311_s26  ;;  %v4781_v45 = vsel %vm1443_vm1, %v9266_v47, %v16613_v7  ;;  %v9267_v50 = vld [vmem:[%s9377_s24 + $0x11e] sm:$0xff]  ;;  %v16614_v42 = vld [vmem:[#allocation47_spill] sm:$0xff]  ;;  %v16621_v46 = vld [vmem:[#allocation96_spill] sm:$0xff] }
 0x5b7   : > { %v4984_v52 = vsel %vm1660_vm8, %v4954_v26, %v4707_v2  ;;  %v4780_v62 = vsel %vm1443_vm1, %v9267_v50, %v16614_v42  ;;  %v16616_v24 = vld [vmem:[#allocation158_spill] sm:$0xff]  ;;  %v16620_v53 = vld [vmem:[#allocation221_spill] sm:$0xff]  ;;  %v4869_v55 = vsel %vm1536_vm4, %v4839_v21, %v16621_v46  ;;  %v16625_v47 = vld [vmem:[#allocation115_spill] sm:$0xff] }
 0x5b8   : > { %v4927_v37 = vsel %vm1598_vm6, %v4897_v23, %v16616_v24  ;;  %9086 = vmatprep.mubr.msk.f32.mxu0 %vm1696_vm9, %v4984_v52  ;;  %v8597_v43 = vld [vmem:[%s9377_s24 + $0xc6] sm:$0xff]  ;;  %v8596_v34 = vld [vmem:[%s9377_s24 + $0xbe] sm:$0xff]  ;;  %v4711_v11 = vpop.permute.xlu0 %4710  ;;  %v8599_v9 = vld [vmem:[%s9377_s24 + $0xd6] sm:$0xff] }
 0x5b9   : > { %v16617_v16 = vld [vmem:[#allocation10_spill] sm:$0xff]  ;;  %v4957_v28 = vsel %vm1629_vm7, %v4927_v37, %v16620_v53  ;;  %9087 = vmatmul.mubr.msk.f32.gmra.mrb[52].mxu0 %vm1696_vm9, %v4985_v51  ;;  %v16622_v29 = vld [vmem:[#allocation97_spill] sm:$0xff]  ;;  %v4899_v51 = vsel %vm1567_vm5, %v4869_v55, %v16625_v47  ;;  %5757 = vrot.lane.b32.xlu1 %v8597_v43, %s9311_s26  ;;  %v16628_v42 = vld [vmem:[#allocation67_spill] sm:$0xff] }
 0x5ba   : > { %v4811_v60 = vsel %vm1474_vm2, %v4781_v45, %v16617_v16  ;;  %v16618_v27 = vld [vmem:[#allocation42_spill] sm:$0xff]  ;;  %v4868_v10 = vsel %vm1536_vm4, %v4838_v20, %v16622_v29  ;;  %v4987_v58 = vsel %vm1660_vm8, %v4957_v28, %v4713_v38  ;;  %v16624_v23 = vld [vmem:[#allocation33_spill] sm:$0xff]  ;;  %5755 = vrot.lane.b32.xlu0 %v8596_v34, %s9311_s26  ;;  %v16627_v45 = vld [vmem:[#allocation104_spill] sm:$0xff]  ;;  %v4717_v34 = vpop.permute.xlu1 %4716 }
 0x5bb   : > { %v4810_v18 = vsel %vm1474_vm2, %v4780_v62, %v16618_v27  ;;  %v16619_v15 = vld [vmem:[#allocation66_spill] sm:$0xff]  ;;  %v4841_v52 = vsel %vm1505_vm3, %v4811_v60, %v16624_v23  ;;  %v16626_v21 = vld [vmem:[#allocation69_spill] sm:$0xff]  ;;  %v4898_v50 = vsel %vm1567_vm5, %v4868_v10, %v16627_v45  ;;  %v4929_v62 = vsel %vm1598_vm6, %v4899_v51, %v16628_v42  ;;  %v16629_v24 = vld [vmem:[#allocation159_spill] sm:$0xff] }
 0x5bc   : > { %v4926_v57 = vsel %vm1598_vm6, %v4896_v4, %v16619_v15  ;;  %v16623_v26 = vld [vmem:[#allocation222_spill] sm:$0xff]  ;;  %v4840_v20 = vsel %vm1505_vm3, %v4810_v18, %v16626_v21  ;;  %v8598_v4 = vld [vmem:[%s9377_s24 + $0xce] sm:$0xff]  ;;  %v4928_v37 = vsel %vm1598_vm6, %v4898_v50, %v16629_v24  ;;  %v4959_v43 = vsel %vm1629_vm7, %v4929_v62, %v13388_v22  ;;  %v4715_v15 = vpop.permute.xlu0 %4714  ;;  %v16633_v55 = vld [vmem:[#allocation157_spill] sm:$0xff] }
 0x5bd   : > { %v4956_v2 = vsel %vm1629_vm7, %v4926_v57, %v16623_v26  ;;  %v16630_v16 = vld [vmem:[#allocation98_spill] sm:$0xff]  ;;  %v4958_v27 = vsel %vm1629_vm7, %v4928_v37, %v13403_v25  ;;  %v4989_v18 = vsel %vm1660_vm8, %v4959_v43, %v4717_v34  ;;  %v16631_v57 = vld [vmem:[#allocation123_spill] sm:$0xff]  ;;  %5761 = vrot.lane.b32.xlu1 %v8599_v9, %s9311_s26  ;;  %v16634_v26 = vld [vmem:[#allocation176_spill] sm:$0xff] }
 0x5be   : > { %v4986_v7 = vsel %vm1660_vm8, %v4956_v2, %v4711_v11  ;;  %v4871_v60 = vsel %vm1536_vm4, %v4841_v52, %v16630_v16  ;;  %v16632_v28 = vld [vmem:[#allocation99_spill] sm:$0xff]  ;;  %v4988_v22 = vsel %vm1660_vm8, %v4958_v27, %v4715_v15  ;;  %5759 = vrot.lane.b32.xlu0 %v8598_v4, %s9311_s26  ;;  %v16635_v11 = vld [vmem:[#allocation198_spill] sm:$0xff]  ;;  %v4721_v47 = vpop.permute.xlu1 %4720  ;;  %v8604_v62 = vld [vmem:[%s9377_s24 + $0xd2] sm:$0xff] }
 0x5bf   : > { %9089 = vmatprep.mubr.msk.f32.mxu0 %vm1696_vm9, %v4986_v7  ;;  %v4901_v53 = vsel %vm1567_vm5, %v4871_v60, %v16631_v57  ;;  %v4870_v38 = vsel %vm1536_vm4, %v4840_v20, %v16632_v28  ;;  %v8601_v2 = vld [vmem:[%s9377_s24 + $0xe6] sm:$0xff]  ;;  %v8602_v45 = vld [vmem:[%s9377_s24 + $0xee] sm:$0xff]  ;;  %v8605_v42 = vld [vmem:[%s9377_s24 + $0xda] sm:$0xff] }
 0x5c0   : > { %9090 = vmatmul.mubr.msk.f32.gmra.mrb[54].mxu0 %vm1696_vm9, %v4987_v58  ;;  %v4900_v10 = vsel %vm1567_vm5, %v4870_v38, %v16633_v55  ;;  %v4931_v25 = vsel %vm1598_vm6, %v4901_v53, %v16634_v26  ;;  %v8600_v58 = vld [vmem:[%s9377_s24 + $0xde] sm:$0xff]  ;;  %v4719_v21 = vpop.permute.xlu0 %4718  ;;  %v8607_v24 = vld [vmem:[%s9377_s24 + $0xea] sm:$0xff]  ;;  %v8608_v27 = vld [vmem:[%s9377_s24 + $0xf2] sm:$0xff] }
 0x5c1   : > { %9092 = vmatprep.mubr.msk.f32.mxu0 %vm1696_vm9, %v4988_v22  ;;  %v4930_v23 = vsel %vm1598_vm6, %v4900_v10, %v16635_v11  ;;  %v4961_v52 = vsel %vm1629_vm7, %v4931_v25, %v13447_v59  ;;  %5765 = vrot.lane.b32.xlu1 %v8601_v2, %s9311_s26  ;;  %v8603_v59 = vld [vmem:[%s9377_s24 + $0xf6] sm:$0xff]  ;;  %v8606_v37 = vld [vmem:[%s9377_s24 + $0xe2] sm:$0xff]  ;;  %v8611_v57 = vld [vmem:[%s9377_s24 + $0x10a] sm:$0xff] }
 0x5c2   : > { %v4960_v51 = vsel %vm1629_vm7, %v4930_v23, %v13459_v5  ;;  %v4991_v7 = vsel %vm1660_vm8, %v4961_v52, %v4721_v47  ;;  %5763 = vrot.lane.b32.xlu0 %v8600_v58, %s9311_s26  ;;  %v14000_v50 = vpop.permute.xlu1 %5593  ;;  %v8609_v60 = vld [vmem:[%s9377_s24 + $0xfa] sm:$0xff]  ;;  %v8610_v53 = vld [vmem:[%s9377_s24 + $0x102] sm:$0xff]  ;;  %v8612_v10 = vld [vmem:[%s9377_s24 + $0x112] sm:$0xff] }
 0x5c3   : > { %v4990_v20 = vsel %vm1660_vm8, %v4960_v51, %v4719_v21  ;;  %v8613_v55 = vld [vmem:[%s9377_s24 + $0x11a] sm:$0xff]  ;;  %v8615_v2 = vld [vmem:[%s9377_s24 + $0x12a] sm:$0xff]  ;;  %v8614_v58 = vld [vmem:[%s9377_s24 + $0x122] sm:$0xff] }
 0x5c4   : > { %9093 = vmatmul.mubr.msk.f32.gmra.mrb[56].mxu0 %vm1696_vm9, %v4989_v18  ;;  %v14002_v5 = vpop.permute.xlu0 %5591  ;;  %v8617_v52 = vld [vmem:[%s9377_s24 + $0x13a] sm:$0xff]  ;;  %v8616_v47 = vld [vmem:[%s9377_s24 + $0x132] sm:$0xff]  ;;  %v8619_v21 = vld [vmem:[%s9377_s24 + $0x14a] sm:$0xff] }
 0x5c5   : > { %9095 = vmatprep.mubr.msk.f32.mxu0 %vm1696_vm9, %v4990_v20  ;;  %5769 = vrot.lane.b32.xlu1 %v8603_v59, %s9311_s26  ;;  %v8618_v20 = vld [vmem:[%s9377_s24 + $0x142] sm:$0xff]  ;;  %v14122_v16 = vld [vmem:[%s9377_s24 + $0x1b2] sm:$0xff] }
 0x5c6   : > { %5767 = vrot.lane.b32.xlu0 %v8602_v45, %s9311_s26  ;;  %v14008_v9 = vpop.permute.xlu1 %5597  ;;  %v8637_v46 = vld [vmem:[%s9377_s24 + $0xf8] sm:$0xff]  ;;  %v8636_v29 = vld [vmem:[%s9377_s24 + $0xf0] sm:$0xff]  ;;  %v8639_v1 = vld [vmem:[%s9377_s24 + $0x108] sm:$0xff] }
 0x5c7   : > { %v8638_v19 = vld [vmem:[%s9377_s24 + $0x100] sm:$0xff]  ;;  %v8756_v36 = vld [vmem:[%s15592_s1 + $0x88] sm:$0xff]  ;;  %v8758_v8 = vld [vmem:[%s15592_s1 + $0x98] sm:$0xf] }
 0x5c8   : > { %9096 = vmatmul.mubr.msk.f32.gmra.mrb[58].mxu0 %vm1696_vm9, %v4991_v7  ;;  %v14010_v4 = vpop.permute.xlu0 %5595  ;;  %v8701_v6 = vld [vmem:[%s9377_s24 + $0x1e3] sm:$0xff]  ;;  %v8703_v61 = vld [vmem:[%s9377_s24 + $0x1f3] sm:$0xff] }
 0x5c9   : > { %5833 = vrot.lane.b32.xlu1 %v8605_v42, %s9312_s27  ;;  %v8621_v42 = vld [vmem:[%s9377_s24 + $0x15a] sm:$0xff] }
 0x5ca   : > { %5831 = vrot.lane.b32.xlu0 %v8604_v62, %s9312_s27  ;;  %v14016_v43 = vpop.permute.xlu1 %5601  ;;  %v8620_v62 = vld [vmem:[%s9377_s24 + $0x152] sm:$0xff] }
 0x5cc   : > { %v14018_v34 = vpop.permute.xlu0 %5599 }
 0x5cd   : > { %5837 = vrot.lane.b32.xlu1 %v8607_v24, %s9312_s27 }
 0x5ce   : > { %5835 = vrot.lane.b32.xlu0 %v8606_v37, %s9312_s27  ;;  %v14024_v18 = vpop.permute.xlu1 %5605 }
 0x5d0   : > { %v14026_v15 = vpop.permute.xlu0 %5603 }
 0x5d1   : > { %5841 = vrot.lane.b32.xlu1 %v8609_v60, %s9312_s27  ;;  %v8623_v60 = vld [vmem:[%s9377_s24 + $0x16a] sm:$0xff] }
 0x5d2   : > { %5839 = vrot.lane.b32.xlu0 %v8608_v27, %s9312_s27  ;;  %v14032_v38 = vpop.permute.xlu1 %5609  ;;  %v8622_v27 = vld [vmem:[%s9377_s24 + $0x162] sm:$0xff] }
 0x5d4   : > { %v14034_v22 = vpop.permute.xlu0 %5607 }
 0x5d5   : > { %5845 = vrot.lane.b32.xlu1 %v8611_v57, %s9312_s27 }
 0x5d6   : > { %5843 = vrot.lane.b32.xlu0 %v8610_v53, %s9312_s27  ;;  %v14040_v26 = vpop.permute.xlu1 %5613 }
 0x5d7   : > { %16636 = vst [vmem:[#allocation74_spill] sm:$0xff] %v14040_v26 }
 0x5d8   : > { %v14042_v25 = vpop.permute.xlu0 %5611 }
 0x5d9   : > { %5849 = vrot.lane.b32.xlu1 %v8613_v55, %s9312_s27  ;;  %v8625_v55 = vld [vmem:[%s9377_s24 + $0x17a] sm:$0xff] }
 0x5da   : > { %5847 = vrot.lane.b32.xlu0 %v8612_v10, %s9312_s27  ;;  %v14048_v11 = vpop.permute.xlu1 %5617  ;;  %v8624_v10 = vld [vmem:[%s9377_s24 + $0x172] sm:$0xff] }
 0x5db   : > { %16637 = vst [vmem:[#allocation105_spill] sm:$0xff] %v14048_v11 }
 0x5dc   : > { %v14050_v23 = vpop.permute.xlu0 %5615 }
 0x5dd   : > { %16638 = vst [vmem:[#allocation199_spill] sm:$0xff] %v14050_v23  ;;  %5853 = vrot.lane.b32.xlu1 %v8615_v2, %s9312_s27 }
 0x5de   : > { %5851 = vrot.lane.b32.xlu0 %v8614_v58, %s9312_s27  ;;  %v14056_v51 = vpop.permute.xlu1 %5621 }
 0x5df   : > { %16639 = vst [vmem:[#allocation3_spill] sm:$0xff] %v14056_v51 }
 0x5e0   : > { %v14058_v7 = vpop.permute.xlu0 %5619 }
 0x5e1   : > { %16640 = vst [vmem:[#allocation75_spill] sm:$0xff] %v14058_v7  ;;  %5857 = vrot.lane.b32.xlu1 %v8617_v52, %s9312_s27  ;;  %v8627_v52 = vld [vmem:[%s9377_s24 + $0x18a] sm:$0xff] }
 0x5e2   : > { %5855 = vrot.lane.b32.xlu0 %v8616_v47, %s9312_s27  ;;  %v14064_v59 = vpop.permute.xlu1 %5625  ;;  %v8626_v47 = vld [vmem:[%s9377_s24 + $0x182] sm:$0xff] }
 0x5e3   : > { %16641 = vst [vmem:[#allocation200_spill] sm:$0xff] %v14064_v59  ;;  %v8731_v59 = vld [vmem:[%s9377_s24 + $0x1ea] sm:$0xff] }
 0x5e4   : > { %v14066_v45 = vpop.permute.xlu0 %5623 }
 0x5e5   : > { %16642 = vst [vmem:[#allocation118_spill] sm:$0xff] %v14066_v45  ;;  %5861 = vrot.lane.b32.xlu1 %v8619_v21, %s9312_s27  ;;  %v8673_v45 = vld [vmem:[%s9377_s24 + $0x1ec] sm:$0xff] }
 0x5e6   : > { %5859 = vrot.lane.b32.xlu0 %v8618_v20, %s9312_s27  ;;  %v14072_v24 = vpop.permute.xlu1 %5629 }
 0x5e7   : > { %16643 = vst [vmem:[#allocation151_spill] sm:$0xff] %v14072_v24 }
 0x5e8   : > { %v14074_v37 = vpop.permute.xlu0 %5627 }
 0x5e9   : > { %16644 = vst [vmem:[#allocation27_spill] sm:$0xff] %v14074_v37  ;;  %5865 = vrot.lane.b32.xlu1 %v8621_v42, %s9312_s27  ;;  %v8629_v42 = vld [vmem:[%s9377_s24 + $0x19a] sm:$0xff] }
 0x5ea   : > { %5863 = vrot.lane.b32.xlu0 %v8620_v62, %s9312_s27  ;;  %v14080_v57 = vpop.permute.xlu1 %5633  ;;  %v8628_v62 = vld [vmem:[%s9377_s24 + $0x192] sm:$0xff] }
 0x5eb   : > { %16645 = vst [vmem:[#allocation48_spill] sm:$0xff] %v14080_v57  ;;  %v8757_v57 = vld [vmem:[%s15592_s1 + $0x90] sm:$0xff] }
 0x5ec   : > { %v14082_v53 = vpop.permute.xlu0 %5631 }
 0x5ed   : > { %16646 = vst [vmem:[#allocation55_spill] sm:$0xff] %v14082_v53  ;;  %5869 = vrot.lane.b32.xlu1 %v8623_v60, %s9312_s27 }
 0x5ee   : > { %5867 = vrot.lane.b32.xlu0 %v8622_v27, %s9312_s27  ;;  %v14088_v2 = vpop.permute.xlu1 %5637 }
 0x5ef   : > { %16647 = vst [vmem:[#allocation70_spill] sm:$0xff] %v14088_v2 }
 0x5f0   : > { %v14090_v58 = vpop.permute.xlu0 %5635 }
 0x5f1   : > { %16648 = vst [vmem:[#allocation116_spill] sm:$0xff] %v14090_v58  ;;  %5873 = vrot.lane.b32.xlu1 %v8625_v55, %s9312_s27  ;;  %v8631_v55 = vld [vmem:[%s9377_s24 + $0x1aa] sm:$0xff] }
 0x5f2   : > { %5871 = vrot.lane.b32.xlu0 %v8624_v10, %s9312_s27  ;;  %v14096_v21 = vpop.permute.xlu1 %5641  ;;  %v8630_v10 = vld [vmem:[%s9377_s24 + $0x1a2] sm:$0xff] }
 0x5f3   : > { %16649 = vst [vmem:[#allocation76_spill] sm:$0xff] %v14096_v21 }
 0x5f4   : > { %v14098_v20 = vpop.permute.xlu0 %5639 }
 0x5f5   : > { %16650 = vst [vmem:[#allocation194_spill] sm:$0xff] %v14098_v20  ;;  %5877 = vrot.lane.b32.xlu1 %v8627_v52, %s9312_s27 }
 0x5f6   : > { %5875 = vrot.lane.b32.xlu0 %v8626_v47, %s9312_s27  ;;  %v14104_v60 = vpop.permute.xlu1 %5645  ;;  %v14119_v47 = vld [vmem:[%s9377_s24 + $0x1ba] sm:$0xff] }
 0x5f7   : > { %16651 = vst [vmem:[#allocation201_spill] sm:$0xff] %v14104_v60 }
 0x5f8   : > { %v14106_v27 = vpop.permute.xlu0 %5643 }
 0x5f9   : > { %16652 = vst [vmem:[#allocation125_spill] sm:$0xff] %v14106_v27  ;;  %5881 = vrot.lane.b32.xlu1 %v8629_v42, %s9312_s27 }
 0x5fa   : > { %5879 = vrot.lane.b32.xlu0 %v8628_v62, %s9312_s27  ;;  %v14112_v28 = vpop.permute.xlu1 %5649 }
 0x5fb   : > { %16653 = vst [vmem:[#allocation77_spill] sm:$0xff] %v14112_v28 }
 0x5fc   : > { %v14114_v52 = vpop.permute.xlu0 %5647 }
 0x5fd   : > { %16654 = vst [vmem:[#allocation202_spill] sm:$0xff] %v14114_v52  ;;  %5885 = vrot.lane.b32.xlu1 %v8631_v55, %s9312_s27  ;;  %v5336_v55 = vld [vmem:[%s9377_s24 + $0xe8] sm:$0xff] }
 0x5fe   : > { %5883 = vrot.lane.b32.xlu0 %v8630_v10, %s9312_s27  ;;  %v14124_v42 = vpop.permute.xlu1 %5713  ;;  %v5335_v10 = vld [vmem:[%s9377_s24 + $0xe0] sm:$0xff] }
 0x600   : > { %v14126_v62 = vpop.permute.xlu0 %5711 }
 0x601   : > { %5889 = vrot.lane.b32.xlu1 %v14119_v47, %s9312_s27 }
 0x602   : > { %5887 = vrot.lane.b32.xlu0 %v14122_v16, %s9312_s27  ;;  %v14132_v52 = vpop.permute.xlu1 %5717 }
 0x604   : > { %v14136_v28 = vpop.permute.xlu0 %5715 }
 0x605   : > { %5953 = vrot.lane.b32.xlu1 %v5336_v55, %s9314_s29  ;;  %v8641_v55 = vld [vmem:[%s9377_s24 + $0x118] sm:$0xff] }
 0x606   : > { %5951 = vrot.lane.b32.xlu0 %v5335_v10, %s9314_s29  ;;  %v14142_v60 = vpop.permute.xlu1 %5721  ;;  %v8640_v10 = vld [vmem:[%s9377_s24 + $0x110] sm:$0xff] }
 0x608   : > { %v14144_v27 = vpop.permute.xlu0 %5719 }
 0x609   : > { %5957 = vrot.lane.b32.xlu1 %v8637_v46, %s9314_s29  ;;  %v8643_v46 = vld [vmem:[%s9377_s24 + $0x128] sm:$0xff] }
 0x60a   : > { %5955 = vrot.lane.b32.xlu0 %v8636_v29, %s9314_s29  ;;  %v14150_v21 = vpop.permute.xlu1 %5725  ;;  %v8642_v29 = vld [vmem:[%s9377_s24 + $0x120] sm:$0xff] }
 0x60c   : > { %v14152_v20 = vpop.permute.xlu0 %5723 }
 0x60d   : > { %5961 = vrot.lane.b32.xlu1 %v8639_v1, %s9314_s29  ;;  %v8754_v1 = vld [vmem:[%s15592_s1 + $0x78] sm:$0xff] }
 0x60e   : > { %5959 = vrot.lane.b32.xlu0 %v8638_v19, %s9314_s29  ;;  %v14158_v49 = vpop.permute.xlu1 %5729  ;;  %v8755_v19 = vld [vmem:[%s15592_s1 + $0x80] sm:$0xff] }
 0x60f   : > { %v9177_v58 = vpack.c.bf16 %v8755_v19, %v8754_v1  ;;  %v9181_v1 = vpack.c.bf16 %v8757_v57, %v8756_v36  ;;  %v8646_v19 = vld [vmem:[%s9377_s24 + $0x140] sm:$0xff]  ;;  %v8694_v36 = vld [vmem:[%s9377_s24 + $0x1ab] sm:$0xff] }
 0x610   : > { %v14160_v32 = vpop.permute.xlu0 %5727  ;;  %v8665_v57 = vld [vmem:[%s9377_s24 + $0x1ac] sm:$0xff] }
 0x611   : > { %5965 = vrot.lane.b32.xlu1 %v8641_v55, %s9314_s29  ;;  %v8645_v55 = vld [vmem:[%s9377_s24 + $0x138] sm:$0xff]  ;;  %9178 = vmatprep.subr.bf16.mxu1 %v9177_v58 }
 0x612   : > { %5963 = vrot.lane.b32.xlu0 %v8640_v10, %s9314_s29  ;;  %v14172_v2 = vpop.permute.xlu1 %5733  ;;  %v8644_v10 = vld [vmem:[%s9377_s24 + $0x130] sm:$0xff]  ;;  %9180 = vmatpush3.bf16.msra.mxu1 %v9177_v58 }
 0x613   : > { %16655 = vst [vmem:[#allocation58_spill] sm:$0xff] %v14172_v2  ;;  %9182 = vmatprep.subr.bf16.mxu1 %v9181_v1  ;;  %v5307_v2 = vld [vmem:[%s9377_s24] sm:$0xff] }
 0x614   : > { %v14174_v33 = vpop.permute.xlu0 %5731  ;;  %v6401_v17 = vsel %vm1443_vm1, %v5307_v2, %v14002_v5  ;;  %v8653_v5 = vld [vmem:[%s9377_s24 + $0x178] sm:$0xff] }
 0x615   : > { %5969 = vrot.lane.b32.xlu1 %v8643_v46, %s9314_s29  ;;  %v8741_v2 = vld [vmem:[%s9377_s24 + $0x23a] sm:$0xff] }
 0x616   : > { %5967 = vrot.lane.b32.xlu0 %v8642_v29, %s9314_s29  ;;  %v14186_v53 = vpop.permute.xlu1 %5737  ;;  %v8664_v29 = vld [vmem:[%s9377_s24 + $0x1a4] sm:$0xff]  ;;  %9184 = vmatpush3.bf16.msra.mxu1 %v9181_v1  ;;  %v8695_v1 = vld [vmem:[%s9377_s24 + $0x1b3] sm:$0xff] }
 0x617   : > { %16656 = vst [vmem:[#allocation14_spill] sm:$0xff] %v14186_v53  ;;  %9106 = vmatprep.subr.msk.mxu1 %vm1787_vm0, %v8758_v8 }
 0x618   : > { %v14188_v46 = vpop.permute.xlu0 %5735 }
 0x619   : > { %16657 = vst [vmem:[#allocation16_spill] sm:$0xff] %v14188_v46  ;;  %5973 = vrot.lane.b32.xlu1 %v8645_v55, %s9314_s29 }
 0x61a   : > { %5971 = vrot.lane.b32.xlu0 %v8644_v10, %s9314_s29  ;;  %v14194_v54 = vpop.permute.xlu1 %5741  ;;  %9107 = vmatpush3.msk.msra.mxu1 %vm1787_vm0, %v8758_v8 }
 0x61b   : > { %16658 = vst [vmem:[#allocation130_spill] sm:$0xff] %v14194_v54 }
 0x61c   : > { %v14199_v58 = vpop.permute.xlu0 %5739 }
 0x61d   : > { %16659 = vst [vmem:[#allocation46_spill] sm:$0xff] %v14199_v58  ;;  %6071 = vrot.lane.b32.xlu1 %v8664_v29, %s9315_s30 }
 0x61e   : > { %5975 = vrot.lane.b32.xlu0 %v8646_v19, %s9314_s29  ;;  %v14206_v55 = vpop.permute.xlu1 %5745  ;;  %v8666_v19 = vld [vmem:[%s9377_s24 + $0x1b4] sm:$0xff] }
 0x61f   : > { %16660 = vst [vmem:[#allocation142_spill] sm:$0xff] %v14206_v55 }
 0x620   : > { %v14209_v10 = vpop.permute.xlu0 %5743 }
 0x621   : > { %16661 = vst [vmem:[#allocation43_spill] sm:$0xff] %v14209_v10  ;;  %6191 = vrot.lane.b32.xlu1 %v8694_v36, %s9316_s4  ;;  %v8696_v36 = vld [vmem:[%s9377_s24 + $0x1bb] sm:$0xff] }
 0x622   : > { %6073 = vrot.lane.b32.xlu0 %v8665_v57, %s9315_s30  ;;  %v14214_v24 = vpop.permute.xlu1 %5749  ;;  %v8667_v57 = vld [vmem:[%s9377_s24 + $0x1bc] sm:$0xff] }
 0x623   : > { %16662 = vst [vmem:[#allocation78_spill] sm:$0xff] %v14214_v24 }
 0x624   : > { %v14216_v29 = vpop.permute.xlu0 %5747 }
 0x625   : > { %16663 = vst [vmem:[#allocation195_spill] sm:$0xff] %v14216_v29  ;;  %6311 = vrot.lane.b32.xlu1 %v14122_v16, %s9317_s22  ;;  %v8671_v29 = vld [vmem:[%s9377_s24 + $0x1dc] sm:$0xff] }
 0x626   : > { %6193 = vrot.lane.b32.xlu0 %v8695_v1, %s9316_s4  ;;  %v8726_v1 = vld [vmem:[%s9377_s24 + $0x1c2] sm:$0xff] }
 0x627   : > { %v14222_v8 = vpop.permute.xlu1 %5753 }
 0x628   : > { %16664 = vst [vmem:[#allocation203_spill] sm:$0xff] %v14222_v8  ;;  %v14224_v37 = vpop.permute.xlu0 %5751  ;;  %v8697_v8 = vld [vmem:[%s9377_s24 + $0x1c3] sm:$0xff] }
 0x629   : > { %16665 = vst [vmem:[#allocation37_spill] sm:$0xff] %v14224_v37  ;;  %6075 = vrot.lane.b32.xlu1 %v8666_v19, %s9315_s30 }
 0x62a   : > { %6313 = vrot.lane.b32.xlu0 %v14119_v47, %s9317_s22  ;;  %v8668_v47 = vld [vmem:[%s9377_s24 + $0x1c4] sm:$0xff] }
 0x62b   : > { %v14231_v24 = vpop.permute.xlu1 %5757 }
 0x62c   : > { %16666 = vst [vmem:[#allocation79_spill] sm:$0xff] %v14231_v24  ;;  %v14233_v16 = vpop.permute.xlu0 %5755  ;;  %v8727_v24 = vld [vmem:[%s9377_s24 + $0x1ca] sm:$0xff] }
 0x62d   : > { %16667 = vst [vmem:[#allocation204_spill] sm:$0xff] %v14233_v16  ;;  %6195 = vrot.lane.b32.xlu1 %v8696_v36, %s9316_s4 }
 0x62e   : > { %6077 = vrot.lane.b32.xlu0 %v8667_v57, %s9315_s30  ;;  %v8698_v57 = vld [vmem:[%s9377_s24 + $0x1cb] sm:$0xff] }
 0x62f   : > { %v14239_v37 = vpop.permute.xlu1 %5761 }
 0x630   : > { %16668 = vst [vmem:[#allocation180_spill] sm:$0xff] %v14239_v37  ;;  %v14241_v19 = vpop.permute.xlu0 %5759  ;;  %v8669_v37 = vld [vmem:[%s9377_s24 + $0x1cc] sm:$0xff] }
 0x631   : > { %16669 = vst [vmem:[#allocation23_spill] sm:$0xff] %v14241_v19  ;;  %6315 = vrot.lane.b32.xlu1 %v8726_v1, %s9317_s22 }
 0x632   : > { %6197 = vrot.lane.b32.xlu0 %v8697_v8, %s9316_s4  ;;  %v8728_v8 = vld [vmem:[%s9377_s24 + $0x1d2] sm:$0xff] }
 0x633   : > { %v14247_v16 = vpop.permute.xlu1 %5765 }
 0x634   : > { %16670 = vst [vmem:[#allocation72_spill] sm:$0xff] %v14247_v16  ;;  %v14249_v36 = vpop.permute.xlu0 %5763  ;;  %v8699_v16 = vld [vmem:[%s9377_s24 + $0x1d3] sm:$0xff] }
 0x635   : > { %16671 = vst [vmem:[#allocation117_spill] sm:$0xff] %v14249_v36  ;;  %6079 = vrot.lane.b32.xlu1 %v8668_v47, %s9315_s30 }
 0x636   : > { %6317 = vrot.lane.b32.xlu0 %v8727_v24, %s9317_s22  ;;  %v8670_v24 = vld [vmem:[%s9377_s24 + $0x1d4] sm:$0xff] }
 0x637   : > { %v14255_v19 = vpop.permute.xlu1 %5769 }
 0x638   : > { %16672 = vst [vmem:[#allocation189_spill] sm:$0xff] %v14255_v19  ;;  %v14257_v1 = vpop.permute.xlu0 %5767  ;;  %v8729_v19 = vld [vmem:[%s9377_s24 + $0x1da] sm:$0xff] }
 0x639   : > { %16673 = vst [vmem:[#allocation143_spill] sm:$0xff] %v14257_v1  ;;  %6199 = vrot.lane.b32.xlu1 %v8698_v57, %s9316_s4 }
 0x63a   : > { %6081 = vrot.lane.b32.xlu0 %v8669_v37, %s9315_s30  ;;  %v8700_v37 = vld [vmem:[%s9377_s24 + $0x1db] sm:$0xff] }
 0x63b   : > { %v14263_v36 = vpop.permute.xlu1 %5833 }
 0x63c   : > { %v14265_v47 = vpop.permute.xlu0 %5831 }
 0x63d   : > { %6319 = vrot.lane.b32.xlu1 %v8728_v8, %s9317_s22 }
 0x63e   : > { %6201 = vrot.lane.b32.xlu0 %v8699_v16, %s9316_s4  ;;  %v8730_v16 = vld [vmem:[%s9377_s24 + $0x1e2] sm:$0xff] }
 0x63f   : > { %v14271_v1 = vpop.permute.xlu1 %5837 }
 0x640   : > { %v14273_v57 = vpop.permute.xlu0 %5835 }
 0x641   : > { %6083 = vrot.lane.b32.xlu1 %v8670_v24, %s9315_s30 }
 0x642   : > { %6321 = vrot.lane.b32.xlu0 %v8729_v19, %s9317_s22  ;;  %v8672_v19 = vld [vmem:[%s9377_s24 + $0x1e4] sm:$0xff] }
 0x643   : > { %v14279_v12 = vpop.permute.xlu1 %5841 }
 0x644   : > { %v14281_v8 = vpop.permute.xlu0 %5839 }
 0x645   : > { %6203 = vrot.lane.b32.xlu1 %v8700_v37, %s9316_s4 }
 0x646   : > { %6085 = vrot.lane.b32.xlu0 %v8671_v29, %s9315_s30  ;;  %v8702_v29 = vld [vmem:[%s9377_s24 + $0x1eb] sm:$0xff] }
 0x647   : > { %v14287_v55 = vpop.permute.xlu1 %5845 }
 0x648   : > { %v14289_v24 = vpop.permute.xlu0 %5843 }
 0x649   : > { %6323 = vrot.lane.b32.xlu1 %v8730_v16, %s9317_s22 }
 0x64a   : > { %6205 = vrot.lane.b32.xlu0 %v8701_v6, %s9316_s4  ;;  %v8732_v6 = vld [vmem:[%s9377_s24 + $0x1f2] sm:$0xff] }
 0x64b   : > { %v14295_v10 = vpop.permute.xlu1 %5849 }
 0x64c   : > { %v14297_v37 = vpop.permute.xlu0 %5847 }
 0x64d   : > { %6087 = vrot.lane.b32.xlu1 %v8672_v19, %s9315_s30  ;;  %v8733_v19 = vld [vmem:[%s9377_s24 + $0x1fa] sm:$0xff] }
 0x64e   : > { %6325 = vrot.lane.b32.xlu0 %v8731_v59, %s9317_s22  ;;  %v8674_v59 = vld [vmem:[%s9377_s24 + $0x1f4] sm:$0xff] }
 0x64f   : > { %v14303_v48 = vpop.permute.xlu1 %5853 }
 0x650   : > { %16674 = vst [vmem:[#allocation44_spill] sm:$0xff] %v14303_v48  ;;  %v14305_v16 = vpop.permute.xlu0 %5851 }
 0x651   : > { %16675 = vst [vmem:[#allocation35_spill] sm:$0xff] %v14305_v16  ;;  %6207 = vrot.lane.b32.xlu1 %v8702_v29, %s9316_s4  ;;  %v8675_v29 = vld [vmem:[%s9377_s24 + $0x1fc] sm:$0xff]  ;;  %v5308_v16 = vld [vmem:[%s9377_s24 + $0x8] sm:$0xff] }
 0x652   : > { %6089 = vrot.lane.b32.xlu0 %v8673_v45, %s9315_s30  ;;  %v8704_v45 = vld [vmem:[%s9377_s24 + $0x1fb] sm:$0xff] }
 0x653   : > { %v14311_v54 = vpop.permute.xlu1 %5857 }
 0x654   : > { %16676 = vst [vmem:[#allocation205_spill] sm:$0xff] %v14311_v54  ;;  %v14313_v51 = vpop.permute.xlu0 %5855 }
 0x655   : > { %16677 = vst [vmem:[#allocation107_spill] sm:$0xff] %v14313_v51  ;;  %6327 = vrot.lane.b32.xlu1 %v8732_v6, %s9317_s22 }
 0x656   : > { %6209 = vrot.lane.b32.xlu0 %v8703_v61, %s9316_s4 }
 0x657   : > { %v14319_v58 = vpop.permute.xlu1 %5861  ;;  %v14333_v61 = vpop.f32.mrb[30].mxu0 }
 0x658   : > { %16678 = vst [vmem:[#allocation206_spill] sm:$0xff] %v14319_v58  ;;  %v14321_v7 = vpop.permute.xlu0 %5859  ;;  %16682 = vst [vmem:[#allocation166_spill] sm:$0xff] %v14333_v61  ;;  %v8734_v58 = vld [vmem:[%s9377_s24 + $0x202] sm:$0xff] }
 0x659   : > { %16679 = vst [vmem:[#allocation181_spill] sm:$0xff] %v14321_v7  ;;  %6091 = vrot.lane.b32.xlu1 %v8674_v59, %s9315_s30  ;;  %v8705_v7 = vld [vmem:[%s9377_s24 + $0x203] sm:$0xff]  ;;  %v14337_v59 = vpop.f32.mrb[31].mxu0 }
 0x65a   : > { %6329 = vrot.lane.b32.xlu0 %v8733_v19, %s9317_s22  ;;  %16683 = vst [vmem:[#allocation164_spill] sm:$0xff] %v14337_v59 }
 0x65b   : > { %v14327_v35 = vpop.permute.xlu1 %5865 }
 0x65c   : > { %16680 = vst [vmem:[#allocation100_spill] sm:$0xff] %v14327_v35  ;;  %v14329_v6 = vpop.permute.xlu0 %5863  ;;  %v14345_v35 = vpop.f32.mrb[32].mxu0 }
 0x65d   : > { %16681 = vst [vmem:[#allocation136_spill] sm:$0xff] %v14329_v6  ;;  %6211 = vrot.lane.b32.xlu1 %v8704_v45, %s9316_s4  ;;  %16686 = vst [vmem:[#allocation15_spill] sm:$0xff] %v14345_v35  ;;  %v8647_v45 = vld [vmem:[%s9377_s24 + $0x148] sm:$0xff]  ;;  %v14349_v61 = vpop.f32.mrb[33].mxu0 }
 0x65e   : > { %6093 = vrot.lane.b32.xlu0 %v8675_v29, %s9315_s30  ;;  %v8735_v29 = vld [vmem:[%s9377_s24 + $0x20a] sm:$0xff]  ;;  %16687 = vst [vmem:[#allocation207_spill] sm:$0xff] %v14349_v61 }
 0x65f   : > { %v14339_v19 = vpop.permute.xlu1 %5869  ;;  %v14357_v59 = vpop.f32.mrb[34].mxu0 }
 0x660   : > { %16684 = vst [vmem:[#allocation112_spill] sm:$0xff] %v14339_v19  ;;  %v14341_v54 = vpop.permute.xlu0 %5867  ;;  %16690 = vst [vmem:[#allocation32_spill] sm:$0xff] %v14357_v59  ;;  %v14361_v35 = vpop.f32.mrb[35].mxu0 }
 0x661   : > { %16685 = vst [vmem:[#allocation177_spill] sm:$0xff] %v14341_v54  ;;  %6331 = vrot.lane.b32.xlu1 %v8734_v58, %s9317_s22  ;;  %v8677_v58 = vld [vmem:[%s9377_s24 + $0x20c] sm:$0xff]  ;;  %16691 = vst [vmem:[#allocation165_spill] sm:$0xff] %v14361_v35 }
 0x662   : > { %6213 = vrot.lane.b32.xlu0 %v8705_v7, %s9316_s4  ;;  %v8676_v7 = vld [vmem:[%s9377_s24 + $0x204] sm:$0xff] }
 0x663   : > { %v14351_v6 = vpop.permute.xlu1 %5873  ;;  %v14369_v61 = vpop.f32.mrb[36].mxu0 }
 0x664   : > { %16688 = vst [vmem:[#allocation21_spill] sm:$0xff] %v14351_v6  ;;  %v14353_v44 = vpop.permute.xlu0 %5871  ;;  %16694 = vst [vmem:[#allocation39_spill] sm:$0xff] %v14369_v61  ;;  %v14373_v59 = vpop.f32.mrb[37].mxu0 }
 0x665   : > { %16689 = vst [vmem:[#allocation208_spill] sm:$0xff] %v14353_v44  ;;  %5977 = vrot.lane.b32.xlu1 %v8647_v45, %s9314_s29  ;;  %v8707_v45 = vld [vmem:[%s9377_s24 + $0x213] sm:$0xff]  ;;  %16695 = vst [vmem:[#allocation36_spill] sm:$0xff] %v14373_v59 }
 0x666   : > { %6333 = vrot.lane.b32.xlu0 %v8735_v29, %s9317_s22  ;;  %v8706_v29 = vld [vmem:[%s9377_s24 + $0x20b] sm:$0xff] }
 0x667   : > { %v14363_v19 = vpop.permute.xlu1 %5877  ;;  %v14381_v35 = vpop.f32.mrb[38].mxu0 }
 0x668   : > { %16692 = vst [vmem:[#allocation73_spill] sm:$0xff] %v14363_v19  ;;  %v14365_v54 = vpop.permute.xlu0 %5875  ;;  %16698 = vst [vmem:[#allocation209_spill] sm:$0xff] %v14381_v35  ;;  %v14385_v61 = vpop.f32.mrb[39].mxu0 }
 0x669   : > { %16693 = vst [vmem:[#allocation167_spill] sm:$0xff] %v14365_v54  ;;  %6097 = vrot.lane.b32.xlu1 %v8677_v58, %s9315_s30  ;;  %v8648_v58 = vld [vmem:[%s9377_s24 + $0x150] sm:$0xff]  ;;  %16699 = vst [vmem:[#allocation160_spill] sm:$0xff] %v14385_v61 }
 0x66a   : > { %6095 = vrot.lane.b32.xlu0 %v8676_v7, %s9315_s30  ;;  %v8736_v7 = vld [vmem:[%s9377_s24 + $0x212] sm:$0xff] }
 0x66b   : > { %v14375_v6 = vpop.permute.xlu1 %5881 }
 0x66c   : > { %16696 = vst [vmem:[#allocation146_spill] sm:$0xff] %v14375_v6  ;;  %v14377_v44 = vpop.permute.xlu0 %5879  ;;  %v14393_v6 = vpop.f32.mrb[40].mxu0 }
 0x66d   : > { %16697 = vst [vmem:[#allocation71_spill] sm:$0xff] %v14377_v44  ;;  %6217 = vrot.lane.b32.xlu1 %v8707_v45, %s9316_s4  ;;  %16702 = vst [vmem:[#allocation191_spill] sm:$0xff] %v14393_v6  ;;  %v8649_v45 = vld [vmem:[%s9377_s24 + $0x158] sm:$0xff]  ;;  %v14397_v35 = vpop.f32.mrb[41].mxu0 }
 0x66e   : > { %6215 = vrot.lane.b32.xlu0 %v8706_v29, %s9316_s4  ;;  %v8737_v29 = vld [vmem:[%s9377_s24 + $0x21a] sm:$0xff]  ;;  %16703 = vst [vmem:[#allocation137_spill] sm:$0xff] %v14397_v35 }
 0x66f   : > { %v14387_v19 = vpop.permute.xlu1 %5885 }
 0x670   : > { %16700 = vst [vmem:[#allocation210_spill] sm:$0xff] %v14387_v19  ;;  %v14389_v54 = vpop.permute.xlu0 %5883  ;;  %v14405_v19 = vpop.f32.mrb[42].mxu0 }
 0x671   : > { %16701 = vst [vmem:[#allocation102_spill] sm:$0xff] %v14389_v54  ;;  %5979 = vrot.lane.b32.xlu1 %v8648_v58, %s9314_s29  ;;  %16706 = vst [vmem:[#allocation19_spill] sm:$0xff] %v14405_v19  ;;  %v8679_v58 = vld [vmem:[%s9377_s24 + $0x21c] sm:$0xff]  ;;  %v14409_v54 = vpop.f32.mrb[43].mxu0 }
 0x672   : > { %6335 = vrot.lane.b32.xlu0 %v8736_v7, %s9317_s22  ;;  %v8678_v7 = vld [vmem:[%s9377_s24 + $0x214] sm:$0xff]  ;;  %16707 = vst [vmem:[#allocation162_spill] sm:$0xff] %v14409_v54 }
 0x673   : > { %v14399_v44 = vpop.permute.xlu1 %5889 }
 0x674   : > { %16704 = vst [vmem:[#allocation131_spill] sm:$0xff] %v14399_v44  ;;  %v14401_v59 = vpop.permute.xlu0 %5887 }
 0x675   : > { %16705 = vst [vmem:[#allocation52_spill] sm:$0xff] %v14401_v59  ;;  %5981 = vrot.lane.b32.xlu1 %v8649_v45, %s9314_s29  ;;  %v8709_v45 = vld [vmem:[%s9377_s24 + $0x223] sm:$0xff] }
 0x676   : > { %6337 = vrot.lane.b32.xlu0 %v8737_v29, %s9317_s22  ;;  %v14417_v59 = vpop.f32.mrb[44].mxu0  ;;  %v8708_v29 = vld [vmem:[%s9377_s24 + $0x21b] sm:$0xff] }
 0x677   : > { %v14411_v6 = vpop.permute.xlu1 %5953  ;;  %16708 = vst [vmem:[#allocation20_spill] sm:$0xff] %v14417_v59  ;;  %v14421_v44 = vpop.f32.mrb[45].mxu0 }
 0x678   : > { %v14413_v61 = vpop.permute.xlu0 %5951  ;;  %16709 = vst [vmem:[#allocation211_spill] sm:$0xff] %v14421_v44 }
 0x679   : > { %6101 = vrot.lane.b32.xlu1 %v8679_v58, %s9315_s30  ;;  %v8650_v58 = vld [vmem:[%s9377_s24 + $0x160] sm:$0xff] }
 0x67a   : > { %6099 = vrot.lane.b32.xlu0 %v8678_v7, %s9315_s30  ;;  %v8738_v7 = vld [vmem:[%s9377_s24 + $0x222] sm:$0xff] }
 0x67b   : > { %v14423_v19 = vpop.permute.xlu1 %5957 }
 0x67c   : > { %v14425_v35 = vpop.permute.xlu0 %5955  ;;  %v14429_v54 = vpop.f32.mrb[46].mxu0 }
 0x67d   : > { %6221 = vrot.lane.b32.xlu1 %v8709_v45, %s9316_s4  ;;  %16710 = vst [vmem:[#allocation103_spill] sm:$0xff] %v14429_v54  ;;  %v14433_v59 = vpop.f32.mrb[47].mxu0  ;;  %v8651_v45 = vld [vmem:[%s9377_s24 + $0x168] sm:$0xff] }
 0x67e   : > { %6219 = vrot.lane.b32.xlu0 %v8708_v29, %s9316_s4  ;;  %16711 = vst [vmem:[#allocation212_spill] sm:$0xff] %v14433_v59  ;;  %v8739_v29 = vld [vmem:[%s9377_s24 + $0x22a] sm:$0xff] }
 0x67f   : > { %v14435_v53 = vpop.permute.xlu1 %5961  ;;  %v8680_v59 = vld [vmem:[%s9377_s24 + $0x224] sm:$0xff] }
 0x680   : > { %v14437_v11 = vpop.permute.xlu0 %5959  ;;  %v14441_v44 = vpop.f32.mrb[48].mxu0 }
 0x681   : > { %5983 = vrot.lane.b32.xlu1 %v8650_v58, %s9314_s29  ;;  %16712 = vst [vmem:[#allocation154_spill] sm:$0xff] %v14441_v44  ;;  %v14445_v54 = vpop.f32.mrb[49].mxu0 }
 0x682   : > { %6339 = vrot.lane.b32.xlu0 %v8738_v7, %s9317_s22  ;;  %16713 = vst [vmem:[#allocation4_spill] sm:$0xff] %v14445_v54  ;;  %v8681_v7 = vld [vmem:[%s9377_s24 + $0x22c] sm:$0xff] }
 0x683   : > { %v14447_v51 = vpop.permute.xlu1 %5965 }
 0x684   : > { %v14449_v46 = vpop.permute.xlu0 %5963 }
 0x685   : > { %5985 = vrot.lane.b32.xlu1 %v8651_v45, %s9314_s29  ;;  %v8711_v45 = vld [vmem:[%s9377_s24 + $0x233] sm:$0xff] }
 0x686   : > { %6341 = vrot.lane.b32.xlu0 %v8739_v29, %s9317_s22  ;;  %v8710_v29 = vld [vmem:[%s9377_s24 + $0x22b] sm:$0xff] }
 0x687   : > { %v14459_v23 = vpop.permute.xlu1 %5969 }
 0x688   : > { %v14453_v58 = vpop.f32.mrb[50].mxu0  ;;  %v14461_v54 = vpop.permute.xlu0 %5967 }
 0x689   : > { %16714 = vst [vmem:[#allocation145_spill] sm:$0xff] %v14453_v58  ;;  %v14457_v44 = vpop.f32.mrb[51].mxu0  ;;  %6105 = vrot.lane.b32.xlu1 %v8681_v7, %s9315_s30 }
 0x68a   : > { %16715 = vst [vmem:[#allocation147_spill] sm:$0xff] %v14457_v44  ;;  %6103 = vrot.lane.b32.xlu0 %v8680_v59, %s9315_s30  ;;  %v8652_v59 = vld [vmem:[%s9377_s24 + $0x170] sm:$0xff] }
 0x68b   : > { %v14471_v48 = vpop.permute.xlu1 %5973 }
 0x68c   : > { %v14465_v31 = vpop.f32.mrb[52].mxu0  ;;  %16718 = vst [vmem:[#allocation13_spill] sm:$0xff] %v14471_v48  ;;  %v14474_v44 = vpop.permute.xlu0 %5971  ;;  %v6431_v48 = vsel %vm1474_vm2, %v6401_v17, %v14126_v62  ;;  %v6402_v17 = vsel %vm1443_vm1, %v5308_v16, %v14000_v50 }
 0x68d   : > { %16716 = vst [vmem:[#allocation12_spill] sm:$0xff] %v14465_v31  ;;  %v14469_v58 = vpop.f32.mrb[53].mxu0  ;;  %16719 = vst [vmem:[#allocation196_spill] sm:$0xff] %v14474_v44  ;;  %6225 = vrot.lane.b32.xlu1 %v8711_v45, %s9316_s4  ;;  %v8740_v31 = vld [vmem:[%s9377_s24 + $0x232] sm:$0xff]  ;;  %v6461_v45 = vsel %vm1505_vm3, %v6431_v48, %v14265_v47 }
 0x68e   : > { %16717 = vst [vmem:[#allocation128_spill] sm:$0xff] %v14469_v58  ;;  %6223 = vrot.lane.b32.xlu0 %v8710_v29, %s9316_s4  ;;  %v6491_v48 = vsel %vm1536_vm4, %v6461_v45, %v9907_v40  ;;  %v8683_v40 = vld [vmem:[%s9377_s24 + $0x23c] sm:$0xff]  ;;  %v8682_v45 = vld [vmem:[%s9377_s24 + $0x234] sm:$0xff] }
 0x68f   : > { %v6072_v58 = vpop.permute.xlu1 %6071  ;;  %v6521_v47 = vsel %vm1567_vm5, %v6491_v48, %v14413_v61  ;;  %v5309_v48 = vld [vmem:[%s9377_s24 + $0x10] sm:$0xff] }
 0x690   : > { %v14488_v44 = vpop.permute.xlu0 %5975  ;;  %v6551_v50 = vsel %vm1598_vm6, %v6521_v47, %v6072_v58  ;;  %v6403_v47 = vsel %vm1443_vm1, %v5309_v48, %v14010_v4  ;;  %v8654_v4 = vld [vmem:[%s9377_s24 + $0x180] sm:$0xff] }
 0x691   : > { %5987 = vrot.lane.b32.xlu1 %v8652_v59, %s9314_s29 }
 0x692   : > { %6343 = vrot.lane.b32.xlu0 %v8740_v31, %s9317_s22  ;;  %v6432_v31 = vsel %vm1474_vm2, %v6402_v17, %v14124_v42 }
 0x693   : > { %v14478_v7 = vpop.f32.mrb[54].mxu0  ;;  %v6462_v59 = vsel %vm1505_vm3, %v6432_v31, %v14263_v36  ;;  %v8712_v31 = vld [vmem:[%s9377_s24 + $0x23b] sm:$0xff] }
 0x694   : > { %16720 = vst [vmem:[#allocation213_spill] sm:$0xff] %v14478_v7  ;;  %v14484_v26 = vpop.f32.mrb[55].mxu0  ;;  %v6192_v7 = vpop.permute.xlu1 %6191  ;;  %v6492_v36 = vsel %vm1536_vm4, %v6462_v59, %v9905_v3  ;;  %v6433_v3 = vsel %vm1474_vm2, %v6403_v47, %v14136_v28  ;;  %v8742_v28 = vld [vmem:[%s9377_s24 + $0x242] sm:$0xff] }
 0x695   : > { %16721 = vst [vmem:[#allocation183_spill] sm:$0xff] %v14484_v26  ;;  %v6074_v62 = vpop.permute.xlu0 %6073  ;;  %5989 = vrot.lane.b32.xlu1 %v8653_v5, %s9314_s29  ;;  %v6581_v42 = vsel %vm1629_vm7, %v6551_v50, %v6192_v7  ;;  %v6522_v58 = vsel %vm1567_vm5, %v6492_v36, %v14411_v6  ;;  %v8713_v7 = vld [vmem:[%s9377_s24 + $0x243] sm:$0xff]  ;;  %v6463_v6 = vsel %vm1505_vm3, %v6433_v3, %v14273_v57 }
 0x696   : > { %6345 = vrot.lane.b32.xlu0 %v8741_v2, %s9317_s22  ;;  %v6552_v50 = vsel %vm1598_vm6, %v6522_v58, %v6074_v62  ;;  %v6493_v57 = vsel %vm1536_vm4, %v6463_v6, %v16148_v30  ;;  %v8743_v30 = vld [vmem:[%s9377_s24 + $0x24a] sm:$0xff] }
 0x697   : > { %v14495_v29 = vpop.f32.mrb[56].mxu0  ;;  %v6523_v36 = vsel %vm1567_vm5, %v6493_v57, %v14425_v35 }
 0x698   : > { %v14499_v26 = vpop.f32.mrb[57].mxu0  ;;  %v6312_v61 = vpop.permute.xlu1 %6311 }
 0x699   : > { %v6611_v5 = vsel %vm1660_vm8, %v6581_v42, %v6312_v61  ;;  %v6194_v2 = vpop.permute.xlu0 %6193  ;;  %6109 = vrot.lane.b32.xlu1 %v8683_v40, %s9315_s30 }
 0x69a   : > { %6107 = vrot.lane.b32.xlu0 %v8682_v45, %s9315_s30  ;;  %9108 = vmatprep.mubr.msk.f32.mxu1 %vm1696_vm9, %v6611_v5  ;;  %v6582_v59 = vsel %vm1629_vm7, %v6552_v50, %v6194_v2  ;;  %v5310_v45 = vld [vmem:[%s9377_s24 + $0x18] sm:$0xff] }
 0x69b   : > { %v14514_v16 = vpop.f32.mrb[58].mxu0  ;;  %v6404_v48 = vsel %vm1443_vm1, %v5310_v45, %v14008_v9 }
 0x69c   : > { %v14519_v17 = vpop.f32.mrb[59].mxu0  ;;  %v6076_v42 = vpop.permute.xlu1 %6075  ;;  %v6434_v2 = vsel %vm1474_vm2, %v6404_v48, %v14132_v52  ;;  %v5311_v52 = vld [vmem:[%s9377_s24 + $0x20] sm:$0xff] }
 0x69d   : > { %v6314_v40 = vpop.permute.xlu0 %6313  ;;  %6229 = vrot.lane.b32.xlu1 %v8713_v7, %s9316_s4  ;;  %v6464_v58 = vsel %vm1505_vm3, %v6434_v2, %v14271_v1  ;;  %v6553_v9 = vsel %vm1598_vm6, %v6523_v36, %v6076_v42  ;;  %v8655_v7 = vld [vmem:[%s9377_s24 + $0x188] sm:$0xff] }
 0x69e   : > { %v6612_v61 = vsel %vm1660_vm8, %v6582_v59, %v6314_v40  ;;  %6227 = vrot.lane.b32.xlu0 %v8712_v31, %s9316_s4  ;;  %v6494_v3 = vsel %vm1536_vm4, %v6464_v58, %v16146_v0  ;;  %v8685_v42 = vld [vmem:[%s9377_s24 + $0x24c] sm:$0xff]  ;;  %v8684_v59 = vld [vmem:[%s9377_s24 + $0x244] sm:$0xff]  ;;  %v6405_v40 = vsel %vm1443_vm1, %v5311_v52, %v14018_v34  ;;  %v8657_v52 = vld [vmem:[%s9377_s24 + $0x198] sm:$0xff] }
 0x69f   : > { %9109 = vmatmul.mubr.msk.f32.vlgmr.msra.gmra.mrb[30].mxu1 %vm1696_vm9, %v6612_v61  ;;  %v6524_v1 = vsel %vm1567_vm5, %v6494_v3, %v14423_v19  ;;  %v6435_v0 = vsel %vm1474_vm2, %v6405_v40, %v14144_v27  ;;  %v8715_v34 = vld [vmem:[%s9377_s24 + $0x253] sm:$0xff]  ;;  %v8714_v27 = vld [vmem:[%s9377_s24 + $0x24b] sm:$0xff] }
 0x6a0   : > { %v6196_v62 = vpop.permute.xlu1 %6195  ;;  %v6465_v19 = vsel %vm1505_vm3, %v6435_v0, %v14281_v8  ;;  %v5314_v40 = vld [vmem:[%s9377_s24 + $0x38] sm:$0xff] }
 0x6a1   : > { %v6078_v5 = vpop.permute.xlu0 %6077  ;;  %5991 = vrot.lane.b32.xlu1 %v8654_v4, %s9314_s29  ;;  %v6583_v31 = vsel %vm1629_vm7, %v6553_v9, %v6196_v62  ;;  %v6495_v8 = vsel %vm1536_vm4, %v6465_v19, %v16479_v41  ;;  %v8656_v9 = vld [vmem:[%s9377_s24 + $0x190] sm:$0xff]  ;;  %v6408_v0 = vsel %vm1443_vm1, %v5314_v40, %v14024_v18 }
 0x6a2   : > { %6347 = vrot.lane.b32.xlu0 %v8742_v28, %s9317_s22  ;;  %v6554_v45 = vsel %vm1598_vm6, %v6524_v1, %v6078_v5  ;;  %v5312_v28 = vld [vmem:[%s9377_s24 + $0x28] sm:$0xff]  ;;  %v6525_v36 = vsel %vm1567_vm5, %v6495_v8, %v14437_v11  ;;  %v8744_v41 = vld [vmem:[%s9377_s24 + $0x252] sm:$0xff]  ;;  %v8658_v8 = vld [vmem:[%s9377_s24 + $0x1a0] sm:$0xff] }
 0x6a3   : > { %v6406_v57 = vsel %vm1443_vm1, %v5312_v28, %v14016_v43 }
 0x6a4   : > { %v6316_v47 = vpop.permute.xlu1 %6315  ;;  %v6436_v2 = vsel %vm1474_vm2, %v6406_v57, %v14142_v60  ;;  %v5313_v60 = vld [vmem:[%s9377_s24 + $0x30] sm:$0xff] }
 0x6a5   : > { %v6613_v35 = vsel %vm1660_vm8, %v6583_v31, %v6316_v47  ;;  %v6198_v50 = vpop.permute.xlu0 %6197  ;;  %5993 = vrot.lane.b32.xlu1 %v8655_v7, %s9314_s29  ;;  %v6466_v58 = vsel %vm1505_vm3, %v6436_v2, %v14279_v12 }
 0x6a6   : > { %6349 = vrot.lane.b32.xlu0 %v8743_v30, %s9317_s22  ;;  %9111 = vmatprep.mubr.msk.f32.mxu1 %vm1696_vm9, %v6613_v35  ;;  %v6584_v61 = vsel %vm1629_vm7, %v6554_v45, %v6198_v50  ;;  %v6496_v47 = vsel %vm1536_vm4, %v6466_v58, %v16475_v14  ;;  %v8745_v35 = vld [vmem:[%s9377_s24 + $0x25a] sm:$0xff]  ;;  %v6407_v50 = vsel %vm1443_vm1, %v5313_v60, %v14026_v15 }
 0x6a7   : > { %v6526_v12 = vsel %vm1567_vm5, %v6496_v47, %v14435_v53  ;;  %v6437_v14 = vsel %vm1474_vm2, %v6407_v50, %v14152_v20  ;;  %v8687_v15 = vld [vmem:[%s9377_s24 + $0x25c] sm:$0xff]  ;;  %v8686_v20 = vld [vmem:[%s9377_s24 + $0x254] sm:$0xff] }
 0x6a8   : > { %v6080_v6 = vpop.permute.xlu1 %6079  ;;  %v6467_v53 = vsel %vm1505_vm3, %v6437_v14, %v14289_v24  ;;  %v8719_v14 = vld [vmem:[%s9377_s24 + $0x273] sm:$0xff] }
 0x6a9   : > { %v6318_v4 = vpop.permute.xlu0 %6317  ;;  %6113 = vrot.lane.b32.xlu1 %v8685_v42, %s9315_s30  ;;  %v6555_v43 = vsel %vm1598_vm6, %v6525_v36, %v6080_v6  ;;  %v6497_v24 = vsel %vm1536_vm4, %v6467_v53, %v16492_v39  ;;  %v8716_v39 = vld [vmem:[%s9377_s24 + $0x25b] sm:$0xff] }
 0x6aa   : > { %v6614_v62 = vsel %vm1660_vm8, %v6584_v61, %v6318_v4  ;;  %6111 = vrot.lane.b32.xlu0 %v8684_v59, %s9315_s30  ;;  %v6438_v4 = vsel %vm1474_vm2, %v6408_v0, %v14150_v21  ;;  %v6527_v28 = vsel %vm1567_vm5, %v6497_v24, %v14449_v46  ;;  %v5315_v21 = vld [vmem:[%s9377_s24 + $0x40] sm:$0xff]  ;;  %v8748_v24 = vld [vmem:[%s9377_s24 + $0x272] sm:$0xff] }
 0x6ab   : > { %9112 = vmatmul.mubr.msk.f32.gmra.mrb[32].mxu1 %vm1696_vm9, %v6614_v62  ;;  %v6468_v19 = vsel %vm1505_vm3, %v6438_v4, %v14287_v55  ;;  %v8717_v62 = vld [vmem:[%s9377_s24 + $0x263] sm:$0xff]  ;;  %v6409_v2 = vsel %vm1443_vm1, %v5315_v21, %v14034_v22  ;;  %v16727_v21 = vld [vmem:[#allocation44_spill] sm:$0xff] }
 0x6ac   : > { %v6200_v48 = vpop.permute.xlu1 %6199  ;;  %v6498_v57 = vsel %vm1536_vm4, %v6468_v19, %v16488_v13  ;;  %v6439_v13 = vsel %vm1474_vm2, %v6409_v2, %v14160_v32  ;;  %v8659_v22 = vld [vmem:[%s9377_s24 + $0x1a8] sm:$0xff] }
 0x6ad   : > { %v6082_v5 = vpop.permute.xlu0 %6081  ;;  %6233 = vrot.lane.b32.xlu1 %v8715_v34, %s9316_s4  ;;  %v6585_v7 = vsel %vm1629_vm7, %v6555_v43, %v6200_v48  ;;  %v6528_v55 = vsel %vm1567_vm5, %v6498_v57, %v14447_v51  ;;  %v6469_v51 = vsel %vm1505_vm3, %v6439_v13, %v14297_v37  ;;  %v8747_v32 = vld [vmem:[%s9377_s24 + $0x26a] sm:$0xff]  ;;  %v8661_v57 = vld [vmem:[%s9377_s24 + $0x1b8] sm:$0xff] }
 0x6ae   : > { %6231 = vrot.lane.b32.xlu0 %v8714_v27, %s9316_s4  ;;  %v6556_v3 = vsel %vm1598_vm6, %v6526_v12, %v6082_v5  ;;  %v8746_v5 = vld [vmem:[%s9377_s24 + $0x262] sm:$0xff]  ;;  %v6499_v37 = vsel %vm1536_vm4, %v6469_v51, %v16505_v63  ;;  %v8690_v51 = vld [vmem:[%s9377_s24 + $0x274] sm:$0xff] }
 0x6af   : > { %v6529_v47 = vsel %vm1567_vm5, %v6499_v37, %v14461_v54  ;;  %v8688_v63 = vld [vmem:[%s9377_s24 + $0x264] sm:$0xff] }
 0x6b0   : > { %v6320_v30 = vpop.permute.xlu1 %6319 }
 0x6b1   : > { %v6615_v11 = vsel %vm1660_vm8, %v6585_v7, %v6320_v30  ;;  %v6202_v31 = vpop.permute.xlu0 %6201  ;;  %5995 = vrot.lane.b32.xlu1 %v8656_v9, %s9314_s29 }
 0x6b2   : > { %6351 = vrot.lane.b32.xlu0 %v8744_v41, %s9317_s22  ;;  %9114 = vmatprep.mubr.msk.f32.mxu1 %vm1696_vm9, %v6615_v11  ;;  %v6586_v42 = vsel %vm1629_vm7, %v6556_v3, %v6202_v31  ;;  %v5316_v41 = vld [vmem:[%s9377_s24 + $0x48] sm:$0xff] }
 0x6b3   : > { %v6410_v60 = vsel %vm1443_vm1, %v5316_v41, %v14032_v38  ;;  %v8691_v41 = vld [vmem:[%s9377_s24 + $0x27c] sm:$0xff] }
 0x6b4   : > { %v6084_v1 = vpop.permute.xlu1 %6083  ;;  %v6440_v31 = vsel %vm1474_vm2, %v6410_v60, %v14158_v49  ;;  %v5317_v49 = vld [vmem:[%s9377_s24 + $0x50] sm:$0xff]  ;;  %v5319_v60 = vld [vmem:[%s9377_s24 + $0x60] sm:$0xff] }
 0x6b5   : > { %v6322_v59 = vpop.permute.xlu0 %6321  ;;  %5997 = vrot.lane.b32.xlu1 %v8657_v52, %s9314_s29  ;;  %v6557_v18 = vsel %vm1598_vm6, %v6527_v28, %v6084_v1  ;;  %v6470_v12 = vsel %vm1505_vm3, %v6440_v31, %v14295_v10  ;;  %v8689_v52 = vld [vmem:[%s9377_s24 + $0x26c] sm:$0xff]  ;;  %v16724_v28 = vld [vmem:[#allocation81_spill] sm:$0xff] }
 0x6b6   : > { %v6616_v45 = vsel %vm1660_vm8, %v6586_v42, %v6322_v59  ;;  %6353 = vrot.lane.b32.xlu0 %v8745_v35, %s9317_s22  ;;  %v6500_v1 = vsel %vm1536_vm4, %v6470_v12, %v16501_v56  ;;  %v8718_v42 = vld [vmem:[%s9377_s24 + $0x26b] sm:$0xff]  ;;  %v6411_v59 = vsel %vm1443_vm1, %v5317_v49, %v14042_v25  ;;  %v8720_v31 = vld [vmem:[%s9377_s24 + $0x27b] sm:$0xff] }
 0x6b7   : > { %9115 = vmatmul.mubr.msk.f32.gmra.mrb[34].mxu1 %vm1696_vm9, %v6616_v45  ;;  %v6530_v10 = vsel %vm1567_vm5, %v6500_v1, %v14459_v23  ;;  %v6441_v56 = vsel %vm1474_vm2, %v6411_v59, %v14174_v33  ;;  %v16722_v23 = vld [vmem:[#allocation35_spill] sm:$0xff]  ;;  %v8660_v25 = vld [vmem:[%s9377_s24 + $0x1b0] sm:$0xff] }
 0x6b8   : > { %v6204_v6 = vpop.permute.xlu1 %6203  ;;  %v16730_v12 = vld [vmem:[#allocation199_spill] sm:$0xff] }
 0x6b9   : > { %v6086_v61 = vpop.permute.xlu0 %6085  ;;  %6117 = vrot.lane.b32.xlu1 %v8687_v15, %s9315_s30  ;;  %v6587_v34 = vsel %vm1629_vm7, %v6557_v18, %v6204_v6  ;;  %v6471_v6 = vsel %vm1505_vm3, %v6441_v56, %v16722_v23  ;;  %v16732_v49 = vld [vmem:[#allocation107_spill] sm:$0xff] }
 0x6ba   : > { %6115 = vrot.lane.b32.xlu0 %v8686_v20, %s9315_s30  ;;  %v6558_v36 = vsel %vm1598_vm6, %v6528_v55, %v6086_v61  ;;  %v5318_v20 = vld [vmem:[%s9377_s24 + $0x58] sm:$0xff]  ;;  %v16723_v61 = vld [vmem:[#allocation74_spill] sm:$0xff]  ;;  %v6501_v19 = vsel %vm1536_vm4, %v6471_v6, %v16724_v28  ;;  %v16735_v56 = vld [vmem:[#allocation83_spill] sm:$0xff] }
 0x6bb   : > { %v6412_v4 = vsel %vm1443_vm1, %v5318_v20, %v16723_v61  ;;  %v8749_v55 = vld [vmem:[%s9377_s24 + $0x27a] sm:$0xff]  ;;  %v8750_v1 = vld [vmem:[%s9377_s24 + $0x282] sm:$0xff] }
 0x6bc   : > { %v6324_v27 = vpop.permute.xlu1 %6323  ;;  %v8663_v6 = vld [vmem:[%s9377_s24 + $0x1c8] sm:$0xff] }
 0x6bd   : > { %v6617_v46 = vsel %vm1660_vm8, %v6587_v34, %v6324_v27  ;;  %v6206_v48 = vpop.permute.xlu0 %6205  ;;  %6237 = vrot.lane.b32.xlu1 %v8717_v62, %s9316_s4  ;;  %v16725_v62 = vld [vmem:[#allocation58_spill] sm:$0xff]  ;;  %v16726_v34 = vld [vmem:[#allocation196_spill] sm:$0xff] }
 0x6be   : > { %6235 = vrot.lane.b32.xlu0 %v8716_v39, %s9316_s4  ;;  %9117 = vmatprep.mubr.msk.f32.mxu1 %vm1696_vm9, %v6617_v46  ;;  %v6588_v43 = vsel %vm1629_vm7, %v6558_v36, %v6206_v48  ;;  %v6442_v39 = vsel %vm1474_vm2, %v6412_v4, %v16725_v62  ;;  %v6531_v27 = vsel %vm1567_vm5, %v6501_v19, %v16726_v34  ;;  %v16737_v4 = vld [vmem:[#allocation82_spill] sm:$0xff] }
 0x6bf   : > { %v6472_v46 = vsel %vm1505_vm3, %v6442_v39, %v16727_v21  ;;  %v8692_v62 = vld [vmem:[%s9377_s24 + $0x284] sm:$0xff] }
 0x6c0   : > { %v6088_v58 = vpop.permute.xlu1 %6087 }
 0x6c1   : > { %v6326_v9 = vpop.permute.xlu0 %6325  ;;  %5999 = vrot.lane.b32.xlu1 %v8658_v8, %s9314_s29  ;;  %v6559_v38 = vsel %vm1598_vm6, %v6529_v47, %v6088_v58  ;;  %v16728_v58 = vld [vmem:[#allocation80_spill] sm:$0xff] }
 0x6c2   : > { %v6618_v7 = vsel %vm1660_vm8, %v6588_v43, %v6326_v9  ;;  %6355 = vrot.lane.b32.xlu0 %v8746_v5, %s9317_s22  ;;  %v6502_v13 = vsel %vm1536_vm4, %v6472_v46, %v16728_v58  ;;  %v16729_v43 = vld [vmem:[#allocation13_spill] sm:$0xff]  ;;  %v5321_v46 = vld [vmem:[%s9377_s24 + $0x70] sm:$0xff] }
 0x6c3   : > { %9118 = vmatmul.mubr.msk.f32.gmra.mrb[36].mxu1 %vm1696_vm9, %v6618_v7  ;;  %v6532_v9 = vsel %vm1567_vm5, %v6502_v13, %v16729_v43  ;;  %v5322_v58 = vld [vmem:[%s9377_s24 + $0x78] sm:$0xff]  ;;  %v16739_v13 = vld [vmem:[#allocation46_spill] sm:$0xff] }
 0x6c4   : > { %v6208_v30 = vpop.permute.xlu1 %6207 }
 0x6c5   : > { %v6090_v11 = vpop.permute.xlu0 %6089  ;;  %6001 = vrot.lane.b32.xlu1 %v8659_v22, %s9314_s29  ;;  %v6589_v35 = vsel %vm1629_vm7, %v6559_v38, %v6208_v30  ;;  %v6413_v38 = vsel %vm1443_vm1, %v5319_v60, %v16730_v12  ;;  %v16744_v12 = vld [vmem:[#allocation206_spill] sm:$0xff] }
 0x6c6   : > { %6357 = vrot.lane.b32.xlu0 %v8747_v32, %s9317_s22  ;;  %v6560_v40 = vsel %vm1598_vm6, %v6530_v10, %v6090_v11  ;;  %v8721_v11 = vld [vmem:[%s9377_s24 + $0x283] sm:$0xff] }
 0x6c8   : > { %v6328_v50 = vpop.permute.xlu1 %6327 }
 0x6c9   : > { %v6619_v54 = vsel %vm1660_vm8, %v6589_v35, %v6328_v50  ;;  %v6210_v3 = vpop.permute.xlu0 %6209  ;;  %6121 = vrot.lane.b32.xlu1 %v8689_v52, %s9315_s30  ;;  %v16731_v35 = vld [vmem:[#allocation16_spill] sm:$0xff] }
 0x6ca   : > { %6119 = vrot.lane.b32.xlu0 %v8688_v63, %s9315_s30  ;;  %9120 = vmatprep.mubr.msk.f32.mxu1 %vm1696_vm9, %v6619_v54  ;;  %v6590_v45 = vsel %vm1629_vm7, %v6560_v40, %v6210_v3  ;;  %v5320_v63 = vld [vmem:[%s9377_s24 + $0x68] sm:$0xff]  ;;  %v6443_v50 = vsel %vm1474_vm2, %v6413_v38, %v16731_v35  ;;  %v8662_v3 = vld [vmem:[%s9377_s24 + $0x1c0] sm:$0xff] }
 0x6cb   : > { %v6473_v54 = vsel %vm1505_vm3, %v6443_v50, %v16732_v49  ;;  %v16734_v40 = vld [vmem:[#allocation14_spill] sm:$0xff] }
 0x6cc   : > { %v6092_v53 = vpop.permute.xlu1 %6091 }
 0x6cd   : > { %v6330_v15 = vpop.permute.xlu0 %6329  ;;  %6241 = vrot.lane.b32.xlu1 %v8719_v14, %s9316_s4  ;;  %v6561_v48 = vsel %vm1598_vm6, %v6531_v27, %v6092_v53  ;;  %v16733_v14 = vld [vmem:[#allocation105_spill] sm:$0xff] }
 0x6ce   : > { %v6620_v0 = vsel %vm1660_vm8, %v6590_v45, %v6330_v15  ;;  %6239 = vrot.lane.b32.xlu0 %v8718_v42, %s9316_s4  ;;  %v6414_v42 = vsel %vm1443_vm1, %v5320_v63, %v16733_v14  ;;  %v6503_v45 = vsel %vm1536_vm4, %v6473_v54, %v16735_v56  ;;  %v16736_v15 = vld [vmem:[#allocation205_spill] sm:$0xff]  ;;  %v16745_v54 = vld [vmem:[#allocation84_spill] sm:$0xff]  ;;  %v16747_v14 = vld [vmem:[#allocation38_spill] sm:$0xff] }
 0x6cf   : > { %9121 = vmatmul.mubr.msk.f32.gmra.mrb[38].mxu1 %vm1696_vm9, %v6620_v0  ;;  %v6444_v53 = vsel %vm1474_vm2, %v6414_v42, %v16734_v40  ;;  %v6533_v23 = vsel %vm1567_vm5, %v6503_v45, %v14488_v44  ;;  %v8751_v0 = vld [vmem:[%s9377_s24 + $0x28a] sm:$0xff]  ;;  %v5323_v45 = vld [vmem:[%s9377_s24 + $0x80] sm:$0xff] }
 0x6d0   : > { %v6212_v33 = vpop.permute.xlu1 %6211  ;;  %v6474_v20 = vsel %vm1505_vm3, %v6444_v53, %v16736_v15 }
 0x6d1   : > { %v6094_v18 = vpop.permute.xlu0 %6093  ;;  %6003 = vrot.lane.b32.xlu1 %v8660_v25, %s9314_s29  ;;  %v6591_v8 = vsel %vm1629_vm7, %v6561_v48, %v6212_v33  ;;  %v6504_v28 = vsel %vm1536_vm4, %v6474_v20, %v16737_v4  ;;  %v16748_v20 = vld [vmem:[#allocation182_spill] sm:$0xff] }
 0x6d2   : > { %6359 = vrot.lane.b32.xlu0 %v8748_v24, %s9317_s22  ;;  %v6562_v7 = vsel %vm1598_vm6, %v6532_v9, %v6094_v18  ;;  %v8693_v18 = vld [vmem:[%s9377_s24 + $0x28c] sm:$0xff]  ;;  %v16740_v9 = vld [vmem:[#allocation181_spill] sm:$0xff] }
 0x6d4   : > { %v6332_v5 = vpop.permute.xlu1 %6331 }
 0x6d5   : > { %v6621_v2 = vsel %vm1660_vm8, %v6591_v8, %v6332_v5  ;;  %v6214_v36 = vpop.permute.xlu0 %6213  ;;  %6005 = vrot.lane.b32.xlu1 %v8661_v57, %s9314_s29  ;;  %v8723_v57 = vld [vmem:[%s9377_s24 + $0x293] sm:$0xff]  ;;  %v16738_v5 = vld [vmem:[#allocation75_spill] sm:$0xff] }
 0x6d6   : > { %6361 = vrot.lane.b32.xlu0 %v8749_v55, %s9317_s22  ;;  %9123 = vmatprep.mubr.msk.f32.mxu1 %vm1696_vm9, %v6621_v2  ;;  %v6592_v32 = vsel %vm1629_vm7, %v6562_v7, %v6214_v36  ;;  %v8722_v55 = vld [vmem:[%s9377_s24 + $0x28b] sm:$0xff]  ;;  %v6415_v2 = vsel %vm1443_vm1, %v5321_v46, %v16738_v5 }
 0x6d7   : > { %v6445_v43 = vsel %vm1474_vm2, %v6415_v2, %v16739_v13  ;;  %v8752_v7 = vld [vmem:[%s9377_s24 + $0x292] sm:$0xff] }
 0x6d8   : > { %v5978_v22 = vpop.permute.xlu1 %5977  ;;  %v16760_v5 = vld [vmem:[#allocation100_spill] sm:$0xff] }
 0x6d9   : > { %v6334_v30 = vpop.permute.xlu0 %6333  ;;  %6125 = vrot.lane.b32.xlu1 %v8691_v41, %s9315_s30  ;;  %v6534_v44 = vsel %vm1567_vm5, %v6504_v28, %v5978_v22  ;;  %v6475_v41 = vsel %vm1505_vm3, %v6445_v43, %v16740_v9  ;;  %v16752_v28 = vld [vmem:[#allocation63_spill] sm:$0xff] }
 0x6da   : > { %v6622_v37 = vsel %vm1660_vm8, %v6592_v32, %v6334_v30  ;;  %6123 = vrot.lane.b32.xlu0 %v8690_v51, %s9315_s30  ;;  %v8753_v51 = vld [vmem:[%s9377_s24 + $0x29a] sm:$0xff]  ;;  %v16741_v32 = vld [vmem:[#allocation3_spill] sm:$0xff] }
 0x6db   : > { %9124 = vmatmul.mubr.msk.f32.gmra.mrb[40].mxu1 %vm1696_vm9, %v6622_v37  ;;  %v6416_v30 = vsel %vm1443_vm1, %v5322_v58, %v16741_v32  ;;  %v16742_v37 = vld [vmem:[#allocation130_spill] sm:$0xff]  ;;  %v16763_v32 = vld [vmem:[#allocation185_spill] sm:$0xff] }
 0x6dc   : > { %v6098_v47 = vpop.permute.xlu1 %6097 }
 0x6dd   : > { %v6096_v52 = vpop.permute.xlu0 %6095  ;;  %6245 = vrot.lane.b32.xlu1 %v8721_v11, %s9316_s4  ;;  %v6564_v39 = vsel %vm1598_vm6, %v6534_v44, %v6098_v47  ;;  %v6446_v11 = vsel %vm1474_vm2, %v6416_v30, %v16742_v37  ;;  %v16754_v44 = vld [vmem:[#allocation136_spill] sm:$0xff] }
 0x6de   : > { %6243 = vrot.lane.b32.xlu0 %v8720_v31, %s9316_s4  ;;  %v6563_v25 = vsel %vm1598_vm6, %v6533_v23, %v6096_v52  ;;  %v16743_v31 = vld [vmem:[#allocation85_spill] sm:$0xff]  ;;  %v6476_v38 = vsel %vm1505_vm3, %v6446_v11, %v16744_v12  ;;  %v16749_v23 = vld [vmem:[#allocation22_spill] sm:$0xff] }
 0x6df   : > { %v6505_v47 = vsel %vm1536_vm4, %v6475_v41, %v16743_v31  ;;  %v16761_v41 = vld [vmem:[#allocation86_spill] sm:$0xff] }
 0x6e0   : > { %v6218_v10 = vpop.permute.xlu1 %6217 }
 0x6e1   : > { %v6216_v59 = vpop.permute.xlu0 %6215  ;;  %6007 = vrot.lane.b32.xlu1 %v8662_v3, %s9314_s29  ;;  %v6594_v27 = vsel %vm1629_vm7, %v6564_v39, %v6218_v10  ;;  %v6506_v3 = vsel %vm1536_vm4, %v6476_v38, %v16745_v54  ;;  %v16746_v10 = vld [vmem:[#allocation148_spill] sm:$0xff]  ;;  %v16764_v38 = vld [vmem:[#allocation2_spill] sm:$0xff]  ;;  %v5326_v54 = vld [vmem:[%s9377_s24 + $0x98] sm:$0xff] }
 0x6e2   : > { %6363 = vrot.lane.b32.xlu0 %v8750_v1, %s9317_s22  ;;  %v6593_v33 = vsel %vm1629_vm7, %v6563_v25, %v6216_v59  ;;  %v16755_v39 = vld [vmem:[#allocation200_spill] sm:$0xff] }
 0x6e4   : > { %v5980_v24 = vpop.permute.xlu1 %5979 }
 0x6e5   : > { %v6336_v61 = vpop.permute.xlu0 %6335  ;;  %6009 = vrot.lane.b32.xlu1 %v8663_v6, %s9314_s29  ;;  %v6535_v52 = vsel %vm1567_vm5, %v6505_v47, %v5980_v24  ;;  %v5325_v47 = vld [vmem:[%s9377_s24 + $0x90] sm:$0xff] }
 0x6e6   : > { %v6623_v19 = vsel %vm1660_vm8, %v6593_v33, %v6336_v61  ;;  %6365 = vrot.lane.b32.xlu0 %v8751_v0, %s9317_s22  ;;  %v16750_v0 = vld [vmem:[#allocation118_spill] sm:$0xff]  ;;  %v5324_v33 = vld [vmem:[%s9377_s24 + $0x88] sm:$0xff] }
 0x6e7   : > { %9126 = vmatprep.mubr.msk.f32.mxu1 %vm1696_vm9, %v6623_v19  ;;  %v6417_v25 = vsel %vm1443_vm1, %v5323_v45, %v16750_v0  ;;  %v16751_v61 = vld [vmem:[#allocation43_spill] sm:$0xff]  ;;  %v16753_v19 = vld [vmem:[#allocation161_spill] sm:$0xff]  ;;  %v16774_v0 = vld [vmem:[#allocation186_spill] sm:$0xff] }
 0x6e8   : > { %v5982_v34 = vpop.permute.xlu1 %5981  ;;  %v6447_v4 = vsel %vm1474_vm2, %v6417_v25, %v16751_v61  ;;  %v16775_v25 = vld [vmem:[#allocation169_spill] sm:$0xff] }
 0x6e9   : > { %v6338_v21 = vpop.permute.xlu0 %6337  ;;  %6129 = vrot.lane.b32.xlu1 %v8693_v18, %s9315_s30  ;;  %v6536_v42 = vsel %vm1567_vm5, %v6506_v3, %v5982_v34  ;;  %v6477_v18 = vsel %vm1505_vm3, %v6447_v4, %v16754_v44  ;;  %v6418_v34 = vsel %vm1443_vm1, %v5324_v33, %v16755_v39  ;;  %v16767_v3 = vld [vmem:[#allocation195_spill] sm:$0xff] }
 0x6ea   : > { %v6624_v48 = vsel %vm1660_vm8, %v6594_v27, %v6338_v21  ;;  %6127 = vrot.lane.b32.xlu0 %v8692_v62, %s9315_s30  ;;  %v16756_v21 = vld [vmem:[#allocation142_spill] sm:$0xff] }
 0x6eb   : > { %9127 = vmatmul.mubr.msk.f32.gmra.mrb[42].mxu1 %vm1696_vm9, %v6624_v48  ;;  %v6448_v46 = vsel %vm1474_vm2, %v6418_v34, %v16756_v21  ;;  %v16757_v48 = vld [vmem:[#allocation87_spill] sm:$0xff] }
 0x6ec   : > { %v6102_v8 = vpop.permute.xlu1 %6101  ;;  %v6478_v2 = vsel %vm1505_vm3, %v6448_v46, %v16760_v5  ;;  %v16778_v34 = vld [vmem:[#allocation187_spill] sm:$0xff] }
 0x6ed   : > { %v6100_v36 = vpop.permute.xlu0 %6099  ;;  %6249 = vrot.lane.b32.xlu1 %v8723_v57, %s9316_s4  ;;  %v6566_v59 = vsel %vm1598_vm6, %v6536_v42, %v6102_v8  ;;  %v6507_v57 = vsel %vm1536_vm4, %v6477_v18, %v16757_v48  ;;  %v16759_v8 = vld [vmem:[#allocation18_spill] sm:$0xff]  ;;  %v16770_v42 = vld [vmem:[#allocation177_spill] sm:$0xff]  ;;  %v16777_v18 = vld [vmem:[#allocation88_spill] sm:$0xff] }
 0x6ee   : > { %6247 = vrot.lane.b32.xlu0 %v8722_v55, %s9316_s4  ;;  %v6565_v63 = vsel %vm1598_vm6, %v6535_v52, %v6100_v36  ;;  %v16758_v55 = vld [vmem:[#allocation155_spill] sm:$0xff]  ;;  %v16765_v52 = vld [vmem:[#allocation134_spill] sm:$0xff] }
 0x6f0   : > { %v6222_v22 = vpop.permute.xlu1 %6221 }
 0x6f1   : > { %v6220_v60 = vpop.permute.xlu0 %6219  ;;  %6369 = vrot.lane.b32.xlu1 %v8753_v51, %s9317_s22  ;;  %v6596_v53 = vsel %vm1629_vm7, %v6566_v59, %v6222_v22  ;;  %v6508_v51 = vsel %vm1536_vm4, %v6478_v2, %v16761_v41  ;;  %v16762_v22 = vld [vmem:[#allocation139_spill] sm:$0xff]  ;;  %v16780_v2 = vld [vmem:[#allocation45_spill] sm:$0xff] }
 0x6f2   : > { %6367 = vrot.lane.b32.xlu0 %v8752_v7, %s9317_s22  ;;  %v6595_v50 = vsel %vm1629_vm7, %v6565_v63, %v6220_v60  ;;  %v5328_v41 = vld [vmem:[%s9377_s24 + $0xa8] sm:$0xff] }
 0x6f4   : > { %v5984_v35 = vpop.permute.xlu1 %5983 }
 0x6f5   : > { %v6340_v49 = vpop.permute.xlu0 %6339  ;;  %6987 = vrot.lane.b32.xlu1 %v16746_v10, %s9310_s25  ;;  %v6537_v36 = vsel %vm1567_vm5, %v6507_v57, %v5984_v35  ;;  %v16766_v35 = vld [vmem:[#allocation27_spill] sm:$0xff] }
 0x6f6   : > { %v6625_v1 = vsel %vm1660_vm8, %v6595_v50, %v6340_v49  ;;  %6985 = vrot.lane.b32.xlu0 %v16747_v14, %s9310_s25  ;;  %v6419_v50 = vsel %vm1443_vm1, %v5325_v47, %v16766_v35  ;;  %v16768_v10 = vld [vmem:[#allocation135_spill] sm:$0xff]  ;;  %v16790_v35 = vld [vmem:[#allocation24_spill] sm:$0xff] }
 0x6f7   : > { %9129 = vmatprep.mubr.msk.f32.mxu1 %vm1696_vm9, %v6625_v1  ;;  %v6449_v1 = vsel %vm1474_vm2, %v6419_v50, %v16767_v3  ;;  %v16769_v14 = vld [vmem:[#allocation175_spill] sm:$0xff]  ;;  %v16791_v50 = vld [vmem:[#allocation65_spill] sm:$0xff] }
 0x6f8   : > { %v5986_v40 = vpop.permute.xlu1 %5985  ;;  %v6479_v59 = vsel %vm1505_vm3, %v6449_v1, %v16770_v42 }
 0x6f9   : > { %v6342_v56 = vpop.permute.xlu0 %6341  ;;  %6991 = vrot.lane.b32.xlu1 %v16748_v20, %s9310_s25  ;;  %v6538_v30 = vsel %vm1567_vm5, %v6508_v51, %v5986_v40  ;;  %v16783_v51 = vld [vmem:[#allocation37_spill] sm:$0xff] }
 0x6fa   : > { %v6626_v15 = vsel %vm1660_vm8, %v6596_v53, %v6342_v56  ;;  %6989 = vrot.lane.b32.xlu0 %v16749_v23, %s9310_s25  ;;  %v16771_v53 = vld [vmem:[#allocation151_spill] sm:$0xff]  ;;  %v16773_v23 = vld [vmem:[#allocation89_spill] sm:$0xff] }
 0x6fb   : > { %9130 = vmatmul.mubr.msk.f32.gmra.mrb[44].mxu1 %vm1696_vm9, %v6626_v15  ;;  %v6420_v56 = vsel %vm1443_vm1, %v5326_v54, %v16771_v53  ;;  %v16772_v15 = vld [vmem:[#allocation78_spill] sm:$0xff] }
 0x6fc   : > { %v6106_v6 = vpop.permute.xlu1 %6105  ;;  %v6450_v20 = vsel %vm1474_vm2, %v6420_v56, %v16772_v15  ;;  %v16794_v56 = vld [vmem:[#allocation173_spill] sm:$0xff] }
 0x6fd   : > { %v6104_v24 = vpop.permute.xlu0 %6103  ;;  %6995 = vrot.lane.b32.xlu1 %v16752_v28, %s9310_s25  ;;  %v6568_v60 = vsel %vm1598_vm6, %v6538_v30, %v6106_v6  ;;  %v6509_v6 = vsel %vm1536_vm4, %v6479_v59, %v16773_v23  ;;  %v16786_v30 = vld [vmem:[#allocation208_spill] sm:$0xff]  ;;  %v16793_v59 = vld [vmem:[#allocation90_spill] sm:$0xff] }
 0x6fe   : > { %6993 = vrot.lane.b32.xlu0 %v16753_v19, %s9310_s25  ;;  %v6567_v58 = vsel %vm1598_vm6, %v6537_v36, %v6104_v24  ;;  %v16776_v24 = vld [vmem:[#allocation112_spill] sm:$0xff] }
 0x6ff   : > { %v6480_v33 = vsel %vm1505_vm3, %v6450_v20, %v16776_v24  ;;  %v16781_v36 = vld [vmem:[#allocation64_spill] sm:$0xff] }
 0x700   : > { %v6226_v62 = vpop.permute.xlu1 %6225 }
 0x701   : > { %v6224_v27 = vpop.permute.xlu0 %6223  ;;  %6999 = vrot.lane.b32.xlu1 %v16758_v55, %s9310_s25  ;;  %v6598_v11 = vsel %vm1629_vm7, %v6568_v60, %v6226_v62  ;;  %v6510_v62 = vsel %vm1536_vm4, %v6480_v33, %v16777_v18  ;;  %v16796_v33 = vld [vmem:[#allocation190_spill] sm:$0xff]  ;;  %v5330_v18 = vld [vmem:[%s9377_s24 + $0xb8] sm:$0xff] }
 0x702   : > { %6997 = vrot.lane.b32.xlu0 %v16759_v8, %s9310_s25  ;;  %v6597_v43 = vsel %vm1629_vm7, %v6567_v58, %v6224_v27  ;;  %v16779_v27 = vld [vmem:[#allocation6_spill] sm:$0xff] }
 0x703   : > { %v5327_v8 = vld [vmem:[%s9377_s24 + $0xa0] sm:$0xff] }
 0x704   : > { %v5988_v13 = vpop.permute.xlu1 %5987 }
 0x705   : > { %v6344_v9 = vpop.permute.xlu0 %6343  ;;  %7003 = vrot.lane.b32.xlu1 %v16762_v22, %s9310_s25  ;;  %v6539_v61 = vsel %vm1567_vm5, %v6509_v6, %v5988_v13  ;;  %v16782_v13 = vld [vmem:[#allocation55_spill] sm:$0xff]  ;;  %v16784_v22 = vld [vmem:[#allocation126_spill] sm:$0xff] }
 0x706   : > { %v6627_v7 = vsel %vm1660_vm8, %v6597_v43, %v6344_v9  ;;  %7001 = vrot.lane.b32.xlu0 %v16763_v32, %s9310_s25  ;;  %v6421_v43 = vsel %vm1443_vm1, %v5327_v8, %v16782_v13  ;;  %v16785_v32 = vld [vmem:[#allocation188_spill] sm:$0xff]  ;;  %v16806_v13 = vld [vmem:[#allocation166_spill] sm:$0xff] }
 0x707   : > { %9132 = vmatprep.mubr.msk.f32.mxu1 %vm1696_vm9, %v6627_v7  ;;  %v6451_v7 = vsel %vm1474_vm2, %v6421_v43, %v16783_v51  ;;  %v16807_v43 = vld [vmem:[#allocation164_spill] sm:$0xff] }
 0x708   : > { %v5990_v37 = vpop.permute.xlu1 %5989  ;;  %v6481_v60 = vsel %vm1505_vm3, %v6451_v7, %v16786_v30 }
 0x709   : > { %v6346_v31 = vpop.permute.xlu0 %6345  ;;  %7007 = vrot.lane.b32.xlu1 %v16764_v38, %s9310_s25  ;;  %v6540_v21 = vsel %vm1567_vm5, %v6510_v62, %v5990_v37  ;;  %v16799_v62 = vld [vmem:[#allocation204_spill] sm:$0xff] }
 0x70a   : > { %v6628_v12 = vsel %vm1660_vm8, %v6598_v11, %v6346_v31  ;;  %7005 = vrot.lane.b32.xlu0 %v16765_v52, %s9310_s25  ;;  %v16787_v11 = vld [vmem:[#allocation48_spill] sm:$0xff]  ;;  %v16789_v52 = vld [vmem:[#allocation91_spill] sm:$0xff] }
 0x70b   : > { %9133 = vmatmul.mubr.msk.f32.gmra.mrb[46].mxu1 %vm1696_vm9, %v6628_v12  ;;  %v6422_v31 = vsel %vm1443_vm1, %v5328_v41, %v16787_v11  ;;  %v16788_v12 = vld [vmem:[#allocation203_spill] sm:$0xff] }
 0x70c   : > { %v6110_v63 = vpop.permute.xlu1 %6109  ;;  %v6452_v38 = vsel %vm1474_vm2, %v6422_v31, %v16788_v12  ;;  %v16810_v31 = vld [vmem:[#allocation15_spill] sm:$0xff] }
 0x70d   : > { %v6108_v49 = vpop.permute.xlu0 %6107  ;;  %7011 = vrot.lane.b32.xlu1 %v16768_v10, %s9310_s25  ;;  %v6570_v46 = vsel %vm1598_vm6, %v6540_v21, %v6110_v63  ;;  %v6511_v63 = vsel %vm1536_vm4, %v6481_v60, %v16789_v52  ;;  %v16802_v21 = vld [vmem:[#allocation167_spill] sm:$0xff]  ;;  %v16809_v60 = vld [vmem:[#allocation92_spill] sm:$0xff] }
 0x70e   : > { %7009 = vrot.lane.b32.xlu0 %v16769_v14, %s9310_s25  ;;  %v6569_v4 = vsel %vm1598_vm6, %v6539_v61, %v6108_v49  ;;  %v16792_v49 = vld [vmem:[#allocation21_spill] sm:$0xff]  ;;  %v16797_v61 = vld [vmem:[#allocation51_spill] sm:$0xff] }
 0x70f   : > { %v6482_v54 = vsel %vm1505_vm3, %v6452_v38, %v16792_v49 }
 0x710   : > { %v6230_v40 = vpop.permute.xlu1 %6229 }
 0x711   : > { %v6228_v45 = vpop.permute.xlu0 %6227  ;;  %7015 = vrot.lane.b32.xlu1 %v16774_v0, %s9310_s25  ;;  %v6600_v57 = vsel %vm1629_vm7, %v6570_v46, %v6230_v40  ;;  %v6512_v40 = vsel %vm1536_vm4, %v6482_v54, %v16793_v59  ;;  %v16812_v54 = vld [vmem:[#allocation32_spill] sm:$0xff]  ;;  %v5332_v59 = vld [vmem:[%s9377_s24 + $0xc8] sm:$0xff] }
 0x712   : > { %7013 = vrot.lane.b32.xlu0 %v16775_v25, %s9310_s25  ;;  %v6599_v19 = vsel %vm1629_vm7, %v6569_v4, %v6228_v45  ;;  %v16795_v45 = vld [vmem:[#allocation127_spill] sm:$0xff]  ;;  %v5329_v25 = vld [vmem:[%s9377_s24 + $0xb0] sm:$0xff] }
 0x714   : > { %v5992_v28 = vpop.permute.xlu1 %5991 }
 0x715   : > { %v6348_v44 = vpop.permute.xlu0 %6347  ;;  %7019 = vrot.lane.b32.xlu1 %v16778_v34, %s9310_s25  ;;  %v6541_v3 = vsel %vm1567_vm5, %v6511_v63, %v5992_v28  ;;  %v16798_v28 = vld [vmem:[#allocation116_spill] sm:$0xff]  ;;  %v16800_v34 = vld [vmem:[#allocation174_spill] sm:$0xff] }
 0x716   : > { %v6629_v39 = vsel %vm1660_vm8, %v6599_v19, %v6348_v44  ;;  %7017 = vrot.lane.b32.xlu0 %v16779_v27, %s9310_s25  ;;  %v6423_v19 = vsel %vm1443_vm1, %v5329_v25, %v16798_v28  ;;  %v16801_v27 = vld [vmem:[#allocation101_spill] sm:$0xff] }
 0x717   : > { %9135 = vmatprep.mubr.msk.f32.mxu1 %vm1696_vm9, %v6629_v39  ;;  %v6453_v39 = vsel %vm1474_vm2, %v6423_v19, %v16799_v62  ;;  %v16822_v28 = vld [vmem:[#allocation209_spill] sm:$0xff]  ;;  %v16823_v19 = vld [vmem:[#allocation160_spill] sm:$0xff] }
 0x718   : > { %v5994_v48 = vpop.permute.xlu1 %5993  ;;  %v6483_v46 = vsel %vm1505_vm3, %v6453_v39, %v16802_v21 }
 0x719   : > { %v6350_v55 = vpop.permute.xlu0 %6349  ;;  %7023 = vrot.lane.b32.xlu1 %v16780_v2, %s9310_s25  ;;  %v6542_v15 = vsel %vm1567_vm5, %v6512_v40, %v5994_v48  ;;  %v16815_v40 = vld [vmem:[#allocation23_spill] sm:$0xff] }
 0x71a   : > { %v6630_v5 = vsel %vm1660_vm8, %v6600_v57, %v6350_v55  ;;  %7021 = vrot.lane.b32.xlu0 %v16781_v36, %s9310_s25  ;;  %v16803_v57 = vld [vmem:[#allocation70_spill] sm:$0xff]  ;;  %v16805_v36 = vld [vmem:[#allocation93_spill] sm:$0xff] }
 0x71b   : > { %9136 = vmatmul.mubr.msk.f32.gmra.mrb[48].mxu1 %vm1696_vm9, %v6630_v5  ;;  %v6424_v55 = vsel %vm1443_vm1, %v5330_v18, %v16803_v57  ;;  %v16804_v5 = vld [vmem:[#allocation79_spill] sm:$0xff] }
 0x71c   : > { %v6114_v58 = vpop.permute.xlu1 %6113  ;;  %v6454_v2 = vsel %vm1474_vm2, %v6424_v55, %v16804_v5  ;;  %v16826_v55 = vld [vmem:[#allocation191_spill] sm:$0xff] }
 0x71d   : > { %v6112_v9 = vpop.permute.xlu0 %6111  ;;  %7027 = vrot.lane.b32.xlu1 %v16784_v22, %s9310_s25  ;;  %v6572_v20 = vsel %vm1598_vm6, %v6542_v15, %v6114_v58  ;;  %v6513_v58 = vsel %vm1536_vm4, %v6483_v46, %v16805_v36  ;;  %v16818_v15 = vld [vmem:[#allocation71_spill] sm:$0xff]  ;;  %v16825_v46 = vld [vmem:[#allocation94_spill] sm:$0xff] }
 0x71e   : > { %7025 = vrot.lane.b32.xlu0 %v16785_v32, %s9310_s25  ;;  %v6571_v1 = vsel %vm1598_vm6, %v6541_v3, %v6112_v9  ;;  %v16808_v9 = vld [vmem:[#allocation73_spill] sm:$0xff] }
 0x71f   : > { %v6484_v41 = vsel %vm1505_vm3, %v6454_v2, %v16808_v9  ;;  %v16813_v3 = vld [vmem:[#allocation165_spill] sm:$0xff] }
 0x720   : > { %v6234_v37 = vpop.permute.xlu1 %6233 }
 0x721   : > { %v6232_v47 = vpop.permute.xlu0 %6231  ;;  %7031 = vrot.lane.b32.xlu1 %v16790_v35, %s9310_s25  ;;  %v6602_v6 = vsel %vm1629_vm7, %v6572_v20, %v6234_v37  ;;  %v6514_v37 = vsel %vm1536_vm4, %v6484_v41, %v16809_v60  ;;  %v16828_v41 = vld [vmem:[#allocation19_spill] sm:$0xff]  ;;  %v5334_v60 = vld [vmem:[%s9377_s24 + $0xd8] sm:$0xff] }
 0x722   : > { %7029 = vrot.lane.b32.xlu0 %v16791_v50, %s9310_s25  ;;  %v6601_v14 = vsel %vm1629_vm7, %v6571_v1, %v6232_v47  ;;  %v16811_v47 = vld [vmem:[#allocation207_spill] sm:$0xff]  ;;  %v5331_v50 = vld [vmem:[%s9377_s24 + $0xc0] sm:$0xff] }
 0x724   : > { %v5996_v10 = vpop.permute.xlu1 %5995 }
 0x725   : > { %v6352_v42 = vpop.permute.xlu0 %6351  ;;  %7035 = vrot.lane.b32.xlu1 %v16794_v56, %s9310_s25  ;;  %v6543_v51 = vsel %vm1567_vm5, %v6513_v58, %v5996_v10  ;;  %v16814_v10 = vld [vmem:[#allocation194_spill] sm:$0xff]  ;;  %v16816_v56 = vld [vmem:[#allocation39_spill] sm:$0xff] }
 0x726   : > { %v6631_v53 = vsel %vm1660_vm8, %v6601_v14, %v6352_v42  ;;  %7033 = vrot.lane.b32.xlu0 %v16795_v45, %s9310_s25  ;;  %v6425_v14 = vsel %vm1443_vm1, %v5331_v50, %v16814_v10  ;;  %v16817_v45 = vld [vmem:[#allocation36_spill] sm:$0xff]  ;;  %v16838_v10 = vld [vmem:[#allocation103_spill] sm:$0xff] }
 0x727   : > { %9138 = vmatprep.mubr.msk.f32.mxu1 %vm1696_vm9, %v6631_v53  ;;  %v6455_v53 = vsel %vm1474_vm2, %v6425_v14, %v16815_v40  ;;  %v16839_v14 = vld [vmem:[#allocation212_spill] sm:$0xff] }
 0x728   : > { %v5998_v23 = vpop.permute.xlu1 %5997  ;;  %v6485_v20 = vsel %vm1505_vm3, %v6455_v53, %v16818_v15 }
 0x729   : > { %v6354_v0 = vpop.permute.xlu0 %6353  ;;  %7039 = vrot.lane.b32.xlu1 %v16796_v33, %s9310_s25  ;;  %v6544_v12 = vsel %vm1567_vm5, %v6514_v37, %v5998_v23  ;;  %v16831_v37 = vld [vmem:[#allocation117_spill] sm:$0xff] }
 0x72a   : > { %v6632_v24 = vsel %vm1660_vm8, %v6602_v6, %v6354_v0  ;;  %7037 = vrot.lane.b32.xlu0 %v16797_v61, %s9310_s25  ;;  %v16819_v6 = vld [vmem:[#allocation76_spill] sm:$0xff]  ;;  %v16821_v61 = vld [vmem:[#allocation95_spill] sm:$0xff] }
 0x72b   : > { %9139 = vmatmul.mubr.msk.f32.gmra.mrb[50].mxu1 %vm1696_vm9, %v6632_v24  ;;  %v6426_v0 = vsel %vm1443_vm1, %v5332_v59, %v16819_v6  ;;  %v16820_v24 = vld [vmem:[#allocation180_spill] sm:$0xff] }
 0x72c   : > { %v6118_v4 = vpop.permute.xlu1 %6117  ;;  %v6456_v33 = vsel %vm1474_vm2, %v6426_v0, %v16820_v24  ;;  %v16842_v0 = vld [vmem:[#allocation154_spill] sm:$0xff] }
 0x72d   : > { %v6116_v44 = vpop.permute.xlu0 %6115  ;;  %7043 = vrot.lane.b32.xlu1 %v16800_v34, %s9310_s25  ;;  %v6574_v38 = vsel %vm1598_vm6, %v6544_v12, %v6118_v4  ;;  %v6515_v4 = vsel %vm1536_vm4, %v6485_v20, %v16821_v61  ;;  %v16834_v12 = vld [vmem:[#allocation102_spill] sm:$0xff]  ;;  %v16841_v20 = vld [vmem:[#allocation96_spill] sm:$0xff] }
 0x72e   : > { %7041 = vrot.lane.b32.xlu0 %v16801_v27, %s9310_s25  ;;  %v6573_v7 = vsel %vm1598_vm6, %v6543_v51, %v6116_v44  ;;  %v16824_v44 = vld [vmem:[#allocation146_spill] sm:$0xff]  ;;  %s9186_s25 = smul.u32 60, %s16899_s13 }
 0x72f   : > { %v6486_v18 = vsel %vm1505_vm3, %v6456_v33, %v16824_v44  ;;  %v16829_v51 = vld [vmem:[#allocation162_spill] sm:$0xff]  ;;  %v16844_v44 = vld [vmem:[#allocation145_spill] sm:$0xff] }
 0x730   : > { %v6238_v48 = vpop.permute.xlu1 %6237 }
 0x731   : > { %v6236_v8 = vpop.permute.xlu0 %6235  ;;  %7107 = vrot.lane.b32.xlu1 %v16806_v13, %s9311_s26  ;;  %v6604_v63 = vsel %vm1629_vm7, %v6574_v38, %v6238_v48  ;;  %v6516_v48 = vsel %vm1536_vm4, %v6486_v18, %v16825_v46  ;;  %v16845_v18 = vld [vmem:[#allocation147_spill] sm:$0xff]  ;;  %v16847_v46 = vld [vmem:[#allocation202_spill] sm:$0xff] }
 0x732   : > { %7105 = vrot.lane.b32.xlu0 %v16807_v43, %s9311_s26  ;;  %v6603_v32 = vsel %vm1629_vm7, %v6573_v7, %v6236_v8  ;;  %v16827_v8 = vld [vmem:[#allocation137_spill] sm:$0xff]  ;;  %v5333_v43 = vld [vmem:[%s9377_s24 + $0xd0] sm:$0xff] }
 0x734   : > { %v6000_v22 = vpop.permute.xlu1 %5999 }
 0x735   : > { %v6356_v30 = vpop.permute.xlu0 %6355  ;;  %7111 = vrot.lane.b32.xlu1 %v16810_v31, %s9311_s26  ;;  %v6545_v62 = vsel %vm1567_vm5, %v6515_v4, %v6000_v22  ;;  %v16830_v22 = vld [vmem:[#allocation125_spill] sm:$0xff]  ;;  %v16832_v31 = vld [vmem:[#allocation20_spill] sm:$0xff] }
 0x736   : > { %v6633_v11 = vsel %vm1660_vm8, %v6603_v32, %v6356_v30  ;;  %7109 = vrot.lane.b32.xlu0 %v16811_v47, %s9311_s26  ;;  %v6427_v32 = vsel %vm1443_vm1, %v5333_v43, %v16830_v22  ;;  %v16833_v47 = vld [vmem:[#allocation211_spill] sm:$0xff]  ;;  %v16852_v43 = vld [vmem:[#allocation128_spill] sm:$0xff] }
 0x737   : > { %9141 = vmatprep.mubr.msk.f32.mxu1 %vm1696_vm9, %v6633_v11  ;;  %v6457_v11 = vsel %vm1474_vm2, %v6427_v32, %v16831_v37 }
 0x738   : > { %v6002_v52 = vpop.permute.xlu1 %6001  ;;  %v6487_v38 = vsel %vm1505_vm3, %v6457_v11, %v16834_v12  ;;  %v16856_v11 = vld [vmem:[#allocation213_spill] sm:$0xff] }
 0x739   : > { %v6358_v35 = vpop.permute.xlu0 %6357  ;;  %7115 = vrot.lane.b32.xlu1 %v16812_v54, %s9311_s26  ;;  %v6546_v5 = vsel %vm1567_vm5, %v6516_v48, %v6002_v52 }
 0x73a   : > { %v6634_v49 = vsel %vm1660_vm8, %v6604_v63, %v6358_v35  ;;  %7113 = vrot.lane.b32.xlu0 %v16813_v3, %s9311_s26  ;;  %v16835_v63 = vld [vmem:[#allocation201_spill] sm:$0xff] }
 0x73b   : > { %9142 = vmatmul.mubr.msk.f32.gmra.mrb[52].mxu1 %vm1696_vm9, %v6634_v49  ;;  %v6428_v35 = vsel %vm1443_vm1, %v5334_v60, %v16835_v63  ;;  %v16836_v49 = vld [vmem:[#allocation72_spill] sm:$0xff]  ;;  %v16837_v3 = vld [vmem:[#allocation97_spill] sm:$0xff] }
 0x73c   : > { %v6122_v1 = vpop.permute.xlu1 %6121  ;;  %v6458_v54 = vsel %vm1474_vm2, %v6428_v35, %v16836_v49 }
 0x73d   : > { %v6120_v42 = vpop.permute.xlu0 %6119  ;;  %7119 = vrot.lane.b32.xlu1 %v16816_v56, %s9311_s26  ;;  %v6576_v2 = vsel %vm1598_vm6, %v6546_v5, %v6122_v1  ;;  %v6517_v1 = vsel %vm1536_vm4, %v6487_v38, %v16837_v3  ;;  %v16849_v5 = vld [vmem:[#allocation143_spill] sm:$0xff] }
 0x73e   : > { %7117 = vrot.lane.b32.xlu0 %v16817_v45, %s9311_s26  ;;  %v6575_v39 = vsel %vm1598_vm6, %v6545_v62, %v6120_v42  ;;  %v16840_v42 = vld [vmem:[#allocation210_spill] sm:$0xff]  ;;  %v9268_v62 = vld [vmem:[%s9377_s24 + $0xe8] sm:$0xff] }
 0x73f   : > { %v6488_v59 = vsel %vm1505_vm3, %v6458_v54, %v16840_v42  ;;  %v16859_v42 = vld [vmem:[#allocation168_spill] sm:$0xff] }
 0x740   : > { %v6242_v23 = vpop.permute.xlu1 %6241 }
 0x741   : > { %v6240_v25 = vpop.permute.xlu0 %6239  ;;  %7123 = vrot.lane.b32.xlu1 %v16822_v28, %s9311_s26  ;;  %v6606_v58 = vsel %vm1629_vm7, %v6576_v2, %v6242_v23  ;;  %v6518_v23 = vsel %vm1536_vm4, %v6488_v59, %v16841_v20  ;;  %v16862_v20 = vld [vmem:[#allocation140_spill] sm:$0xff] }
 0x742   : > { %7121 = vrot.lane.b32.xlu0 %v16823_v19, %s9311_s26  ;;  %v6605_v27 = vsel %vm1629_vm7, %v6575_v39, %v6240_v25  ;;  %v16843_v25 = vld [vmem:[#allocation4_spill] sm:$0xff]  ;;  %v16846_v39 = vld [vmem:[#allocation77_spill] sm:$0xff] }
 0x744   : > { %v6004_v34 = vpop.permute.xlu1 %6003 }
 0x745   : > { %v6360_v21 = vpop.permute.xlu0 %6359  ;;  %7127 = vrot.lane.b32.xlu1 %v16826_v55, %s9311_s26  ;;  %v6547_v40 = vsel %vm1567_vm5, %v6517_v1, %v6004_v34  ;;  %v6430_v34 = vsel %vm1443_vm1, %v9268_v62, %v16846_v39  ;;  %v16858_v1 = vld [vmem:[#allocation50_spill] sm:$0xff] }
 0x746   : > { %v6635_v57 = vsel %vm1660_vm8, %v6605_v27, %v6360_v21  ;;  %7125 = vrot.lane.b32.xlu0 %v16827_v8, %s9311_s26  ;;  %v9269_v21 = vld [vmem:[%s9377_s24 + $0xe0] sm:$0xff]  ;;  %s184_s24 = smul.u32 30, %s9292_s12 }
 0x747   : > { %9144 = vmatprep.mubr.msk.f32.mxu1 %vm1696_vm9, %v6635_v57  ;;  %v6429_v48 = vsel %vm1443_vm1, %v9269_v21, %v16847_v46  ;;  %v16848_v57 = vld [vmem:[#allocation189_spill] sm:$0xff] }
 0x748   : > { %v6006_v36 = vpop.permute.xlu1 %6005  ;;  %v6460_v55 = vsel %vm1474_vm2, %v6430_v34, %v16848_v57  ;;  %v6459_v2 = vsel %vm1474_vm2, %v6429_v48, %v16849_v5  ;;  %v16867_v34 = vld [vmem:[#allocation26_spill] sm:$0xff]  ;;  %v16868_v46 = vld [vmem:[#allocation53_spill] sm:$0xff]  ;;  %p187_p6 = scmp.lt.s32.totalorder %s184_s24, 59 }
 0x749   : > { %v6362_v13 = vpop.permute.xlu0 %6361  ;;  %7131 = vrot.lane.b32.xlu1 %v16828_v41, %s9311_s26  ;;  %v6548_v24 = vsel %vm1567_vm5, %v6518_v23, %v6006_v36  ;;  %v16850_v36 = vld [vmem:[#allocation131_spill] sm:$0xff] }
 0x74a   : > { %v6636_v9 = vsel %vm1660_vm8, %v6606_v58, %v6362_v13  ;;  %7129 = vrot.lane.b32.xlu0 %v16829_v51, %s9311_s26  ;;  %v6490_v58 = vsel %vm1505_vm3, %v6460_v55, %v16850_v36  ;;  %v16851_v13 = vld [vmem:[#allocation12_spill] sm:$0xff]  ;;  %v16869_v55 = vld [vmem:[#allocation54_spill] sm:$0xff]  ;;  %s16901_s24 = smov (!%p187_p6, %s184_s24), 59 }
 0x74b   : > { %9145 = vmatmul.mubr.msk.f32.gmra.mrb[54].mxu1 %vm1696_vm9, %v6636_v9  ;;  %v16853_v9 = vld [vmem:[#allocation52_spill] sm:$0xff]  ;;  %s190_s12 = sadd.s32 %s9186_s25, %s16901_s24 }
 0x74c   : > { %v6126_v7 = vpop.permute.xlu1 %6125  ;;  %v6489_v41 = vsel %vm1505_vm3, %v6459_v2, %v16853_v9  ;;  %v16871_v9 = vld [vmem:[#allocation114_spill] sm:$0xff]  ;;  %s7690_s13 = sshll.u32 %s190_s12, 3 }
 0x74d   : > { %v6124_v30 = vpop.permute.xlu0 %6123  ;;  %7135 = vrot.lane.b32.xlu1 %v16832_v31, %s9311_s26  ;;  %v6578_v33 = vsel %vm1598_vm6, %v6548_v24, %v6126_v7  ;;  %v16854_v7 = vld [vmem:[#allocation98_spill] sm:$0xff]  ;;  %v16857_v31 = vld [vmem:[#allocation183_spill] sm:$0xff]  ;;  %s15417_s22 = scalar_lea.vmem %s15594_s3, %s7690_s13 }
 0x74e   : > { %7133 = vrot.lane.b32.xlu0 %v16833_v47, %s9311_s26  ;;  %v6577_v53 = vsel %vm1598_vm6, %v6547_v40, %v6124_v30  ;;  %v6520_v22 = vsel %vm1536_vm4, %v6490_v58, %v16854_v7  ;;  %v16855_v30 = vld [vmem:[#allocation99_spill] sm:$0xff]  ;;  %v16870_v58 = vld [vmem:[#allocation113_spill] sm:$0xff]  ;;  %v16872_v7 = vld [vmem:[#allocation28_spill] sm:$0xff] }
 0x74f   : > { %v6519_v60 = vsel %vm1536_vm4, %v6489_v41, %v16855_v30  ;;  %v16873_v30 = vld [vmem:[#allocation144_spill] sm:$0xff] }
 0x750   : > { %v6246_v52 = vpop.permute.xlu1 %6245 }
 0x751   : > { %v6244_v50 = vpop.permute.xlu0 %6243  ;;  %7139 = vrot.lane.b32.xlu1 %v16838_v10, %s9311_s26  ;;  %v6608_v4 = vsel %vm1629_vm7, %v6578_v33, %v6246_v52  ;;  %v16864_v33 = vld [vmem:[#allocation170_spill] sm:$0xff] }
 0x752   : > { %7137 = vrot.lane.b32.xlu0 %v16839_v14, %s9311_s26  ;;  %v6607_v45 = vsel %vm1629_vm7, %v6577_v53, %v6244_v50 }
 0x754   : > { %v6008_v56 = vpop.permute.xlu1 %6007 }
 0x755   : > { %v6364_v15 = vpop.permute.xlu0 %6363  ;;  %7143 = vrot.lane.b32.xlu1 %v16842_v0, %s9311_s26  ;;  %v6549_v47 = vsel %vm1567_vm5, %v6519_v60, %v6008_v56  ;;  %v16861_v56 = vld [vmem:[#allocation109_spill] sm:$0xff] }
 0x756   : > { %v6637_v6 = vsel %vm1660_vm8, %v6607_v45, %v6364_v15  ;;  %7141 = vrot.lane.b32.xlu0 %v16843_v25, %s9311_s26 }
 0x757   : > { %9147 = vmatprep.mubr.msk.f32.mxu1 %vm1696_vm9, %v6637_v6 }
 0x758   : > { %v6010_v61 = vpop.permute.xlu1 %6009 }
 0x759   : > { %v6366_v28 = vpop.permute.xlu0 %6365  ;;  %7147 = vrot.lane.b32.xlu1 %v16844_v44, %s9311_s26  ;;  %v6550_v37 = vsel %vm1567_vm5, %v6520_v22, %v6010_v61 }
 0x75a   : > { %v6638_v19 = vsel %vm1660_vm8, %v6608_v4, %v6366_v28  ;;  %7145 = vrot.lane.b32.xlu0 %v16845_v18, %s9311_s26  ;;  %v16865_v28 = vld [vmem:[#allocation7_spill] sm:$0xff]  ;;  %v16866_v18 = vld [vmem:[#allocation25_spill] sm:$0xff] }
 0x75b   : > { %9148 = vmatmul.mubr.msk.f32.gmra.mrb[56].mxu1 %vm1696_vm9, %v6638_v19 }
 0x75c   : > { %v6130_v27 = vpop.permute.xlu1 %6129 }
 0x75d   : > { %v6128_v8 = vpop.permute.xlu0 %6127  ;;  %7151 = vrot.lane.b32.xlu1 %v16851_v13, %s9311_s26  ;;  %v6580_v12 = vsel %vm1598_vm6, %v6550_v37, %v6130_v27 }
 0x75e   : > { %7149 = vrot.lane.b32.xlu0 %v16852_v43, %s9311_s26  ;;  %v6579_v38 = vsel %vm1598_vm6, %v6549_v47, %v6128_v8 }
 0x760   : > { %v6250_v51 = vpop.permute.xlu1 %6249 }
 0x761   : > { %v6248_v32 = vpop.permute.xlu0 %6247  ;;  %7155 = vrot.lane.b32.xlu1 %v16856_v11, %s9311_s26  ;;  %v6610_v52 = vsel %vm1629_vm7, %v6580_v12, %v6250_v51  ;;  %v16874_v11 = vld [vmem:[#allocation57_spill] sm:$0xff] }
 0x762   : > { %7153 = vrot.lane.b32.xlu0 %v16857_v31, %s9311_s26  ;;  %v6609_v35 = vsel %vm1629_vm7, %v6579_v38, %v6248_v32  ;;  %v16875_v12 = vld [vmem:[#allocation9_spill] sm:$0xff] }
 0x764   : > { %v6370_v63 = vpop.permute.xlu1 %6369 }
 0x765   : > { %v6640_v50 = vsel %vm1660_vm8, %v6610_v52, %v6370_v63  ;;  %v6368_v49 = vpop.permute.xlu0 %6367  ;;  %7159 = vrot.lane.b32.xlu1 %v14495_v29, %s9311_s26  ;;  %v16860_v29 = vld [vmem:[#allocation108_spill] sm:$0xff] }
 0x766   : > { %v6639_v54 = vsel %vm1660_vm8, %v6609_v35, %v6368_v49  ;;  %7157 = vrot.lane.b32.xlu0 %v14499_v26, %s9311_s26 }
 0x767   : > { %9150 = vmatprep.mubr.msk.f32.mxu1 %vm1696_vm9, %v6639_v54 }
 0x768   : > { %9151 = vmatmul.mubr.msk.f32.gmra.mrb[58].mxu1 %vm1696_vm9, %v6640_v50  ;;  %v6988_v3 = vpop.permute.xlu1 %6987  ;;  %v16876_v50 = vld [vmem:[#allocation29_spill] sm:$0xff] }
 0x769   : > { %v15142_v10 = vsel %vm1443_vm1, %v16858_v1, %v6988_v3  ;;  %v6986_v14 = vpop.permute.xlu0 %6985  ;;  %7163 = vrot.lane.b32.xlu1 %v14514_v16, %s9311_s26  ;;  %v16863_v16 = vld [vmem:[#allocation141_spill] sm:$0xff]  ;;  %v16877_v3 = vld [vmem:[#allocation30_spill] sm:$0xff] }
 0x76a   : > { %v15146_v59 = vsel %vm1443_vm1, %v16859_v42, %v6986_v14  ;;  %7161 = vrot.lane.b32.xlu0 %v14519_v17, %s9311_s26  ;;  %v16878_v42 = vld [vmem:[#allocation60_spill] sm:$0xff] }
 0x76c   : > { %v6992_v26 = vpop.permute.xlu1 %6991 }
 0x76d   : > { %v15154_v40 = vsel %vm1443_vm1, %v16860_v29, %v6992_v26  ;;  %v6990_v53 = vpop.permute.xlu0 %6989 }
 0x76e   : > { %v15158_v45 = vsel %vm1443_vm1, %v16861_v56, %v6990_v53  ;;  %v16879_v53 = vld [vmem:[#allocation61_spill] sm:$0xff] }
 0x770   : > { %v6996_v15 = vpop.permute.xlu1 %6995 }
 0x771   : > { %v15162_v23 = vsel %vm1443_vm1, %v16862_v20, %v6996_v15  ;;  %v6994_v6 = vpop.permute.xlu0 %6993  ;;  %v16880_v20 = vld [vmem:[#allocation119_spill] sm:$0xff] }
 0x772   : > { %v15166_v0 = vsel %vm1443_vm1, %v16863_v16, %v6994_v6  ;;  %v9110_v17 = vpop.f32.mrb[30].mxu1 }
 0x773   : > { %v6806_v25 = vpop.f32.mrb[31].mxu1  ;;  %7227 = vrot.lane.b32.xlu1 %v9110_v17, %s9312_s27  ;;  %v16881_v17 = vld [vmem:[#allocation31_spill] sm:$0xff] }
 0x774   : > { %7225 = vrot.lane.b32.xlu0 %v6806_v25, %s9312_s27  ;;  %v7000_v24 = vpop.permute.xlu1 %6999 }
 0x775   : > { %v15172_v61 = vsel %vm1443_vm1, %v16864_v33, %v7000_v24  ;;  %v6998_v4 = vpop.permute.xlu0 %6997 }
 0x776   : > { %v15176_v19 = vsel %vm1443_vm1, %v16865_v28, %v6998_v4  ;;  %v16882_v28 = vld [vmem:[#allocation149_spill] sm:$0xff] }
 0x778   : > { %v7004_v44 = vpop.permute.xlu1 %7003 }
 0x779   : > { %v15180_v62 = vsel %vm1443_vm1, %v16866_v18, %v7004_v44  ;;  %v7002_v39 = vpop.permute.xlu0 %7001 }
 0x77a   : > { %v15184_v27 = vsel %vm1443_vm1, %v16867_v34, %v7002_v39  ;;  %v16883_v39 = vld [vmem:[#allocation62_spill] sm:$0xff] }
 0x77c   : > { %v7008_v21 = vpop.permute.xlu1 %7007 }
 0x77d   : > { %v15188_v48 = vsel %vm1443_vm1, %v16868_v46, %v7008_v21  ;;  %v7006_v57 = vpop.permute.xlu0 %7005  ;;  %v16884_v46 = vld [vmem:[#allocation11_spill] sm:$0xff] }
 0x77e   : > { %v15192_v8 = vsel %vm1443_vm1, %v16869_v55, %v7006_v57  ;;  %v9113_v5 = vpop.f32.mrb[32].mxu1 }
 0x77f   : > { %v6816_v2 = vpop.f32.mrb[33].mxu1  ;;  %7231 = vrot.lane.b32.xlu1 %v9113_v5, %s9312_s27  ;;  %v16885_v5 = vld [vmem:[#allocation120_spill] sm:$0xff] }
 0x780   : > { %7229 = vrot.lane.b32.xlu0 %v6816_v2, %s9312_s27  ;;  %v7012_v36 = vpop.permute.xlu1 %7011 }
 0x781   : > { %v15198_v13 = vsel %vm1443_vm1, %v16870_v58, %v7012_v36  ;;  %v7010_v43 = vpop.permute.xlu0 %7009  ;;  %v16886_v58 = vld [vmem:[#allocation34_spill] sm:$0xff] }
 0x782   : > { %v15202_v41 = vsel %vm1443_vm1, %v16871_v9, %v7010_v43 }
 0x784   : > { %v7016_v51 = vpop.permute.xlu1 %7015 }
 0x785   : > { %v15206_v22 = vsel %vm1443_vm1, %v16872_v7, %v7016_v51  ;;  %v7014_v32 = vpop.permute.xlu0 %7013  ;;  %v16887_v51 = vld [vmem:[#allocation150_spill] sm:$0xff] }
 0x786   : > { %v15210_v60 = vsel %vm1443_vm1, %v16873_v30, %v7014_v32 }
 0x788   : > { %v7020_v37 = vpop.permute.xlu1 %7019 }
 0x789   : > { %v15214_v31 = vsel %vm1443_vm1, %v16874_v11, %v7020_v37  ;;  %v7018_v47 = vpop.permute.xlu0 %7017 }
 0x78a   : > { %v15218_v38 = vsel %vm1443_vm1, %v16875_v12, %v7018_v47  ;;  %v9116_v52 = vpop.f32.mrb[34].mxu1 }
 0x78b   : > { %v6826_v63 = vpop.f32.mrb[35].mxu1  ;;  %7235 = vrot.lane.b32.xlu1 %v9116_v52, %s9312_s27 }
 0x78c   : > { %7233 = vrot.lane.b32.xlu0 %v6826_v63, %s9312_s27  ;;  %v7024_v35 = vpop.permute.xlu1 %7023 }
 0x78d   : > { %v15224_v49 = vsel %vm1443_vm1, %v16876_v50, %v7024_v35  ;;  %v7022_v54 = vpop.permute.xlu0 %7021 }
 0x78e   : > { %v15228_v1 = vsel %vm1443_vm1, %v16877_v3, %v7022_v54 }
 0x790   : > { %v7028_v14 = vpop.permute.xlu1 %7027 }
 0x791   : > { %v15232_v26 = vsel %vm1443_vm1, %v16878_v42, %v7028_v14  ;;  %v7026_v29 = vpop.permute.xlu0 %7025 }
 0x792   : > { %v15236_v56 = vsel %vm1443_vm1, %v16879_v53, %v7026_v29 }
 0x794   : > { %v7032_v15 = vpop.permute.xlu1 %7031 }
 0x795   : > { %v15240_v6 = vsel %vm1443_vm1, %v16880_v20, %v7032_v15  ;;  %v7030_v16 = vpop.permute.xlu0 %7029 }
 0x796   : > { %v15244_v25 = vsel %vm1443_vm1, %v16881_v17, %v7030_v16  ;;  %v9119_v24 = vpop.f32.mrb[36].mxu1 }
 0x797   : > { %v6836_v33 = vpop.f32.mrb[37].mxu1  ;;  %7239 = vrot.lane.b32.xlu1 %v9119_v24, %s9312_s27 }
 0x798   : > { %7237 = vrot.lane.b32.xlu0 %v6836_v33, %s9312_s27  ;;  %v7036_v4 = vpop.permute.xlu1 %7035 }
 0x799   : > { %v15250_v44 = vsel %vm1443_vm1, %v16882_v28, %v7036_v4  ;;  %v7034_v18 = vpop.permute.xlu0 %7033 }
 0x79a   : > { %v15254_v34 = vsel %vm1443_vm1, %v16883_v39, %v7034_v18 }
 0x79c   : > { %v7040_v21 = vpop.permute.xlu1 %7039 }
 0x79d   : > { %v15258_v57 = vsel %vm1443_vm1, %v16884_v46, %v7040_v21  ;;  %v7038_v55 = vpop.permute.xlu0 %7037 }
 0x79e   : > { %v15262_v2 = vsel %vm1443_vm1, %v16885_v5, %v7038_v55 }
 0x7a0   : > { %v7044_v36 = vpop.permute.xlu1 %7043 }
 0x7a1   : > { %v15266_v43 = vsel %vm1443_vm1, %v16886_v58, %v7044_v36  ;;  %v7042_v9 = vpop.permute.xlu0 %7041 }
 0x7a2   : > { %v15270_v7 = vsel %vm1443_vm1, %v16887_v51, %v7042_v9  ;;  %v9122_v32 = vpop.f32.mrb[38].mxu1 }
 0x7a3   : > { %v6846_v30 = vpop.f32.mrb[39].mxu1  ;;  %7243 = vrot.lane.b32.xlu1 %v9122_v32, %s9312_s27 }
 0x7a4   : > { %7241 = vrot.lane.b32.xlu0 %v6846_v30, %s9312_s27  ;;  %v15274_v37 = vpop.permute.xlu1 %7107 }
 0x7a5   : > { %v15276_v11 = vpop.permute.xlu0 %7105 }
 0x7a8   : > { %v7112_v47 = vpop.permute.xlu1 %7111 }
 0x7a9   : > { %v15280_v12 = vsel %vm1474_vm2, %v15154_v40, %v7112_v47  ;;  %v7110_v52 = vpop.permute.xlu0 %7109 }
 0x7aa   : > { %v15284_v63 = vsel %vm1474_vm2, %v15158_v45, %v7110_v52 }
 0x7ac   : > { %v7116_v35 = vpop.permute.xlu1 %7115 }
 0x7ad   : > { %v15288_v50 = vsel %vm1474_vm2, %v15162_v23, %v7116_v35  ;;  %v7114_v54 = vpop.permute.xlu0 %7113 }
 0x7ae   : > { %v15292_v3 = vsel %vm1474_vm2, %v15166_v0, %v7114_v54  ;;  %v9125_v14 = vpop.f32.mrb[40].mxu1 }
 0x7af   : > { %v6856_v42 = vpop.f32.mrb[41].mxu1  ;;  %7247 = vrot.lane.b32.xlu1 %v9125_v14, %s9312_s27 }
 0x7b0   : > { %7245 = vrot.lane.b32.xlu0 %v6856_v42, %s9312_s27  ;;  %v7120_v40 = vpop.permute.xlu1 %7119 }
 0x7b1   : > { %v15298_v45 = vsel %vm1474_vm2, %v15172_v61, %v7120_v40  ;;  %v7118_v29 = vpop.permute.xlu0 %7117 }
 0x7b2   : > { %v15302_v23 = vsel %vm1474_vm2, %v15176_v19, %v7118_v29  ;;  %v7345_v29 = vsel %vm1474_vm2, %v15146_v59, %v15276_v11 }
 0x7b4   : > { %v7124_v53 = vpop.permute.xlu1 %7123 }
 0x7b5   : > { %v15306_v0 = vsel %vm1474_vm2, %v15180_v62, %v7124_v53  ;;  %v7122_v15 = vpop.permute.xlu0 %7121 }
 0x7b6   : > { %v15310_v20 = vsel %vm1474_vm2, %v15184_v27, %v7122_v15 }
 0x7b8   : > { %v7128_v16 = vpop.permute.xlu1 %7127 }
 0x7b9   : > { %v15314_v61 = vsel %vm1474_vm2, %v15188_v48, %v7128_v16  ;;  %v7126_v17 = vpop.permute.xlu0 %7125 }
 0x7ba   : > { %v15318_v19 = vsel %vm1474_vm2, %v15192_v8, %v7126_v17 }
 0x7bc   : > { %v7132_v24 = vpop.permute.xlu1 %7131 }
 0x7bd   : > { %v15322_v62 = vsel %vm1474_vm2, %v15198_v13, %v7132_v24  ;;  %v7130_v33 = vpop.permute.xlu0 %7129 }
 0x7be   : > { %v15326_v27 = vsel %vm1474_vm2, %v15202_v41, %v7130_v33  ;;  %v9128_v4 = vpop.f32.mrb[42].mxu1 }
 0x7bf   : > { %v6866_v28 = vpop.f32.mrb[43].mxu1  ;;  %7251 = vrot.lane.b32.xlu1 %v9128_v4, %s9312_s27 }
 0x7c0   : > { %7249 = vrot.lane.b32.xlu0 %v6866_v28, %s9312_s27  ;;  %v7136_v48 = vpop.permute.xlu1 %7135 }
 0x7c1   : > { %v15332_v8 = vsel %vm1474_vm2, %v15206_v22, %v7136_v48  ;;  %v7134_v18 = vpop.permute.xlu0 %7133 }
 0x7c2   : > { %v15336_v13 = vsel %vm1474_vm2, %v15210_v60, %v7134_v18 }
 0x7c4   : > { %v7140_v39 = vpop.permute.xlu1 %7139 }
 0x7c5   : > { %v15340_v41 = vsel %vm1474_vm2, %v15214_v31, %v7140_v39  ;;  %v7138_v21 = vpop.permute.xlu0 %7137 }
 0x7c6   : > { %v15344_v46 = vsel %vm1474_vm2, %v15218_v38, %v7138_v21 }
 0x7c8   : > { %v7144_v55 = vpop.permute.xlu1 %7143 }
 0x7c9   : > { %v15348_v22 = vsel %vm1474_vm2, %v15224_v49, %v7144_v55  ;;  %v7142_v5 = vpop.permute.xlu0 %7141 }
 0x7ca   : > { %v15352_v60 = vsel %vm1474_vm2, %v15228_v1, %v7142_v5 }
 0x7cc   : > { %v7148_v36 = vpop.permute.xlu1 %7147 }
 0x7cd   : > { %v15356_v31 = vsel %vm1474_vm2, %v15232_v26, %v7148_v36  ;;  %v7146_v58 = vpop.permute.xlu0 %7145 }
 0x7ce   : > { %v15360_v38 = vsel %vm1474_vm2, %v15236_v56, %v7146_v58  ;;  %v9131_v9 = vpop.f32.mrb[44].mxu1 }
 0x7cf   : > { %v6876_v51 = vpop.f32.mrb[45].mxu1  ;;  %7255 = vrot.lane.b32.xlu1 %v9131_v9, %s9312_s27 }
 0x7d0   : > { %7253 = vrot.lane.b32.xlu0 %v6876_v51, %s9312_s27  ;;  %v7152_v49 = vpop.permute.xlu1 %7151 }
 0x7d1   : > { %v15366_v1 = vsel %vm1474_vm2, %v15240_v6, %v7152_v49  ;;  %v7150_v32 = vpop.permute.xlu0 %7149 }
 0x7d2   : > { %v15370_v26 = vsel %vm1474_vm2, %v15244_v25, %v7150_v32 }
 0x7d4   : > { %v7156_v30 = vpop.permute.xlu1 %7155 }
 0x7d5   : > { %v15374_v56 = vsel %vm1474_vm2, %v15250_v44, %v7156_v30  ;;  %v7154_v47 = vpop.permute.xlu0 %7153 }
 0x7d6   : > { %v15378_v52 = vsel %vm1474_vm2, %v15254_v34, %v7154_v47 }
 0x7d8   : > { %v7160_v35 = vpop.permute.xlu1 %7159 }
 0x7d9   : > { %v15383_v6 = vsel %vm1474_vm2, %v15258_v57, %v7160_v35  ;;  %v7158_v54 = vpop.permute.xlu0 %7157 }
 0x7da   : > { %v15387_v25 = vsel %vm1474_vm2, %v15262_v2, %v7158_v54  ;;  %v15403_v2 = vld [vmem:[%s15593_s2] ss:$0 sm:$0xff] }
 0x7dc   : > { %v7164_v14 = vpop.permute.xlu1 %7163 }
 0x7dd   : > { %v15391_v44 = vsel %vm1474_vm2, %v15266_v43, %v7164_v14  ;;  %v7162_v42 = vpop.permute.xlu0 %7161  ;;  %v7346_v43 = vsel %vm1474_vm2, %v15142_v10, %v15274_v37 }
 0x7de   : > { %v15396_v34 = vsel %vm1474_vm2, %v15270_v7, %v7162_v42  ;;  %v9134_v40 = vpop.f32.mrb[46].mxu1 }
 0x7df   : > { %v6886_v57 = vpop.f32.mrb[47].mxu1  ;;  %7259 = vrot.lane.b32.xlu1 %v9134_v40, %s9312_s27 }
 0x7e0   : > { %7257 = vrot.lane.b32.xlu0 %v6886_v57, %s9312_s27 }
 0x7e5   : > { %v7228_v7 = vpop.permute.xlu1 %7227 }
 0x7e6   : > { %v7376_v53 = vsel %vm1505_vm3, %v7346_v43, %v7228_v7  ;;  %v7226_v15 = vpop.permute.xlu0 %7225 }
 0x7e7   : > { %v7413_v16 = vadd.f32 %v15403_v2, %v7376_v53  ;;  %v7375_v17 = vsel %vm1505_vm3, %v7345_v29, %v7226_v15 }
 0x7e8   : > { %v7412_v10 = vadd.f32 %v15403_v2, %v7375_v17 }
 0x7e9   : > { %v7443_v37 = vmax.f32 %v7413_v16, 0.0 }
 0x7ea   : > { %v7442_v24 = vmax.f32 %v7412_v10, 0.0 }
 0x7eb   : > { %7473 = vst.msk [vmem:[%s15417_s22 + $0x8] sm:$0xff] %vm1536_vm4, %v7443_v37 }
 0x7ec   : > { %7472 = vst.msk [vmem:[%s15417_s22] sm:$0xff] %vm1536_vm4, %v7442_v24 }
 0x7ee   : > { %v9137_v59 = vpop.f32.mrb[48].mxu1 }
 0x7ef   : > { %v6896_v11 = vpop.f32.mrb[49].mxu1  ;;  %7263 = vrot.lane.b32.xlu1 %v9137_v59, %s9312_s27 }
 0x7f0   : > { %7261 = vrot.lane.b32.xlu0 %v6896_v11, %s9312_s27 }
 0x7f1   : > { %v7232_v33 = vpop.permute.xlu1 %7231 }
 0x7f2   : > { %v7378_v4 = vsel %vm1505_vm3, %v15280_v12, %v7232_v33  ;;  %v7230_v28 = vpop.permute.xlu0 %7229 }
 0x7f3   : > { %v7415_v48 = vadd.f32 %v15403_v2, %v7378_v4  ;;  %v7377_v18 = vsel %vm1505_vm3, %v15284_v63, %v7230_v28 }
 0x7f4   : > { %v7414_v39 = vadd.f32 %v15403_v2, %v7377_v18 }
 0x7f5   : > { %v7445_v21 = vmax.f32 %v7415_v48, 0.0 }
 0x7f6   : > { %v7444_v55 = vmax.f32 %v7414_v39, 0.0 }
 0x7f7   : > { %7475 = vst.msk [vmem:[%s15417_s22 + $0x18] sm:$0xff] %vm1536_vm4, %v7445_v21 }
 0x7f8   : > { %7474 = vst.msk [vmem:[%s15417_s22 + $0x10] sm:$0xff] %vm1536_vm4, %v7444_v55 }
 0x7fd   : > { %v7236_v5 = vpop.permute.xlu1 %7235 }
 0x7fe   : > { %v7380_v12 = vsel %vm1505_vm3, %v15288_v50, %v7236_v5  ;;  %v9140_v36 = vpop.f32.mrb[50].mxu1  ;;  %v7234_v58 = vpop.permute.xlu0 %7233 }
 0x7ff   : > { %v7417_v9 = vadd.f32 %v15403_v2, %v7380_v12  ;;  %v7379_v63 = vsel %vm1505_vm3, %v15292_v3, %v7234_v58  ;;  %v6906_v51 = vpop.f32.mrb[51].mxu1  ;;  %7267 = vrot.lane.b32.xlu1 %v9140_v36, %s9312_s27 }
 0x800   : > { %v7416_v49 = vadd.f32 %v15403_v2, %v7379_v63  ;;  %7265 = vrot.lane.b32.xlu0 %v6906_v51, %s9312_s27 }
 0x801   : > { %v7447_v32 = vmax.f32 %v7417_v9, 0.0 }
 0x802   : > { %v7446_v30 = vmax.f32 %v7416_v49, 0.0 }
 0x803   : > { %7477 = vst.msk [vmem:[%s15417_s22 + $0x28] sm:$0xff] %vm1536_vm4, %v7447_v32 }
 0x804   : > { %7476 = vst.msk [vmem:[%s15417_s22 + $0x20] sm:$0xff] %vm1536_vm4, %v7446_v30 }
 0x809   : > { %v7240_v50 = vpop.permute.xlu1 %7239 }
 0x80a   : > { %v7382_v47 = vsel %vm1505_vm3, %v15298_v45, %v7240_v50  ;;  %v7238_v3 = vpop.permute.xlu0 %7237 }
 0x80b   : > { %v7419_v35 = vadd.f32 %v15403_v2, %v7382_v47  ;;  %v7381_v54 = vsel %vm1505_vm3, %v15302_v23, %v7238_v3 }
 0x80c   : > { %v7418_v14 = vadd.f32 %v15403_v2, %v7381_v54 }
 0x80d   : > { %v7449_v42 = vmax.f32 %v7419_v35, 0.0 }
 0x80e   : > { %v7448_v40 = vmax.f32 %v7418_v14, 0.0  ;;  %v9143_v57 = vpop.f32.mrb[52].mxu1 }
 0x80f   : > { %7479 = vst.msk [vmem:[%s15417_s22 + $0x38] sm:$0xff] %vm1536_vm4, %v7449_v42  ;;  %v6916_v43 = vpop.f32.mrb[53].mxu1  ;;  %7271 = vrot.lane.b32.xlu1 %v9143_v57, %s9312_s27 }
 0x810   : > { %7478 = vst.msk [vmem:[%s15417_s22 + $0x30] sm:$0xff] %vm1536_vm4, %v7448_v40  ;;  %7269 = vrot.lane.b32.xlu0 %v6916_v43, %s9312_s27 }
 0x815   : > { %v7244_v45 = vpop.permute.xlu1 %7243 }
 0x816   : > { %v7384_v23 = vsel %vm1505_vm3, %v15306_v0, %v7244_v45  ;;  %v7242_v7 = vpop.permute.xlu0 %7241 }
 0x817   : > { %v7421_v29 = vadd.f32 %v15403_v2, %v7384_v23  ;;  %v7383_v53 = vsel %vm1505_vm3, %v15310_v20, %v7242_v7 }
 0x818   : > { %v7420_v15 = vadd.f32 %v15403_v2, %v7383_v53 }
 0x819   : > { %v7451_v16 = vmax.f32 %v7421_v29, 0.0 }
 0x81a   : > { %v7450_v17 = vmax.f32 %v7420_v15, 0.0 }
 0x81b   : > { %7481 = vst.msk [vmem:[%s15417_s22 + $0x48] sm:$0xff] %vm1536_vm4, %v7451_v16 }
 0x81c   : > { %7480 = vst.msk [vmem:[%s15417_s22 + $0x40] sm:$0xff] %vm1536_vm4, %v7450_v17 }
 0x81e   : > { %v9146_v10 = vpop.f32.mrb[54].mxu1 }
 0x81f   : > { %v6926_v37 = vpop.f32.mrb[55].mxu1  ;;  %7275 = vrot.lane.b32.xlu1 %v9146_v10, %s9312_s27 }
 0x820   : > { %7273 = vrot.lane.b32.xlu0 %v6926_v37, %s9312_s27 }
 0x821   : > { %v7248_v0 = vpop.permute.xlu1 %7247 }
 0x822   : > { %v7386_v20 = vsel %vm1505_vm3, %v15314_v61, %v7248_v0  ;;  %v7246_v24 = vpop.permute.xlu0 %7245 }
 0x823   : > { %v7423_v59 = vadd.f32 %v15403_v2, %v7386_v20  ;;  %v7385_v11 = vsel %vm1505_vm3, %v15318_v19, %v7246_v24 }
 0x824   : > { %v7422_v33 = vadd.f32 %v15403_v2, %v7385_v11 }
 0x825   : > { %v7453_v4 = vmax.f32 %v7423_v59, 0.0 }
 0x826   : > { %v7452_v28 = vmax.f32 %v7422_v33, 0.0 }
 0x827   : > { %7483 = vst.msk [vmem:[%s15417_s22 + $0x58] sm:$0xff] %vm1536_vm4, %v7453_v4 }
 0x828   : > { %7482 = vst.msk [vmem:[%s15417_s22 + $0x50] sm:$0xff] %vm1536_vm4, %v7452_v28 }
 0x82e   : > { %v9149_v48 = vpop.f32.mrb[56].mxu1 }
 0x82f   : > { %v6936_v18 = vpop.f32.mrb[57].mxu1  ;;  %7279 = vrot.lane.b32.xlu1 %v9149_v48, %s9312_s27 }
 0x830   : > { %7277 = vrot.lane.b32.xlu0 %v6936_v18, %s9312_s27 }
 0x831   : > { %v7252_v61 = vpop.permute.xlu1 %7251 }
 0x832   : > { %v7388_v19 = vsel %vm1505_vm3, %v15322_v62, %v7252_v61  ;;  %v7250_v39 = vpop.permute.xlu0 %7249 }
 0x833   : > { %v7425_v21 = vadd.f32 %v15403_v2, %v7388_v19  ;;  %v7387_v55 = vsel %vm1505_vm3, %v15326_v27, %v7250_v39 }
 0x834   : > { %v7424_v5 = vadd.f32 %v15403_v2, %v7387_v55 }
 0x835   : > { %v7455_v12 = vmax.f32 %v7425_v21, 0.0 }
 0x836   : > { %v7454_v36 = vmax.f32 %v7424_v5, 0.0 }
 0x837   : > { %7485 = vst.msk [vmem:[%s15417_s22 + $0x68] sm:$0xff] %vm1536_vm4, %v7455_v12 }
 0x838   : > { %7484 = vst.msk [vmem:[%s15417_s22 + $0x60] sm:$0xff] %vm1536_vm4, %v7454_v36 }
 0x83b   : > { %v9152_v58 = vpop.f32.mrb[58].mxu1 }
 0x83c   : > { %v6946_v9 = vpop.f32.mrb[59].mxu1  ;;  %7283 = vrot.lane.b32.xlu1 %v9152_v58, %s9312_s27 }
 0x83d   : > { %7281 = vrot.lane.b32.xlu0 %v6946_v9, %s9312_s27 }
 0x841   : > { %v7256_v62 = vpop.permute.xlu1 %7255 }
 0x842   : > { %v7390_v27 = vsel %vm1505_vm3, %v15332_v8, %v7256_v62  ;;  %v7254_v63 = vpop.permute.xlu0 %7253 }
 0x843   : > { %v7427_v51 = vadd.f32 %v15403_v2, %v7390_v27  ;;  %v7389_v49 = vsel %vm1505_vm3, %v15336_v13, %v7254_v63 }
 0x844   : > { %v7426_v32 = vadd.f32 %v15403_v2, %v7389_v49 }
 0x845   : > { %v7457_v30 = vmax.f32 %v7427_v51, 0.0 }
 0x846   : > { %v7456_v50 = vmax.f32 %v7426_v32, 0.0 }
 0x847   : > { %7487 = vst.msk [vmem:[%s15417_s22 + $0x78] sm:$0xff] %vm1536_vm4, %v7457_v30 }
 0x848   : > { %7486 = vst.msk [vmem:[%s15417_s22 + $0x70] sm:$0xff] %vm1536_vm4, %v7456_v50 }
 0x851   : > { %v7260_v47 = vpop.permute.xlu1 %7259 }
 0x852   : > { %v7392_v8 = vsel %vm1505_vm3, %v15340_v41, %v7260_v47  ;;  %v7258_v3 = vpop.permute.xlu0 %7257 }
 0x853   : > { %v7429_v35 = vadd.f32 %v15403_v2, %v7392_v8  ;;  %v7391_v13 = vsel %vm1505_vm3, %v15344_v46, %v7258_v3 }
 0x854   : > { %v7428_v54 = vadd.f32 %v15403_v2, %v7391_v13 }
 0x855   : > { %v7459_v14 = vmax.f32 %v7429_v35, 0.0 }
 0x856   : > { %v7458_v42 = vmax.f32 %v7428_v54, 0.0 }
 0x857   : > { %7489 = vst.msk [vmem:[%s15417_s22 + $0x88] sm:$0xff] %vm1536_vm4, %v7459_v14 }
 0x858   : > { %7488 = vst.msk [vmem:[%s15417_s22 + $0x80] sm:$0xff] %vm1536_vm4, %v7458_v42 }
 0x861   : > { %v7264_v40 = vpop.permute.xlu1 %7263 }
 0x862   : > { %v7394_v41 = vsel %vm1505_vm3, %v15348_v22, %v7264_v40  ;;  %v7262_v57 = vpop.permute.xlu0 %7261 }
 0x863   : > { %v7431_v43 = vadd.f32 %v15403_v2, %v7394_v41  ;;  %v7393_v46 = vsel %vm1505_vm3, %v15352_v60, %v7262_v57 }
 0x864   : > { %v7430_v45 = vadd.f32 %v15403_v2, %v7393_v46 }
 0x865   : > { %v7461_v23 = vmax.f32 %v7431_v43, 0.0 }
 0x866   : > { %v7460_v7 = vmax.f32 %v7430_v45, 0.0 }
 0x867   : > { %7491 = vst.msk [vmem:[%s15417_s22 + $0x98] sm:$0xff] %vm1536_vm4, %v7461_v23 }
 0x868   : > { %7490 = vst.msk [vmem:[%s15417_s22 + $0x90] sm:$0xff] %vm1536_vm4, %v7460_v7 }
 0x871   : > { %v7268_v29 = vpop.permute.xlu1 %7267 }
 0x872   : > { %v7396_v22 = vsel %vm1505_vm3, %v15356_v31, %v7268_v29  ;;  %v7266_v53 = vpop.permute.xlu0 %7265 }
 0x873   : > { %v7433_v15 = vadd.f32 %v15403_v2, %v7396_v22  ;;  %v7395_v60 = vsel %vm1505_vm3, %v15360_v38, %v7266_v53 }
 0x874   : > { %v7432_v16 = vadd.f32 %v15403_v2, %v7395_v60 }
 0x875   : > { %v7463_v17 = vmax.f32 %v7433_v15, 0.0 }
 0x876   : > { %v7462_v10 = vmax.f32 %v7432_v16, 0.0 }
 0x877   : > { %7493 = vst.msk [vmem:[%s15417_s22 + $0xa8] sm:$0xff] %vm1536_vm4, %v7463_v17 }
 0x878   : > { %7492 = vst.msk [vmem:[%s15417_s22 + $0xa0] sm:$0xff] %vm1536_vm4, %v7462_v10 }
 0x881   : > { %v7272_v37 = vpop.permute.xlu1 %7271 }
 0x882   : > { %v7398_v31 = vsel %vm1505_vm3, %v15366_v1, %v7272_v37  ;;  %v7270_v0 = vpop.permute.xlu0 %7269 }
 0x883   : > { %v7435_v20 = vadd.f32 %v15403_v2, %v7398_v31  ;;  %v7397_v38 = vsel %vm1505_vm3, %v15370_v26, %v7270_v0 }
 0x884   : > { %v7434_v24 = vadd.f32 %v15403_v2, %v7397_v38 }
 0x885   : > { %v7465_v59 = vmax.f32 %v7435_v20, 0.0 }
 0x886   : > { %v7464_v11 = vmax.f32 %v7434_v24, 0.0 }
 0x887   : > { %7495 = vst.msk [vmem:[%s15417_s22 + $0xb8] sm:$0xff] %vm1536_vm4, %v7465_v59 }
 0x888   : > { %7494 = vst.msk [vmem:[%s15417_s22 + $0xb0] sm:$0xff] %vm1536_vm4, %v7464_v11 }
 0x891   : > { %v7276_v33 = vpop.permute.xlu1 %7275 }
 0x892   : > { %v7400_v1 = vsel %vm1505_vm3, %v15374_v56, %v7276_v33  ;;  %v7274_v4 = vpop.permute.xlu0 %7273 }
 0x893   : > { %v7437_v28 = vadd.f32 %v15403_v2, %v7400_v1  ;;  %v7399_v26 = vsel %vm1505_vm3, %v15378_v52, %v7274_v4 }
 0x894   : > { %v7436_v48 = vadd.f32 %v15403_v2, %v7399_v26 }
 0x895   : > { %v7467_v18 = vmax.f32 %v7437_v28, 0.0 }
 0x896   : > { %v7466_v61 = vmax.f32 %v7436_v48, 0.0 }
 0x897   : > { %7497 = vst.msk [vmem:[%s15417_s22 + $0xc8] sm:$0xff] %vm1536_vm4, %v7467_v18 }
 0x898   : > { %7496 = vst.msk [vmem:[%s15417_s22 + $0xc0] sm:$0xff] %vm1536_vm4, %v7466_v61 }
 0x8a1   : > { %v7280_v19 = vpop.permute.xlu1 %7279 }
 0x8a2   : > { %v7402_v56 = vsel %vm1505_vm3, %v15383_v6, %v7280_v19  ;;  %v7278_v39 = vpop.permute.xlu0 %7277 }
 0x8a3   : > { %v7439_v21 = vadd.f32 %v15403_v2, %v7402_v56  ;;  %v7401_v52 = vsel %vm1505_vm3, %v15387_v25, %v7278_v39 }
 0x8a4   : > { %v7438_v55 = vadd.f32 %v15403_v2, %v7401_v52 }
 0x8a5   : > { %v7469_v5 = vmax.f32 %v7439_v21, 0.0 }
 0x8a6   : > { %v7468_v12 = vmax.f32 %v7438_v55, 0.0 }
 0x8a7   : > { %7499 = vst.msk [vmem:[%s15417_s22 + $0xd8] sm:$0xff] %vm1536_vm4, %v7469_v5 }
 0x8a8   : > { %7498 = vst.msk [vmem:[%s15417_s22 + $0xd0] sm:$0xff] %vm1536_vm4, %v7468_v12 }
 0x8ae   : > { %v7284_v36 = vpop.permute.xlu1 %7283 }
 0x8af   : > { %v7404_v6 = vsel %vm1505_vm3, %v15391_v44, %v7284_v36  ;;  %v7282_v58 = vpop.permute.xlu0 %7281 }
 0x8b0   : > { %v7441_v9 = vadd.f32 %v15403_v2, %v7404_v6  ;;  %v7403_v62 = vsel %vm1505_vm3, %v15396_v34, %v7282_v58 }
 0x8b1   : > { %v7440_v25 = vadd.f32 %v15403_v2, %v7403_v62 }
 0x8b2   : > { %v7471_v27 = vmax.f32 %v7441_v9, 0.0 }
 0x8b3   : > { %v7470_v63 = vmax.f32 %v7440_v25, 0.0 }
 0x8b4   : > { %7501 = vst.msk [vmem:[%s15417_s22 + $0xe8] sm:$0xff] %vm1536_vm4, %v7471_v27 }
 0x8b5   : > { %7500 = vst.msk [vmem:[%s15417_s22 + $0xe0] sm:$0xff] %vm1536_vm4, %v7470_v63 }
 0x8b6 PF: > { %s13_s16 = sadd.s32 1, %s9308_s16   ;;  %s16888_s12 = smov %s9300_s14 }
 0x8b7   : > { %p10_p7 = scmp.ge.s32.totalorder %s13_s16, 6   ;;  %s16889_s13 = smov %s9304_s15 }
 0x8b8   : > { %s16890_s14 = smov %s16893_s17  ;;  %s16891_s15 = smov %s16897_s18 }
 0x8b9   :  { %12 = sbr.rel (!%p10_p7) target bundleno = 3 (0x3), region = 98 }

</bundles_post_ra>
